<compile_context>
chip_gen: v5e
topology: v5e:2x2
jax: 0.10.0
libtpu: 0.0.40
codegen_flags: <defaults>
</compile_context>

<pallas_src>
import functools

import jax
import jax.numpy as jnp
import numpy as np
from jax.experimental import pallas as pl
from jax.experimental.pallas import tpu as pltpu

EPS = 1e-5
LANE = 128


# ---------------------------------------------------------------------------
# Kernels
# ---------------------------------------------------------------------------
def _conv3x3_stats_kernel(x_ref, halo_ref, scale_ref, shift_ref, w_ref,
                          y_ref, stats_ref, pad_s, acc_s, *, apply_prelude):
    """One (image, row-block) tile of a 3x3 / stride-1 / pad-1 conv.

    x_ref     : (1, TH, W, Cin)   f32  main rows of the conv input
    halo_ref  : (1, 2, W, Cin)    f32  row above / row below the tile (clamped)
    scale_ref : (1, Cp)           f32  per-channel affine applied before the
    shift_ref : (1, Cp)           f32  conv (folded bn1 + relu) when
                                       apply_prelude=True, unused otherwise
    w_ref     : (9, Cp, Cp)       bf16 tap weights, tap t = kh*3+kw, (cin,cout)
    y_ref     : (1, TH, W, Cp)    f32  conv output tile
    stats_ref : (1, 1, 2, Cp)     f32  per-tile (sum, sum of squares)
    pad_s     : (TH+2, W+2, Cp)   bf16 scratch: spatially padded conv input
    acc_s     : (TH*W, Cp)        f32  scratch: conv accumulator
    """
    j = pl.program_id(1)
    nb = pl.num_programs(1)
    _, TH, W, Cin = x_ref.shape
    Cp = w_ref.shape[-1]

    def prelude(v):
        if apply_prelude:            # fused bn1 (folded scale/shift) + relu
            v = jnp.maximum(v * scale_ref[...] + shift_ref[...], 0.0)
        return v

    # Every cell of pad_s that the conv reads is (re)written each grid step,
    # so the kernel is safe under any megacore partitioning of the grid.
    if Cin < Cp:
        pad_s[...] = jnp.zeros_like(pad_s)   # also clears the channel padding
    else:
        zc = jnp.zeros((TH + 2, 1, Cp), jnp.bfloat16)
        pad_s[:, 0:1, :] = zc                # left / right spatial padding
        pad_s[:, W + 1:W + 2, :] = zc

    halo = halo_ref[...]                                   # (1, 2, W, Cin)
    top = jnp.where(j == 0, 0.0, prelude(halo[0, 0]))      # image top padding
    bot = jnp.where(j == nb - 1, 0.0, prelude(halo[0, 1])) # image bottom padding
    pad_s[0:1, 1:W + 1, :Cin] = top.astype(jnp.bfloat16)[None]
    pad_s[TH + 1:TH + 2, 1:W + 1, :Cin] = bot.astype(jnp.bfloat16)[None]
    pad_s[1:TH + 1, 1:W + 1, :Cin] = prelude(x_ref[...][0]).astype(jnp.bfloat16)

    # 3x3 conv = 9 shifted-slice matmuls (bf16 operands, f32 accumulation)
    # accumulated into an explicit f32 VMEM scratch (no im2col buffer).
    for kh in range(3):
        for kw in range(3):
            a = pad_s[kh:kh + TH, kw:kw + W, :].reshape(TH * W, Cp)
            contrib = jnp.dot(a, w_ref[kh * 3 + kw],
                              preferred_element_type=jnp.float32)
            if kh == 0 and kw == 0:
                acc_s[...] = contrib
            else:
                acc_s[...] += contrib

    acc = acc_s[...]
    # One-pass BN statistics: per-channel sum and sum of squares for this tile.
    s = jnp.sum(acc, axis=0, keepdims=True)
    sq = jnp.sum(acc * acc, axis=0, keepdims=True)
    stats_ref[...] = jnp.concatenate([s, sq], axis=0).reshape(1, 1, 2, Cp)
    y_ref[...] = acc.reshape(1, TH, W, Cp)


def _bn_residual_relu_kernel(y_ref, x_ref, scale_ref, shift_ref, out_ref):
    """out = relu(bn2(conv2_out) + x), elementwise per tile."""
    C = x_ref.shape[-1]
    h = y_ref[...][0] * scale_ref[...] + shift_ref[...]     # (TH, W, Cp)
    out_ref[...] = jnp.maximum(h[..., :C] + x_ref[...][0], 0.0)[None]


# ---------------------------------------------------------------------------
# Wrapper-side helpers (JAX glue)
# ---------------------------------------------------------------------------
def _make_halo(a, row_tile):
    """Rows just above / below each row-tile (clamped at the image border).

    a: (N, H, W, Cc) -> (N*nb, 2, W, Cc); the kernel zeroes the clamped rows
    for the first / last row-tile (they are image padding)."""
    n, h, w, c = a.shape
    nb = h // row_tile
    top_idx = jnp.maximum(jnp.arange(nb) * row_tile - 1, 0)
    bot_idx = jnp.minimum((jnp.arange(nb) + 1) * row_tile, h - 1)
    halo = jnp.stack([a[:, top_idx], a[:, bot_idx]], axis=2)   # (N, nb, 2, W, Cc)
    return halo.reshape(n * nb, 2, w, c)


def _bn_fold(stats, gamma_p, beta_p, count):
    """Reduce per-tile (sum, sumsq) to a folded per-channel scale/shift."""
    total = stats.sum(axis=(0, 1))                 # (2, Cp)
    mean = total[0] / count
    var = total[1] / count - mean * mean           # biased (training-mode) var
    scale = gamma_p * jax.lax.rsqrt(var + EPS)
    shift = beta_p - mean * scale
    return scale.reshape(1, -1), shift.reshape(1, -1)


def _conv_pass(src, halo, scale, shift, w9, *, apply_prelude, row_tile):
    N, H, W, Cin = src.shape
    Cp = w9.shape[-1]
    TH = row_tile
    nb = H // TH
    kernel = functools.partial(_conv3x3_stats_kernel, apply_prelude=apply_prelude)
    return pl.pallas_call(
        kernel,
        grid=(N, nb),
        in_specs=[
            pl.BlockSpec((1, TH, W, Cin), lambda n, j: (n, j, 0, 0)),
            pl.BlockSpec((1, 2, W, Cin), lambda n, j: (n * nb + j, 0, 0, 0)),
            pl.BlockSpec((1, Cp), lambda n, j: (0, 0)),
            pl.BlockSpec((1, Cp), lambda n, j: (0, 0)),
            pl.BlockSpec((9, Cp, Cp), lambda n, j: (0, 0, 0)),
        ],
        out_specs=(
            pl.BlockSpec((1, TH, W, Cp), lambda n, j: (n, j, 0, 0)),
            pl.BlockSpec((1, 1, 2, Cp), lambda n, j: (n, j, 0, 0)),
        ),
        out_shape=(
            jax.ShapeDtypeStruct((N, H, W, Cp), jnp.float32),
            jax.ShapeDtypeStruct((N, nb, 2, Cp), jnp.float32),
        ),
        scratch_shapes=[
            pltpu.VMEM((TH + 2, W + 2, Cp), jnp.bfloat16),   # padded conv input
            pltpu.VMEM((TH * W, Cp), jnp.float32),           # f32 accumulator
        ],
        compiler_params=pltpu.CompilerParams(
            dimension_semantics=("parallel", "parallel")),
    )(src, halo, scale, shift, w9)


@functools.partial(jax.jit, static_argnames=("row_tile",))
def basic_block_pallas(x_nhwc, w1_hwio, g1, b1, w2_hwio, g2, b2, *, row_tile=8):
    N, H, W, C = x_nhwc.shape
    Cp = ((C + LANE - 1) // LANE) * LANE
    TH = min(row_tile, H)
    assert H % TH == 0, "row_tile must divide H"
    nb = H // TH
    count = float(N * H * W)

    x32 = x_nhwc.astype(jnp.float32)

    def pad_c(v):  # pad a per-channel vector to the lane width
        return jnp.pad(v.astype(jnp.float32), (0, Cp - C))

    def prep_w(w_hwio):  # (3,3,C,C) HWIO -> (9, Cp, Cp) bf16, taps (kh, kw)
        w = jnp.pad(w_hwio, ((0, 0), (0, 0), (0, Cp - C), (0, Cp - C)))
        return w.reshape(9, Cp, Cp).astype(jnp.bfloat16)

    zero_aff = jnp.zeros((1, Cp), jnp.float32)

    # Pass 1: conv1 + partial BN1 statistics.
    y1, st1 = _conv_pass(x32, _make_halo(x32, TH), zero_aff, zero_aff,
                         prep_w(w1_hwio), apply_prelude=False, row_tile=TH)
    scale1, shift1 = _bn_fold(st1, pad_c(g1), pad_c(b1), count)

    # Pass 2: fused bn1+relu, conv2 + partial BN2 statistics.
    y2, st2 = _conv_pass(y1, _make_halo(y1, TH), scale1, shift1,
                         prep_w(w2_hwio), apply_prelude=True, row_tile=TH)
    scale2, shift2 = _bn_fold(st2, pad_c(g2), pad_c(b2), count)

    # Pass 3: bn2 + residual add + relu (elementwise, tiled the same way).
    out = pl.pallas_call(
        _bn_residual_relu_kernel,
        grid=(N, nb),
        in_specs=[
            pl.BlockSpec((1, TH, W, Cp), lambda n, j: (n, j, 0, 0)),
            pl.BlockSpec((1, TH, W, C), lambda n, j: (n, j, 0, 0)),
            pl.BlockSpec((1, Cp), lambda n, j: (0, 0)),
            pl.BlockSpec((1, Cp), lambda n, j: (0, 0)),
        ],
        out_specs=pl.BlockSpec((1, TH, W, C), lambda n, j: (n, j, 0, 0)),
        out_shape=jax.ShapeDtypeStruct((N, H, W, C), jnp.float32),
        compiler_params=pltpu.CompilerParams(
            dimension_semantics=("parallel", "parallel")),
    )(y2, x32, scale2, shift2)
    return out


# ---------------------------------------------------------------------------
# Plain-JAX reference (same precision scheme: bf16 conv operands, f32 BN).
# ---------------------------------------------------------------------------
def basic_block_reference(x_nhwc, w1_hwio, g1, b1, w2_hwio, g2, b2):
    def conv(x, w):
        return jax.lax.conv_general_dilated(
            x.astype(jnp.bfloat16), w.astype(jnp.bfloat16),
            window_strides=(1, 1), padding="SAME",
            dimension_numbers=("NHWC", "HWIO", "NHWC"),
            preferred_element_type=jnp.float32)

    def bn(y, g, b):
        mean = y.mean(axis=(0, 1, 2))
        var = y.var(axis=(0, 1, 2))          # biased, training-mode stats
        return (y - mean) * jax.lax.rsqrt(var + EPS) * g + b

    h = jnp.maximum(bn(conv(x_nhwc, w1_hwio), g1, b1), 0.0)
    o = bn(conv(h, w2_hwio), g2, b2) + x_nhwc
    return jnp.maximum(o, 0.0)


if __name__ == "__main__":
    # Small shapes consistent with BasicBlock(inplanes=8, planes=8, stride=1).
    N, C, H, W = 2, 8, 16, 16

    key = jax.random.PRNGKey(0)
    kx, kw1, kw2 = jax.random.split(key, 3)

    # PyTorch conventions: x is NCHW, conv weights are (Cout, Cin, 3, 3).
    x_nchw = jax.random.normal(kx, (N, C, H, W), dtype=jnp.float32)
    w1_oihw = jax.random.normal(kw1, (C, C, 3, 3), dtype=jnp.float32) * 0.1
    w2_oihw = jax.random.normal(kw2, (C, C, 3, 3), dtype=jnp.float32) * 0.1

    # Deterministic, non-trivial BatchNorm affine parameters.
    g1 = 1.0 + 0.10 * jnp.arange(C, dtype=jnp.float32)
    b1 = 0.05 * jnp.arange(C, dtype=jnp.float32)
    g2 = 1.0 - 0.05 * jnp.arange(C, dtype=jnp.float32)
    b2 = -0.02 * jnp.arange(C, dtype=jnp.float32)

    # Glue: NCHW -> NHWC, OIHW -> HWIO.
    x_nhwc = jnp.transpose(x_nchw, (0, 2, 3, 1))
    w1_hwio = jnp.transpose(w1_oihw, (2, 3, 1, 0))
    w2_hwio = jnp.transpose(w2_oihw, (2, 3, 1, 0))

    # row_tile=8 -> 2 row blocks per image: exercises the halo path.
    out_nhwc = basic_block_pallas(x_nhwc, w1_hwio, g1, b1, w2_hwio, g2, b2,
                                  row_tile=8)
    out_nhwc = jax.block_until_ready(out_nhwc)
    out_nchw = jnp.transpose(out_nhwc, (0, 3, 1, 2))  # back to PyTorch layout

    ref = basic_block_reference(x_nhwc, w1_hwio, g1, b1, w2_hwio, g2, b2)
    np.testing.assert_allclose(np.asarray(out_nhwc), np.asarray(ref),
                               rtol=2e-3, atol=2e-3)

    print("KERNEL_OK")
</pallas_src>

<mosaic_0001>
module attributes {stable_mosaic.version = 11 : i64} {
  func.func @_bn_residual_relu_kernel(%arg0: i32, %arg1: i32, %arg2: memref<1x8x16x128xf32, #tpu.memory_space<vmem>>, %arg3: memref<1x8x16x8xf32, #tpu.memory_space<vmem>>, %arg4: memref<1x128xf32, #tpu.memory_space<vmem>>, %arg5: memref<1x128xf32, #tpu.memory_space<vmem>>, %arg6: memref<1x8x16x8xf32, #tpu.memory_space<vmem>>) attributes {dimension_semantics = [#tpu.dimension_semantics<parallel>, #tpu.dimension_semantics<parallel>], iteration_bounds = array<i64: 2, 2>, scalar_prefetch = 0 : i64, scratch_operands = 0 : i64, tpu.core_type = #tpu.core_type<tc>, window_params = [{transform_indices = @transform_0, window_bounds = array<i64: 1, 8, 16, 128>}, {transform_indices = @transform_1, window_bounds = array<i64: 1, 8, 16, 8>}, {pipeline_mode = #tpu.pipeline_mode<synchronous>, transform_indices = @transform_2, window_bounds = array<i64: 1, 128>}, {pipeline_mode = #tpu.pipeline_mode<synchronous>, transform_indices = @transform_3, window_bounds = array<i64: 1, 128>}, {transform_indices = @transform_4, window_bounds = array<i64: 1, 8, 16, 8>}]} {
    %c0 = arith.constant 0 : index
    %c0_0 = arith.constant 0 : index
    %c0_1 = arith.constant 0 : index
    %c0_2 = arith.constant 0 : index
    %0 = vector.load %arg2[%c0, %c0_0, %c0_1, %c0_2] : memref<1x8x16x128xf32, #tpu.memory_space<vmem>>, vector<1x8x16x128xf32>
    %1 = vector.shape_cast %0 : vector<1x8x16x128xf32> to vector<8x16x128xf32>
    %c0_3 = arith.constant 0 : index
    %c0_4 = arith.constant 0 : index
    %2 = vector.load %arg4[%c0_3, %c0_4] : memref<1x128xf32, #tpu.memory_space<vmem>>, vector<1x128xf32>
    %3 = vector.shape_cast %2 : vector<1x128xf32> to vector<1x1x128xf32>
    %4 = vector.broadcast %3 : vector<1x1x128xf32> to vector<8x16x128xf32>
    %5 = arith.mulf %1, %4 : vector<8x16x128xf32>
    %c0_5 = arith.constant 0 : index
    %c0_6 = arith.constant 0 : index
    %6 = vector.load %arg5[%c0_5, %c0_6] : memref<1x128xf32, #tpu.memory_space<vmem>>, vector<1x128xf32>
    %7 = vector.shape_cast %6 : vector<1x128xf32> to vector<1x1x128xf32>
    %8 = vector.broadcast %7 : vector<1x1x128xf32> to vector<8x16x128xf32>
    %9 = arith.addf %5, %8 : vector<8x16x128xf32>
    %10 = vector.extract_strided_slice %9 {offsets = [0, 0, 0], sizes = [8, 16, 8], strides = [1, 1, 1]} : vector<8x16x128xf32> to vector<8x16x8xf32>
    %c0_7 = arith.constant 0 : index
    %c0_8 = arith.constant 0 : index
    %c0_9 = arith.constant 0 : index
    %c0_10 = arith.constant 0 : index
    %11 = vector.load %arg3[%c0_7, %c0_8, %c0_9, %c0_10] : memref<1x8x16x8xf32, #tpu.memory_space<vmem>>, vector<1x8x16x8xf32>
    %12 = vector.shape_cast %11 : vector<1x8x16x8xf32> to vector<8x16x8xf32>
    %13 = arith.addf %10, %12 : vector<8x16x8xf32>
    %cst = arith.constant 0.000000e+00 : f32
    %14 = vector.broadcast %cst : f32 to vector<8x16x8xf32>
    %15 = arith.maximumf %13, %14 : vector<8x16x8xf32>
    %16 = vector.shape_cast %15 : vector<8x16x8xf32> to vector<1x8x16x8xf32>
    %c0_11 = arith.constant 0 : index
    %c0_12 = arith.constant 0 : index
    %c0_13 = arith.constant 0 : index
    %c0_14 = arith.constant 0 : index
    %17 = vector.load %arg6[%c0_11, %c0_12, %c0_13, %c0_14] : memref<1x8x16x8xf32, #tpu.memory_space<vmem>>, vector<1x8x16x8xf32>
    tpu.vector_store %arg6[%c0_11, %c0_12, %c0_13, %c0_14], %16 {strides = array<i32>} : memref<1x8x16x8xf32, #tpu.memory_space<vmem>>, vector<1x8x16x8xf32>,
    return
  }
  func.func @transform_0(%arg0: i32, %arg1: i32) -> (i32, i32, i32, i32) {
    %c0_i32 = arith.constant 0 : i32
    %c0_i32_0 = arith.constant 0 : i32
    %c0_i32_1 = arith.constant 0 : i32
    return %arg0, %arg1, %c0_i32, %c0_i32_0 : i32, i32, i32, i32
  }
  func.func @transform_1(%arg0: i32, %arg1: i32) -> (i32, i32, i32, i32) {
    %c0_i32 = arith.constant 0 : i32
    %c0_i32_0 = arith.constant 0 : i32
    %c0_i32_1 = arith.constant 0 : i32
    return %arg0, %arg1, %c0_i32, %c0_i32_0 : i32, i32, i32, i32
  }
  func.func @transform_2(%arg0: i32, %arg1: i32) -> (i32, i32) {
    %c0_i32 = arith.constant 0 : i32
    %c0_i32_0 = arith.constant 0 : i32
    %c0_i32_1 = arith.constant 0 : i32
    return %c0_i32, %c0_i32_0 : i32, i32
  }
  func.func @transform_3(%arg0: i32, %arg1: i32) -> (i32, i32) {
    %c0_i32 = arith.constant 0 : i32
    %c0_i32_0 = arith.constant 0 : i32
    %c0_i32_1 = arith.constant 0 : i32
    return %c0_i32, %c0_i32_0 : i32, i32
  }
  func.func @transform_4(%arg0: i32, %arg1: i32) -> (i32, i32, i32, i32) {
    %c0_i32 = arith.constant 0 : i32
    %c0_i32_0 = arith.constant 0 : i32
    %c0_i32_1 = arith.constant 0 : i32
    return %arg0, %arg1, %c0_i32, %c0_i32_0 : i32, i32, i32, i32
  }
}

module attributes {stable_mosaic.version = 11 : i64} {
  func.func @_conv3x3_stats_kernel(%arg0: i32, %arg1: i32, %arg2: memref<1x8x16x8xf32, #tpu.memory_space<vmem>>, %arg3: memref<1x2x16x8xf32, #tpu.memory_space<vmem>>, %arg4: memref<1x128xf32, #tpu.memory_space<vmem>>, %arg5: memref<1x128xf32, #tpu.memory_space<vmem>>, %arg6: memref<9x128x128xbf16, #tpu.memory_space<vmem>>, %arg7: memref<1x8x16x128xf32, #tpu.memory_space<vmem>>, %arg8: memref<1x1x2x128xf32, #tpu.memory_space<vmem>>, %arg9: memref<10x18x128xbf16, #tpu.memory_space<vmem>>, %arg10: memref<128x128xf32, #tpu.memory_space<vmem>>) attributes {dimension_semantics = [#tpu.dimension_semantics<parallel>, #tpu.dimension_semantics<parallel>], iteration_bounds = array<i64: 2, 2>, scalar_prefetch = 0 : i64, scratch_operands = 2 : i64, tpu.core_type = #tpu.core_type<tc>, window_params = [{transform_indices = @transform_0, window_bounds = array<i64: 1, 8, 16, 8>}, {transform_indices = @transform_1, window_bounds = array<i64: 1, 2, 16, 8>}, {pipeline_mode = #tpu.pipeline_mode<synchronous>, transform_indices = @transform_2, window_bounds = array<i64: 1, 128>}, {pipeline_mode = #tpu.pipeline_mode<synchronous>, transform_indices = @transform_3, window_bounds = array<i64: 1, 128>}, {pipeline_mode = #tpu.pipeline_mode<synchronous>, transform_indices = @transform_4, window_bounds = array<i64: 9, 128, 128>}, {transform_indices = @transform_5, window_bounds = array<i64: 1, 8, 16, 128>}, {transform_indices = @transform_6, window_bounds = array<i64: 1, 1, 2, 128>}]} {
    %cst = arith.constant 0.000000e+00 : bf16
    %0 = vector.broadcast %cst : bf16 to vector<10x18x128xbf16>
    %c0 = arith.constant 0 : index
    %c0_0 = arith.constant 0 : index
    %c0_1 = arith.constant 0 : index
    %1 = vector.load %arg9[%c0, %c0_0, %c0_1] : memref<10x18x128xbf16, #tpu.memory_space<vmem>>, vector<10x18x128xbf16>
    tpu.vector_store %arg9[%c0, %c0_0, %c0_1], %0 {strides = array<i32>} : memref<10x18x128xbf16, #tpu.memory_space<vmem>>, vector<10x18x128xbf16>,
    %c0_2 = arith.constant 0 : index
    %c0_3 = arith.constant 0 : index
    %c0_4 = arith.constant 0 : index
    %c0_5 = arith.constant 0 : index
    %2 = vector.load %arg3[%c0_2, %c0_3, %c0_4, %c0_5] : memref<1x2x16x8xf32, #tpu.memory_space<vmem>>, vector<1x2x16x8xf32>
    %c0_i32 = arith.constant 0 : i32
    %3 = arith.cmpi eq, %arg1, %c0_i32 : i32
    %4 = vector.extract_strided_slice %2 {offsets = [0, 0, 0, 0], sizes = [1, 1, 16, 8], strides = [1, 1, 1, 1]} : vector<1x2x16x8xf32> to vector<1x1x16x8xf32>
    %5 = vector.shape_cast %4 : vector<1x1x16x8xf32> to vector<16x8xf32>
    %cst_6 = arith.constant 0.000000e+00 : f32
    %6 = vector.broadcast %cst_6 : f32 to vector<16x8xf32>
    %7 = arith.select %3, %6, %5 : vector<16x8xf32>
    %c1_i32 = arith.constant 1 : i32
    %8 = arith.cmpi eq, %arg1, %c1_i32 : i32
    %9 = vector.extract_strided_slice %2 {offsets = [0, 1, 0, 0], sizes = [1, 1, 16, 8], strides = [1, 1, 1, 1]} : vector<1x2x16x8xf32> to vector<1x1x16x8xf32>
    %10 = vector.shape_cast %9 : vector<1x1x16x8xf32> to vector<16x8xf32>
    %cst_7 = arith.constant 0.000000e+00 : f32
    %11 = vector.broadcast %cst_7 : f32 to vector<16x8xf32>
    %12 = arith.select %8, %11, %10 : vector<16x8xf32>
    %13 = arith.truncf %7 : vector<16x8xf32> to vector<16x8xbf16>
    %14 = vector.shape_cast %13 : vector<16x8xbf16> to vector<1x16x8xbf16>
    %c0_8 = arith.constant 0 : index
    %c1 = arith.constant 1 : index
    %c0_9 = arith.constant 0 : index
    %15 = vector.load %arg9[%c0_8, %c1, %c0_9] : memref<10x18x128xbf16, #tpu.memory_space<vmem>>, vector<1x16x8xbf16>
    tpu.vector_store %arg9[%c0_8, %c1, %c0_9], %14 {strides = array<i32>} : memref<10x18x128xbf16, #tpu.memory_space<vmem>>, vector<1x16x8xbf16>,
    %16 = arith.truncf %12 : vector<16x8xf32> to vector<16x8xbf16>
    %17 = vector.shape_cast %16 : vector<16x8xbf16> to vector<1x16x8xbf16>
    %c9 = arith.constant 9 : index
    %c1_10 = arith.constant 1 : index
    %c0_11 = arith.constant 0 : index
    %18 = vector.load %arg9[%c9, %c1_10, %c0_11] : memref<10x18x128xbf16, #tpu.memory_space<vmem>>, vector<1x16x8xbf16>
    tpu.vector_store %arg9[%c9, %c1_10, %c0_11], %17 {strides = array<i32>} : memref<10x18x128xbf16, #tpu.memory_space<vmem>>, vector<1x16x8xbf16>,
    %c0_12 = arith.constant 0 : index
    %c0_13 = arith.constant 0 : index
    %c0_14 = arith.constant 0 : index
    %c0_15 = arith.constant 0 : index
    %19 = vector.load %arg2[%c0_12, %c0_13, %c0_14, %c0_15] : memref<1x8x16x8xf32, #tpu.memory_space<vmem>>, vector<1x8x16x8xf32>
    %20 = vector.shape_cast %19 : vector<1x8x16x8xf32> to vector<8x16x8xf32>
    %21 = arith.truncf %20 : vector<8x16x8xf32> to vector<8x16x8xbf16>
    %c1_16 = arith.constant 1 : index
    %c1_17 = arith.constant 1 : index
    %c0_18 = arith.constant 0 : index
    %22 = vector.load %arg9[%c1_16, %c1_17, %c0_18] : memref<10x18x128xbf16, #tpu.memory_space<vmem>>, vector<8x16x8xbf16>
    tpu.vector_store %arg9[%c1_16, %c1_17, %c0_18], %21 {strides = array<i32>} : memref<10x18x128xbf16, #tpu.memory_space<vmem>>, vector<8x16x8xbf16>,
    %c0_19 = arith.constant 0 : index
    %c0_20 = arith.constant 0 : index
    %c0_21 = arith.constant 0 : index
    %23 = vector.load %arg9[%c0_19, %c0_20, %c0_21] : memref<10x18x128xbf16, #tpu.memory_space<vmem>>, vector<8x16x128xbf16>
    %24 = vector.shape_cast %23 : vector<8x16x128xbf16> to vector<128x128xbf16>
    %c0_22 = arith.constant 0 : index
    %c0_23 = arith.constant 0 : index
    %c0_24 = arith.constant 0 : index
    %25 = vector.load %arg6[%c0_22, %c0_23, %c0_24] : memref<9x128x128xbf16, #tpu.memory_space<vmem>>, vector<1x128x128xbf16>
    %26 = vector.shape_cast %25 : vector<1x128x128xbf16> to vector<128x128xbf16>
    %cst_25 = arith.constant dense<0.000000e+00> : vector<128x128xf32>
    %27 = tpu.matmul %24, %26, %cst_25 {dimension_numbers = #tpu.dot_dimension_numbers<[1], [0], [0], [1], [0, 0, 1, 1], [], []>} : vector<128x128xbf16>, vector<128x128xbf16>, vector<128x128xf32> -> vector<128x128xf32>
    %c0_26 = arith.constant 0 : index
    %c0_27 = arith.constant 0 : index
    %28 = vector.load %arg10[%c0_26, %c0_27] : memref<128x128xf32, #tpu.memory_space<vmem>>, vector<128x128xf32>
    tpu.vector_store %arg10[%c0_26, %c0_27], %27 {strides = array<i32>} : memref<128x128xf32, #tpu.memory_space<vmem>>, vector<128x128xf32>,
    %c0_28 = arith.constant 0 : index
    %c1_29 = arith.constant 1 : index
    %c0_30 = arith.constant 0 : index
    %29 = vector.load %arg9[%c0_28, %c1_29, %c0_30] : memref<10x18x128xbf16, #tpu.memory_space<vmem>>, vector<8x16x128xbf16>
    %30 = vector.shape_cast %29 : vector<8x16x128xbf16> to vector<128x128xbf16>
    %c1_31 = arith.constant 1 : index
    %c0_32 = arith.constant 0 : index
    %c0_33 = arith.constant 0 : index
    %31 = vector.load %arg6[%c1_31, %c0_32, %c0_33] : memref<9x128x128xbf16, #tpu.memory_space<vmem>>, vector<1x128x128xbf16>
    %32 = vector.shape_cast %31 : vector<1x128x128xbf16> to vector<128x128xbf16>
    %cst_34 = arith.constant dense<0.000000e+00> : vector<128x128xf32>
    %33 = tpu.matmul %30, %32, %cst_34 {dimension_numbers = #tpu.dot_dimension_numbers<[1], [0], [0], [1], [0, 0, 1, 1], [], []>} : vector<128x128xbf16>, vector<128x128xbf16>, vector<128x128xf32> -> vector<128x128xf32>
    %c0_35 = arith.constant 0 : index
    %c0_36 = arith.constant 0 : index
    %34 = vector.load %arg10[%c0_35, %c0_36] : memref<128x128xf32, #tpu.memory_space<vmem>>, vector<128x128xf32>
    %35 = arith.addf %34, %33 : vector<128x128xf32>
    %c0_37 = arith.constant 0 : index
    %c0_38 = arith.constant 0 : index
    %36 = vector.load %arg10[%c0_37, %c0_38] : memref<128x128xf32, #tpu.memory_space<vmem>>, vector<128x128xf32>
    tpu.vector_store %arg10[%c0_37, %c0_38], %35 {strides = array<i32>} : memref<128x128xf32, #tpu.memory_space<vmem>>, vector<128x128xf32>,
    %c0_39 = arith.constant 0 : index
    %c2 = arith.constant 2 : index
    %c0_40 = arith.constant 0 : index
    %37 = vector.load %arg9[%c0_39, %c2, %c0_40] : memref<10x18x128xbf16, #tpu.memory_space<vmem>>, vector<8x16x128xbf16>
    %38 = vector.shape_cast %37 : vector<8x16x128xbf16> to vector<128x128xbf16>
    %c2_41 = arith.constant 2 : index
    %c0_42 = arith.constant 0 : index
    %c0_43 = arith.constant 0 : index
    %39 = vector.load %arg6[%c2_41, %c0_42, %c0_43] : memref<9x128x128xbf16, #tpu.memory_space<vmem>>, vector<1x128x128xbf16>
    %40 = vector.shape_cast %39 : vector<1x128x128xbf16> to vector<128x128xbf16>
    %cst_44 = arith.constant dense<0.000000e+00> : vector<128x128xf32>
    %41 = tpu.matmul %38, %40, %cst_44 {dimension_numbers = #tpu.dot_dimension_numbers<[1], [0], [0], [1], [0, 0, 1, 1], [], []>} : vector<128x128xbf16>, vector<128x128xbf16>, vector<128x128xf32> -> vector<128x128xf32>
    %c0_45 = arith.constant 0 : index
    %c0_46 = arith.constant 0 : index
    %42 = vector.load %arg10[%c0_45, %c0_46] : memref<128x128xf32, #tpu.memory_space<vmem>>, vector<128x128xf32>
    %43 = arith.addf %42, %41 : vector<128x128xf32>
    %c0_47 = arith.constant 0 : index
    %c0_48 = arith.constant 0 : index
    %44 = vector.load %arg10[%c0_47, %c0_48] : memref<128x128xf32, #tpu.memory_space<vmem>>, vector<128x128xf32>
    tpu.vector_store %arg10[%c0_47, %c0_48], %43 {strides = array<i32>} : memref<128x128xf32, #tpu.memory_space<vmem>>, vector<128x128xf32>,
    %c1_49 = arith.constant 1 : index
    %c0_50 = arith.constant 0 : index
    %c0_51 = arith.constant 0 : index
    %45 = vector.load %arg9[%c1_49, %c0_50, %c0_51] : memref<10x18x128xbf16, #tpu.memory_space<vmem>>, vector<8x16x128xbf16>
    %46 = vector.shape_cast %45 : vector<8x16x128xbf16> to vector<128x128xbf16>
    %c3 = arith.constant 3 : index
    %c0_52 = arith.constant 0 : index
    %c0_53 = arith.constant 0 : index
    %47 = vector.load %arg6[%c3, %c0_52, %c0_53] : memref<9x128x128xbf16, #tpu.memory_space<vmem>>, vector<1x128x128xbf16>
    %48 = vector.shape_cast %47 : vector<1x128x128xbf16> to vector<128x128xbf16>
    %cst_54 = arith.constant dense<0.000000e+00> : vector<128x128xf32>
    %49 = tpu.matmul %46, %48, %cst_54 {dimension_numbers = #tpu.dot_dimension_numbers<[1], [0], [0], [1], [0, 0, 1, 1], [], []>} : vector<128x128xbf16>, vector<128x128xbf16>, vector<128x128xf32> -> vector<128x128xf32>
    %c0_55 = arith.constant 0 : index
    %c0_56 = arith.constant 0 : index
    %50 = vector.load %arg10[%c0_55, %c0_56] : memref<128x128xf32, #tpu.memory_space<vmem>>, vector<128x128xf32>
    %51 = arith.addf %50, %49 : vector<128x128xf32>
    %c0_57 = arith.constant 0 : index
    %c0_58 = arith.constant 0 : index
    %52 = vector.load %arg10[%c0_57, %c0_58] : memref<128x128xf32, #tpu.memory_space<vmem>>, vector<128x128xf32>
    tpu.vector_store %arg10[%c0_57, %c0_58], %51 {strides = array<i32>} : memref<128x128xf32, #tpu.memory_space<vmem>>, vector<128x128xf32>,
    %c1_59 = arith.constant 1 : index
    %c1_60 = arith.constant 1 : index
    %c0_61 = arith.constant 0 : index
    %53 = vector.load %arg9[%c1_59, %c1_60, %c0_61] : memref<10x18x128xbf16, #tpu.memory_space<vmem>>, vector<8x16x128xbf16>
    %54 = vector.shape_cast %53 : vector<8x16x128xbf16> to vector<128x128xbf16>
    %c4 = arith.constant 4 : index
    %c0_62 = arith.constant 0 : index
    %c0_63 = arith.constant 0 : index
    %55 = vector.load %arg6[%c4, %c0_62, %c0_63] : memref<9x128x128xbf16, #tpu.memory_space<vmem>>, vector<1x128x128xbf16>
    %56 = vector.shape_cast %55 : vector<1x128x128xbf16> to vector<128x128xbf16>
    %cst_64 = arith.constant dense<0.000000e+00> : vector<128x128xf32>
    %57 = tpu.matmul %54, %56, %cst_64 {dimension_numbers = #tpu.dot_dimension_numbers<[1], [0], [0], [1], [0, 0, 1, 1], [], []>} : vector<128x128xbf16>, vector<128x128xbf16>, vector<128x128xf32> -> vector<128x128xf32>
    %c0_65 = arith.constant 0 : index
    %c0_66 = arith.constant 0 : index
    %58 = vector.load %arg10[%c0_65, %c0_66] : memref<128x128xf32, #tpu.memory_space<vmem>>, vector<128x128xf32>
    %59 = arith.addf %58, %57 : vector<128x128xf32>
    %c0_67 = arith.constant 0 : index
    %c0_68 = arith.constant 0 : index
    %60 = vector.load %arg10[%c0_67, %c0_68] : memref<128x128xf32, #tpu.memory_space<vmem>>, vector<128x128xf32>
    tpu.vector_store %arg10[%c0_67, %c0_68], %59 {strides = array<i32>} : memref<128x128xf32, #tpu.memory_space<vmem>>, vector<128x128xf32>,
    %c1_69 = arith.constant 1 : index
    %c2_70 = arith.constant 2 : index
    %c0_71 = arith.constant 0 : index
    %61 = vector.load %arg9[%c1_69, %c2_70, %c0_71] : memref<10x18x128xbf16, #tpu.memory_space<vmem>>, vector<8x16x128xbf16>
    %62 = vector.shape_cast %61 : vector<8x16x128xbf16> to vector<128x128xbf16>
    %c5 = arith.constant 5 : index
    %c0_72 = arith.constant 0 : index
    %c0_73 = arith.constant 0 : index
    %63 = vector.load %arg6[%c5, %c0_72, %c0_73] : memref<9x128x128xbf16, #tpu.memory_space<vmem>>, vector<1x128x128xbf16>
    %64 = vector.shape_cast %63 : vector<1x128x128xbf16> to vector<128x128xbf16>
    %cst_74 = arith.constant dense<0.000000e+00> : vector<128x128xf32>
    %65 = tpu.matmul %62, %64, %cst_74 {dimension_numbers = #tpu.dot_dimension_numbers<[1], [0], [0], [1], [0, 0, 1, 1], [], []>} : vector<128x128xbf16>, vector<128x128xbf16>, vector<128x128xf32> -> vector<128x128xf32>
    %c0_75 = arith.constant 0 : index
    %c0_76 = arith.constant 0 : index
    %66 = vector.load %arg10[%c0_75, %c0_76] : memref<128x128xf32, #tpu.memory_space<vmem>>, vector<128x128xf32>
    %67 = arith.addf %66, %65 : vector<128x128xf32>
    %c0_77 = arith.constant 0 : index
    %c0_78 = arith.constant 0 : index
    %68 = vector.load %arg10[%c0_77, %c0_78] : memref<128x128xf32, #tpu.memory_space<vmem>>, vector<128x128xf32>
    tpu.vector_store %arg10[%c0_77, %c0_78], %67 {strides = array<i32>} : memref<128x128xf32, #tpu.memory_space<vmem>>, vector<128x128xf32>,
    %c2_79 = arith.constant 2 : index
    %c0_80 = arith.constant 0 : index
    %c0_81 = arith.constant 0 : index
    %69 = vector.load %arg9[%c2_79, %c0_80, %c0_81] : memref<10x18x128xbf16, #tpu.memory_space<vmem>>, vector<8x16x128xbf16>
    %70 = vector.shape_cast %69 : vector<8x16x128xbf16> to vector<128x128xbf16>
    %c6 = arith.constant 6 : index
    %c0_82 = arith.constant 0 : index
    %c0_83 = arith.constant 0 : index
    %71 = vector.load %arg6[%c6, %c0_82, %c0_83] : memref<9x128x128xbf16, #tpu.memory_space<vmem>>, vector<1x128x128xbf16>
    %72 = vector.shape_cast %71 : vector<1x128x128xbf16> to vector<128x128xbf16>
    %cst_84 = arith.constant dense<0.000000e+00> : vector<128x128xf32>
    %73 = tpu.matmul %70, %72, %cst_84 {dimension_numbers = #tpu.dot_dimension_numbers<[1], [0], [0], [1], [0, 0, 1, 1], [], []>} : vector<128x128xbf16>, vector<128x128xbf16>, vector<128x128xf32> -> vector<128x128xf32>
    %c0_85 = arith.constant 0 : index
    %c0_86 = arith.constant 0 : index
    %74 = vector.load %arg10[%c0_85, %c0_86] : memref<128x128xf32, #tpu.memory_space<vmem>>, vector<128x128xf32>
    %75 = arith.addf %74, %73 : vector<128x128xf32>
    %c0_87 = arith.constant 0 : index
    %c0_88 = arith.constant 0 : index
    %76 = vector.load %arg10[%c0_87, %c0_88] : memref<128x128xf32, #tpu.memory_space<vmem>>, vector<128x128xf32>
    tpu.vector_store %arg10[%c0_87, %c0_88], %75 {strides = array<i32>} : memref<128x128xf32, #tpu.memory_space<vmem>>, vector<128x128xf32>,
    %c2_89 = arith.constant 2 : index
    %c1_90 = arith.constant 1 : index
    %c0_91 = arith.constant 0 : index
    %77 = vector.load %arg9[%c2_89, %c1_90, %c0_91] : memref<10x18x128xbf16, #tpu.memory_space<vmem>>, vector<8x16x128xbf16>
    %78 = vector.shape_cast %77 : vector<8x16x128xbf16> to vector<128x128xbf16>
    %c7 = arith.constant 7 : index
    %c0_92 = arith.constant 0 : index
    %c0_93 = arith.constant 0 : index
    %79 = vector.load %arg6[%c7, %c0_92, %c0_93] : memref<9x128x128xbf16, #tpu.memory_space<vmem>>, vector<1x128x128xbf16>
    %80 = vector.shape_cast %79 : vector<1x128x128xbf16> to vector<128x128xbf16>
    %cst_94 = arith.constant dense<0.000000e+00> : vector<128x128xf32>
    %81 = tpu.matmul %78, %80, %cst_94 {dimension_numbers = #tpu.dot_dimension_numbers<[1], [0], [0], [1], [0, 0, 1, 1], [], []>} : vector<128x128xbf16>, vector<128x128xbf16>, vector<128x128xf32> -> vector<128x128xf32>
    %c0_95 = arith.constant 0 : index
    %c0_96 = arith.constant 0 : index
    %82 = vector.load %arg10[%c0_95, %c0_96] : memref<128x128xf32, #tpu.memory_space<vmem>>, vector<128x128xf32>
    %83 = arith.addf %82, %81 : vector<128x128xf32>
    %c0_97 = arith.constant 0 : index
    %c0_98 = arith.constant 0 : index
    %84 = vector.load %arg10[%c0_97, %c0_98] : memref<128x128xf32, #tpu.memory_space<vmem>>, vector<128x128xf32>
    tpu.vector_store %arg10[%c0_97, %c0_98], %83 {strides = array<i32>} : memref<128x128xf32, #tpu.memory_space<vmem>>, vector<128x128xf32>,
    %c2_99 = arith.constant 2 : index
    %c2_100 = arith.constant 2 : index
    %c0_101 = arith.constant 0 : index
    %85 = vector.load %arg9[%c2_99, %c2_100, %c0_101] : memref<10x18x128xbf16, #tpu.memory_space<vmem>>, vector<8x16x128xbf16>
    %86 = vector.shape_cast %85 : vector<8x16x128xbf16> to vector<128x128xbf16>
    %c8 = arith.constant 8 : index
    %c0_102 = arith.constant 0 : index
    %c0_103 = arith.constant 0 : index
    %87 = vector.load %arg6[%c8, %c0_102, %c0_103] : memref<9x128x128xbf16, #tpu.memory_space<vmem>>, vector<1x128x128xbf16>
    %88 = vector.shape_cast %87 : vector<1x128x128xbf16> to vector<128x128xbf16>
    %cst_104 = arith.constant dense<0.000000e+00> : vector<128x128xf32>
    %89 = tpu.matmul %86, %88, %cst_104 {dimension_numbers = #tpu.dot_dimension_numbers<[1], [0], [0], [1], [0, 0, 1, 1], [], []>} : vector<128x128xbf16>, vector<128x128xbf16>, vector<128x128xf32> -> vector<128x128xf32>
    %c0_105 = arith.constant 0 : index
    %c0_106 = arith.constant 0 : index
    %90 = vector.load %arg10[%c0_105, %c0_106] : memref<128x128xf32, #tpu.memory_space<vmem>>, vector<128x128xf32>
    %91 = arith.addf %90, %89 : vector<128x128xf32>
    %c0_107 = arith.constant 0 : index
    %c0_108 = arith.constant 0 : index
    %92 = vector.load %arg10[%c0_107, %c0_108] : memref<128x128xf32, #tpu.memory_space<vmem>>, vector<128x128xf32>
    tpu.vector_store %arg10[%c0_107, %c0_108], %91 {strides = array<i32>} : memref<128x128xf32, #tpu.memory_space<vmem>>, vector<128x128xf32>,
    %c0_109 = arith.constant 0 : index
    %c0_110 = arith.constant 0 : index
    %93 = vector.load %arg10[%c0_109, %c0_110] : memref<128x128xf32, #tpu.memory_space<vmem>>, vector<128x128xf32>
    %cst_111 = arith.constant dense<0.000000e+00> : vector<128xf32>
    %94 = vector.multi_reduction <add>, %93, %cst_111 [0] : vector<128x128xf32> to vector<128xf32>
    %95 = vector.shape_cast %94 : vector<128xf32> to vector<1x128xf32>
    %96 = arith.mulf %93, %93 : vector<128x128xf32>
    %cst_112 = arith.constant dense<0.000000e+00> : vector<128xf32>
    %97 = vector.multi_reduction <add>, %96, %cst_112 [0] : vector<128x128xf32> to vector<128xf32>
    %98 = vector.shape_cast %97 : vector<128xf32> to vector<1x128xf32>
    %99 = tpu.concatenate %95, %98 in 0 : vector<1x128xf32>, vector<1x128xf32> -> vector<2x128xf32>
    %100 = vector.shape_cast %99 : vector<2x128xf32> to vector<1x1x2x128xf32>
    %c0_113 = arith.constant 0 : index
    %c0_114 = arith.constant 0 : index
    %c0_115 = arith.constant 0 : index
    %c0_116 = arith.constant 0 : index
    %101 = vector.load %arg8[%c0_113, %c0_114, %c0_115, %c0_116] : memref<1x1x2x128xf32, #tpu.memory_space<vmem>>, vector<1x1x2x128xf32>
    tpu.vector_store %arg8[%c0_113, %c0_114, %c0_115, %c0_116], %100 {strides = array<i32>} : memref<1x1x2x128xf32, #tpu.memory_space<vmem>>, vector<1x1x2x128xf32>,
    %102 = vector.shape_cast %93 : vector<128x128xf32> to vector<1x8x16x128xf32>
    %c0_117 = arith.constant 0 : index
    %c0_118 = arith.constant 0 : index
    %c0_119 = arith.constant 0 : index
    %c0_120 = arith.constant 0 : index
    %103 = vector.load %arg7[%c0_117, %c0_118, %c0_119, %c0_120] : memref<1x8x16x128xf32, #tpu.memory_space<vmem>>, vector<1x8x16x128xf32>
    tpu.vector_store %arg7[%c0_117, %c0_118, %c0_119, %c0_120], %102 {strides = array<i32>} : memref<1x8x16x128xf32, #tpu.memory_space<vmem>>, vector<1x8x16x128xf32>,
    return
  }
  func.func @transform_0(%arg0: i32, %arg1: i32) -> (i32, i32, i32, i32) {
    %c0_i32 = arith.constant 0 : i32
    %c0_i32_0 = arith.constant 0 : i32
    %c0_i32_1 = arith.constant 0 : i32
    return %arg0, %arg1, %c0_i32, %c0_i32_0 : i32, i32, i32, i32
  }
  func.func @transform_1(%arg0: i32, %arg1: i32) -> (i32, i32, i32, i32) {
    %c2_i32 = arith.constant 2 : i32
    %0 = arith.muli %arg0, %c2_i32 : i32
    %1 = arith.addi %0, %arg1 : i32
    %c0_i32 = arith.constant 0 : i32
    %c0_i32_0 = arith.constant 0 : i32
    %c0_i32_1 = arith.constant 0 : i32
    %c0_i32_2 = arith.constant 0 : i32
    return %1, %c0_i32, %c0_i32_0, %c0_i32_1 : i32, i32, i32, i32
  }
  func.func @transform_2(%arg0: i32, %arg1: i32) -> (i32, i32) {
    %c0_i32 = arith.constant 0 : i32
    %c0_i32_0 = arith.constant 0 : i32
    %c0_i32_1 = arith.constant 0 : i32
    return %c0_i32, %c0_i32_0 : i32, i32
  }
  func.func @transform_3(%arg0: i32, %arg1: i32) -> (i32, i32) {
    %c0_i32 = arith.constant 0 : i32
    %c0_i32_0 = arith.constant 0 : i32
    %c0_i32_1 = arith.constant 0 : i32
    return %c0_i32, %c0_i32_0 : i32, i32
  }
  func.func @transform_4(%arg0: i32, %arg1: i32) -> (i32, i32, i32) {
    %c0_i32 = arith.constant 0 : i32
    %c0_i32_0 = arith.constant 0 : i32
    %c0_i32_1 = arith.constant 0 : i32
    %c0_i32_2 = arith.constant 0 : i32
    return %c0_i32, %c0_i32_0, %c0_i32_1 : i32, i32, i32
  }
  func.func @transform_5(%arg0: i32, %arg1: i32) -> (i32, i32, i32, i32) {
    %c0_i32 = arith.constant 0 : i32
    %c0_i32_0 = arith.constant 0 : i32
    %c0_i32_1 = arith.constant 0 : i32
    return %arg0, %arg1, %c0_i32, %c0_i32_0 : i32, i32, i32, i32
  }
  func.func @transform_6(%arg0: i32, %arg1: i32) -> (i32, i32, i32, i32) {
    %c0_i32 = arith.constant 0 : i32
    %c0_i32_0 = arith.constant 0 : i32
    %c0_i32_1 = arith.constant 0 : i32
    return %arg0, %arg1, %c0_i32, %c0_i32_0 : i32, i32, i32, i32
  }
}

module attributes {stable_mosaic.version = 11 : i64} {
  func.func @_conv3x3_stats_kernel(%arg0: i32, %arg1: i32, %arg2: memref<1x8x16x128xf32, #tpu.memory_space<vmem>>, %arg3: memref<1x2x16x128xf32, #tpu.memory_space<vmem>>, %arg4: memref<1x128xf32, #tpu.memory_space<vmem>>, %arg5: memref<1x128xf32, #tpu.memory_space<vmem>>, %arg6: memref<9x128x128xbf16, #tpu.memory_space<vmem>>, %arg7: memref<1x8x16x128xf32, #tpu.memory_space<vmem>>, %arg8: memref<1x1x2x128xf32, #tpu.memory_space<vmem>>, %arg9: memref<10x18x128xbf16, #tpu.memory_space<vmem>>, %arg10: memref<128x128xf32, #tpu.memory_space<vmem>>) attributes {dimension_semantics = [#tpu.dimension_semantics<parallel>, #tpu.dimension_semantics<parallel>], iteration_bounds = array<i64: 2, 2>, scalar_prefetch = 0 : i64, scratch_operands = 2 : i64, tpu.core_type = #tpu.core_type<tc>, window_params = [{transform_indices = @transform_0, window_bounds = array<i64: 1, 8, 16, 128>}, {transform_indices = @transform_1, window_bounds = array<i64: 1, 2, 16, 128>}, {pipeline_mode = #tpu.pipeline_mode<synchronous>, transform_indices = @transform_2, window_bounds = array<i64: 1, 128>}, {pipeline_mode = #tpu.pipeline_mode<synchronous>, transform_indices = @transform_3, window_bounds = array<i64: 1, 128>}, {pipeline_mode = #tpu.pipeline_mode<synchronous>, transform_indices = @transform_4, window_bounds = array<i64: 9, 128, 128>}, {transform_indices = @transform_5, window_bounds = array<i64: 1, 8, 16, 128>}, {transform_indices = @transform_6, window_bounds = array<i64: 1, 1, 2, 128>}]} {
    %cst = arith.constant 0.000000e+00 : bf16
    %0 = vector.broadcast %cst : bf16 to vector<10x1x128xbf16>
    %c0 = arith.constant 0 : index
    %c0_0 = arith.constant 0 : index
    %c0_1 = arith.constant 0 : index
    %1 = vector.load %arg9[%c0, %c0_0, %c0_1] : memref<10x18x128xbf16, #tpu.memory_space<vmem>>, vector<10x1x128xbf16>
    tpu.vector_store %arg9[%c0, %c0_0, %c0_1], %0 {strides = array<i32>} : memref<10x18x128xbf16, #tpu.memory_space<vmem>>, vector<10x1x128xbf16>,
    %c0_2 = arith.constant 0 : index
    %c17 = arith.constant 17 : index
    %c0_3 = arith.constant 0 : index
    %2 = vector.load %arg9[%c0_2, %c17, %c0_3] : memref<10x18x128xbf16, #tpu.memory_space<vmem>>, vector<10x1x128xbf16>
    tpu.vector_store %arg9[%c0_2, %c17, %c0_3], %0 {strides = array<i32>} : memref<10x18x128xbf16, #tpu.memory_space<vmem>>, vector<10x1x128xbf16>,
    %c0_4 = arith.constant 0 : index
    %c0_5 = arith.constant 0 : index
    %c0_6 = arith.constant 0 : index
    %c0_7 = arith.constant 0 : index
    %3 = vector.load %arg3[%c0_4, %c0_5, %c0_6, %c0_7] : memref<1x2x16x128xf32, #tpu.memory_space<vmem>>, vector<1x2x16x128xf32>
    %c0_i32 = arith.constant 0 : i32
    %4 = arith.cmpi eq, %arg1, %c0_i32 : i32
    %5 = vector.extract_strided_slice %3 {offsets = [0, 0, 0, 0], sizes = [1, 1, 16, 128], strides = [1, 1, 1, 1]} : vector<1x2x16x128xf32> to vector<1x1x16x128xf32>
    %6 = vector.shape_cast %5 : vector<1x1x16x128xf32> to vector<16x128xf32>
    %c0_8 = arith.constant 0 : index
    %c0_9 = arith.constant 0 : index
    %7 = vector.load %arg4[%c0_8, %c0_9] : memref<1x128xf32, #tpu.memory_space<vmem>>, vector<1x128xf32>
    %8 = vector.broadcast %7 : vector<1x128xf32> to vector<16x128xf32>
    %9 = arith.mulf %6, %8 : vector<16x128xf32>
    %c0_10 = arith.constant 0 : index
    %c0_11 = arith.constant 0 : index
    %10 = vector.load %arg5[%c0_10, %c0_11] : memref<1x128xf32, #tpu.memory_space<vmem>>, vector<1x128xf32>
    %11 = vector.broadcast %10 : vector<1x128xf32> to vector<16x128xf32>
    %12 = arith.addf %9, %11 : vector<16x128xf32>
    %cst_12 = arith.constant 0.000000e+00 : f32
    %13 = vector.broadcast %cst_12 : f32 to vector<16x128xf32>
    %14 = arith.maximumf %12, %13 : vector<16x128xf32>
    %cst_13 = arith.constant 0.000000e+00 : f32
    %15 = vector.broadcast %cst_13 : f32 to vector<16x128xf32>
    %16 = arith.select %4, %15, %14 : vector<16x128xf32>
    %c1_i32 = arith.constant 1 : i32
    %17 = arith.cmpi eq, %arg1, %c1_i32 : i32
    %18 = vector.extract_strided_slice %3 {offsets = [0, 1, 0, 0], sizes = [1, 1, 16, 128], strides = [1, 1, 1, 1]} : vector<1x2x16x128xf32> to vector<1x1x16x128xf32>
    %19 = vector.shape_cast %18 : vector<1x1x16x128xf32> to vector<16x128xf32>
    %c0_14 = arith.constant 0 : index
    %c0_15 = arith.constant 0 : index
    %20 = vector.load %arg4[%c0_14, %c0_15] : memref<1x128xf32, #tpu.memory_space<vmem>>, vector<1x128xf32>
    %21 = vector.broadcast %20 : vector<1x128xf32> to vector<16x128xf32>
    %22 = arith.mulf %19, %21 : vector<16x128xf32>
    %c0_16 = arith.constant 0 : index
    %c0_17 = arith.constant 0 : index
    %23 = vector.load %arg5[%c0_16, %c0_17] : memref<1x128xf32, #tpu.memory_space<vmem>>, vector<1x128xf32>
    %24 = vector.broadcast %23 : vector<1x128xf32> to vector<16x128xf32>
    %25 = arith.addf %22, %24 : vector<16x128xf32>
    %cst_18 = arith.constant 0.000000e+00 : f32
    %26 = vector.broadcast %cst_18 : f32 to vector<16x128xf32>
    %27 = arith.maximumf %25, %26 : vector<16x128xf32>
    %cst_19 = arith.constant 0.000000e+00 : f32
    %28 = vector.broadcast %cst_19 : f32 to vector<16x128xf32>
    %29 = arith.select %17, %28, %27 : vector<16x128xf32>
    %30 = arith.truncf %16 : vector<16x128xf32> to vector<16x128xbf16>
    %31 = vector.shape_cast %30 : vector<16x128xbf16> to vector<1x16x128xbf16>
    %c0_20 = arith.constant 0 : index
    %c1 = arith.constant 1 : index
    %c0_21 = arith.constant 0 : index
    %32 = vector.load %arg9[%c0_20, %c1, %c0_21] : memref<10x18x128xbf16, #tpu.memory_space<vmem>>, vector<1x16x128xbf16>
    tpu.vector_store %arg9[%c0_20, %c1, %c0_21], %31 {strides = array<i32>} : memref<10x18x128xbf16, #tpu.memory_space<vmem>>, vector<1x16x128xbf16>,
    %33 = arith.truncf %29 : vector<16x128xf32> to vector<16x128xbf16>
    %34 = vector.shape_cast %33 : vector<16x128xbf16> to vector<1x16x128xbf16>
    %c9 = arith.constant 9 : index
    %c1_22 = arith.constant 1 : index
    %c0_23 = arith.constant 0 : index
    %35 = vector.load %arg9[%c9, %c1_22, %c0_23] : memref<10x18x128xbf16, #tpu.memory_space<vmem>>, vector<1x16x128xbf16>
    tpu.vector_store %arg9[%c9, %c1_22, %c0_23], %34 {strides = array<i32>} : memref<10x18x128xbf16, #tpu.memory_space<vmem>>, vector<1x16x128xbf16>,
    %c0_24 = arith.constant 0 : index
    %c0_25 = arith.constant 0 : index
    %c0_26 = arith.constant 0 : index
    %c0_27 = arith.constant 0 : index
    %36 = vector.load %arg2[%c0_24, %c0_25, %c0_26, %c0_27] : memref<1x8x16x128xf32, #tpu.memory_space<vmem>>, vector<1x8x16x128xf32>
    %37 = vector.shape_cast %36 : vector<1x8x16x128xf32> to vector<8x16x128xf32>
    %c0_28 = arith.constant 0 : index
    %c0_29 = arith.constant 0 : index
    %38 = vector.load %arg4[%c0_28, %c0_29] : memref<1x128xf32, #tpu.memory_space<vmem>>, vector<1x128xf32>
    %39 = vector.shape_cast %38 : vector<1x128xf32> to vector<1x1x128xf32>
    %40 = vector.broadcast %39 : vector<1x1x128xf32> to vector<8x16x128xf32>
    %41 = arith.mulf %37, %40 : vector<8x16x128xf32>
    %c0_30 = arith.constant 0 : index
    %c0_31 = arith.constant 0 : index
    %42 = vector.load %arg5[%c0_30, %c0_31] : memref<1x128xf32, #tpu.memory_space<vmem>>, vector<1x128xf32>
    %43 = vector.shape_cast %42 : vector<1x128xf32> to vector<1x1x128xf32>
    %44 = vector.broadcast %43 : vector<1x1x128xf32> to vector<8x16x128xf32>
    %45 = arith.addf %41, %44 : vector<8x16x128xf32>
    %cst_32 = arith.constant 0.000000e+00 : f32
    %46 = vector.broadcast %cst_32 : f32 to vector<8x16x128xf32>
    %47 = arith.maximumf %45, %46 : vector<8x16x128xf32>
    %48 = arith.truncf %47 : vector<8x16x128xf32> to vector<8x16x128xbf16>
    %c1_33 = arith.constant 1 : index
    %c1_34 = arith.constant 1 : index
    %c0_35 = arith.constant 0 : index
    %49 = vector.load %arg9[%c1_33, %c1_34, %c0_35] : memref<10x18x128xbf16, #tpu.memory_space<vmem>>, vector<8x16x128xbf16>
    tpu.vector_store %arg9[%c1_33, %c1_34, %c0_35], %48 {strides = array<i32>} : memref<10x18x128xbf16, #tpu.memory_space<vmem>>, vector<8x16x128xbf16>,
    %c0_36 = arith.constant 0 : index
    %c0_37 = arith.constant 0 : index
    %c0_38 = arith.constant 0 : index
    %50 = vector.load %arg9[%c0_36, %c0_37, %c0_38] : memref<10x18x128xbf16, #tpu.memory_space<vmem>>, vector<8x16x128xbf16>
    %51 = vector.shape_cast %50 : vector<8x16x128xbf16> to vector<128x128xbf16>
    %c0_39 = arith.constant 0 : index
    %c0_40 = arith.constant 0 : index
    %c0_41 = arith.constant 0 : index
    %52 = vector.load %arg6[%c0_39, %c0_40, %c0_41] : memref<9x128x128xbf16, #tpu.memory_space<vmem>>, vector<1x128x128xbf16>
    %53 = vector.shape_cast %52 : vector<1x128x128xbf16> to vector<128x128xbf16>
    %cst_42 = arith.constant dense<0.000000e+00> : vector<128x128xf32>
    %54 = tpu.matmul %51, %53, %cst_42 {dimension_numbers = #tpu.dot_dimension_numbers<[1], [0], [0], [1], [0, 0, 1, 1], [], []>} : vector<128x128xbf16>, vector<128x128xbf16>, vector<128x128xf32> -> vector<128x128xf32>
    %c0_43 = arith.constant 0 : index
    %c0_44 = arith.constant 0 : index
    %55 = vector.load %arg10[%c0_43, %c0_44] : memref<128x128xf32, #tpu.memory_space<vmem>>, vector<128x128xf32>
    tpu.vector_store %arg10[%c0_43, %c0_44], %54 {strides = array<i32>} : memref<128x128xf32, #tpu.memory_space<vmem>>, vector<128x128xf32>,
    %c0_45 = arith.constant 0 : index
    %c1_46 = arith.constant 1 : index
    %c0_47 = arith.constant 0 : index
    %56 = vector.load %arg9[%c0_45, %c1_46, %c0_47] : memref<10x18x128xbf16, #tpu.memory_space<vmem>>, vector<8x16x128xbf16>
    %57 = vector.shape_cast %56 : vector<8x16x128xbf16> to vector<128x128xbf16>
    %c1_48 = arith.constant 1 : index
    %c0_49 = arith.constant 0 : index
    %c0_50 = arith.constant 0 : index
    %58 = vector.load %arg6[%c1_48, %c0_49, %c0_50] : memref<9x128x128xbf16, #tpu.memory_space<vmem>>, vector<1x128x128xbf16>
    %59 = vector.shape_cast %58 : vector<1x128x128xbf16> to vector<128x128xbf16>
    %cst_51 = arith.constant dense<0.000000e+00> : vector<128x128xf32>
    %60 = tpu.matmul %57, %59, %cst_51 {dimension_numbers = #tpu.dot_dimension_numbers<[1], [0], [0], [1], [0, 0, 1, 1], [], []>} : vector<128x128xbf16>, vector<128x128xbf16>, vector<128x128xf32> -> vector<128x128xf32>
    %c0_52 = arith.constant 0 : index
    %c0_53 = arith.constant 0 : index
    %61 = vector.load %arg10[%c0_52, %c0_53] : memref<128x128xf32, #tpu.memory_space<vmem>>, vector<128x128xf32>
    %62 = arith.addf %61, %60 : vector<128x128xf32>
    %c0_54 = arith.constant 0 : index
    %c0_55 = arith.constant 0 : index
    %63 = vector.load %arg10[%c0_54, %c0_55] : memref<128x128xf32, #tpu.memory_space<vmem>>, vector<128x128xf32>
    tpu.vector_store %arg10[%c0_54, %c0_55], %62 {strides = array<i32>} : memref<128x128xf32, #tpu.memory_space<vmem>>, vector<128x128xf32>,
    %c0_56 = arith.constant 0 : index
    %c2 = arith.constant 2 : index
    %c0_57 = arith.constant 0 : index
    %64 = vector.load %arg9[%c0_56, %c2, %c0_57] : memref<10x18x128xbf16, #tpu.memory_space<vmem>>, vector<8x16x128xbf16>
    %65 = vector.shape_cast %64 : vector<8x16x128xbf16> to vector<128x128xbf16>
    %c2_58 = arith.constant 2 : index
    %c0_59 = arith.constant 0 : index
    %c0_60 = arith.constant 0 : index
    %66 = vector.load %arg6[%c2_58, %c0_59, %c0_60] : memref<9x128x128xbf16, #tpu.memory_space<vmem>>, vector<1x128x128xbf16>
    %67 = vector.shape_cast %66 : vector<1x128x128xbf16> to vector<128x128xbf16>
    %cst_61 = arith.constant dense<0.000000e+00> : vector<128x128xf32>
    %68 = tpu.matmul %65, %67, %cst_61 {dimension_numbers = #tpu.dot_dimension_numbers<[1], [0], [0], [1], [0, 0, 1, 1], [], []>} : vector<128x128xbf16>, vector<128x128xbf16>, vector<128x128xf32> -> vector<128x128xf32>
    %c0_62 = arith.constant 0 : index
    %c0_63 = arith.constant 0 : index
    %69 = vector.load %arg10[%c0_62, %c0_63] : memref<128x128xf32, #tpu.memory_space<vmem>>, vector<128x128xf32>
    %70 = arith.addf %69, %68 : vector<128x128xf32>
    %c0_64 = arith.constant 0 : index
    %c0_65 = arith.constant 0 : index
    %71 = vector.load %arg10[%c0_64, %c0_65] : memref<128x128xf32, #tpu.memory_space<vmem>>, vector<128x128xf32>
    tpu.vector_store %arg10[%c0_64, %c0_65], %70 {strides = array<i32>} : memref<128x128xf32, #tpu.memory_space<vmem>>, vector<128x128xf32>,
    %c1_66 = arith.constant 1 : index
    %c0_67 = arith.constant 0 : index
    %c0_68 = arith.constant 0 : index
    %72 = vector.load %arg9[%c1_66, %c0_67, %c0_68] : memref<10x18x128xbf16, #tpu.memory_space<vmem>>, vector<8x16x128xbf16>
    %73 = vector.shape_cast %72 : vector<8x16x128xbf16> to vector<128x128xbf16>
    %c3 = arith.constant 3 : index
    %c0_69 = arith.constant 0 : index
    %c0_70 = arith.constant 0 : index
    %74 = vector.load %arg6[%c3, %c0_69, %c0_70] : memref<9x128x128xbf16, #tpu.memory_space<vmem>>, vector<1x128x128xbf16>
    %75 = vector.shape_cast %74 : vector<1x128x128xbf16> to vector<128x128xbf16>
    %cst_71 = arith.constant dense<0.000000e+00> : vector<128x128xf32>
    %76 = tpu.matmul %73, %75, %cst_71 {dimension_numbers = #tpu.dot_dimension_numbers<[1], [0], [0], [1], [0, 0, 1, 1], [], []>} : vector<128x128xbf16>, vector<128x128xbf16>, vector<128x128xf32> -> vector<128x128xf32>
    %c0_72 = arith.constant 0 : index
    %c0_73 = arith.constant 0 : index
    %77 = vector.load %arg10[%c0_72, %c0_73] : memref<128x128xf32, #tpu.memory_space<vmem>>, vector<128x128xf32>
    %78 = arith.addf %77, %76 : vector<128x128xf32>
    %c0_74 = arith.constant 0 : index
    %c0_75 = arith.constant 0 : index
    %79 = vector.load %arg10[%c0_74, %c0_75] : memref<128x128xf32, #tpu.memory_space<vmem>>, vector<128x128xf32>
    tpu.vector_store %arg10[%c0_74, %c0_75], %78 {strides = array<i32>} : memref<128x128xf32, #tpu.memory_space<vmem>>, vector<128x128xf32>,
    %c1_76 = arith.constant 1 : index
    %c1_77 = arith.constant 1 : index
    %c0_78 = arith.constant 0 : index
    %80 = vector.load %arg9[%c1_76, %c1_77, %c0_78] : memref<10x18x128xbf16, #tpu.memory_space<vmem>>, vector<8x16x128xbf16>
    %81 = vector.shape_cast %80 : vector<8x16x128xbf16> to vector<128x128xbf16>
    %c4 = arith.constant 4 : index
    %c0_79 = arith.constant 0 : index
    %c0_80 = arith.constant 0 : index
    %82 = vector.load %arg6[%c4, %c0_79, %c0_80] : memref<9x128x128xbf16, #tpu.memory_space<vmem>>, vector<1x128x128xbf16>
    %83 = vector.shape_cast %82 : vector<1x128x128xbf16> to vector<128x128xbf16>
    %cst_81 = arith.constant dense<0.000000e+00> : vector<128x128xf32>
    %84 = tpu.matmul %81, %83, %cst_81 {dimension_numbers = #tpu.dot_dimension_numbers<[1], [0], [0], [1], [0, 0, 1, 1], [], []>} : vector<128x128xbf16>, vector<128x128xbf16>, vector<128x128xf32> -> vector<128x128xf32>
    %c0_82 = arith.constant 0 : index
    %c0_83 = arith.constant 0 : index
    %85 = vector.load %arg10[%c0_82, %c0_83] : memref<128x128xf32, #tpu.memory_space<vmem>>, vector<128x128xf32>
    %86 = arith.addf %85, %84 : vector<128x128xf32>
    %c0_84 = arith.constant 0 : index
    %c0_85 = arith.constant 0 : index
    %87 = vector.load %arg10[%c0_84, %c0_85] : memref<128x128xf32, #tpu.memory_space<vmem>>, vector<128x128xf32>
    tpu.vector_store %arg10[%c0_84, %c0_85], %86 {strides = array<i32>} : memref<128x128xf32, #tpu.memory_space<vmem>>, vector<128x128xf32>,
    %c1_86 = arith.constant 1 : index
    %c2_87 = arith.constant 2 : index
    %c0_88 = arith.constant 0 : index
    %88 = vector.load %arg9[%c1_86, %c2_87, %c0_88] : memref<10x18x128xbf16, #tpu.memory_space<vmem>>, vector<8x16x128xbf16>
    %89 = vector.shape_cast %88 : vector<8x16x128xbf16> to vector<128x128xbf16>
    %c5 = arith.constant 5 : index
    %c0_89 = arith.constant 0 : index
    %c0_90 = arith.constant 0 : index
    %90 = vector.load %arg6[%c5, %c0_89, %c0_90] : memref<9x128x128xbf16, #tpu.memory_space<vmem>>, vector<1x128x128xbf16>
    %91 = vector.shape_cast %90 : vector<1x128x128xbf16> to vector<128x128xbf16>
    %cst_91 = arith.constant dense<0.000000e+00> : vector<128x128xf32>
    %92 = tpu.matmul %89, %91, %cst_91 {dimension_numbers = #tpu.dot_dimension_numbers<[1], [0], [0], [1], [0, 0, 1, 1], [], []>} : vector<128x128xbf16>, vector<128x128xbf16>, vector<128x128xf32> -> vector<128x128xf32>
    %c0_92 = arith.constant 0 : index
    %c0_93 = arith.constant 0 : index
    %93 = vector.load %arg10[%c0_92, %c0_93] : memref<128x128xf32, #tpu.memory_space<vmem>>, vector<128x128xf32>
    %94 = arith.addf %93, %92 : vector<128x128xf32>
    %c0_94 = arith.constant 0 : index
    %c0_95 = arith.constant 0 : index
    %95 = vector.load %arg10[%c0_94, %c0_95] : memref<128x128xf32, #tpu.memory_space<vmem>>, vector<128x128xf32>
    tpu.vector_store %arg10[%c0_94, %c0_95], %94 {strides = array<i32>} : memref<128x128xf32, #tpu.memory_space<vmem>>, vector<128x128xf32>,
    %c2_96 = arith.constant 2 : index
    %c0_97 = arith.constant 0 : index
    %c0_98 = arith.constant 0 : index
    %96 = vector.load %arg9[%c2_96, %c0_97, %c0_98] : memref<10x18x128xbf16, #tpu.memory_space<vmem>>, vector<8x16x128xbf16>
    %97 = vector.shape_cast %96 : vector<8x16x128xbf16> to vector<128x128xbf16>
    %c6 = arith.constant 6 : index
    %c0_99 = arith.constant 0 : index
    %c0_100 = arith.constant 0 : index
    %98 = vector.load %arg6[%c6, %c0_99, %c0_100] : memref<9x128x128xbf16, #tpu.memory_space<vmem>>, vector<1x128x128xbf16>
    %99 = vector.shape_cast %98 : vector<1x128x128xbf16> to vector<128x128xbf16>
    %cst_101 = arith.constant dense<0.000000e+00> : vector<128x128xf32>
    %100 = tpu.matmul %97, %99, %cst_101 {dimension_numbers = #tpu.dot_dimension_numbers<[1], [0], [0], [1], [0, 0, 1, 1], [], []>} : vector<128x128xbf16>, vector<128x128xbf16>, vector<128x128xf32> -> vector<128x128xf32>
    %c0_102 = arith.constant 0 : index
    %c0_103 = arith.constant 0 : index
    %101 = vector.load %arg10[%c0_102, %c0_103] : memref<128x128xf32, #tpu.memory_space<vmem>>, vector<128x128xf32>
    %102 = arith.addf %101, %100 : vector<128x128xf32>
    %c0_104 = arith.constant 0 : index
    %c0_105 = arith.constant 0 : index
    %103 = vector.load %arg10[%c0_104, %c0_105] : memref<128x128xf32, #tpu.memory_space<vmem>>, vector<128x128xf32>
    tpu.vector_store %arg10[%c0_104, %c0_105], %102 {strides = array<i32>} : memref<128x128xf32, #tpu.memory_space<vmem>>, vector<128x128xf32>,
    %c2_106 = arith.constant 2 : index
    %c1_107 = arith.constant 1 : index
    %c0_108 = arith.constant 0 : index
    %104 = vector.load %arg9[%c2_106, %c1_107, %c0_108] : memref<10x18x128xbf16, #tpu.memory_space<vmem>>, vector<8x16x128xbf16>
    %105 = vector.shape_cast %104 : vector<8x16x128xbf16> to vector<128x128xbf16>
    %c7 = arith.constant 7 : index
    %c0_109 = arith.constant 0 : index
    %c0_110 = arith.constant 0 : index
    %106 = vector.load %arg6[%c7, %c0_109, %c0_110] : memref<9x128x128xbf16, #tpu.memory_space<vmem>>, vector<1x128x128xbf16>
    %107 = vector.shape_cast %106 : vector<1x128x128xbf16> to vector<128x128xbf16>
    %cst_111 = arith.constant dense<0.000000e+00> : vector<128x128xf32>
    %108 = tpu.matmul %105, %107, %cst_111 {dimension_numbers = #tpu.dot_dimension_numbers<[1], [0], [0], [1], [0, 0, 1, 1], [], []>} : vector<128x128xbf16>, vector<128x128xbf16>, vector<128x128xf32> -> vector<128x128xf32>
    %c0_112 = arith.constant 0 : index
    %c0_113 = arith.constant 0 : index
    %109 = vector.load %arg10[%c0_112, %c0_113] : memref<128x128xf32, #tpu.memory_space<vmem>>, vector<128x128xf32>
    %110 = arith.addf %109, %108 : vector<128x128xf32>
    %c0_114 = arith.constant 0 : index
    %c0_115 = arith.constant 0 : index
    %111 = vector.load %arg10[%c0_114, %c0_115] : memref<128x128xf32, #tpu.memory_space<vmem>>, vector<128x128xf32>
    tpu.vector_store %arg10[%c0_114, %c0_115], %110 {strides = array<i32>} : memref<128x128xf32, #tpu.memory_space<vmem>>, vector<128x128xf32>,
    %c2_116 = arith.constant 2 : index
    %c2_117 = arith.constant 2 : index
    %c0_118 = arith.constant 0 : index
    %112 = vector.load %arg9[%c2_116, %c2_117, %c0_118] : memref<10x18x128xbf16, #tpu.memory_space<vmem>>, vector<8x16x128xbf16>
    %113 = vector.shape_cast %112 : vector<8x16x128xbf16> to vector<128x128xbf16>
    %c8 = arith.constant 8 : index
    %c0_119 = arith.constant 0 : index
    %c0_120 = arith.constant 0 : index
    %114 = vector.load %arg6[%c8, %c0_119, %c0_120] : memref<9x128x128xbf16, #tpu.memory_space<vmem>>, vector<1x128x128xbf16>
    %115 = vector.shape_cast %114 : vector<1x128x128xbf16> to vector<128x128xbf16>
    %cst_121 = arith.constant dense<0.000000e+00> : vector<128x128xf32>
    %116 = tpu.matmul %113, %115, %cst_121 {dimension_numbers = #tpu.dot_dimension_numbers<[1], [0], [0], [1], [0, 0, 1, 1], [], []>} : vector<128x128xbf16>, vector<128x128xbf16>, vector<128x128xf32> -> vector<128x128xf32>
    %c0_122 = arith.constant 0 : index
    %c0_123 = arith.constant 0 : index
    %117 = vector.load %arg10[%c0_122, %c0_123] : memref<128x128xf32, #tpu.memory_space<vmem>>, vector<128x128xf32>
    %118 = arith.addf %117, %116 : vector<128x128xf32>
    %c0_124 = arith.constant 0 : index
    %c0_125 = arith.constant 0 : index
    %119 = vector.load %arg10[%c0_124, %c0_125] : memref<128x128xf32, #tpu.memory_space<vmem>>, vector<128x128xf32>
    tpu.vector_store %arg10[%c0_124, %c0_125], %118 {strides = array<i32>} : memref<128x128xf32, #tpu.memory_space<vmem>>, vector<128x128xf32>,
    %c0_126 = arith.constant 0 : index
    %c0_127 = arith.constant 0 : index
    %120 = vector.load %arg10[%c0_126, %c0_127] : memref<128x128xf32, #tpu.memory_space<vmem>>, vector<128x128xf32>
    %cst_128 = arith.constant dense<0.000000e+00> : vector<128xf32>
    %121 = vector.multi_reduction <add>, %120, %cst_128 [0] : vector<128x128xf32> to vector<128xf32>
    %122 = vector.shape_cast %121 : vector<128xf32> to vector<1x128xf32>
    %123 = arith.mulf %120, %120 : vector<128x128xf32>
    %cst_129 = arith.constant dense<0.000000e+00> : vector<128xf32>
    %124 = vector.multi_reduction <add>, %123, %cst_129 [0] : vector<128x128xf32> to vector<128xf32>
    %125 = vector.shape_cast %124 : vector<128xf32> to vector<1x128xf32>
    %126 = tpu.concatenate %122, %125 in 0 : vector<1x128xf32>, vector<1x128xf32> -> vector<2x128xf32>
    %127 = vector.shape_cast %126 : vector<2x128xf32> to vector<1x1x2x128xf32>
    %c0_130 = arith.constant 0 : index
    %c0_131 = arith.constant 0 : index
    %c0_132 = arith.constant 0 : index
    %c0_133 = arith.constant 0 : index
    %128 = vector.load %arg8[%c0_130, %c0_131, %c0_132, %c0_133] : memref<1x1x2x128xf32, #tpu.memory_space<vmem>>, vector<1x1x2x128xf32>
    tpu.vector_store %arg8[%c0_130, %c0_131, %c0_132, %c0_133], %127 {strides = array<i32>} : memref<1x1x2x128xf32, #tpu.memory_space<vmem>>, vector<1x1x2x128xf32>,
    %129 = vector.shape_cast %120 : vector<128x128xf32> to vector<1x8x16x128xf32>
    %c0_134 = arith.constant 0 : index
    %c0_135 = arith.constant 0 : index
    %c0_136 = arith.constant 0 : index
    %c0_137 = arith.constant 0 : index
    %130 = vector.load %arg7[%c0_134, %c0_135, %c0_136, %c0_137] : memref<1x8x16x128xf32, #tpu.memory_space<vmem>>, vector<1x8x16x128xf32>
    tpu.vector_store %arg7[%c0_134, %c0_135, %c0_136, %c0_137], %129 {strides = array<i32>} : memref<1x8x16x128xf32, #tpu.memory_space<vmem>>, vector<1x8x16x128xf32>,
    return
  }
  func.func @transform_0(%arg0: i32, %arg1: i32) -> (i32, i32, i32, i32) {
    %c0_i32 = arith.constant 0 : i32
    %c0_i32_0 = arith.constant 0 : i32
    %c0_i32_1 = arith.constant 0 : i32
    return %arg0, %arg1, %c0_i32, %c0_i32_0 : i32, i32, i32, i32
  }
  func.func @transform_1(%arg0: i32, %arg1: i32) -> (i32, i32, i32, i32) {
    %c2_i32 = arith.constant 2 : i32
    %0 = arith.muli %arg0, %c2_i32 : i32
    %1 = arith.addi %0, %arg1 : i32
    %c0_i32 = arith.constant 0 : i32
    %c0_i32_0 = arith.constant 0 : i32
    %c0_i32_1 = arith.constant 0 : i32
    %c0_i32_2 = arith.constant 0 : i32
    return %1, %c0_i32, %c0_i32_0, %c0_i32_1 : i32, i32, i32, i32
  }
  func.func @transform_2(%arg0: i32, %arg1: i32) -> (i32, i32) {
    %c0_i32 = arith.constant 0 : i32
    %c0_i32_0 = arith.constant 0 : i32
    %c0_i32_1 = arith.constant 0 : i32
    return %c0_i32, %c0_i32_0 : i32, i32
  }
  func.func @transform_3(%arg0: i32, %arg1: i32) -> (i32, i32) {
    %c0_i32 = arith.constant 0 : i32
    %c0_i32_0 = arith.constant 0 : i32
    %c0_i32_1 = arith.constant 0 : i32
    return %c0_i32, %c0_i32_0 : i32, i32
  }
  func.func @transform_4(%arg0: i32, %arg1: i32) -> (i32, i32, i32) {
    %c0_i32 = arith.constant 0 : i32
    %c0_i32_0 = arith.constant 0 : i32
    %c0_i32_1 = arith.constant 0 : i32
    %c0_i32_2 = arith.constant 0 : i32
    return %c0_i32, %c0_i32_0, %c0_i32_1 : i32, i32, i32
  }
  func.func @transform_5(%arg0: i32, %arg1: i32) -> (i32, i32, i32, i32) {
    %c0_i32 = arith.constant 0 : i32
    %c0_i32_0 = arith.constant 0 : i32
    %c0_i32_1 = arith.constant 0 : i32
    return %arg0, %arg1, %c0_i32, %c0_i32_0 : i32, i32, i32, i32
  }
  func.func @transform_6(%arg0: i32, %arg1: i32) -> (i32, i32, i32, i32) {
    %c0_i32 = arith.constant 0 : i32
    %c0_i32_0 = arith.constant 0 : i32
    %c0_i32_1 = arith.constant 0 : i32
    return %arg0, %arg1, %c0_i32, %c0_i32_0 : i32, i32, i32, i32
  }
}

</mosaic_0001>

<bundles_post_ra>
// kernel: basic_block_pallas.5
= control target key start
LH: loop header
LB: loop body
LE: loop exit
PB: predicated region body
PF: predicated region fallthrough
CT: control target
= control target key end

     0   :  { %s648_s15 = smov 0   ;;  %s650_s16 = smov 0   ;;  %s819_s0 = inlined_call_operand.vmem [shape: f32[2,16,16,128], index: 0, kind: input, shape index: {}]   ;;  %s820_s1 = inlined_call_operand.vmem [shape: f32[2,16,16,8], index: 1, kind: input, shape index: {}]   ;;  %s821_s2 = inlined_call_operand.vmem [shape: f32[1,128], index: 2, kind: input, shape index: {}]   ;;  %s822_s3 = inlined_call_operand.vmem [shape: f32[1,128], index: 3, kind: input, shape index: {}]   ;;  %s823_s4 = inlined_call_operand.vmem [shape: f32[2,16,16,8], index: 4, kind: output, shape index: {}]  }
   0x1   :  { %s652_s17 = smov 0   ;;  %s654_s18 = smov 0  }
   0x2   :  { %s656_s19 = smov 0  }
   0x3 LB: > { %s23_s20 = sadd.s32 1, %s613_s17  ;;  %s26_s21 = sadd.s32 1, %s617_s18  ;;  %s621_s19 = sphi %s656_s19, %s14_s19   ;;  %s617_s18 = sphi %s654_s18, %s827_s18   ;;  %s613_s17 = sphi %s652_s17, %s826_s17   ;;  %s609_s16 = sphi %s650_s16, %s825_s16   ;;  %s605_s15 = sphi %s648_s15, %s824_s15  }
   0x4   : > { %p24_p0 = scmp.ge.s32.totalorder %s23_s20, 2  ;;  %p526_p1 = scmp.ge.s32.totalorder %s621_s19, 1 }
   0x5   : > { %p202_p2 = scmp.lt.s32.totalorder %s621_s19, 5 }
   0x6   : > { %s829_s20 = smov (%p24_p0, %s23_s20), 0  ;;  %s831_s21 = smov (!%p24_p0, %s26_s21), %s617_s18 }
   0x7   : > { %p203_p3 = pnand %p526_p1, %p202_p2  ;;  %p28_p4 = scmp.ge.s32.totalorder %s831_s21, 2 }
   0x8   : > { %s527_s22 = sshll.u32 (!%p203_p3), %s605_s15, 3  ;;  %p249_p5 = scmp.lt.s32.totalorder (!%p203_p3), %s609_s16, 1 }
   0x9   : > { %s833_s21 = smov (%p28_p4, %s831_s21), 0  ;;  %206 = sbr.rel (%p203_p3) target bundleno = 44 (0x2c), region = 36 }
   0xa   : > { %p251_p6 = scmp.lt.s32.totalorder (!%p203_p3), %s527_s22, 15 }
   0xe   : > { %s835_s16 = smov (!%p249_p5, %s609_s16), 1  ;;  %s837_s22 = smov (!%p251_p6, %s527_s22), 15  ;;  %v681_v0 = vld [vmem:[%s821_s2] ss:$0 sm:$0xff]  ;;  %vm385_vm0 = vcmask 64512  }
   0xf   : > { %s529_s23 = sshll.u32 %s835_s16, 5  ;;  %s528_s24 = sshll.u32 %s837_s22, 1  ;;  %v700_v1 = vld [vmem:[%s822_s3] ss:$0 sm:$0xff] }
  0x10   : > { %s255_s25 = sadd.s32 %s529_s23, %s528_s24 }
  0x11   : > { %s683_s28 = sshll.u32 %s255_s25, 3 }
  0x12   : > { %s689_s5 = scalar_lea.vmem %s819_s0, %s683_s28  ;;  %s695_s8 = scalar_lea.vmem %s820_s1, %s683_s28 }
  0x13   : > { %v281_v2 = vld [vmem:[%s689_s5] sm:$0xff]  ;;  %v282_v3 = vld [vmem:[%s689_s5 + $0x8] sm:$0xff]  ;;  %v283_v7 = vld [vmem:[%s689_s5 + $0x10] sm:$0xff]  ;;  %s731_s13 = scalar_lea.vmem %s823_s4, %s683_s28 }
  0x14   : > { %v301_v4 = vmul.f32 %v681_v0, %v281_v2  ;;  %v337_v5 = vld [vmem:[%s695_s8] sm:$0xff]  ;;  %v302_v6 = vmul.f32 %v681_v0, %v282_v3  ;;  %v338_v8 = vld [vmem:[%s695_s8 + $0x8] sm:$0xff]  ;;  %v303_v9 = vmul.f32 %v681_v0, %v283_v7  ;;  %v284_v10 = vld [vmem:[%s689_s5 + $0x18] sm:$0xff] }
  0x15   : > { %v285_v11 = vld [vmem:[%s689_s5 + $0x20] sm:$0xff]  ;;  %v339_v14 = vld [vmem:[%s695_s8 + $0x10] sm:$0xff]  ;;  %v304_v15 = vmul.f32 %v681_v0, %v284_v10  ;;  %v340_v16 = vld [vmem:[%s695_s8 + $0x18] sm:$0xff] }
  0x16   : > { %v321_v12 = vadd.f32 %v700_v1, %v301_v4  ;;  %v322_v13 = vadd.f32 %v700_v1, %v302_v6  ;;  %v305_v17 = vmul.f32 %v681_v0, %v285_v11  ;;  %v286_v18 = vld [vmem:[%s689_s5 + $0x28] sm:$0xff]  ;;  %v323_v19 = vadd.f32 %v700_v1, %v303_v9  ;;  %v341_v20 = vld [vmem:[%s695_s8 + $0x20] sm:$0xff]  ;;  %v287_v22 = vld [vmem:[%s689_s5 + $0x30] sm:$0xff] }
  0x17   : > { %v306_v21 = vmul.f32 %v681_v0, %v286_v18  ;;  %v288_v23 = vld [vmem:[%s689_s5 + $0x38] sm:$0xff]  ;;  %v324_v26 = vadd.f32 %v700_v1, %v304_v15  ;;  %v342_v28 = vld [vmem:[%s695_s8 + $0x28] sm:$0xff]  ;;  %v307_v31 = vmul.f32 %v681_v0, %v287_v22  ;;  %v289_v33 = vld [vmem:[%s689_s5 + $0x40] sm:$0xff] }
  0x18   : > { %v353_v24 = vadd.f32 %v337_v5, %v321_v12  ;;  %v354_v25 = vadd.f32 %v338_v8, %v322_v13  ;;  %v325_v27 = vadd.f32 %v700_v1, %v305_v17  ;;  %v355_v29 = vadd.f32 %v339_v14, %v323_v19  ;;  %v290_v34 = vld [vmem:[%s689_s5 + $0x48] sm:$0xff]  ;;  %v343_v39 = vld [vmem:[%s695_s8 + $0x30] sm:$0xff]  ;;  %v344_v40 = vld [vmem:[%s695_s8 + $0x38] sm:$0xff] }
  0x19   : > { %v326_v30 = vadd.f32 %v700_v1, %v306_v21  ;;  %v308_v32 = vmul.f32 %v681_v0, %v288_v23  ;;  %v356_v37 = vadd.f32 %v340_v16, %v324_v26  ;;  %v291_v41 = vld [vmem:[%s689_s5 + $0x50] sm:$0xff]  ;;  %v327_v44 = vadd.f32 %v700_v1, %v307_v31  ;;  %v292_v46 = vld [vmem:[%s689_s5 + $0x58] sm:$0xff]  ;;  %v293_v47 = vld [vmem:[%s689_s5 + $0x60] sm:$0xff] }
  0x1a   : > { %v369_v35 = vmax.f32 %v353_v24, 0.0  ;;  %v370_v36 = vmax.f32 %v354_v25, 0.0  ;;  %v357_v38 = vadd.f32 %v341_v20, %v325_v27  ;;  %v371_v42 = vmax.f32 %v355_v29, 0.0  ;;  %v294_v52 = vld [vmem:[%s689_s5 + $0x68] sm:$0xff]  ;;  %v345_v56 = vld [vmem:[%s695_s8 + $0x40] sm:$0xff]  ;;  %v347_v61 = vld [vmem:[%s695_s8 + $0x50] sm:$0xff] }
  0x1b   : > { %v358_v43 = vadd.f32 %v342_v28, %v326_v30  ;;  %v328_v45 = vadd.f32 %v700_v1, %v308_v32  ;;  %v372_v48 = vmax.f32 %v356_v37, 0.0  ;;  %v309_v50 = vmul.f32 %v681_v0, %v289_v33  ;;  %v346_v57 = vld [vmem:[%s695_s8 + $0x48] sm:$0xff]  ;;  %v295_v2 = vld [vmem:[%s689_s5 + $0x70] sm:$0xff]  ;;  %v296_v3 = vld [vmem:[%s689_s5 + $0x78] sm:$0xff] }
  0x1c   : > { %386 = vst.msk [vmem:[%s731_s13] sm:$0xff] %vm385_vm0, %v369_v35  ;;  %v373_v49 = vmax.f32 %v357_v38, 0.0  ;;  %v310_v51 = vmul.f32 %v681_v0, %v290_v34  ;;  %v359_v54 = vadd.f32 %v343_v39, %v327_v44  ;;  %v311_v58 = vmul.f32 %v681_v0, %v291_v41  ;;  %v348_v7 = vld [vmem:[%s695_s8 + $0x58] sm:$0xff]  ;;  %v349_v8 = vld [vmem:[%s695_s8 + $0x60] sm:$0xff]  ;;  %v350_v14 = vld [vmem:[%s695_s8 + $0x68] sm:$0xff] }
  0x1d   : > { %387 = vst.msk [vmem:[%s731_s13 + $0x8] sm:$0xff] %vm385_vm0, %v370_v36  ;;  %v374_v53 = vmax.f32 %v358_v43, 0.0  ;;  %v360_v55 = vadd.f32 %v344_v40, %v328_v45  ;;  %v329_v59 = vadd.f32 %v700_v1, %v309_v50  ;;  %v312_v62 = vmul.f32 %v681_v0, %v292_v46  ;;  %v351_v23 = vld [vmem:[%s695_s8 + $0x70] sm:$0xff]  ;;  %v352_v24 = vld [vmem:[%s695_s8 + $0x78] sm:$0xff] }
  0x1e   : > { %388 = vst.msk [vmem:[%s731_s13 + $0x10] sm:$0xff] %vm385_vm0, %v371_v42  ;;  %v330_v60 = vadd.f32 %v700_v1, %v310_v51  ;;  %v313_v63 = vmul.f32 %v681_v0, %v293_v47  ;;  %v375_v4 = vmax.f32 %v359_v54, 0.0  ;;  %v331_v6 = vadd.f32 %v700_v1, %v311_v58 }
  0x1f   : > { %389 = vst.msk [vmem:[%s731_s13 + $0x18] sm:$0xff] %vm385_vm0, %v372_v48  ;;  %v376_v5 = vmax.f32 %v360_v55, 0.0  ;;  %v314_v9 = vmul.f32 %v681_v0, %v294_v52  ;;  %v361_v10 = vadd.f32 %v345_v56, %v329_v59  ;;  %v332_v12 = vadd.f32 %v700_v1, %v312_v62 }
  0x20   : > { %390 = vst.msk [vmem:[%s731_s13 + $0x20] sm:$0xff] %vm385_vm0, %v373_v49  ;;  %v362_v11 = vadd.f32 %v346_v57, %v330_v60  ;;  %v333_v13 = vadd.f32 %v700_v1, %v313_v63  ;;  %v363_v15 = vadd.f32 %v347_v61, %v331_v6  ;;  %v315_v17 = vmul.f32 %v681_v0, %v295_v2 }
  0x21   : > { %391 = vst.msk [vmem:[%s731_s13 + $0x28] sm:$0xff] %vm385_vm0, %v374_v53  ;;  %v334_v16 = vadd.f32 %v700_v1, %v314_v9  ;;  %v316_v18 = vmul.f32 %v681_v0, %v296_v3  ;;  %v377_v19 = vmax.f32 %v361_v10, 0.0  ;;  %v364_v21 = vadd.f32 %v348_v7, %v332_v12 }
  0x22   : > { %392 = vst.msk [vmem:[%s731_s13 + $0x30] sm:$0xff] %vm385_vm0, %v375_v4  ;;  %v378_v20 = vmax.f32 %v362_v11, 0.0  ;;  %v365_v22 = vadd.f32 %v349_v8, %v333_v13  ;;  %v379_v25 = vmax.f32 %v363_v15, 0.0  ;;  %v335_v0 = vadd.f32 %v700_v1, %v315_v17 }
  0x23   : > { %393 = vst.msk [vmem:[%s731_s13 + $0x38] sm:$0xff] %vm385_vm0, %v376_v5  ;;  %v366_v26 = vadd.f32 %v350_v14, %v334_v16  ;;  %v336_v27 = vadd.f32 %v700_v1, %v316_v18  ;;  %v380_v28 = vmax.f32 %v364_v21, 0.0 }
  0x24   : > { %394 = vst.msk [vmem:[%s731_s13 + $0x40] sm:$0xff] %vm385_vm0, %v377_v19  ;;  %v381_v29 = vmax.f32 %v365_v22, 0.0  ;;  %v367_v31 = vadd.f32 %v351_v23, %v335_v0 }
  0x25   : > { %395 = vst.msk [vmem:[%s731_s13 + $0x48] sm:$0xff] %vm385_vm0, %v378_v20  ;;  %v382_v30 = vmax.f32 %v366_v26, 0.0  ;;  %v368_v32 = vadd.f32 %v352_v24, %v336_v27 }
  0x26   : > { %396 = vst.msk [vmem:[%s731_s13 + $0x50] sm:$0xff] %vm385_vm0, %v379_v25  ;;  %v383_v33 = vmax.f32 %v367_v31, 0.0 }
  0x27   : > { %397 = vst.msk [vmem:[%s731_s13 + $0x58] sm:$0xff] %vm385_vm0, %v380_v28  ;;  %v384_v34 = vmax.f32 %v368_v32, 0.0 }
  0x28   : > { %398 = vst.msk [vmem:[%s731_s13 + $0x60] sm:$0xff] %vm385_vm0, %v381_v29 }
  0x29   : > { %399 = vst.msk [vmem:[%s731_s13 + $0x68] sm:$0xff] %vm385_vm0, %v382_v30 }
  0x2a   : > { %400 = vst.msk [vmem:[%s731_s13 + $0x70] sm:$0xff] %vm385_vm0, %v383_v33 }
  0x2b   : > { %401 = vst.msk [vmem:[%s731_s13 + $0x78] sm:$0xff] %vm385_vm0, %v384_v34 }
  0x2c PF: > { %s14_s19 = sadd.s32 1, %s621_s19   ;;  %s824_s15 = smov %s613_s17 }
  0x2d   : > { %p11_p7 = scmp.ge.s32.totalorder %s14_s19, 6   ;;  %s825_s16 = smov %s617_s18 }
  0x2e   : > { %s826_s17 = smov %s829_s20  ;;  %s827_s18 = smov %s833_s21 }
  0x2f   :  { %13 = sbr.rel (!%p11_p7) target bundleno = 3 (0x3), region = 69 }

// kernel: basic_block_pallas.4
= control target key start
LH: loop header
LB: loop body
LE: loop exit
PB: predicated region body
PF: predicated region fallthrough
CT: control target
= control target key end

     0   :  { %s4650_s21 = smov 0   ;;  %s4652_s22 = smov 0   ;;  %s5640_s0 = inlined_call_operand.vmem [shape: f32[2,16,16,128], index: 0, kind: input, shape index: {}]   ;;  %s5641_s1 = inlined_call_operand.vmem [shape: f32[4,2,16,128], index: 1, kind: input, shape index: {}]   ;;  %s5642_s2 = inlined_call_operand.vmem [shape: f32[1,128], index: 2, kind: input, shape index: {}]   ;;  %s5643_s3 = inlined_call_operand.vmem [shape: f32[1,128], index: 3, kind: input, shape index: {}]   ;;  %s5644_s4 = inlined_call_operand.vmem [shape: bf16[9,128,128], index: 4, kind: input, shape index: {}]   ;;  %s5645_s5 = inlined_call_operand.vmem [shape: f32[2,16,16,128], index: 5, kind: output, shape index: {0}]   ;;  %s5646_s6 = inlined_call_operand.vmem [shape: f32[2,2,2,128], index: 6, kind: output, shape index: {1}]  }
   0x1   :  { %s4654_s23 = smov 0   ;;  %s4656_s24 = smov 0  }
   0x2   :  { %s4658_s25 = smov 0  }
   0x3 LB: > { %s26_s26 = sadd.s32 1, %s4605_s23  ;;  %s29_s27 = sadd.s32 1, %s4609_s24  ;;  %s4613_s25 = sphi %s4658_s25, %s17_s25   ;;  %s4609_s24 = sphi %s4656_s24, %s5662_s24   ;;  %s4605_s23 = sphi %s4654_s23, %s5661_s23   ;;  %s4601_s22 = sphi %s4652_s22, %s5660_s22   ;;  %s4597_s21 = sphi %s4650_s21, %s5659_s21  }
   0x4   : > { %p27_p0 = scmp.ge.s32.totalorder %s26_s26, 2  ;;  %p3854_p1 = scmp.ge.s32.totalorder %s4613_s25, 1 }
   0x5   : > { %p257_p2 = scmp.lt.s32.totalorder %s4613_s25, 5 }
   0x6   : > { %s5664_s26 = smov (%p27_p0, %s26_s26), 0  ;;  %s5666_s27 = smov (!%p27_p0, %s29_s27), %s4609_s24 }
   0x7   : > { %p258_p3 = pnand %p3854_p1, %p257_p2  ;;  %p31_p4 = scmp.ge.s32.totalorder %s5666_s27, 2 }
   0x8   : > { %s3855_s30 = sshll.u32 (!%p258_p3), %s4597_s21, 3  ;;  %p313_p5 = scmp.lt.s32.totalorder (!%p258_p3), %s4601_s22, 1 }
   0x9   : > { %s5668_s27 = smov (%p31_p4, %s5666_s27), 0  ;;  %261 = sbr.rel (%p258_p3) target bundleno = 492 (0x1ec), region = 40 }
   0xa   : > { %p315_p6 = scmp.lt.s32.totalorder (!%p258_p3), %s3855_s30, 15  ;;  %s3859_s14 = sshll.u32 (!%p258_p3), %s4601_s22, 1 }
   0xb   : > { %s324_s18 = sadd.s32 (!%p258_p3), %s4597_s21, %s3859_s14  ;;  %p421_p8 = scmp.eq.s32.totalorder (!%p258_p3), %s4597_s21, 0 }
   0xc   : > { %p325_p7 = scmp.lt.s32.totalorder (!%p258_p3), %s324_s18, 3  ;;  %p441_p9 = scmp.eq.s32.totalorder (!%p258_p3), %s4597_s21, 1 }
   0xd   : > { %p345_p10 = scmp.lt.s32.totalorder (!%p258_p3), %s4597_s21, 1 }
   0xe   : > { %v4422_v0 = vld [vmem:[%s5644_s4 + $0x38] sm:$0xff]  ;;  %vm352_vm0 = vcmask 1040384   ;;  %vm353_vm1 = vsmask.f32 256  ;;  %v4421_v1 = vld [vmem:[%s5644_s4 + $0x30] sm:$0xff]  ;;  %s4693_s9 = scalar_select %p313_p5, %s4601_s22, 1 }
   0xf   : > { %4503 = vmatpush.bf16.msra.mxu1 %v4422_v0  ;;  %4504 = vmatpush.bf16.msra.mxu2 %v4422_v0  ;;  %vm4697_vm2 = vmand %vm352_vm0, %vm353_vm1  ;;  %s5670_s30 = smov (!%p315_p6, %s3855_s30), 15  ;;  %v361_v3 = vld [vmem:[#allocation2 + $0x18] sm:$0x1]  ;;  %v4420_v4 = vld [vmem:[%s5644_s4 + $0x28] sm:$0xff]  ;;  %vm385_vm3 = vsmask.f32 7938 }
  0x10   : > { %4505 = vmatpush.bf16.msra.mxu3 %v4422_v0  ;;  %949 = vmatpush.bf16.msra.mxu0 %v4422_v0  ;;  %s3857_s12 = sshll.u32 %s4693_s9, 5  ;;  %v362_v5 = vsel %vm4697_vm2, 0, %v361_v3  ;;  %s3856_s13 = sshll.u32 %s5670_s30, 1  ;;  %v4713_v6 = vld [vmem:[%s5642_s2] ss:$0 sm:$0xff]  ;;  %vm477_vm4 = vcmask 1043456   ;;  %vm4880_vm9 = vmand %vm352_vm0, %vm385_vm3 }
  0x11   : > { %363 = vst [vmem:[#allocation2 + $0x18] sm:$0x1] %v362_v5  ;;  %s4708_s15 = sadd.s32 %s3857_s12, %s3856_s13  ;;  %v367_v7 = vld [vmem:[#allocation2 + $0x30] sm:$0x1]  ;;  %v373_v8 = vld [vmem:[#allocation2 + $0x48] sm:$0x1]  ;;  %vm4794_vm7 = vmand %vm477_vm4, %vm385_vm3 }
  0x12   : > { %s3858_s19 = sshll.u32 %s4708_s15, 3  ;;  %v4720_v9 = vld [vmem:[%s5643_s3] ss:$0 sm:$0xff]  ;;  %v368_v10 = vsel %vm4697_vm2, 0, %v367_v7  ;;  %v374_v11 = vsel %vm4697_vm2, 0, %v373_v8  ;;  %s5672_s18 = smov (!%p325_p7, %s324_s18), 3 }
  0x13   : > { %4506 = vmatpush.bf16.msra.mxu1 %v4421_v1  ;;  %4507 = vmatpush.bf16.msra.mxu2 %v4421_v1  ;;  %v4419_v12 = vld [vmem:[%s5644_s4 + $0x20] sm:$0xff]  ;;  %s4734_s8 = scalar_lea.vmem %s5640_s0, %s3858_s19  ;;  %369 = vst [vmem:[#allocation2 + $0x30] sm:$0x1] %v368_v10  ;;  %s4406_s10 = sshll.u32 %s5672_s18, 5  ;;  %v4418_v32 = vld [vmem:[%s5644_s4 + $0x18] sm:$0xff]  ;;  %v4417_v56 = vld [vmem:[%s5644_s4 + $0x10] sm:$0xff] }
  0x14   : > { %4508 = vmatpush.bf16.msra.mxu3 %v4421_v1  ;;  %950 = vmatpush.bf16.msra.mxu0 %v4421_v1  ;;  %v355_v13 = vld [vmem:[#allocation2] sm:$0x1]  ;;  %v518_v14 = vld [vmem:[%s4734_s8 + $0x10] sm:$0xff]  ;;  %v519_v15 = vld [vmem:[%s4734_s8 + $0x18] sm:$0xff]  ;;  %375 = vst [vmem:[#allocation2 + $0x48] sm:$0x1] %v374_v11  ;;  %s4767_s18 = scalar_lea.vmem %s5641_s1, %s4406_s10  ;;  %s5585_s22 = scalar_lea.vmem %s5645_s5, %s3858_s19 }
  0x15   : > { %v522_v16 = vld [vmem:[%s4734_s8 + $0x30] sm:$0xff]  ;;  %v356_v17 = vsel %vm4697_vm2, 0, %v355_v13  ;;  %v538_v18 = vmul.f32 %v4713_v6, %v518_v14  ;;  %v539_v19 = vmul.f32 %v4713_v6, %v519_v15  ;;  %v523_v20 = vld [vmem:[%s4734_s8 + $0x38] sm:$0xff]  ;;  %v4569_v30 = vld [vmem:[%s5642_s2] ss:$0 sm:$0xff]  ;;  %vm1475_vm10 = vcmask 1042432  }
  0x16   : > { %v542_v21 = vmul.f32 %v4713_v6, %v522_v16  ;;  %v526_v22 = vld [vmem:[%s4734_s8 + $0x50] sm:$0xff]  ;;  %v527_v23 = vld [vmem:[%s4734_s8 + $0x58] sm:$0xff]  ;;  %357 = vst [vmem:[#allocation2] sm:$0x1] %v356_v17  ;;  %v543_v24 = vmul.f32 %v4713_v6, %v523_v20  ;;  %v520_v31 = vld [vmem:[%s4734_s8 + $0x20] sm:$0xff]  ;;  %vm1476_vm13 = vcmask 1046532  }
  0x17   : > { %4509 = vmatpush.bf16.msra.mxu1 %v4420_v4  ;;  %4510 = vmatpush.bf16.msra.mxu2 %v4420_v4  ;;  %v546_v25 = vmul.f32 %v4713_v6, %v526_v22  ;;  %v547_v26 = vmul.f32 %v4713_v6, %v527_v23  ;;  %v558_v27 = vadd.f32 %v4720_v9, %v538_v18  ;;  %vm455_vm5 = vsmask.f32 4368  ;;  %v364_v36 = vld [vmem:[#allocation2 + $0x24] sm:$0x1]  ;;  %v418_v41 = vld [vmem:[%s4767_s18 + $0x8] sm:$0xff]  ;;  %vm5012_vm14 = vmor %vm1475_vm10, %vm1476_vm13  ;;  %s5674_s21 = smov (!%p345_p10, %s4597_s21), 1 }
  0x18   : > { %4511 = vmatpush.bf16.msra.mxu3 %v4420_v4  ;;  %951 = vmatpush.bf16.msra.mxu0 %v4420_v4  ;;  %v559_v28 = vadd.f32 %v4720_v9, %v539_v19  ;;  %v562_v29 = vadd.f32 %v4720_v9, %v542_v21  ;;  %v563_v33 = vadd.f32 %v4720_v9, %v543_v24  ;;  %v417_v40 = vld [vmem:[%s4767_s18] sm:$0xff]  ;;  %v365_v42 = vsel %vm4697_vm2, 0, %v364_v36  ;;  %vm4785_vm6 = vmor %vm353_vm1, %vm455_vm5  ;;  %v521_v8 = vld [vmem:[%s4734_s8 + $0x28] sm:$0xff]  ;;  %s4807_s10 = scalar_select %p421_p8, 1, 0 }
  0x19   : > { %v566_v34 = vadd.f32 %v4720_v9, %v546_v25  ;;  %v567_v35 = vadd.f32 %v4720_v9, %v547_v26  ;;  %v574_v37 = vmax.f32 %v558_v27, 0.0  ;;  %v4774_v46 = vmul.f32 %v4713_v6, %v520_v31  ;;  %v4570_v51 = vld [vmem:[%s5643_s3] ss:$0 sm:$0xff]  ;;  %366 = vst [vmem:[#allocation2 + $0x24] sm:$0x1] %v365_v42  ;;  %v4416_v16 = vld [vmem:[%s5644_s4 + $0x8] sm:$0xff] }
  0x1a   : > { %v575_v38 = vmax.f32 %v559_v28, 0.0  ;;  %v578_v39 = vmax.f32 %v562_v29, 0.0  ;;  %v579_v43 = vmax.f32 %v563_v33, 0.0  ;;  %v426_v50 = vmul.f32 %v4569_v30, %v417_v40  ;;  %v772_v11 = vld [vmem:[#allocation2 + $0x18] sm:$0xf]  ;;  %v4415_v36 = vld [vmem:[%s5644_s4] sm:$0xff] }
  0x1b   : > { %4512 = vmatpush.bf16.msra.mxu1 %v4419_v12  ;;  %4513 = vmatpush.bf16.msra.mxu2 %v4419_v12  ;;  %v582_v44 = vmax.f32 %v566_v34, 0.0  ;;  %v583_v45 = vmax.f32 %v567_v35, 0.0  ;;  %v590_v47 = vpack.c.bf16 %v574_v37, %v574_v37  ;;  %v427_v55 = vmul.f32 %v4569_v30, %v418_v41  ;;  %v786_v20 = vld [vmem:[#allocation2 + $0x30] sm:$0xf]  ;;  %v370_v30 = vld [vmem:[#allocation2 + $0x3c] sm:$0x1] }
  0x1c   : > { %4514 = vmatpush.bf16.msra.mxu3 %v4419_v12  ;;  %952 = vmatpush.bf16.msra.mxu0 %v4419_v12  ;;  %v591_v48 = vpack.c.bf16 %v575_v38, %v575_v38  ;;  %v594_v49 = vpack.c.bf16 %v578_v39, %v578_v39  ;;  %v595_v52 = vpack.c.bf16 %v579_v43, %v579_v43  ;;  %v800_v33 = vld [vmem:[#allocation2 + $0x48] sm:$0xf]  ;;  %v4438_v40 = vld [vmem:[%s5644_s4 + $0xb8] sm:$0xff]  ;;  %vm1038_vm11 = vsmask.f32 3328  ;;  %s3866_s15 = sshll.u32 %s4693_s9, 1 }
  0x1d   : > { %v598_v53 = vpack.c.bf16 %v582_v44, %v582_v44  ;;  %v599_v54 = vpack.c.bf16 %v583_v45, %v583_v45  ;;  %v622_v57 = vshrl.u32 %v590_v47, 16  ;;  %v625_v58 = vshll.u32 %v590_v47, 16  ;;  %v4430_v41 = vld [vmem:[%s5644_s4 + $0x78] sm:$0xff]  ;;  %s5461_s13 = scalar_select %p441_p9, 1, 0 }
  0x1e   : > { %v630_v59 = vshrl.u32 %v591_v48, 16  ;;  %v633_v60 = vshll.u32 %v591_v48, 16  ;;  %v656_v61 = vshrl.u32 %v594_v49, 16  ;;  %v659_v62 = vshll.u32 %v594_v49, 16  ;;  %v4454_v42 = vld [vmem:[%s5644_s4 + $0xf8] sm:$0xff]  ;;  %v524_v48 = vld [vmem:[%s4734_s8 + $0x40] sm:$0xff]  ;;  %s348_s19 = sadd.s32 %s3866_s15, %s5674_s21 }
  0x1f   : > { %4515 = vmatpush.bf16.msra.mxu1 %v4418_v32  ;;  %4516 = vmatpush.bf16.msra.mxu2 %v4418_v32  ;;  %v664_v63 = vshrl.u32 %v595_v52, 16  ;;  %v667_v0 = vshll.u32 %v595_v52, 16  ;;  %v624_v3 = vrot.slane %v622_v57, 7  ;;  %v690_v5 = vshrl.u32 %v598_v53, 16  ;;  %s3867_s29 = sshll.u32 %s348_s19, 1 }
  0x20   : > { %4517 = vmatpush.bf16.msra.mxu3 %v4418_v32  ;;  %953 = vmatpush.bf16.msra.mxu0 %v4418_v32  ;;  %v4789_v4 = vrot.slane %v630_v59, 7  ;;  %v432_v7 = vadd.f32 %v4570_v51, %v426_v50  ;;  %v658_v12 = vrot.slane %v656_v61, 7  ;;  %v693_v14 = vshll.u32 %v598_v53, 16  ;;  %v525_v53 = vld [vmem:[%s4734_s8 + $0x48] sm:$0xff]  ;;  %s350_s7 = scalar_lea.vmem %s5646_s6, %s3867_s29 }
  0x21   : > { %v4798_v13 = vrot.slane %v664_v63, 7  ;;  %v698_v15 = vshrl.u32 %v599_v54, 16  ;;  %v627_v17 = vor.u32 %v625_v58, %v624_v3  ;;  %v628_v18 = vrot.slane %v624_v3, 4 }
  0x22   : > { %v635_v19 = vor.u32 %v633_v60, %v4789_v4  ;;  %v701_v21 = vshll.u32 %v599_v54, 16  ;;  %v661_v22 = vor.u32 %v659_v62, %v658_v12  ;;  %v662_v23 = vrot.slane %v658_v12, 4  ;;  %v4437_v60 = vld [vmem:[%s5644_s4 + $0xb0] sm:$0xff]  ;;  %v528_v12 = vld [vmem:[%s4734_s8 + $0x60] sm:$0xff] }
  0x23   : > { %4518 = vmatpush.bf16.msra.mxu1 %v4417_v56  ;;  %4519 = vmatpush.bf16.msra.mxu2 %v4417_v56  ;;  %v669_v24 = vor.u32 %v667_v0, %v4798_v13  ;;  %v541_v25 = vmul.f32 %v4713_v6, %v521_v8  ;;  %v773_v27 = vsel %vm4794_vm7, %v627_v17, %v772_v11  ;;  %v692_v28 = vrot.slane %v690_v5, 7  ;;  %v376_v0 = vld [vmem:[#allocation2 + $0x54] sm:$0x1] }
  0x24   : > { %4520 = vmatpush.bf16.msra.mxu3 %v4417_v56  ;;  %954 = vmatpush.bf16.msra.mxu0 %v4417_v56  ;;  %v636_v26 = vsel %vm4785_vm6, %v628_v18, %v635_v19  ;;  %v4814_v29 = vrot.slane %v698_v15, 7  ;;  %774 = vst [vmem:[#allocation2 + $0x18] sm:$0xf] %v773_v27  ;;  %v787_v32 = vsel %vm4794_vm7, %v661_v22, %v786_v20  ;;  %v434_v35 = vmax.f32 %v432_v7, 0.0  ;;  %v4429_v11 = vld [vmem:[%s5644_s4 + $0x70] sm:$0xff] }
  0x25   : > { %v670_v31 = vsel %vm4785_vm6, %v662_v23, %v669_v24  ;;  %v433_v34 = vadd.f32 %v4570_v51, %v427_v55  ;;  %775 = vst [vmem:[#allocation2 + $0x1c] sm:$0xf] %v636_v26  ;;  %v695_v37 = vor.u32 %v693_v14, %v692_v28  ;;  %v696_v38 = vrot.slane %v692_v28, 4  ;;  %v4462_v51 = vld [vmem:[%s5644_s4 + $0x138] sm:$0xff]  ;;  %v479_v15 = vld [vmem:[#allocation2] sm:$0xf] }
  0x26   : > { %v703_v39 = vor.u32 %v701_v21, %v4814_v29  ;;  %788 = vst [vmem:[#allocation2 + $0x30] sm:$0xf] %v787_v32  ;;  %v437_v44 = vstv %s4807_s10  ;;  %v560_v45 = vadd.f32 %v4720_v9, %v4774_v46  ;;  %v561_v47 = vadd.f32 %v4720_v9, %v541_v25  ;;  %v4461_v23 = vld [vmem:[%s5644_s4 + $0x130] sm:$0xff]  ;;  %v4436_v24 = vld [vmem:[%s5644_s4 + $0xa8] sm:$0xff] }
  0x27   : > { %4521 = vmatpush.bf16.msra.mxu1 %v4416_v16  ;;  %4522 = vmatpush.bf16.msra.mxu2 %v4416_v16  ;;  %v435_v43 = vmax.f32 %v433_v34, 0.0  ;;  %789 = vst [vmem:[#allocation2 + $0x34] sm:$0xf] %v670_v31  ;;  %v801_v50 = vsel %vm4794_vm7, %v695_v37, %v800_v33  ;;  %vm438_vm8 = vcmp.eq.s32.totalorder %v437_v44, 1  ;;  %v371_v52 = vsel %vm4697_vm2, 0, %v370_v30  ;;  %v4428_v25 = vld [vmem:[%s5644_s4 + $0x68] sm:$0xff] }
  0x28   : > { %4523 = vmatpush.bf16.msra.mxu3 %v4416_v16  ;;  %955 = vmatpush.bf16.msra.mxu0 %v4416_v16  ;;  %v704_v49 = vsel %vm4785_vm6, %v696_v38, %v703_v39  ;;  %802 = vst [vmem:[#allocation2 + $0x48] sm:$0xf] %v801_v50  ;;  %v439_v46 = vsel %vm438_vm8, 0.0, %v434_v35  ;;  %v576_v55 = vmax.f32 %v560_v45, 0.0  ;;  %v577_v56 = vmax.f32 %v561_v47, 0.0  ;;  %v4453_v16 = vld [vmem:[%s5644_s4 + $0xf0] sm:$0xff] }
  0x29   : > { %v440_v54 = vsel %vm438_vm8, 0.0, %v435_v43  ;;  %803 = vst [vmem:[#allocation2 + $0x4c] sm:$0xf] %v704_v49  ;;  %v453_v57 = vpack.c.bf16 %v439_v46, %v439_v46  ;;  %v544_v59 = vmul.f32 %v4713_v6, %v524_v48  ;;  %v545_v63 = vmul.f32 %v4713_v6, %v525_v53  ;;  %v358_v34 = vld [vmem:[#allocation2 + $0xc] sm:$0x1] }
  0x2a   : > { %v454_v58 = vpack.c.bf16 %v440_v54, %v440_v54  ;;  %v592_v61 = vpack.c.bf16 %v576_v55, %v576_v55  ;;  %v593_v62 = vpack.c.bf16 %v577_v56, %v577_v56  ;;  %372 = vst [vmem:[#allocation2 + $0x3c] sm:$0x1] %v371_v52  ;;  %v377_v32 = vsel %vm4697_vm2, 0, %v376_v0  ;;  %v779_v39 = vld [vmem:[#allocation2 + $0x24] sm:$0xf]  ;;  %v4460_v43 = vld [vmem:[%s5644_s4 + $0x128] sm:$0xff] }
  0x2b   : > { %4524 = vmatpush.bf16.msra.mxu1 %v4415_v36  ;;  %4525 = vmatpush.bf16.msra.mxu2 %v4415_v36  ;;  %v458_v3 = vshrl.u32 %v453_v57, 16  ;;  %v461_v5 = vshll.u32 %v453_v57, 16  ;;  %v564_v26 = vadd.f32 %v4720_v9, %v544_v59  ;;  %v565_v27 = vadd.f32 %v4720_v9, %v545_v63  ;;  %378 = vst [vmem:[#allocation2 + $0x54] sm:$0x1] %v377_v32  ;;  %v516_v52 = vld [vmem:[%s4734_s8] sm:$0xff]  ;;  %v517_v53 = vld [vmem:[%s4734_s8 + $0x8] sm:$0xff] }
  0x2c   : > { %4526 = vmatpush.bf16.msra.mxu3 %v4415_v36  ;;  %956 = vmatpush.bf16.msra.mxu0 %v4415_v36  ;;  %v466_v7 = vshrl.u32 %v454_v58, 16  ;;  %v469_v8 = vshll.u32 %v454_v58, 16  ;;  %v4409_v14 = vld [vmem:[#allocation2 + $0x18] sm:$0xff]  ;;  %v639_v17 = vshrl.u32 %v592_v61, 16  ;;  %v642_v18 = vshll.u32 %v592_v61, 16  ;;  %v4435_v58 = vld [vmem:[%s5644_s4 + $0xa0] sm:$0xff] }
  0x2d   : > { %v647_v19 = vshrl.u32 %v593_v62, 16  ;;  %v650_v20 = vshll.u32 %v593_v62, 16  ;;  %v460_v21 = vrot.slane %v458_v3, 7  ;;  %v548_v33 = vmul.f32 %v4713_v6, %v528_v12  ;;  %v387_v46 = vld [vmem:[#allocation2 + $0x8] sm:$0x1]  ;;  %v4427_v59 = vld [vmem:[%s5644_s4 + $0x60] sm:$0xff] }
  0x2e   : > { %v4860_v22 = vrot.slane %v466_v7, 7  ;;  %967 = vmatmul.bf16.vlgmr.msra.gmra.mxu1 %v4409_v14  ;;  %v4411_v28 = vld [vmem:[#allocation2 + $0x30] sm:$0xff]  ;;  %v641_v30 = vrot.slane %v639_v17, 7  ;;  %v580_v50 = vmax.f32 %v564_v26, 0.0  ;;  %v359_v57 = vsel %vm4697_vm2, 0, %v358_v34  ;;  %v4451_v63 = vld [vmem:[%s5644_s4 + $0xe0] sm:$0xff] }
  0x2f   : > { %1631 = vmatpush.bf16.msrb.mxu2 %v4438_v40  ;;  %1330 = vmatpush.bf16.msrb.mxu1 %v4430_v41  ;;  %v4873_v31 = vrot.slane %v647_v19, 7  ;;  %v463_v36 = vor.u32 %v461_v5, %v460_v21  ;;  %v464_v37 = vrot.slane %v460_v21, 4  ;;  %v529_v40 = vld [vmem:[%s4734_s8 + $0x68] sm:$0xff]  ;;  %v568_v62 = vadd.f32 %v4720_v9, %v548_v33  ;;  %v4459_v0 = vld [vmem:[%s5644_s4 + $0x120] sm:$0xff]  ;;  %360 = vst [vmem:[#allocation2 + $0xc] sm:$0x1] %v359_v57 }
  0x30   : > { %1857 = vmatpush.bf16.msrb.mxu3 %v4454_v42  ;;  %2267 = vmatpush.bf16.msrb.mxu0 %v4462_v51  ;;  %v471_v38 = vor.u32 %v469_v8, %v4860_v22  ;;  %v4413_v41 = vld [vmem:[#allocation2 + $0x48] sm:$0xff]  ;;  %v644_v44 = vor.u32 %v642_v18, %v641_v30  ;;  %v645_v45 = vrot.slane %v641_v30, 4  ;;  %v581_v51 = vmax.f32 %v565_v27, 0.0  ;;  %v4434_v18 = vld [vmem:[%s5644_s4 + $0x98] sm:$0xff] }
  0x31   : > { %977 = vmatmul.bf16.vlgmr.msra.gmra.mxu2 %v4411_v28  ;;  %v4452_v42 = vld [vmem:[%s5644_s4 + $0xe8] sm:$0xff]  ;;  %v652_v47 = vor.u32 %v650_v20, %v4873_v31  ;;  %v480_v49 = vsel %vm4794_vm7, %v463_v36, %v479_v15  ;;  %987 = vmatmul.bf16.vlgmr.msra.gmra.mxu3 %v4413_v41  ;;  %v549_v56 = vmul.f32 %v4713_v6, %v529_v40  ;;  %v388_v8 = vsel %vm4880_vm9, 0, %v387_v46  ;;  %v4458_v36 = vld [vmem:[%s5644_s4 + $0x118] sm:$0xff] }
  0x32   : > { %v472_v48 = vsel %vm4785_vm6, %v464_v37, %v471_v38  ;;  %481 = vst [vmem:[#allocation2] sm:$0xf] %v480_v49  ;;  %v780_v55 = vsel %vm4794_vm7, %v644_v44, %v779_v39  ;;  %v597_v61 = vpack.c.bf16 %v581_v51, %v581_v51  ;;  %v536_v5 = vmul.f32 %v4713_v6, %v516_v52  ;;  %v4433_v37 = vld [vmem:[%s5644_s4 + $0x90] sm:$0xff] }
  0x33   : > { %1632 = vmatpush.bf16.msrb.mxu2 %v4437_v60  ;;  %1331 = vmatpush.bf16.msrb.mxu1 %v4429_v11  ;;  %v653_v54 = vsel %vm4785_vm6, %v645_v45, %v652_v47  ;;  %482 = vst [vmem:[#allocation2 + $0x4] sm:$0xf] %v472_v48  ;;  %v596_v60 = vpack.c.bf16 %v580_v50, %v580_v50  ;;  %v473_v20 = vrot.slane %v4860_v22, 4  ;;  %v4425_v44 = vld [vmem:[%s5644_s4 + $0x50] sm:$0xff]  ;;  %vm1039_vm12 = vsmask.f32 7440 }
  0x34   : > { %1858 = vmatpush.bf16.msrb.mxu3 %v4453_v16  ;;  %2268 = vmatpush.bf16.msrb.mxu0 %v4461_v23  ;;  %781 = vst [vmem:[#allocation2 + $0x24] sm:$0xf] %v780_v55  ;;  %v569_v3 = vadd.f32 %v4720_v9, %v549_v56  ;;  %v537_v7 = vmul.f32 %v4713_v6, %v517_v53  ;;  %v681_v14 = vshrl.u32 %v597_v61, 16  ;;  %v684_v15 = vshll.u32 %v597_v61, 16  ;;  %v807_v48 = vld [vmem:[#allocation2 + $0x54] sm:$0xf]  ;;  %vm5022_vm15 = vmor %vm1038_vm11, %vm1039_vm12 }
  0x35   : > { %782 = vst [vmem:[#allocation2 + $0x28] sm:$0xf] %v653_v54  ;;  %v673_v11 = vshrl.u32 %v596_v60, 16  ;;  %v676_v12 = vshll.u32 %v596_v60, 16  ;;  %v584_v16 = vmax.f32 %v568_v62, 0.0  ;;  %v556_v19 = vadd.f32 %v4720_v9, %v536_v5  ;;  %v4449_v50 = vld [vmem:[%s5644_s4 + $0xd0] sm:$0xff] }
  0x36   : > { %v585_v17 = vmax.f32 %v569_v3, 0.0  ;;  %v557_v6 = vadd.f32 %v4720_v9, %v537_v7  ;;  %v4930_v23 = vrot.slane %v681_v14, 7  ;;  %389 = vst [vmem:[#allocation2 + $0x8] sm:$0x1] %v388_v8  ;;  %v4450_v9 = vld [vmem:[%s5644_s4 + $0xd8] sm:$0xff]  ;;  %v4457_v51 = vld [vmem:[%s5644_s4 + $0x110] sm:$0xff] }
  0x37   : > { %1633 = vmatpush.bf16.msrb.mxu2 %v4436_v24  ;;  %1332 = vmatpush.bf16.msrb.mxu1 %v4428_v25  ;;  %v675_v21 = vrot.slane %v673_v11, 7  ;;  %v4426_v24 = vld [vmem:[%s5644_s4 + $0x58] sm:$0xff]  ;;  %v600_v26 = vpack.c.bf16 %v584_v16, %v584_v16  ;;  %v572_v28 = vmax.f32 %v556_v19, 0.0  ;;  %v390_v16 = vld [vmem:[#allocation2 + $0x14] sm:$0x1] }
  0x38   : > { %1859 = vmatpush.bf16.msrb.mxu3 %v4452_v42  ;;  %2269 = vmatpush.bf16.msrb.mxu0 %v4460_v43  ;;  %v793_v25 = vld [vmem:[#allocation2 + $0x3c] sm:$0xf]  ;;  %v601_v27 = vpack.c.bf16 %v585_v17, %v585_v17  ;;  %v573_v30 = vmax.f32 %v557_v6, 0.0  ;;  %v686_v34 = vor.u32 %v684_v15, %v4930_v23  ;;  %v765_v19 = vld [vmem:[#allocation2 + $0xc] sm:$0xf] }
  0x39   : > { %v678_v32 = vor.u32 %v676_v12, %v675_v21  ;;  %v679_v33 = vrot.slane %v675_v21, 4  ;;  %v4945_v38 = vld [vmem:[#allocation2] sm:$0xf]  ;;  %v707_v40 = vshrl.u32 %v600_v26, 16  ;;  %v710_v41 = vshll.u32 %v600_v26, 16  ;;  %v4456_v12 = vld [vmem:[%s5644_s4 + $0x108] sm:$0xff] }
  0x3a   : > { %v4407_v39 = vld [vmem:[#allocation2] sm:$0xff]  ;;  %v715_v42 = vshrl.u32 %v601_v27, 16  ;;  %v718_v43 = vshll.u32 %v601_v27, 16  ;;  %v588_v49 = vpack.c.bf16 %v572_v28, %v572_v28  ;;  %v589_v54 = vpack.c.bf16 %v573_v30, %v573_v30 }
  0x3b   : > { %1634 = vmatpush.bf16.msrb.mxu2 %v4435_v58  ;;  %1333 = vmatpush.bf16.msrb.mxu1 %v4427_v59  ;;  %v687_v45 = vsel %vm4785_vm6, %v679_v33, %v686_v34  ;;  %v794_v47 = vsel %vm4794_vm7, %v678_v32, %v793_v25  ;;  %v709_v53 = vrot.slane %v707_v40, 7  ;;  %v1042_v55 = vshrl.u32 %v4945_v38, 16  ;;  %v4432_v58 = vld [vmem:[%s5644_s4 + $0x88] sm:$0xff]  ;;  %v1015_v60 = vld [vmem:[#allocation2 + $0x4] sm:$0xf] }
  0x3c   : > { %1860 = vmatpush.bf16.msrb.mxu3 %v4451_v63  ;;  %2270 = vmatpush.bf16.msrb.mxu0 %v4459_v0  ;;  %v4410_v52 = vld [vmem:[#allocation2 + $0x24] sm:$0xff]  ;;  %795 = vst [vmem:[#allocation2 + $0x3c] sm:$0xf] %v794_v47  ;;  %v4960_v46 = vrot.slane %v715_v42, 7  ;;  %v605_v56 = vshrl.u32 %v588_v49, 16  ;;  %v608_v57 = vshll.u32 %v588_v49, 16 }
  0x3d   : > { %957 = vmatmul.bf16.vlgmr.msra.gmra.mxu0 %v4407_v39  ;;  %796 = vst [vmem:[#allocation2 + $0x40] sm:$0xf] %v687_v45  ;;  %v4424_v59 = vld [vmem:[%s5644_s4 + $0x48] sm:$0xff]  ;;  %v712_v61 = vor.u32 %v710_v41, %v709_v53  ;;  %v713_v62 = vrot.slane %v709_v53, 4  ;;  %v4973_v5 = vld [vmem:[#allocation2] sm:$0xe] }
  0x3e   : > { %972 = vmatmul.bf16.gmra.mxu1 %v4410_v52  ;;  %v720_v63 = vor.u32 %v718_v43, %v4960_v46  ;;  %v4448_v0 = vld [vmem:[%s5644_s4 + $0xc8] sm:$0xff]  ;;  %v607_v7 = vrot.slane %v605_v56, 7  ;;  %v613_v8 = vshrl.u32 %v589_v54, 16  ;;  %v616_v11 = vshll.u32 %v589_v54, 16  ;;  %v1428_v15 = vld [vmem:[#allocation2 + $0x4] sm:$0xf] }
  0x3f   : > { %1635 = vmatpush.bf16.msrb.mxu2 %v4434_v18  ;;  %1334 = vmatpush.bf16.msrb.mxu1 %v4426_v24  ;;  %v483_v3 = vld [vmem:[#allocation2 + $0x8] sm:$0x1]  ;;  %v808_v18 = vsel %vm4794_vm7, %v712_v61, %v807_v48  ;;  %v1044_v6 = vrot.slane %v1042_v55, 4  ;;  %v1045_v21 = vshll.u32 %v4945_v38, 16  ;;  %v393_v24 = vld [vmem:[#allocation2 + $0x20] sm:$0x1] }
  0x40   : > { %1861 = vmatpush.bf16.msrb.mxu3 %v4450_v9  ;;  %2271 = vmatpush.bf16.msrb.mxu0 %v4458_v36  ;;  %v484_v14 = vsel %vm4697_vm2, %v473_v20, %v483_v3  ;;  %v721_v17 = vsel %vm4785_vm6, %v713_v62, %v720_v63  ;;  %809 = vst [vmem:[#allocation2 + $0x54] sm:$0xf] %v808_v18  ;;  %v611_v25 = vrot.slane %v607_v7, 4  ;;  %v4987_v26 = vrot.slane %v613_v8, 7  ;;  %v4431_v20 = vld [vmem:[%s5644_s4 + $0x80] sm:$0xff]  ;;  %v4486_v39 = vld [vmem:[%s5644_s4 + $0x1b8] sm:$0xff] }
  0x41   : > { %485 = vst [vmem:[#allocation2 + $0x8] sm:$0x1] %v484_v14  ;;  %v610_v22 = vor.u32 %v608_v57, %v607_v7  ;;  %v4423_v27 = vld [vmem:[%s5644_s4 + $0x40] sm:$0xff]  ;;  %v1051_v9 = vshll.u32 %v1015_v60, 16  ;;  %v1047_v30 = vrot.slane %v1045_v21, 5  ;;  %v1055_v32 = vshrl.u32 %v1015_v60, 16 }
  0x42   : > { %810 = vst [vmem:[#allocation2 + $0x58] sm:$0xf] %v721_v17  ;;  %v4447_v28 = vld [vmem:[%s5644_s4 + $0xc0] sm:$0xff]  ;;  %v618_v33 = vor.u32 %v616_v11, %v4987_v26  ;;  %v3980_v38 = vrot.slane %v4973_v5, 9  ;;  %v5008_v40 = vld [vmem:[#allocation2 + $0x18] sm:$0xf] }
  0x43   : > { %1636 = vmatpush.bf16.msrb.mxu2 %v4433_v37  ;;  %1335 = vmatpush.bf16.msrb.mxu1 %v4425_v44  ;;  %v766_v34 = vsel %vm4794_vm7, %v610_v22, %v765_v19  ;;  %v4455_v36 = vld [vmem:[%s5644_s4 + $0x100] sm:$0xff]  ;;  %v1053_v37 = vrot.slane %v1051_v9, 5  ;;  %v1048_v42 = vor.u32 %v1047_v30, %v1044_v6  ;;  %v1057_v43 = vrot.slane %v1055_v32, 4  ;;  %v4502_v56 = vld [vmem:[%s5644_s4 + $0x238] sm:$0xff] }
  0x44   : > { %1862 = vmatpush.bf16.msrb.mxu3 %v4449_v50  ;;  %2272 = vmatpush.bf16.msrb.mxu0 %v4457_v51  ;;  %v4412_v41 = vld [vmem:[#allocation2 + $0x3c] sm:$0xff]  ;;  %767 = vst [vmem:[#allocation2 + $0xc] sm:$0xf] %v766_v34  ;;  %v1480_v45 = vrot.slane %v1428_v15, 5  ;;  %v391_v47 = vsel %vm4880_vm9, 0, %v390_v16  ;;  %v619_v48 = vsel %vm4785_vm6, %v611_v25, %v618_v33  ;;  %v394_v52 = vsel %vm4880_vm9, 0, %v393_v24 }
  0x45   : > { %392 = vst [vmem:[#allocation2 + $0x14] sm:$0x1] %v391_v47  ;;  %v4494_v50 = vld [vmem:[%s5644_s4 + $0x1f8] sm:$0xff]  ;;  %982 = vmatmul.bf16.gmra.mxu2 %v4412_v41  ;;  %v1049_v53 = vrot.slane %v1048_v42, 4  ;;  %v1058_v54 = vor.u32 %v1057_v43, %v1053_v37  ;;  %v2003_v57 = vshrl.u32 %v5008_v40, 16  ;;  %v620_v7 = vrot.slane %v4987_v26, 4 }
  0x46   : > { %v4470_v51 = vld [vmem:[%s5644_s4 + $0x178] sm:$0xff]  ;;  %768 = vst [vmem:[#allocation2 + $0x10] sm:$0xf] %v619_v48  ;;  %v1482_v55 = vrot.slane %v1480_v45, 4  ;;  %v1481_v60 = vsel %vm5012_vm14, %v3980_v38, %v1480_v45  ;;  %v637_v8 = vrot.slane %v4789_v4, 4  ;;  %v2006_v14 = vshll.u32 %v5008_v40, 16 }
  0x47   : > { %1637 = vmatpush.bf16.msrb.mxu2 %v4432_v58  ;;  %1336 = vmatpush.bf16.msrb.mxu1 %v4424_v59  ;;  %395 = vst [vmem:[#allocation2 + $0x20] sm:$0x1] %v394_v52  ;;  %v1054_v61 = vsel %vm5022_vm15, %v1049_v53, %v1053_v37  ;;  %v1059_v62 = vrot.slane %v1058_v54, 4  ;;  %v5042_v3 = vld [vmem:[#allocation2 + $0x1c] sm:$0xf]  ;;  %v1551_v16 = vunpack.c.l.b16 %v1481_v60  ;;  %v5049_v19 = vrot.slane %v2003_v57, 4 }
  0x48   : > { %1863 = vmatpush.bf16.msrb.mxu3 %v4448_v0  ;;  %2273 = vmatpush.bf16.msrb.mxu0 %v4456_v12  ;;  %v1016_v58 = vld [vmem:[#allocation2 + $0x8] sm:$0x1]  ;;  %v1250_v15 = vunpack.c.l.b16 %v1054_v61  ;;  %v2012_v6 = vshll.u32 %v5042_v3, 16  ;;  %v4485_v26 = vld [vmem:[%s5644_s4 + $0x1b0] sm:$0xff]  ;;  %v396_v38 = vld [vmem:[#allocation2 + $0x2c] sm:$0x1] }
  0x49   : > { %v1429_v59 = vld [vmem:[#allocation2 + $0x8] sm:$0x1]  ;;  %v1061_v63 = vshll.u32 %v1016_v58, 16  ;;  %v4414_v5 = vld [vmem:[#allocation2 + $0x54] sm:$0xff] }
  0x4a   : > { %v1483_v0 = vrot.slane %v1429_v59, 5  ;;  %992 = vmatmul.bf16.gmra.mxu3 %v4414_v5  ;;  %v4493_v52 = vld [vmem:[%s5644_s4 + $0x1f0] sm:$0xff] }
  0x4b   : > { %1638 = vmatpush.bf16.msrb.mxu2 %v4431_v20  ;;  %1337 = vmatpush.bf16.msrb.mxu1 %v4423_v27  ;;  %v1063_v11 = vrot.slane %v1061_v63, 5  ;;  %v1954_v17 = vld [vmem:[#allocation2 + $0xc] sm:$0xf]  ;;  %v4469_v58 = vld [vmem:[%s5644_s4 + $0x170] sm:$0xff] }
  0x4c   : > { %1864 = vmatpush.bf16.msrb.mxu3 %v4447_v28  ;;  %2274 = vmatpush.bf16.msrb.mxu0 %v4455_v36  ;;  %v1484_v12 = vsel %vm5012_vm14, %v1482_v55, %v1483_v0  ;;  %v1017_v18 = vld [vmem:[#allocation2 + $0xc] sm:$0xf]  ;;  %v769_v21 = vld [vmem:[#allocation2 + $0x14] sm:$0x1]  ;;  %v1979_v24 = vshrl.u32 %v1954_v17, 16  ;;  %v1982_v22 = vshll.u32 %v1954_v17, 16 }
  0x4d   : > { %v1064_v4 = vsel %vm5022_vm15, %v1059_v62, %v1063_v11  ;;  %v1066_v25 = vshrl.u32 %v1017_v18, 16  ;;  %v4408_v20 = vld [vmem:[#allocation2 + $0xc] sm:$0xff]  ;;  %v1552_v9 = vunpack.c.l.b16 %v1484_v12  ;;  %v770_v28 = vsel %vm4697_vm2, %v620_v7, %v769_v21 }
  0x4e   : > { %v1251_v27 = vunpack.c.l.b16 %v1064_v4  ;;  %v1955_v30 = vld [vmem:[#allocation2 + $0x10] sm:$0xf]  ;;  %v1069_v32 = vshll.u32 %v1017_v18, 16  ;;  %771 = vst [vmem:[#allocation2 + $0x14] sm:$0x1] %v770_v28  ;;  %v1981_v33 = vrot.slane %v1979_v24, 4  ;;  %962 = vmatmul.bf16.gmra.mxu0 %v4408_v20 }
  0x4f   : > { %2792 = vmatpush.bf16.msra.mxu2 %v4486_v39  ;;  %2565 = vmatpush.bf16.msra.mxu1 %v4470_v51  ;;  %v1984_v34 = vrot.slane %v1982_v22, 5  ;;  %v1988_v36 = vshll.u32 %v1955_v30, 16  ;;  %v1992_v37 = vshrl.u32 %v1955_v30, 16  ;;  %v1018_v40 = vld [vmem:[#allocation2 + $0x10] sm:$0xf]  ;;  %v1068_v41 = vrot.slane %v1066_v25, 4 }
  0x50   : > { %3202 = vmatpush.bf16.msra.mxu3 %v4494_v50  ;;  %3500 = vmatpush.bf16.msra.mxu0 %v4502_v56  ;;  %v1266_v39 = vpack.c.b16 %v1251_v27, %v1250_v15  ;;  %v1071_v42 = vrot.slane %v1069_v32, 5  ;;  %v1431_v43 = vld [vmem:[#allocation2 + $0x10] sm:$0xf]  ;;  %v1075_v50 = vshll.u32 %v1018_v40, 16  ;;  %v776_v51 = vld [vmem:[#allocation2 + $0x20] sm:$0x1]  ;;  %v1567_v53 = vpack.c.b16 %v1552_v9, %v1551_v16 }
  0x51   : > { %v1985_v45 = vor.u32 %v1984_v34, %v1981_v33  ;;  %v1990_v47 = vrot.slane %v1988_v36, 5  ;;  %v1994_v48 = vrot.slane %v1992_v37, 4  ;;  %v1079_v55 = vshrl.u32 %v1018_v40, 16  ;;  %v1430_v56 = vld [vmem:[#allocation2 + $0xc] sm:$0xe]  ;;  %v4501_v59 = vld [vmem:[%s5644_s4 + $0x230] sm:$0xff] }
  0x52   : > { %1338 = vmatmul.bf16.vlgmr.msrb.gmra.mxu1 %v1266_v39  ;;  %v1072_v54 = vor.u32 %v1071_v42, %v1068_v41  ;;  %v1487_v57 = vrot.slane %v1431_v43, 5  ;;  %v1077_v62 = vrot.slane %v1075_v50, 5  ;;  %v777_v63 = vsel %vm4697_vm2, %v637_v8, %v776_v51  ;;  %v1020_v18 = vld [vmem:[#allocation2 + $0x18] sm:$0xf]  ;;  %v4439_v9 = vld [vmem:[#allocation2 + $0xc] sm:$0xff] }
  0x53   : > { %2793 = vmatpush.bf16.msra.mxu2 %v4485_v26  ;;  %v1986_v60 = vrot.slane %v1985_v45, 4  ;;  %v1995_v61 = vor.u32 %v1994_v48, %v1990_v47  ;;  %v1081_v5 = vrot.slane %v1079_v55, 4  ;;  %778 = vst [vmem:[#allocation2 + $0x20] sm:$0x1] %v777_v63  ;;  %v2016_v7 = vshrl.u32 %v5042_v3, 16  ;;  %2566 = vmatpush.bf16.msra.mxu1 %v4469_v58 }
  0x54   : > { %3203 = vmatpush.bf16.msra.mxu3 %v4493_v52  ;;  %v1073_v0 = vrot.slane %v1072_v54, 4  ;;  %3501 = vmatpush.bf16.msra.mxu0 %v4501_v59  ;;  %v397_v11 = vsel %vm4880_vm9, 0, %v396_v38  ;;  %v3981_v15 = vrot.slane %v1430_v56, 9  ;;  %v1489_v16 = vrot.slane %v1487_v57, 4  ;;  %v1021_v41 = vld [vmem:[#allocation2 + $0x1c] sm:$0xf] }
  0x55   : > { %v1996_v12 = vrot.slane %v1995_v61, 4  ;;  %v2008_v17 = vrot.slane %v2006_v14, 5  ;;  %v1956_v4 = vld [vmem:[#allocation2 + $0x14] sm:$0x1]  ;;  %v1991_v8 = vsel %vm5022_vm15, %v1986_v60, %v1990_v47  ;;  %v1082_v24 = vor.u32 %v1081_v5, %v1077_v62  ;;  %1639 = vmatmul.bf16.vlgmr.msrb.gmra.mxu2 %v1567_v53  ;;  %398 = vst [vmem:[#allocation2 + $0x2c] sm:$0x1] %v397_v11 }
  0x56   : > { %v1019_v21 = vld [vmem:[#allocation2 + $0x14] sm:$0x1]  ;;  %v1998_v25 = vshll.u32 %v1956_v4, 16  ;;  %v1078_v26 = vsel %vm5022_vm15, %v1073_v0, %v1077_v62  ;;  %v5079_v14 = vrot.slane %v2012_v6, 5  ;;  %v2018_v30 = vrot.slane %v2016_v7, 4  ;;  %v4484_v52 = vld [vmem:[%s5644_s4 + $0x1a8] sm:$0xff] }
  0x57   : > { %v1432_v22 = vld [vmem:[#allocation2 + $0x14] sm:$0x1]  ;;  %v1085_v20 = vshll.u32 %v1019_v21, 16  ;;  %v1083_v28 = vrot.slane %v1082_v24, 4  ;;  %v1090_v32 = vshrl.u32 %v1020_v18, 16  ;;  %v654_v33 = vrot.slane %v4873_v31, 4  ;;  %2794 = vmatpush.bf16.msra.mxu2 %v4484_v52 }
  0x58   : > { %v1490_v27 = vrot.slane %v1432_v22, 5  ;;  %v2000_v34 = vrot.slane %v1998_v25, 5  ;;  %v1093_v37 = vshll.u32 %v1020_v18, 16  ;;  %v2187_v38 = vunpack.c.l.b16 %v1991_v8  ;;  %v1960_v63 = vld [vmem:[#allocation2 + $0x24] sm:$0xf]  ;;  %v4492_v4 = vld [vmem:[%s5644_s4 + $0x1e8] sm:$0xff] }
  0x59   : > { %v1087_v36 = vrot.slane %v1085_v20, 5  ;;  %v1252_v39 = vunpack.c.l.b16 %v1078_v26  ;;  %v2009_v40 = vor.u32 %v2008_v17, %v5049_v19  ;;  %v1092_v42 = vrot.slane %v1090_v32, 4  ;;  %v4468_v8 = vld [vmem:[%s5644_s4 + $0x168] sm:$0xff]  ;;  %3204 = vmatpush.bf16.msra.mxu3 %v4492_v4 }
  0x5a   : > { %v2001_v43 = vsel %vm5022_vm15, %v1996_v12, %v2000_v34  ;;  %v1488_v6 = vsel %vm5012_vm14, %v3981_v15, %v1487_v57  ;;  %v1959_v45 = vld [vmem:[#allocation2 + $0x20] sm:$0x1]  ;;  %v1095_v47 = vrot.slane %v1093_v37, 5  ;;  %1865 = vmatmul.bf16.vlgmr.msrb.gmra.mxu3 %v4439_v9  ;;  %v1491_v19 = vsel %vm5012_vm14, %v1489_v16, %v1490_v27  ;;  %v5095_v57 = vld [vmem:[#allocation2 + $0x1c] sm:$0xf]  ;;  %v4500_v21 = vld [vmem:[%s5644_s4 + $0x228] sm:$0xff]  ;;  %2567 = vmatpush.bf16.msra.mxu1 %v4468_v8 }
  0x5b   : > { %v1088_v3 = vsel %vm5022_vm15, %v1083_v28, %v1087_v36  ;;  %v1022_v31 = vld [vmem:[#allocation2 + $0x20] sm:$0x1]  ;;  %v2188_v48 = vunpack.c.l.b16 %v2001_v43  ;;  %v2019_v51 = vor.u32 %v2018_v30, %v5079_v14  ;;  %v2022_v53 = vshll.u32 %v1959_v45, 16  ;;  %v1433_v12 = vld [vmem:[#allocation2 + $0x18] sm:$0xe]  ;;  %3502 = vmatpush.bf16.msra.mxu0 %v4500_v21 }
  0x5c   : > { %v1253_v50 = vunpack.c.l.b16 %v1088_v3  ;;  %v1096_v54 = vor.u32 %v1095_v47, %v1092_v42  ;;  %v1099_v55 = vshll.u32 %v1021_v41, 16  ;;  %v1103_v56 = vshrl.u32 %v1021_v41, 16  ;;  %v783_v62 = vld [vmem:[#allocation2 + $0x2c] sm:$0x1]  ;;  %v1435_v15 = vld [vmem:[#allocation2 + $0x20] sm:$0x1] }
  0x5d   : > { %v2203_v58 = vpack.c.b16 %v2188_v48, %v2187_v38  ;;  %v2010_v60 = vrot.slane %v2009_v40, 4  ;;  %v1109_v61 = vshll.u32 %v1022_v31, 16  ;;  %v1553_v0 = vunpack.c.l.b16 %v1488_v6  ;;  %v1961_v16 = vld [vmem:[#allocation2 + $0x28] sm:$0xf]  ;;  %v1023_v9 = vld [vmem:[#allocation2 + $0x24] sm:$0xf] }
  0x5e   : > { %v1267_v59 = vpack.c.b16 %v1253_v50, %v1252_v39  ;;  %v1554_v5 = vunpack.c.l.b16 %v1491_v19  ;;  %v1101_v7 = vrot.slane %v1099_v55, 5  ;;  %v1105_v11 = vrot.slane %v1103_v56, 4  ;;  %v1024_v39 = vld [vmem:[#allocation2 + $0x28] sm:$0xf]  ;;  %v4440_v31 = vld [vmem:[#allocation2 + $0x18] sm:$0xff] }
  0x5f   : > { %2275 = vmatmul.bf16.vlgmr.msrb.gmra.mxu0 %v2203_v58  ;;  %v2020_v17 = vrot.slane %v2019_v51, 4  ;;  %v784_v18 = vsel %vm4697_vm2, %v654_v33, %v783_v62  ;;  %v2024_v24 = vrot.slane %v2022_v53, 5  ;;  %v1097_v22 = vrot.slane %v1096_v54, 4  ;;  %v5133_v4 = vld [vmem:[#allocation2 + $0x28] sm:$0xf] }
  0x60   : > { %v1106_v25 = vor.u32 %v1105_v11, %v1101_v7  ;;  %v1494_v26 = vrot.slane %v5095_v57, 5  ;;  %785 = vst [vmem:[#allocation2 + $0x2c] sm:$0x1] %v784_v18  ;;  %v1111_v20 = vrot.slane %v1109_v61, 5  ;;  %v2027_v27 = vshrl.u32 %v1960_v63, 16 }
  0x61   : > { %v1568_v28 = vpack.c.b16 %v1554_v5, %v1553_v0  ;;  %v2015_v30 = vsel %vm5022_vm15, %v2010_v60, %v5079_v14  ;;  %v2030_v33 = vshll.u32 %v1960_v63, 16  ;;  %v3982_v34 = vrot.slane %v1433_v12, 9  ;;  %v399_v63 = vld [vmem:[#allocation2 + $0x38] sm:$0x1]  ;;  %v5131_v18 = vld [vmem:[#allocation2 + $0x24] sm:$0xe] }
  0x62   : > { %1343 = vmatmul.bf16.gmra.mxu1 %v1267_v59  ;;  %v1107_v32 = vrot.slane %v1106_v25, 4  ;;  %v1497_v36 = vrot.slane %v1435_v15, 5  ;;  %v2036_v37 = vshll.u32 %v1961_v16, 16  ;;  %v2040_v38 = vshrl.u32 %v1961_v16, 16  ;;  %v1963_v25 = vld [vmem:[#allocation2 + $0x30] sm:$0xf] }
  0x63   : > { %v2025_v40 = vsel %vm5022_vm15, %v2020_v17, %v2024_v24  ;;  %v1102_v41 = vsel %vm5022_vm15, %v1097_v22, %v1101_v7  ;;  %v1496_v42 = vrot.slane %v1494_v26, 4  ;;  %v1114_v43 = vshrl.u32 %v1023_v9, 16  ;;  %v4483_v17 = vld [vmem:[%s5644_s4 + $0x1a0] sm:$0xff] }
  0x64   : > { %v1112_v14 = vsel %vm5022_vm15, %v1107_v32, %v1111_v20  ;;  %v2029_v3 = vrot.slane %v2027_v27, 4  ;;  %v2032_v6 = vrot.slane %v2030_v33, 5  ;;  %v1117_v45 = vshll.u32 %v1023_v9, 16  ;;  %2795 = vmatpush.bf16.msra.mxu2 %v4483_v17 }
  0x65   : > { %1644 = vmatmul.bf16.gmra.mxu2 %v1568_v28  ;;  %v5118_v47 = vrot.slane %v2036_v37, 5  ;;  %v2042_v48 = vrot.slane %v2040_v38, 4  ;;  %v1116_v50 = vrot.slane %v1114_v43, 4  ;;  %v1123_v19 = vshll.u32 %v1024_v39, 16  ;;  %v4467_v37 = vld [vmem:[%s5644_s4 + $0x160] sm:$0xff] }
  0x66   : > { %v2189_v51 = vunpack.c.l.b16 %v2015_v30  ;;  %v2190_v52 = vunpack.c.l.b16 %v2025_v40  ;;  %v1119_v55 = vrot.slane %v1117_v45, 5  ;;  %v1127_v56 = vshrl.u32 %v1024_v39, 16  ;;  %v4499_v38 = vld [vmem:[%s5644_s4 + $0x220] sm:$0xff]  ;;  %v1026_v43 = vld [vmem:[#allocation2 + $0x30] sm:$0xf]  ;;  %2568 = vmatpush.bf16.msra.mxu1 %v4467_v37 }
  0x67   : > { %v1962_v53 = vld [vmem:[#allocation2 + $0x2c] sm:$0x1]  ;;  %v1254_v57 = vunpack.c.l.b16 %v1102_v41  ;;  %v5120_v58 = vrot.slane %v1123_v19, 5  ;;  %v1255_v59 = vunpack.c.l.b16 %v1112_v14  ;;  %v1495_v60 = vsel %vm5012_vm14, %v3982_v34, %v1494_v26  ;;  %v1964_v26 = vld [vmem:[#allocation2 + $0x34] sm:$0xf]  ;;  %3503 = vmatpush.bf16.msra.mxu0 %v4499_v38 }
  0x68   : > { %v1025_v54 = vld [vmem:[#allocation2 + $0x2c] sm:$0x1]  ;;  %v1498_v61 = vsel %vm5012_vm14, %v1496_v42, %v1497_v36  ;;  %v1129_v62 = vrot.slane %v1127_v56, 4  ;;  %v2033_v0 = vor.u32 %v2032_v6, %v2029_v3  ;;  %v2043_v5 = vor.u32 %v2042_v48, %v5118_v47  ;;  %v4491_v36 = vld [vmem:[%s5644_s4 + $0x1e0] sm:$0xff] }
  0x69   : > { %v2046_v7 = vshll.u32 %v1962_v53, 16  ;;  %v1133_v11 = vshll.u32 %v1025_v54, 16  ;;  %v2204_v12 = vpack.c.b16 %v2190_v52, %v2189_v51  ;;  %v1120_v15 = vor.u32 %v1119_v55, %v1116_v50  ;;  %v1438_v30 = vld [vmem:[#allocation2 + $0x2c] sm:$0x1]  ;;  %3205 = vmatpush.bf16.msra.mxu3 %v4491_v36  ;;  %v402_v45 = vld [vmem:[#allocation2 + $0x44] sm:$0x1] }
  0x6a   : > { %1870 = vmatmul.bf16.gmra.mxu3 %v4440_v31  ;;  %v1130_v16 = vor.u32 %v1129_v62, %v5120_v58  ;;  %v400_v8 = vsel %vm4880_vm9, 0, %v399_v63  ;;  %v1268_v21 = vpack.c.b16 %v1255_v59, %v1254_v57  ;;  %v1555_v24 = vunpack.c.l.b16 %v1495_v60  ;;  %v1027_v50 = vld [vmem:[#allocation2 + $0x34] sm:$0xf] }
  0x6b   : > { %v1556_v22 = vunpack.c.l.b16 %v1498_v61  ;;  %401 = vst [vmem:[#allocation2 + $0x38] sm:$0x1] %v400_v8  ;;  %v2034_v20 = vrot.slane %v2033_v0, 4  ;;  %v2044_v27 = vrot.slane %v2043_v5, 4  ;;  %v2048_v9 = vrot.slane %v2046_v7, 5  ;;  %v4441_v7 = vld [vmem:[#allocation2 + $0x24] sm:$0xff] }
  0x6c   : > { %v1135_v28 = vrot.slane %v1133_v11, 5  ;;  %v1121_v32 = vrot.slane %v1120_v15, 4  ;;  %v1131_v33 = vrot.slane %v1130_v16, 4  ;;  %v1501_v34 = vrot.slane %v5133_v4, 5  ;;  %v405_v5 = vld [vmem:[#allocation2 + $0x50] sm:$0x1] }
  0x6d   : > { %v2051_v39 = vshrl.u32 %v1963_v25, 16  ;;  %v2054_v40 = vshll.u32 %v1963_v25, 16  ;;  %v2060_v41 = vshll.u32 %v1964_v26, 16  ;;  %v2064_v42 = vshrl.u32 %v1964_v26, 16  ;;  %v5174_v26 = vld [vmem:[#allocation2 + $0x34] sm:$0xf] }
  0x6e   : > { %v671_v14 = vrot.slane %v4798_v13, 4  ;;  %v1569_v3 = vpack.c.b16 %v1556_v22, %v1555_v24  ;;  %v3983_v6 = vrot.slane %v5131_v18, 9  ;;  %v2039_v31 = vsel %vm5022_vm15, %v2034_v20, %v5118_v47 }
  0x6f   : > { %2280 = vmatmul.bf16.gmra.mxu0 %v2204_v12  ;;  %v1504_v48 = vrot.slane %v1438_v30, 5  ;;  %v1138_v19 = vshrl.u32 %v1026_v43, 16  ;;  %v1141_v51 = vshll.u32 %v1026_v43, 16  ;;  %v2049_v52 = vsel %vm5022_vm15, %v2044_v27, %v2048_v9  ;;  %v4482_v9 = vld [vmem:[%s5644_s4 + $0x198] sm:$0xff] }
  0x70   : > { %v1126_v13 = vsel %vm5022_vm15, %v1121_v32, %v5120_v58  ;;  %v1136_v53 = vsel %vm5022_vm15, %v1131_v33, %v1135_v28  ;;  %v1503_v54 = vrot.slane %v1501_v34, 4  ;;  %v2053_v56 = vrot.slane %v2051_v39, 4  ;;  %v1966_v33 = vld [vmem:[#allocation2 + $0x3c] sm:$0xf]  ;;  %2796 = vmatpush.bf16.msra.mxu2 %v4482_v9 }
  0x71   : > { %v2056_v47 = vrot.slane %v2054_v40, 5  ;;  %v5159_v57 = vrot.slane %v2060_v41, 5  ;;  %v2066_v59 = vrot.slane %v2064_v42, 4  ;;  %v1147_v61 = vshll.u32 %v1027_v50, 16 }
  0x72   : > { %1348 = vmatmul.bf16.gmra.mxu1 %v1268_v21  ;;  %v790_v55 = vld [vmem:[#allocation2 + $0x38] sm:$0x1]  ;;  %v1151_v62 = vshrl.u32 %v1027_v50, 16  ;;  %v403_v63 = vsel %vm4880_vm9, 0, %v402_v45  ;;  %v1140_v58 = vrot.slane %v1138_v19, 4  ;;  %v1143_v0 = vrot.slane %v1141_v51, 5 }
  0x73   : > { %v791_v60 = vsel %vm4697_vm2, %v671_v14, %v790_v55  ;;  %v2191_v11 = vunpack.c.l.b16 %v2039_v31  ;;  %v2192_v12 = vunpack.c.l.b16 %v2049_v52  ;;  %404 = vst [vmem:[#allocation2 + $0x44] sm:$0x1] %v403_v63  ;;  %v1256_v15 = vunpack.c.l.b16 %v1126_v13  ;;  %v4490_v50 = vld [vmem:[%s5644_s4 + $0x1d8] sm:$0xff] }
  0x74   : > { %792 = vst [vmem:[#allocation2 + $0x38] sm:$0x1] %v791_v60  ;;  %v1257_v16 = vunpack.c.l.b16 %v1136_v53  ;;  %v1502_v17 = vsel %vm5012_vm14, %v3983_v6, %v1501_v34  ;;  %v1505_v18 = vsel %vm5012_vm14, %v1503_v54, %v1504_v48  ;;  %v2057_v4 = vor.u32 %v2056_v47, %v2053_v56  ;;  %v1967_v34 = vld [vmem:[#allocation2 + $0x40] sm:$0xf]  ;;  %v4466_v19 = vld [vmem:[%s5644_s4 + $0x158] sm:$0xff]  ;;  %3206 = vmatpush.bf16.msra.mxu3 %v4490_v50 }
  0x75   : > { %1649 = vmatmul.bf16.gmra.mxu2 %v1569_v3  ;;  %v5169_v8 = vrot.slane %v1147_v61, 5  ;;  %v1153_v21 = vrot.slane %v1151_v62, 4  ;;  %v406_v24 = vsel %vm4880_vm9, 0, %v405_v5  ;;  %v2067_v22 = vor.u32 %v2066_v59, %v5159_v57  ;;  %v1439_v3 = vld [vmem:[#allocation2 + $0x30] sm:$0xe]  ;;  %v4498_v51 = vld [vmem:[%s5644_s4 + $0x218] sm:$0xff]  ;;  %2569 = vmatpush.bf16.msra.mxu1 %v4466_v19 }
  0x76   : > { %v1144_v25 = vor.u32 %v1143_v0, %v1140_v58  ;;  %407 = vst [vmem:[#allocation2 + $0x50] sm:$0x1] %v406_v24  ;;  %v688_v20 = vrot.slane %v4930_v23, 4  ;;  %v2205_v27 = vpack.c.b16 %v2192_v12, %v2191_v11  ;;  %v705_v28 = vrot.slane %v4814_v29, 4  ;;  %v1029_v53 = vld [vmem:[#allocation2 + $0x3c] sm:$0xf]  ;;  %3504 = vmatpush.bf16.msra.mxu0 %v4498_v51 }
  0x77   : > { %v1557_v30 = vunpack.c.l.b16 %v1502_v17  ;;  %v1558_v32 = vunpack.c.l.b16 %v1505_v18  ;;  %v1269_v36 = vpack.c.b16 %v1257_v16, %v1256_v15  ;;  %v2058_v38 = vrot.slane %v2057_v4, 4  ;;  %v1030_v59 = vld [vmem:[#allocation2 + $0x40] sm:$0xf]  ;;  %v1970_v51 = vld [vmem:[#allocation2 + $0x4c] sm:$0xf] }
  0x78   : > { %v1154_v40 = vor.u32 %v1153_v21, %v5169_v8  ;;  %v1508_v23 = vrot.slane %v5174_v26, 5  ;;  %v2068_v41 = vrot.slane %v2067_v22, 4  ;;  %v1145_v43 = vrot.slane %v1144_v25, 4 }
  0x79   : > { %v2075_v45 = vshrl.u32 %v1966_v33, 16  ;;  %v2078_v31 = vshll.u32 %v1966_v33, 16  ;;  %v2084_v48 = vshll.u32 %v1967_v34, 16  ;;  %v2088_v13 = vshrl.u32 %v1967_v34, 16 }
  0x7a   : > { %1875 = vmatmul.bf16.gmra.mxu3 %v4441_v7  ;;  %v797_v6 = vld [vmem:[#allocation2 + $0x44] sm:$0x1]  ;;  %v1570_v54 = vpack.c.b16 %v1558_v32, %v1557_v30  ;;  %v1155_v55 = vrot.slane %v1154_v40, 4  ;;  %v1162_v60 = vshrl.u32 %v1029_v53, 16  ;;  %v1165_v61 = vshll.u32 %v1029_v53, 16 }
  0x7b   : > { %v1965_v37 = vld [vmem:[#allocation2 + $0x38] sm:$0x1]  ;;  %v798_v29 = vsel %vm4697_vm2, %v688_v20, %v797_v6  ;;  %v1171_v62 = vshll.u32 %v1030_v59, 16  ;;  %v1175_v63 = vshrl.u32 %v1030_v59, 16  ;;  %v2063_v0 = vsel %vm5022_vm15, %v2058_v38, %v5159_v57  ;;  %v4442_v20 = vld [vmem:[#allocation2 + $0x30] sm:$0xff] }
  0x7c   : > { %v1028_v39 = vld [vmem:[#allocation2 + $0x38] sm:$0x1]  ;;  %v2070_v42 = vshll.u32 %v1965_v37, 16  ;;  %799 = vst [vmem:[#allocation2 + $0x44] sm:$0x1] %v798_v29  ;;  %v3984_v5 = vrot.slane %v1439_v3, 9  ;;  %v1150_v18 = vsel %vm5022_vm15, %v1145_v43, %v5169_v8 }
  0x7d   : > { %v1157_v14 = vshll.u32 %v1028_v39, 16  ;;  %v1441_v47 = vld [vmem:[#allocation2 + $0x38] sm:$0x1]  ;;  %v804_v58 = vld [vmem:[#allocation2 + $0x50] sm:$0x1]  ;;  %v1510_v7 = vrot.slane %v1508_v23, 4  ;;  %v1258_v34 = vunpack.c.l.b16 %v1150_v18 }
  0x7e   : > { %v2072_v52 = vrot.slane %v2070_v42, 5  ;;  %v2077_v11 = vrot.slane %v2075_v45, 4  ;;  %v2080_v15 = vrot.slane %v2078_v31, 5  ;;  %v5199_v16 = vrot.slane %v2084_v48, 5  ;;  %v1969_v42 = vld [vmem:[#allocation2 + $0x48] sm:$0xf] }
  0x7f   : > { %2285 = vmatmul.bf16.gmra.mxu0 %v2205_v27  ;;  %v1159_v56 = vrot.slane %v1157_v14, 5  ;;  %v2090_v17 = vrot.slane %v2088_v13, 4  ;;  %v1511_v21 = vrot.slane %v1441_v47, 5  ;;  %v805_v57 = vsel %vm4697_vm2, %v705_v28, %v804_v58  ;;  %v4481_v3 = vld [vmem:[%s5644_s4 + $0x190] sm:$0xff]  ;;  %v408_v6 = vld [vmem:[#allocation2 + $0x5c] sm:$0x1] }
  0x80   : > { %v2073_v12 = vsel %vm5022_vm15, %v2068_v41, %v2072_v52  ;;  %v1164_v24 = vrot.slane %v1162_v60, 4  ;;  %v1167_v22 = vrot.slane %v1165_v61, 5  ;;  %v5208_v25 = vrot.slane %v1171_v62, 5  ;;  %806 = vst [vmem:[#allocation2 + $0x50] sm:$0x1] %v805_v57  ;;  %2797 = vmatpush.bf16.msra.mxu2 %v4481_v3  ;;  %v4489_v60 = vld [vmem:[%s5644_s4 + $0x1d0] sm:$0xff] }
  0x81   : > { %v1160_v4 = vsel %vm5022_vm15, %v1155_v55, %v1159_v56  ;;  %v1177_v26 = vrot.slane %v1175_v63, 4  ;;  %v2193_v27 = vunpack.c.l.b16 %v2063_v0  ;;  %v2194_v9 = vunpack.c.l.b16 %v2073_v12  ;;  %v5216_v41 = vld [vmem:[#allocation2 + $0x40] sm:$0xf]  ;;  %v1442_v48 = vld [vmem:[#allocation2 + $0x3c] sm:$0xe]  ;;  %v4465_v61 = vld [vmem:[%s5644_s4 + $0x150] sm:$0xff]  ;;  %3207 = vmatpush.bf16.msra.mxu3 %v4489_v60 }
  0x82   : > { %1353 = vmatmul.bf16.gmra.mxu1 %v1269_v36  ;;  %v2081_v32 = vor.u32 %v2080_v15, %v2077_v11  ;;  %v2091_v8 = vor.u32 %v2090_v17, %v5199_v16  ;;  %v1259_v36 = vunpack.c.l.b16 %v1160_v4  ;;  %v1509_v28 = vsel %vm5012_vm14, %v3984_v5, %v1508_v23  ;;  %v4497_v62 = vld [vmem:[%s5644_s4 + $0x210] sm:$0xff]  ;;  %v531_v12 = vld [vmem:[%s4734_s8 + $0x78] sm:$0xff]  ;;  %v1033_v57 = vld [vmem:[#allocation2 + $0x4c] sm:$0xf] }
  0x83   : > { %v1968_v30 = vld [vmem:[#allocation2 + $0x44] sm:$0x1]  ;;  %v1512_v37 = vsel %vm5012_vm14, %v1510_v7, %v1511_v21  ;;  %v1168_v39 = vor.u32 %v1167_v22, %v1164_v24  ;;  %v1178_v40 = vor.u32 %v1177_v26, %v5208_v25  ;;  %v2206_v43 = vpack.c.b16 %v2194_v9, %v2193_v27  ;;  %v530_v11 = vld [vmem:[%s4734_s8 + $0x70] sm:$0xff]  ;;  %2570 = vmatpush.bf16.msra.mxu1 %v4465_v61  ;;  %v1032_v21 = vld [vmem:[#allocation2 + $0x48] sm:$0xf] }
  0x84   : > { %v1031_v33 = vld [vmem:[#allocation2 + $0x44] sm:$0x1]  ;;  %v2094_v38 = vshll.u32 %v1968_v30, 16  ;;  %v1559_v29 = vunpack.c.l.b16 %v1509_v28  ;;  %v1560_v23 = vunpack.c.l.b16 %v1512_v37  ;;  %v2082_v45 = vrot.slane %v2081_v32, 4  ;;  %3505 = vmatpush.bf16.msra.mxu0 %v4497_v62  ;;  %v4571_v27 = vld [vmem:[%s5642_s2] ss:$0 sm:$0xff] }
  0x85   : > { %1654 = vmatmul.bf16.gmra.mxu2 %v1570_v54  ;;  %v1181_v14 = vshll.u32 %v1031_v33, 16  ;;  %v2092_v31 = vrot.slane %v2091_v8, 4  ;;  %v1270_v50 = vpack.c.b16 %v1259_v36, %v1258_v34  ;;  %v1515_v19 = vrot.slane %v5216_v41, 5  ;;  %v1444_v56 = vld [vmem:[#allocation2 + $0x44] sm:$0x1] }
  0x86   : > { %v2099_v52 = vshrl.u32 %v1969_v42, 16  ;;  %v2102_v13 = vshll.u32 %v1969_v42, 16  ;;  %v2096_v53 = vrot.slane %v2094_v38, 5  ;;  %v1169_v54 = vrot.slane %v1168_v39, 4 }
  0x87   : > { %v1179_v55 = vrot.slane %v1178_v40, 4  ;;  %v409_v47 = vsel %vm4880_vm9, 0, %v408_v6  ;;  %v1183_v59 = vrot.slane %v1181_v14, 5  ;;  %v2108_v63 = vshll.u32 %v1970_v51, 16  ;;  %v1971_v32 = vld [vmem:[#allocation2 + $0x50] sm:$0x1] }
  0x88   : > { %410 = vst [vmem:[#allocation2 + $0x5c] sm:$0x1] %v409_v47  ;;  %v2112_v58 = vshrl.u32 %v1970_v51, 16  ;;  %v722_v0 = vrot.slane %v4960_v46, 4  ;;  %v3985_v5 = vrot.slane %v1442_v48, 9  ;;  %v1517_v7 = vrot.slane %v1515_v19, 4 }
  0x89   : > { %v1571_v15 = vpack.c.b16 %v1560_v23, %v1559_v29  ;;  %v2087_v17 = vsel %vm5022_vm15, %v2082_v45, %v5199_v16  ;;  %v1518_v18 = vrot.slane %v1444_v56, 5  ;;  %v2101_v4 = vrot.slane %v2099_v52, 4  ;;  %v4443_v40 = vld [vmem:[#allocation2 + $0x3c] sm:$0xff] }
  0x8a   : > { %1880 = vmatmul.bf16.gmra.mxu3 %v4442_v20  ;;  %v2097_v46 = vsel %vm5022_vm15, %v2092_v31, %v2096_v53  ;;  %v1174_v24 = vsel %vm5022_vm15, %v1169_v54, %v5208_v25  ;;  %v1184_v22 = vsel %vm5022_vm15, %v1179_v55, %v1183_v59  ;;  %v2104_v26 = vrot.slane %v2102_v13, 5  ;;  %v379_v29 = vld [vmem:[#allocation2 + $0x60] sm:$0x1]  ;;  %v1034_v53 = vld [vmem:[#allocation2 + $0x50] sm:$0x1]  ;;  %v4480_v59 = vld [vmem:[%s5644_s4 + $0x188] sm:$0xff] }
  0x8b   : > { %v5246_v20 = vrot.slane %v2108_v63, 5  ;;  %v2114_v16 = vrot.slane %v2112_v58, 4  ;;  %v550_v9 = vmul.f32 %v4571_v27, %v530_v11  ;;  %v551_v30 = vmul.f32 %v4571_v27, %v531_v12  ;;  %v4572_v23 = vld [vmem:[%s5643_s3] ss:$0 sm:$0xff]  ;;  %v411_v54 = vld [vmem:[#allocation2 + $0x68] sm:$0x1]  ;;  %2798 = vmatpush.bf16.msra.mxu2 %v4480_v59 }
  0x8c   : > { %v1186_v8 = vshrl.u32 %v1032_v21, 16  ;;  %v1189_v33 = vshll.u32 %v1032_v21, 16  ;;  %v1195_v34 = vshll.u32 %v1033_v57, 16  ;;  %v1199_v36 = vshrl.u32 %v1033_v57, 16  ;;  %v1446_v11 = vld [vmem:[#allocation2 + $0x4c] sm:$0xf] }
  0x8d   : > { %v2195_v25 = vunpack.c.l.b16 %v2087_v17  ;;  %v1260_v28 = vunpack.c.l.b16 %v1174_v24  ;;  %v1516_v37 = vsel %vm5012_vm14, %v3985_v5, %v1515_v19  ;;  %v1519_v38 = vsel %vm5012_vm14, %v1517_v7, %v1518_v18  ;;  %v1972_v12 = vld [vmem:[#allocation2 + $0x54] sm:$0xf]  ;;  %v1973_v21 = vld [vmem:[#allocation2 + $0x58] sm:$0xf]  ;;  %v4488_v57 = vld [vmem:[%s5644_s4 + $0x1c8] sm:$0xff] }
  0x8e   : > { %v2196_v41 = vunpack.c.l.b16 %v2097_v46  ;;  %v1261_v42 = vunpack.c.l.b16 %v1184_v22  ;;  %v2115_v3 = vor.u32 %v2114_v16, %v5246_v20  ;;  %v2118_v6 = vshll.u32 %v1971_v32, 16  ;;  %v4464_v46 = vld [vmem:[%s5644_s4 + $0x148] sm:$0xff]  ;;  %3208 = vmatpush.bf16.msra.mxu3 %v4488_v57 }
  0x8f   : > { %2290 = vmatmul.bf16.gmra.mxu0 %v2206_v43  ;;  %v811_v39 = vld [vmem:[#allocation2 + $0x5c] sm:$0x1]  ;;  %v2105_v43 = vor.u32 %v2104_v26, %v2101_v4  ;;  %v570_v45 = vadd.f32 %v4572_v23, %v550_v9  ;;  %v571_v31 = vadd.f32 %v4572_v23, %v551_v30  ;;  %v1188_v48 = vrot.slane %v1186_v8, 4  ;;  %v1445_v22 = vld [vmem:[#allocation2 + $0x48] sm:$0xe]  ;;  %2571 = vmatpush.bf16.msra.mxu1 %v4464_v46 }
  0x90   : > { %v812_v14 = vsel %vm4697_vm2, %v722_v0, %v811_v39  ;;  %v5261_v19 = vrot.slane %v1195_v34, 5  ;;  %v1201_v51 = vrot.slane %v1199_v36, 4  ;;  %v1561_v52 = vunpack.c.l.b16 %v1516_v37  ;;  %v1447_v8 = vld [vmem:[#allocation2 + $0x50] sm:$0x1]  ;;  %v1035_v36 = vld [vmem:[#allocation2 + $0x54] sm:$0xf] }
  0x91   : > { %813 = vst [vmem:[#allocation2 + $0x5c] sm:$0x1] %v812_v14  ;;  %v1562_v13 = vunpack.c.l.b16 %v1519_v38  ;;  %v2207_v55 = vpack.c.b16 %v2196_v41, %v2195_v25  ;;  %v1271_v56 = vpack.c.b16 %v1261_v42, %v1260_v28  ;;  %v2106_v47 = vrot.slane %v2105_v43, 4  ;;  %v1036_v42 = vld [vmem:[#allocation2 + $0x58] sm:$0xf] }
  0x92   : > { %1358 = vmatmul.bf16.gmra.mxu1 %v1270_v50  ;;  %v1191_v50 = vrot.slane %v1189_v33, 5  ;;  %v380_v60 = vsel %vm4697_vm2, 0, %v379_v29  ;;  %v2116_v61 = vrot.slane %v2115_v3, 4  ;;  %v2120_v62 = vrot.slane %v2118_v6, 5  ;;  %v4496_v33 = vld [vmem:[%s5644_s4 + $0x208] sm:$0xff] }
  0x93   : > { %381 = vst [vmem:[#allocation2 + $0x60] sm:$0x1] %v380_v60  ;;  %v586_v63 = vmax.f32 %v570_v45, 0.0  ;;  %v587_v58 = vmax.f32 %v571_v31, 0.0  ;;  %v1202_v5 = vor.u32 %v1201_v51, %v5261_v19  ;;  %v1205_v7 = vshll.u32 %v1034_v53, 16  ;;  %3506 = vmatpush.bf16.msra.mxu0 %v4496_v33  ;;  %v4444_v53 = vld [vmem:[#allocation2 + $0x48] sm:$0xff] }
  0x94   : > { %v1192_v0 = vor.u32 %v1191_v50, %v1188_v48  ;;  %v2111_v4 = vsel %vm5022_vm15, %v2106_v47, %v5246_v20  ;;  %v1572_v24 = vpack.c.b16 %v1562_v13, %v1561_v52  ;;  %v1522_v26 = vrot.slane %v1446_v11, 5  ;;  %v1449_v33 = vld [vmem:[#allocation2 + $0x58] sm:$0xf] }
  0x95   : > { %1659 = vmatmul.bf16.gmra.mxu2 %v1571_v15  ;;  %v412_v15 = vsel %vm4880_vm9, 0, %v411_v54  ;;  %v602_v17 = vpack.c.bf16 %v586_v63, %v586_v63  ;;  %v5271_v18 = vpack.c.bf16 %v587_v58, %v587_v58  ;;  %v2123_v16 = vshrl.u32 %v1972_v12, 16 }
  0x96   : > { %413 = vst [vmem:[#allocation2 + $0x68] sm:$0x1] %v412_v15  ;;  %v2121_v9 = vsel %vm5022_vm15, %v2116_v61, %v2120_v62  ;;  %v1193_v30 = vrot.slane %v1192_v0, 4  ;;  %v1203_v20 = vrot.slane %v1202_v5, 4  ;;  %v1207_v32 = vrot.slane %v1205_v7, 5 }
  0x97   : > { %v724_v27 = vshrl.u32 %v602_v17, 16  ;;  %v5287_v34 = vunpack.c.l.b16 %v2111_v4  ;;  %v727_v28 = vshll.u32 %v602_v17, 16  ;;  %v732_v37 = vshrl.u32 %v5271_v18, 16 }
  0x98   : > { %v3986_v38 = vrot.slane %v1445_v22, 9  ;;  %v2126_v39 = vshll.u32 %v1972_v12, 16  ;;  %v2136_v41 = vshrl.u32 %v1973_v21, 16  ;;  %v2198_v43 = vunpack.c.l.b16 %v2121_v9  ;;  %v1974_v5 = vld [vmem:[#allocation2 + $0x5c] sm:$0x1] }
  0x99   : > { %v726_v25 = vrot.slane %v724_v27, 7  ;;  %v1524_v14 = vrot.slane %v1522_v26, 4  ;;  %v2125_v3 = vrot.slane %v2123_v16, 4  ;;  %v1198_v29 = vsel %vm5022_vm15, %v1193_v30, %v5261_v19  ;;  %v4479_v16 = vld [vmem:[%s5644_s4 + $0x180] sm:$0xff] }
  0x9a   : > { %1885 = vmatmul.bf16.gmra.mxu3 %v4443_v40  ;;  %v2132_v40 = vshll.u32 %v1973_v21, 16  ;;  %v1208_v23 = vsel %vm5022_vm15, %v1203_v20, %v1207_v32  ;;  %v1525_v45 = vrot.slane %v1447_v8, 5  ;;  %v1210_v31 = vshrl.u32 %v1035_v36, 16  ;;  %v814_v48 = vld [vmem:[#allocation2 + $0x60] sm:$0xf]  ;;  %2799 = vmatpush.bf16.msra.mxu2 %v4479_v16 }
  0x9b   : > { %v729_v6 = vor.u32 %v727_v28, %v726_v25  ;;  %v1213_v50 = vshll.u32 %v1035_v36, 16  ;;  %v1219_v51 = vshll.u32 %v1036_v42, 16  ;;  %v1223_v52 = vshrl.u32 %v1036_v42, 16  ;;  %v1037_v21 = vld [vmem:[#allocation2 + $0x5c] sm:$0x1]  ;;  %v4463_v36 = vld [vmem:[%s5644_s4 + $0x140] sm:$0xff] }
  0x9c   : > { %v734_v13 = vrot.slane %v732_v37, 7  ;;  %v1523_v54 = vsel %vm5012_vm14, %v3986_v38, %v1522_v26  ;;  %v2138_v47 = vrot.slane %v2136_v41, 4  ;;  %v730_v19 = vrot.slane %v726_v25, 4  ;;  %2572 = vmatpush.bf16.msra.mxu1 %v4463_v36  ;;  %v2890_v16 = vld [vmem:[#allocation2 + $0x1c] sm:$0xf] }
  0x9d   : > { %v735_v59 = vshll.u32 %v5271_v18, 16  ;;  %v815_v61 = vsel %vm4794_vm7, %v729_v6, %v814_v48  ;;  %v818_v62 = vld [vmem:[#allocation2 + $0x68] sm:$0x1]  ;;  %v1262_v63 = vunpack.c.l.b16 %v1198_v29  ;;  %v1263_v58 = vunpack.c.l.b16 %v1208_v23  ;;  %v1450_v6 = vld [vmem:[#allocation2 + $0x5c] sm:$0x1] }
  0x9e   : > { %v739_v60 = vrot.slane %v734_v13, 4  ;;  %v1526_v0 = vsel %vm5012_vm14, %v1524_v14, %v1525_v45  ;;  %v1212_v7 = vrot.slane %v1210_v31, 4  ;;  %816 = vst [vmem:[#allocation2 + $0x60] sm:$0xf] %v815_v61  ;;  %v1215_v11 = vrot.slane %v1213_v50, 5  ;;  %v4495_v50 = vld [vmem:[%s5644_s4 + $0x200] sm:$0xff] }
  0x9f   : > { %2295 = vmatmul.bf16.gmra.mxu0 %v2207_v55  ;;  %v2128_v55 = vrot.slane %v2126_v39, 5  ;;  %v5304_v12 = vrot.slane %v1219_v51, 5  ;;  %v1225_v15 = vrot.slane %v1223_v52, 4  ;;  %v737_v17 = vor.u32 %v735_v59, %v734_v13  ;;  %v2366_v36 = vld [vmem:[#allocation2 + $0x14] sm:$0x1] }
  0xa0   : > { %v2208_v18 = vpack.c.b16 %v2198_v43, %v5287_v34  ;;  %v819_v57 = vsel %vm4697_vm2, %v739_v60, %v818_v62  ;;  %v2142_v22 = vshll.u32 %v1974_v5, 16  ;;  %v1272_v27 = vpack.c.b16 %v1263_v58, %v1262_v63  ;;  %v4487_v34 = vld [vmem:[%s5644_s4 + $0x1c0] sm:$0xff]  ;;  %v1448_v43 = vld [vmem:[#allocation2 + $0x54] sm:$0xe]  ;;  %3507 = vmatpush.bf16.msra.mxu0 %v4495_v50 }
  0xa1   : > { %v2129_v46 = vor.u32 %v2128_v55, %v2125_v3  ;;  %v738_v26 = vsel %vm4785_vm6, %v730_v19, %v737_v17  ;;  %820 = vst [vmem:[#allocation2 + $0x68] sm:$0x1] %v819_v57  ;;  %v1563_v9 = vunpack.c.l.b16 %v1523_v54  ;;  %v1564_v30 = vunpack.c.l.b16 %v1526_v0  ;;  %3209 = vmatpush.bf16.msra.mxu3 %v4487_v34  ;;  %v4445_v19 = vld [vmem:[#allocation2 + $0x54] sm:$0xff]  ;;  %v2364_v34 = vld [vmem:[#allocation2 + $0xc] sm:$0xe] }
  0xa2   : > { %1363 = vmatmul.bf16.gmra.mxu1 %v1271_v56  ;;  %v5297_v56 = vrot.slane %v2132_v40, 5  ;;  %817 = vst [vmem:[#allocation2 + $0x64] sm:$0xf] %v738_v26  ;;  %v1216_v20 = vor.u32 %v1215_v11, %v1212_v7  ;;  %v1226_v32 = vor.u32 %v1225_v15, %v5304_v12  ;;  %v1229_v8 = vshll.u32 %v1037_v21, 16 }
  0xa3   : > { %v2130_v25 = vrot.slane %v2129_v46, 4  ;;  %v2144_v37 = vrot.slane %v2142_v22, 5  ;;  %v1573_v38 = vpack.c.b16 %v1564_v30, %v1563_v9  ;;  %v1529_v14 = vrot.slane %v1449_v33, 5  ;;  %v2365_v46 = vld [vmem:[#allocation2 + $0x10] sm:$0xf] }
  0xa4   : > { %v1217_v40 = vrot.slane %v1216_v20, 4  ;;  %v1227_v41 = vrot.slane %v1226_v32, 4  ;;  %v1231_v42 = vrot.slane %v1229_v8, 5  ;;  %v3987_v52 = vrot.slane %v1448_v43, 9 }
  0xa5   : > { %1664 = vmatmul.bf16.gmra.mxu2 %v1572_v24  ;;  %v2139_v24 = vor.u32 %v2138_v47, %v5297_v56  ;;  %v1975_v39 = vld [vmem:[#allocation2 + $0x60] sm:$0xf]  ;;  %v2135_v29 = vsel %vm5022_vm15, %v2130_v25, %v5297_v56  ;;  %v1531_v56 = vrot.slane %v1529_v14, 4  ;;  %v1532_v47 = vrot.slane %v1450_v6, 5 }
  0xa6   : > { %v2147_v31 = vshrl.u32 %v1975_v39, 16  ;;  %v2150_v48 = vshll.u32 %v1975_v39, 16  ;;  %v1222_v54 = vsel %vm5022_vm15, %v1217_v40, %v5304_v12  ;;  %v1232_v55 = vsel %vm5022_vm15, %v1227_v41, %v1231_v42 }
  0xa7   : > { %v2140_v28 = vrot.slane %v2139_v24, 4  ;;  %v2199_v59 = vunpack.c.l.b16 %v2135_v29  ;;  %v1264_v5 = vunpack.c.l.b16 %v1222_v54  ;;  %v1265_v7 = vunpack.c.l.b16 %v1232_v55 }
  0xa8   : > { %v2149_v61 = vrot.slane %v2147_v31, 4  ;;  %v2152_v62 = vrot.slane %v2150_v48, 5  ;;  %v1977_v11 = vld [vmem:[#allocation2 + $0x68] sm:$0x1]  ;;  %v1530_v12 = vsel %vm5012_vm14, %v3987_v52, %v1529_v14  ;;  %v1533_v17 = vsel %vm5012_vm14, %v1531_v56, %v1532_v47 }
  0xa9   : > { %v2145_v23 = vsel %vm5022_vm15, %v2140_v28, %v2144_v37  ;;  %v1976_v45 = vld [vmem:[#allocation2 + $0x64] sm:$0xf]  ;;  %v2166_v26 = vshll.u32 %v1977_v11, 16  ;;  %v1565_v9 = vunpack.c.l.b16 %v1530_v12  ;;  %v1566_v30 = vunpack.c.l.b16 %v1533_v17  ;;  %v3299_v12 = vld [vmem:[#allocation2 + $0x18] sm:$0xe] }
  0xaa   : > { %1890 = vmatmul.bf16.gmra.mxu3 %v4444_v53  ;;  %v2156_v13 = vshll.u32 %v1976_v45, 16  ;;  %v2160_v53 = vshrl.u32 %v1976_v45, 16  ;;  %v2200_v60 = vunpack.c.l.b16 %v2145_v23  ;;  %v2153_v24 = vor.u32 %v2152_v62, %v2149_v61  ;;  %v4446_v56 = vld [vmem:[#allocation2 + $0x60] sm:$0xff]  ;;  %v3300_v61 = vld [vmem:[#allocation2 + $0x1c] sm:$0xf] }
  0xab   : > { %v5307_v4 = vpop.f32.mrf.mxu1  ;;  %v2414_v32 = vrot.slane %v2365_v46, 5  ;;  %v2923_v25 = vshll.u32 %v2890_v16, 16  ;;  %v2927_v28 = vshrl.u32 %v2890_v16, 16  ;;  %v2168_v39 = vrot.slane %v2166_v26, 5  ;;  %v3301_v26 = vld [vmem:[#allocation2 + $0x20] sm:$0x1] }
  0xac   : > { %v2158_v63 = vrot.slane %v2156_v13, 5  ;;  %v2162_v58 = vrot.slane %v2160_v53, 4  ;;  %v2209_v21 = vpack.c.b16 %v2200_v60, %v2199_v59  ;;  %v2154_v37 = vrot.slane %v2153_v24, 4  ;;  %v2891_v13 = vld [vmem:[#allocation2 + $0x20] sm:$0x1] }
  0xad   : > { %v1574_v40 = vpack.c.b16 %v1566_v30, %v1565_v9  ;;  %v4164_v43 = vrot.slane %v2364_v34, 9  ;;  %v2416_v14 = vrot.slane %v2414_v32, 4  ;;  %v2417_v6 = vrot.slane %v2366_v36, 5  ;;  %v2368_v24 = vld [vmem:[#allocation2 + $0x1c] sm:$0xf] }
  0xae   : > { %v2163_v22 = vor.u32 %v2162_v58, %v2158_v63  ;;  %v2925_v23 = vrot.slane %v2923_v25, 5  ;;  %v2929_v45 = vrot.slane %v2927_v28, 4  ;;  %v2159_v48 = vsel %vm5022_vm15, %v2154_v37, %v2158_v63 }
  0xaf   : > { %2300 = vmatmul.bf16.gmra.mxu0 %v2208_v18  ;;  %v2889_v18 = vld [vmem:[#allocation2 + $0x18] sm:$0xf]  ;;  %v2415_v53 = vsel %vm5012_vm14, %v4164_v43, %v2414_v32  ;;  %v2418_v54 = vsel %vm5012_vm14, %v2416_v14, %v2417_v6  ;;  %v2201_v47 = vunpack.c.l.b16 %v2159_v48  ;;  %v2933_v60 = vshll.u32 %v2891_v13, 16 }
  0xb0   : > { %v2914_v20 = vshrl.u32 %v2889_v18, 16  ;;  %v2917_v8 = vshll.u32 %v2889_v18, 16  ;;  %v2930_v59 = vor.u32 %v2929_v45, %v2925_v23  ;;  %v2485_v63 = vunpack.c.l.b16 %v2415_v53  ;;  %v4471_v48 = vld [vmem:[#allocation2 + $0x18] sm:$0xff] }
  0xb1   : > { %v2486_v58 = vunpack.c.l.b16 %v2418_v54  ;;  %v3349_v46 = vrot.slane %v3300_v61, 5  ;;  %v4348_v36 = vrot.slane %v3299_v12, 9  ;;  %v2421_v25 = vrot.slane %v2368_v24, 5 }
  0xb2   : > { %1368 = vmatmul.bf16.gmra.mxu1 %v1272_v27  ;;  %v1273_v27 = vpack.c.b16 %v1265_v7, %v1264_v5  ;;  %v2916_v41 = vrot.slane %v2914_v20, 4  ;;  %v2919_v29 = vrot.slane %v2917_v8, 5  ;;  %v2892_v5 = vld [vmem:[#allocation2 + $0x24] sm:$0xf]  ;;  %v2893_v7 = vld [vmem:[#allocation2 + $0x28] sm:$0xf] }
  0xb3   : > { %v5324_v3 = vpop.f32.mrf.mxu1  ;;  %v2931_v18 = vrot.slane %v2930_v59, 4  ;;  %v2938_v16 = vshrl.u32 %v2892_v5, 16  ;;  %v2947_v9 = vshll.u32 %v2893_v7, 16  ;;  %v2951_v30 = vshrl.u32 %v2893_v7, 16 }
  0xb4   : > { %v5334_v51 = vpop.f32.mrf.mxu2  ;;  %v5343_v15 = vpop.f32.mrf.mxu3  ;;  %v2920_v55 = vor.u32 %v2919_v29, %v2916_v41  ;;  %v2501_v20 = vpack.c.b16 %v2486_v58, %v2485_v63  ;;  %v2369_v41 = vld [vmem:[#allocation2 + $0x20] sm:$0x1]  ;;  %v2423_v13 = vrot.slane %v2421_v25, 4 }
  0xb5   : > { %1669 = vmatmul.bf16.gmra.mxu2 %v1573_v38  ;;  %v2164_v38 = vrot.slane %v2163_v22, 4  ;;  %v2940_v43 = vrot.slane %v2938_v16, 4  ;;  %v2949_v6 = vrot.slane %v2947_v9, 5  ;;  %v2953_v29 = vrot.slane %v2951_v30, 4  ;;  %v2895_v9 = vld [vmem:[#allocation2 + $0x30] sm:$0xf] }
  0xb6   : > { %v2921_v11 = vrot.slane %v2920_v55, 4  ;;  %v2424_v53 = vrot.slane %v2369_v41, 5  ;;  %v3350_v55 = vsel %vm5012_vm14, %v4348_v36, %v3349_v46  ;;  %v3304_v41 = vld [vmem:[#allocation2 + $0x2c] sm:$0x1] }
  0xb7   : > { %v2169_v50 = vsel %vm5022_vm15, %v2164_v38, %v2168_v39  ;;  %v3351_v38 = vrot.slane %v3349_v46, 4  ;;  %v3352_v39 = vrot.slane %v3301_v26, 5  ;;  %v2954_v59 = vor.u32 %v2953_v29, %v2949_v6 }
  0xb8   : > { %v2926_v34 = vsel %vm5022_vm15, %v2921_v11, %v2925_v23  ;;  %v2894_v23 = vld [vmem:[#allocation2 + $0x2c] sm:$0x1]  ;;  %v3420_v11 = vunpack.c.l.b16 %v3350_v55 }
  0xba   : > { %v5341_v0 = vpop.f32.mrf.mxu0  ;;  %1895 = vmatmul.bf16.gmra.mxu3 %v4445_v19  ;;  %v2202_v19 = vunpack.c.l.b16 %v2169_v50 }
  0xbb   : > { %v5349_v57 = vpop.f32.mrf.mxu1 }
  0xbc   : > { %v5351_v33 = vpop.f32.mrf.mxu2  ;;  %v5355_v31 = vpop.f32.mrf.mxu3  ;;  %v2210_v17 = vpack.c.b16 %v2202_v19, %v2201_v47  ;;  %v3353_v47 = vsel %vm5012_vm14, %v3351_v38, %v3352_v39  ;;  %v2962_v39 = vshrl.u32 %v2895_v9, 16 }
  0xbd   : > { %v3421_v12 = vunpack.c.l.b16 %v3353_v47 }
  0xbf   : > { %2305 = vmatmul.bf16.gmra.mxu0 %v2209_v21  ;;  %v2935_v21 = vrot.slane %v2933_v60, 5  ;;  %v2957_v60 = vshll.u32 %v2894_v23, 16 }
  0xc1   : > { %v2936_v37 = vsel %vm5022_vm15, %v2931_v18, %v2935_v21  ;;  %v2955_v21 = vrot.slane %v2954_v59, 4  ;;  %v2959_v46 = vrot.slane %v2957_v60, 5  ;;  %v2964_v59 = vrot.slane %v2962_v39, 4  ;;  %v3306_v39 = vld [vmem:[#allocation2 + $0x34] sm:$0xf] }
  0xc2   : > { %1373 = vmatmul.bf16.gmra.mxu1 %v1273_v27  ;;  %v5353_v42 = vpop.f32.mrf.mxu0  ;;  %v2941_v27 = vshll.u32 %v2892_v5, 16  ;;  %v3123_v54 = vunpack.c.l.b16 %v2936_v37  ;;  %v2425_v5 = vsel %vm5012_vm14, %v2423_v13, %v2424_v53  ;;  %v3302_v37 = vld [vmem:[#allocation2 + $0x24] sm:$0xe] }
  0xc3   : > { %v5361_v52 = vpop.f32.mrf.mxu1  ;;  %v2488_v16 = vunpack.c.l.b16 %v2425_v5 }
  0xc4   : > { %v2943_v14 = vrot.slane %v2941_v27, 5  ;;  %v3303_v27 = vld [vmem:[#allocation2 + $0x28] sm:$0xf] }
  0xc5   : > { %1674 = vmatmul.bf16.gmra.mxu2 %v1574_v40  ;;  %v2367_v40 = vld [vmem:[#allocation2 + $0x18] sm:$0xe]  ;;  %v3356_v38 = vrot.slane %v3303_v27, 5 }
  0xc6   : > { %v4165_v50 = vrot.slane %v2367_v40, 9  ;;  %v2944_v19 = vor.u32 %v2943_v14, %v2940_v43  ;;  %v2965_v43 = vshll.u32 %v2895_v9, 16 }
  0xc7   : > { %v3358_v47 = vrot.slane %v3356_v38, 4 }
  0xc8   : > { %v5367_v62 = vpop.f32.mrf.mxu2  ;;  %v2422_v58 = vsel %vm5012_vm14, %v4165_v50, %v2421_v25  ;;  %v2945_v18 = vrot.slane %v2944_v19, 4  ;;  %v3359_v19 = vrot.slane %v3304_v41, 5 }
  0xc9   : > { %v2487_v26 = vunpack.c.l.b16 %v2422_v58 }
  0xca   : > { %1900 = vmatmul.bf16.gmra.mxu3 %v4446_v56  ;;  %v2950_v25 = vsel %vm5022_vm15, %v2945_v18, %v2949_v6  ;;  %v4349_v6 = vrot.slane %v3302_v37, 9 }
  0xcb   : > { %v5369_v22 = vpop.f32.mrf.mxu0  ;;  %v2502_v40 = vpack.c.b16 %v2488_v16, %v2487_v26  ;;  %v3124_v53 = vunpack.c.l.b16 %v2950_v25  ;;  %v3360_v16 = vsel %vm5012_vm14, %v3358_v47, %v3359_v19  ;;  %v2898_v47 = vld [vmem:[#allocation2 + $0x3c] sm:$0xf] }
  0xcc   : > { %v3357_v26 = vsel %vm5012_vm14, %v4349_v6, %v3356_v38  ;;  %v3423_v37 = vunpack.c.l.b16 %v3360_v16  ;;  %v3307_v6 = vld [vmem:[#allocation2 + $0x38] sm:$0x1]  ;;  %v2989_v16 = vshll.u32 %v2898_v47, 16 }
  0xcd   : > { %v5371_v32 = vpop.f32.mrf.mxu3 }
  0xcf   : > { %v1339_v8 = vpop.f32.mrf.mxu1  ;;  %2310 = vmatmul.bf16.gmra.mxu0 %v2210_v17 }
  0xd0   : > { %v1395_v28 = vadd.f32 %v1339_v8, %v5341_v0  ;;  %v5378_v45 = vpop.f32.mrf.mxu2  ;;  %v3122_v0 = vunpack.c.l.b16 %v2926_v34  ;;  %v3436_v8 = vpack.c.b16 %v3421_v12, %v3420_v11  ;;  %v2371_v34 = vld [vmem:[#allocation2 + $0x28] sm:$0xf] }
  0xd1   : > { %v4472_v12 = vld [vmem:[#allocation2 + $0x24] sm:$0xff] }
  0xd2   : > { %2573 = vmatmul.bf16.vlgmr.msra.gmra.mxu1 %v2501_v20  ;;  %v3138_v7 = vpack.c.b16 %v3123_v54, %v3122_v0  ;;  %v2896_v20 = vld [vmem:[#allocation2 + $0x34] sm:$0xf]  ;;  %v2370_v0 = vld [vmem:[#allocation2 + $0x24] sm:$0xe]  ;;  %v2372_v54 = vld [vmem:[#allocation2 + $0x2c] sm:$0x1] }
  0xd3   : > { %v5382_v56 = vpop.f32.mrf.mxu0  ;;  %v2971_v14 = vshll.u32 %v2896_v20, 16  ;;  %v2975_v29 = vshrl.u32 %v2896_v20, 16  ;;  %v4166_v18 = vrot.slane %v2370_v0, 9  ;;  %v2374_v0 = vld [vmem:[#allocation2 + $0x34] sm:$0xf] }
  0xd5   : > { %v5386_v61 = vpop.f32.mrf.mxu3  ;;  %2800 = vmatmul.bf16.vlgmr.msra.gmra.mxu2 %v4471_v48  ;;  %v2428_v48 = vrot.slane %v2371_v34, 5  ;;  %v5398_v58 = vrot.slane %v2971_v14, 5  ;;  %v2977_v5 = vrot.slane %v2975_v29, 4 }
  0xd7   : > { %v1341_v63 = vpop.f32.mrf.mxu1  ;;  %v2978_v34 = vor.u32 %v2977_v5, %v5398_v58 }
  0xd8   : > { %v1396_v17 = vadd.f32 %v1341_v63, %v5353_v42  ;;  %v1640_v24 = vpop.f32.mrf.mxu2  ;;  %v2960_v42 = vsel %vm5022_vm15, %v2955_v21, %v2959_v46  ;;  %v2967_v63 = vrot.slane %v2965_v43, 5  ;;  %v2431_v21 = vrot.slane %v2372_v54, 5  ;;  %v2897_v46 = vld [vmem:[#allocation2 + $0x38] sm:$0x1] }
  0xd9   : > { %v1696_v30 = vadd.f32 %v1640_v24, %v1395_v28  ;;  %v3125_v55 = vunpack.c.l.b16 %v2960_v42  ;;  %v3422_v42 = vunpack.c.l.b16 %v3357_v26  ;;  %v2986_v26 = vshrl.u32 %v2898_v47, 16 }
  0xda   : > { %3210 = vmatmul.bf16.vlgmr.msra.gmra.mxu3 %v3138_v7  ;;  %v2968_v9 = vor.u32 %v2967_v63, %v2964_v59 }
  0xdb   : > { %v3139_v27 = vpack.c.b16 %v3125_v55, %v3124_v53  ;;  %v3437_v53 = vpack.c.b16 %v3423_v37, %v3422_v42 }
  0xdc   : > { %v2276_v36 = vpop.f32.mrf.mxu0  ;;  %v2969_v14 = vrot.slane %v2968_v9, 4 }
  0xdd   : > { %v1866_v28 = vpop.f32.mrf.mxu3 }
  0xde   : > { %v1922_v50 = vadd.f32 %v1866_v28, %v1696_v30  ;;  %v2979_v28 = vrot.slane %v2978_v34, 4  ;;  %v4473_v34 = vld [vmem:[#allocation2 + $0x30] sm:$0xff] }
  0xdf   : > { %v1344_v23 = vpop.f32.mrf.mxu1  ;;  %3508 = vmatmul.bf16.vlgmr.msra.gmra.mxu0 %v3436_v8 }
  0xe0   : > { %v1397_v13 = vadd.f32 %v1344_v23, %v5369_v22  ;;  %v1642_v60 = vpop.f32.mrf.mxu2  ;;  %v5400_v7 = vadd.f32 %v2276_v36, %v1922_v50  ;;  %v2430_v22 = vrot.slane %v2428_v48, 4  ;;  %v2981_v36 = vshll.u32 %v2897_v46, 16  ;;  %v2373_v46 = vld [vmem:[#allocation2 + $0x30] sm:$0xe] }
  0xe1   : > { %v1697_v11 = vadd.f32 %v1642_v60, %v1396_v17  ;;  %v2429_v17 = vsel %vm5012_vm14, %v4166_v18, %v2428_v48  ;;  %v3305_v48 = vld [vmem:[#allocation2 + $0x30] sm:$0xe]  ;;  %v3363_v50 = vrot.slane %v3306_v39, 5  ;;  %v2899_v60 = vld [vmem:[#allocation2 + $0x40] sm:$0xf]  ;;  %v2435_v18 = vrot.slane %v2374_v0, 5 }
  0xe2   : > { %2578 = vmatmul.bf16.gmra.mxu1 %v2502_v40  ;;  %v2432_v8 = vsel %vm5012_vm14, %v2430_v22, %v2431_v21  ;;  %v2489_v41 = vunpack.c.l.b16 %v2429_v17  ;;  %v2983_v23 = vrot.slane %v2981_v36, 5  ;;  %v4350_v59 = vrot.slane %v3305_v48, 9 }
  0xe3   : > { %v2490_v43 = vunpack.c.l.b16 %v2432_v8  ;;  %v4167_v36 = vrot.slane %v2373_v46, 9  ;;  %v2988_v39 = vrot.slane %v2986_v26, 4  ;;  %v3308_v46 = vld [vmem:[#allocation2 + $0x3c] sm:$0xe] }
  0xe4   : > { %v2278_v24 = vpop.f32.mrf.mxu0  ;;  %v2984_v5 = vsel %vm5022_vm15, %v2979_v28, %v2983_v23 }
  0xe5   : > { %v1868_v30 = vpop.f32.mrf.mxu3  ;;  %2805 = vmatmul.bf16.gmra.mxu2 %v4472_v12  ;;  %v2503_v19 = vpack.c.b16 %v2490_v43, %v2489_v41  ;;  %v3366_v12 = vrot.slane %v3307_v6, 5  ;;  %v3309_v6 = vld [vmem:[#allocation2 + $0x40] sm:$0xf] }
  0xe6   : > { %v1923_v25 = vadd.f32 %v1868_v30, %v1697_v11  ;;  %v3365_v11 = vrot.slane %v3363_v50, 4 }
  0xe7   : > { %v1346_v20 = vpop.f32.mrf.mxu1 }
  0xe8   : > { %v1398_v38 = vadd.f32 %v1346_v20, %v5382_v56  ;;  %v1645_v40 = vpop.f32.mrf.mxu2  ;;  %v5412_v54 = vadd.f32 %v2278_v24, %v1923_v25  ;;  %v2974_v56 = vsel %vm5022_vm15, %v2969_v14, %v5398_v58  ;;  %v2375_v24 = vld [vmem:[#allocation2 + $0x38] sm:$0x1]  ;;  %v2999_v58 = vshrl.u32 %v2899_v60, 16 }
  0xe9   : > { %v1698_v29 = vadd.f32 %v1645_v40, %v1397_v13  ;;  %v3126_v30 = vunpack.c.l.b16 %v2974_v56  ;;  %v3127_v20 = vunpack.c.l.b16 %v2984_v5  ;;  %v2437_v25 = vrot.slane %v2435_v18, 4 }
  0xea   : > { %3215 = vmatmul.bf16.gmra.mxu3 %v3139_v27  ;;  %v2995_v27 = vshll.u32 %v2899_v60, 16  ;;  %v2438_v42 = vrot.slane %v2375_v24, 5  ;;  %v3367_v37 = vsel %vm5012_vm14, %v3365_v11, %v3366_v12  ;;  %v2991_v40 = vrot.slane %v2989_v16, 5  ;;  %v2901_v60 = vld [vmem:[#allocation2 + $0x48] sm:$0xf] }
  0xeb   : > { %v3001_v14 = vrot.slane %v2999_v58, 4  ;;  %v3425_v23 = vunpack.c.l.b16 %v3367_v37  ;;  %v3370_v11 = vrot.slane %v3309_v6, 5  ;;  %v2902_v12 = vld [vmem:[#allocation2 + $0x4c] sm:$0xf]  ;;  %v3310_v24 = vld [vmem:[#allocation2 + $0x44] sm:$0x1] }
  0xec   : > { %v2281_v55 = vpop.f32.mrf.mxu0  ;;  %v5426_v43 = vrot.slane %v2995_v27, 5  ;;  %v2377_v16 = vld [vmem:[#allocation2 + $0x40] sm:$0xf]  ;;  %v3010_v27 = vshrl.u32 %v2901_v60, 16  ;;  %v3013_v58 = vshll.u32 %v2901_v60, 16 }
  0xed   : > { %v1871_v13 = vpop.f32.mrf.mxu3 }
  0xee   : > { %v1924_v22 = vadd.f32 %v1871_v13, %v1698_v29  ;;  %v2900_v29 = vld [vmem:[#allocation2 + $0x44] sm:$0x1]  ;;  %v3002_v56 = vor.u32 %v3001_v14, %v5426_v43 }
  0xef   : > { %v1349_v63 = vpop.f32.mrf.mxu1  ;;  %3513 = vmatmul.bf16.gmra.mxu0 %v3437_v53  ;;  %v2436_v53 = vsel %vm5012_vm14, %v4167_v36, %v2435_v18 }
  0xf0   : > { %v1399_v21 = vadd.f32 %v1349_v63, %v5307_v4  ;;  %v1647_v9 = vpop.f32.mrf.mxu2  ;;  %v5420_v17 = vadd.f32 %v2281_v55, %v1924_v22  ;;  %v3364_v4 = vsel %vm5012_vm14, %v4350_v59, %v3363_v50  ;;  %v2439_v50 = vsel %vm5012_vm14, %v2437_v25, %v2438_v42 }
  0xf1   : > { %v1699_v8 = vadd.f32 %v1647_v9, %v1398_v38  ;;  %v3424_v38 = vunpack.c.l.b16 %v3364_v4  ;;  %v3140_v55 = vpack.c.b16 %v3127_v20, %v3126_v30  ;;  %v3005_v59 = vshll.u32 %v2900_v29, 16  ;;  %v2376_v29 = vld [vmem:[#allocation2 + $0x3c] sm:$0xe] }
  0xf2   : > { %2583 = vmatmul.bf16.gmra.mxu1 %v2503_v19  ;;  %v2992_v19 = vor.u32 %v2991_v40, %v2988_v39  ;;  %v2491_v63 = vunpack.c.l.b16 %v2436_v53  ;;  %v2492_v5 = vunpack.c.l.b16 %v2439_v50  ;;  %v3003_v30 = vrot.slane %v3002_v56, 4 }
  0xf3   : > { %v3438_v22 = vpack.c.b16 %v3425_v23, %v3424_v38  ;;  %v3007_v20 = vrot.slane %v3005_v59, 5  ;;  %v4351_v25 = vrot.slane %v3308_v46, 9  ;;  %v3372_v42 = vrot.slane %v3370_v11, 4  ;;  %v4474_v59 = vld [vmem:[#allocation2 + $0x3c] sm:$0xff] }
  0xf4   : > { %v2283_v41 = vpop.f32.mrf.mxu0  ;;  %v2993_v26 = vrot.slane %v2992_v19, 4  ;;  %v2504_v36 = vpack.c.b16 %v2492_v5, %v2491_v63  ;;  %v3373_v4 = vrot.slane %v3310_v24, 5  ;;  %v2442_v39 = vrot.slane %v2377_v16, 5 }
  0xf5   : > { %v1873_v28 = vpop.f32.mrf.mxu3  ;;  %2810 = vmatmul.bf16.gmra.mxu2 %v4473_v34  ;;  %v3023_v34 = vshrl.u32 %v2902_v12, 16  ;;  %v3015_v38 = vrot.slane %v3013_v58, 5 }
  0xf6   : > { %v1925_v0 = vadd.f32 %v1873_v28, %v1699_v8  ;;  %v3019_v8 = vshll.u32 %v2902_v12, 16  ;;  %v2378_v28 = vld [vmem:[#allocation2 + $0x44] sm:$0x1]  ;;  %v2998_v23 = vsel %vm5022_vm15, %v2993_v26, %v5426_v43  ;;  %v4168_v43 = vrot.slane %v2376_v29, 9  ;;  %v420_v29 = vld [vmem:[%s4767_s18 + $0x18] sm:$0xff] }
  0xf7   : > { %v1351_v48 = vpop.f32.mrf.mxu1  ;;  %v3025_v50 = vrot.slane %v3023_v34, 4  ;;  %v2444_v60 = vrot.slane %v2442_v39, 4  ;;  %v3128_v63 = vunpack.c.l.b16 %v2998_v23 }
  0xf8   : > { %v1400_v47 = vadd.f32 %v1351_v48, %v5324_v3  ;;  %v1650_v13 = vpop.f32.mrf.mxu2  ;;  %v5434_v3 = vadd.f32 %v2283_v41, %v1925_v0  ;;  %v3012_v41 = vrot.slane %v3010_v27, 4  ;;  %v3008_v48 = vsel %vm5022_vm15, %v3003_v30, %v3007_v20  ;;  %v3313_v30 = vld [vmem:[#allocation2 + $0x50] sm:$0x1] }
  0xf9   : > { %v1700_v18 = vadd.f32 %v1650_v13, %v1399_v21  ;;  %v5442_v53 = vrot.slane %v3019_v8, 5  ;;  %v3371_v0 = vsel %vm5012_vm14, %v4351_v25, %v3370_v11  ;;  %v2445_v13 = vrot.slane %v2378_v28, 5 }
  0xfa   : > { %3220 = vmatmul.bf16.gmra.mxu3 %v3140_v55  ;;  %v2903_v55 = vld [vmem:[#allocation2 + $0x50] sm:$0x1]  ;;  %v3129_v5 = vunpack.c.l.b16 %v3008_v48  ;;  %v3016_v12 = vor.u32 %v3015_v38, %v3012_v41  ;;  %v3426_v46 = vunpack.c.l.b16 %v3371_v0  ;;  %v3380_v48 = vrot.slane %v3313_v30, 5 }
  0xfb   : > { %v3026_v11 = vor.u32 %v3025_v50, %v5442_v53  ;;  %v3029_v26 = vshll.u32 %v2903_v55, 16  ;;  %v2446_v58 = vsel %vm5012_vm14, %v2444_v60, %v2445_v13  ;;  %v2905_v50 = vld [vmem:[#allocation2 + $0x58] sm:$0xf]  ;;  %v449_v30 = vstv %s5461_s13 }
  0xfc   : > { %v2286_v9 = vpop.f32.mrf.mxu0  ;;  %v3141_v34 = vpack.c.b16 %v3129_v5, %v3128_v63  ;;  %v3017_v25 = vrot.slane %v3016_v12, 4  ;;  %v2494_v38 = vunpack.c.l.b16 %v2446_v58  ;;  %v2379_v63 = vld [vmem:[#allocation2 + $0x48] sm:$0xe]  ;;  %v2381_v5 = vld [vmem:[#allocation2 + $0x50] sm:$0x1]  ;;  %v3043_v12 = vshll.u32 %v2905_v50, 16 }
  0xfd   : > { %v1876_v37 = vpop.f32.mrf.mxu3  ;;  %vm450_vm1 = vcmp.eq.s32.totalorder %v449_v30, 1  ;;  %v2908_v30 = vld [vmem:[#allocation2 + $0x64] sm:$0xf] }
  0xfe   : > { %v1926_v40 = vadd.f32 %v1876_v37, %v1700_v18  ;;  %v3027_v37 = vrot.slane %v3026_v11, 4  ;;  %v382_v11 = vld [vmem:[#allocation2 + $0x6c] sm:$0x1] }
  0xff   : > { %v1354_v21 = vpop.f32.mrf.mxu1  ;;  %3518 = vmatmul.bf16.gmra.mxu0 %v3438_v22  ;;  %v3312_v22 = vld [vmem:[#allocation2 + $0x4c] sm:$0xf] }
 0x100   : > { %v1401_v14 = vadd.f32 %v1354_v21, %v5349_v57  ;;  %v1652_v6 = vpop.f32.mrf.mxu2  ;;  %v3374_v57 = vsel %vm5012_vm14, %v3372_v42, %v3373_v4  ;;  %v5448_v19 = vadd.f32 %v2286_v9, %v1926_v40  ;;  %v3311_v9 = vld [vmem:[#allocation2 + $0x48] sm:$0xe]  ;;  %v3377_v20 = vrot.slane %v3312_v22, 5  ;;  %v2904_v42 = vld [vmem:[#allocation2 + $0x54] sm:$0xf] }
 0x101   : > { %v1701_v56 = vadd.f32 %v1652_v6, %v1400_v47  ;;  %v3427_v24 = vunpack.c.l.b16 %v3374_v57  ;;  %v2443_v47 = vsel %vm5012_vm14, %v4168_v43, %v2442_v39  ;;  %v3031_v21 = vrot.slane %v3029_v26, 5  ;;  %v2380_v40 = vld [vmem:[#allocation2 + $0x4c] sm:$0xf]  ;;  %v419_v39 = vld [vmem:[%s4767_s18 + $0x10] sm:$0xff] }
 0x102   : > { %2588 = vmatmul.bf16.gmra.mxu1 %v2504_v36  ;;  %v2493_v41 = vunpack.c.l.b16 %v2443_v47  ;;  %v4352_v23 = vrot.slane %v3311_v9, 9  ;;  %v3379_v0 = vrot.slane %v3377_v20, 4  ;;  %v3034_v57 = vshrl.u32 %v2904_v42, 16 }
 0x103   : > { %v3439_v4 = vpack.c.b16 %v3427_v24, %v3426_v46  ;;  %v3037_v55 = vshll.u32 %v2904_v42, 16  ;;  %v3047_v22 = vshrl.u32 %v2905_v50, 16  ;;  %v3032_v24 = vsel %vm5022_vm15, %v3027_v37, %v3031_v21 }
 0x104   : > { %v2288_v18 = vpop.f32.mrf.mxu0  ;;  %v2505_v46 = vpack.c.b16 %v2494_v38, %v2493_v41  ;;  %v3381_v58 = vsel %vm5012_vm14, %v3379_v0, %v3380_v48  ;;  %v383_v9 = vsel %vm4697_vm2, 0, %v382_v11  ;;  %v2452_v42 = vrot.slane %v2381_v5, 5 }
 0x105   : > { %v1878_v16 = vpop.f32.mrf.mxu3  ;;  %2815 = vmatmul.bf16.gmra.mxu2 %v4474_v59  ;;  %384 = vst [vmem:[#allocation2 + $0x6c] sm:$0x1] %v383_v9  ;;  %v3036_v37 = vrot.slane %v3034_v57, 4  ;;  %v3039_v21 = vrot.slane %v3037_v55, 5  ;;  %v3131_v50 = vunpack.c.l.b16 %v3032_v24  ;;  %v5494_v24 = vld [vmem:[#allocation2 + $0x54] sm:$0xe] }
 0x106   : > { %v1927_v8 = vadd.f32 %v1878_v16, %v1701_v56  ;;  %v4573_v56 = vld [vmem:[%s5642_s2] ss:$0 sm:$0xff] }
 0x107   : > { %v1356_v27 = vpop.f32.mrf.mxu1  ;;  %v442_v59 = vmul.f32 %v4573_v56, %v419_v39  ;;  %v443_v43 = vmul.f32 %v4573_v56, %v420_v29  ;;  %v3049_v39 = vrot.slane %v3047_v22, 4  ;;  %v3429_v56 = vunpack.c.l.b16 %v3381_v58 }
 0x108   : > { %v1402_v36 = vadd.f32 %v1356_v27, %v5361_v52  ;;  %v1655_v28 = vpop.f32.mrf.mxu2  ;;  %v2449_v52 = vrot.slane %v2380_v40, 5  ;;  %v5466_v60 = vadd.f32 %v2288_v18, %v1927_v8  ;;  %v4574_v18 = vld [vmem:[%s5643_s3] ss:$0 sm:$0xff]  ;;  %v5483_v40 = vrot.slane %v3043_v12, 5 }
 0x109   : > { %v1702_v6 = vadd.f32 %v1655_v28, %v1401_v14  ;;  %v3022_v14 = vsel %vm5022_vm15, %v3017_v25, %v5442_v53  ;;  %v444_v26 = vadd.f32 %v4574_v18, %v442_v59  ;;  %v445_v16 = vadd.f32 %v4574_v18, %v443_v43  ;;  %v2907_v12 = vld [vmem:[#allocation2 + $0x60] sm:$0xf] }
 0x10a   : > { %3225 = vmatmul.bf16.gmra.mxu3 %v3141_v34  ;;  %v3378_v53 = vsel %vm5012_vm14, %v4352_v23, %v3377_v20  ;;  %v4169_v34 = vrot.slane %v2379_v63, 9  ;;  %v2451_v25 = vrot.slane %v2449_v52, 4  ;;  %v4475_v23 = vld [vmem:[#allocation2 + $0x48] sm:$0xff]  ;;  %v3130_v48 = vunpack.c.l.b16 %v3022_v14 }
 0x10b   : > { %v446_v20 = vmax.f32 %v444_v26, 0.0  ;;  %v447_v28 = vmax.f32 %v445_v16, 0.0  ;;  %v3428_v55 = vunpack.c.l.b16 %v3378_v53  ;;  %v3040_v63 = vor.u32 %v3039_v21, %v3036_v37  ;;  %v5496_v26 = vld [vmem:[#allocation2 + $0x5c] sm:$0x1] }
 0x10c   : > { %v2291_v13 = vpop.f32.mrf.mxu0  ;;  %v2453_v0 = vsel %vm5012_vm14, %v2451_v25, %v2452_v42  ;;  %v3142_v18 = vpack.c.b16 %v3131_v50, %v3130_v48  ;;  %v4353_v21 = vrot.slane %v5494_v24, 9  ;;  %v509_v24 = vld [vmem:[#allocation2 + $0x6c] sm:$0xf] }
 0x10d   : > { %v1881_v27 = vpop.f32.mrf.mxu3  ;;  %v451_v59 = vsel %vm450_vm1, 0.0, %v446_v20  ;;  %v452_v43 = vsel %vm450_vm1, 0.0, %v447_v28  ;;  %v3440_v58 = vpack.c.b16 %v3429_v56, %v3428_v55  ;;  %v3041_v25 = vrot.slane %v3040_v63, 4  ;;  %v2383_v28 = vld [vmem:[#allocation2 + $0x58] sm:$0xf] }
 0x10e   : > { %v1928_v8 = vadd.f32 %v1881_v27, %v1702_v6  ;;  %v2450_v6 = vsel %vm5012_vm14, %v4169_v34, %v2449_v52  ;;  %v2496_v52 = vunpack.c.l.b16 %v2453_v0  ;;  %v486_v16 = vpack.c.bf16 %v451_v59, %v451_v59 }
 0x10f   : > { %v1359_v47 = vpop.f32.mrf.mxu1  ;;  %3523 = vmatmul.bf16.gmra.mxu0 %v3439_v4  ;;  %v2906_v4 = vld [vmem:[#allocation2 + $0x5c] sm:$0x1]  ;;  %v487_v27 = vpack.c.bf16 %v452_v43, %v452_v43  ;;  %v3387_v20 = vrot.slane %v5496_v26, 5  ;;  %v3071_v55 = vshrl.u32 %v2908_v30, 16  ;;  %v2456_v59 = vrot.slane %v2383_v28, 5 }
 0x110   : > { %v1657_v29 = vpop.f32.mrf.mxu2  ;;  %v5485_v41 = vadd.f32 %v2291_v13, %v1928_v8  ;;  %v3050_v13 = vor.u32 %v3049_v39, %v5483_v40  ;;  %v3053_v5 = vshll.u32 %v2906_v4, 16  ;;  %v1403_v53 = vadd.f32 %v1359_v47, %v5334_v51 }
 0x111   : > { %v1703_v38 = vadd.f32 %v1657_v29, %v1402_v36  ;;  %v5492_v36 = vld [vmem:[#allocation2 + $0x58] sm:$0xf]  ;;  %v3058_v8 = vshrl.u32 %v2907_v12, 16  ;;  %v3067_v51 = vshll.u32 %v2908_v30, 16  ;;  %v489_v47 = vshrl.u32 %v486_v16, 16 }
 0x112   : > { %2593 = vmatmul.bf16.gmra.mxu1 %v2505_v46  ;;  %v2495_v46 = vunpack.c.l.b16 %v2450_v6  ;;  %v3384_v9 = vrot.slane %v5492_v36, 5  ;;  %v3051_v42 = vrot.slane %v3050_v13, 4  ;;  %v3055_v37 = vrot.slane %v3053_v5, 5 }
 0x113   : > { %v492_v4 = vshll.u32 %v486_v16, 16  ;;  %v497_v48 = vshrl.u32 %v487_v27, 16  ;;  %v5504_v0 = vrot.slane %v3058_v8, 4  ;;  %v500_v56 = vshll.u32 %v487_v27, 16  ;;  %v2384_v16 = vld [vmem:[#allocation2 + $0x5c] sm:$0x1] }
 0x114   : > { %v2293_v57 = vpop.f32.mrf.mxu0  ;;  %v2506_v29 = vpack.c.b16 %v2496_v52, %v2495_v46  ;;  %v3386_v6 = vrot.slane %v3384_v9, 4  ;;  %v491_v43 = vrot.slane %v489_v47, 7  ;;  %v3056_v46 = vsel %vm5022_vm15, %v3051_v42, %v3055_v37  ;;  %v2382_v52 = vld [vmem:[#allocation2 + $0x54] sm:$0xe] }
 0x115   : > { %v1883_v14 = vpop.f32.mrf.mxu3  ;;  %2820 = vmatmul.bf16.gmra.mxu2 %v4475_v23  ;;  %v414_v23 = vld [vmem:[#allocation2 + $0x74] sm:$0x1]  ;;  %v499_v63 = vrot.slane %v497_v48, 7  ;;  %v5515_v35 = vrot.slane %v3067_v51, 5  ;;  %v3073_v8 = vrot.slane %v3071_v55, 4  ;;  %v4170_v37 = vrot.slane %v2382_v52, 9 }
 0x116   : > { %v1929_v11 = vadd.f32 %v1883_v14, %v1703_v38  ;;  %v3061_v38 = vshll.u32 %v2907_v12, 16  ;;  %v415_v13 = vsel %vm4880_vm9, 0, %v414_v23  ;;  %v3046_v14 = vsel %vm5022_vm15, %v3041_v25, %v5483_v40  ;;  %v4476_v42 = vld [vmem:[#allocation2 + $0x54] sm:$0xff] }
 0x117   : > { %v1361_v22 = vpop.f32.mrf.mxu1  ;;  %416 = vst [vmem:[#allocation2 + $0x74] sm:$0x1] %v415_v13  ;;  %v502_v40 = vor.u32 %v500_v56, %v499_v63  ;;  %v2458_v28 = vrot.slane %v2456_v59, 4  ;;  %v3133_v51 = vunpack.c.l.b16 %v3056_v46  ;;  %v3385_v10 = vsel %vm5012_vm14, %v4353_v21, %v3384_v9  ;;  %v3318_v13 = vld [vmem:[#allocation2 + $0x64] sm:$0xf] }
 0x118   : > { %v1660_v34 = vpop.f32.mrf.mxu2  ;;  %v3063_v27 = vrot.slane %v3061_v38, 5  ;;  %v1404_v30 = vadd.f32 %v1361_v22, %v5351_v33  ;;  %v2909_v38 = vld [vmem:[#allocation2 + $0x68] sm:$0x1]  ;;  %v504_v33 = vrot.slane %v499_v63, 4  ;;  %v3132_v22 = vunpack.c.l.b16 %v3046_v14 }
 0x119   : > { %v1704_v39 = vadd.f32 %v1660_v34, %v1403_v53  ;;  %v494_v53 = vor.u32 %v492_v4, %v491_v43  ;;  %v495_v34 = vrot.slane %v491_v43, 4  ;;  %v3388_v47 = vsel %vm5012_vm14, %v3386_v6, %v3387_v20 }
 0x11a   : > { %3230 = vmatmul.bf16.gmra.mxu3 %v3142_v18  ;;  %v5513_v18 = vadd.f32 %v2293_v57, %v1929_v11  ;;  %v3064_v4 = vor.u32 %v3063_v27, %v5504_v0  ;;  %v3077_v48 = vshll.u32 %v2909_v38, 16  ;;  %v2457_v56 = vsel %vm5012_vm14, %v4170_v37, %v2456_v59  ;;  %v3317_v27 = vld [vmem:[#allocation2 + $0x60] sm:$0xe] }
 0x11b   : > { %v510_v57 = vsel %vm4794_vm7, %v494_v53, %v509_v24  ;;  %v503_v23 = vsel %vm4785_vm6, %v495_v34, %v502_v40  ;;  %v3074_v36 = vor.u32 %v3073_v8, %v5515_v35  ;;  %v3143_v20 = vpack.c.b16 %v3133_v51, %v3132_v22  ;;  %v3319_v34 = vld [vmem:[#allocation2 + $0x68] sm:$0x1]  ;;  %v2385_v22 = vld [vmem:[#allocation2 + $0x60] sm:$0xe] }
 0x11c   : > { %v2296_v50 = vpop.f32.mrf.mxu0  ;;  %511 = vst [vmem:[#allocation2 + $0x6c] sm:$0xf] %v510_v57  ;;  %v3430_v6 = vunpack.c.l.b16 %v3385_v10  ;;  %v3431_v0 = vunpack.c.l.b16 %v3388_v47  ;;  %v2497_v14 = vunpack.c.l.b16 %v2457_v56  ;;  %v3065_v24 = vrot.slane %v3064_v4, 4  ;;  %v2387_v51 = vld [vmem:[#allocation2 + $0x68] sm:$0x1] }
 0x11d   : > { %v1886_v5 = vpop.f32.mrf.mxu3  ;;  %512 = vst [vmem:[#allocation2 + $0x70] sm:$0xf] %v503_v23  ;;  %v3391_v53 = vrot.slane %v3318_v13, 5  ;;  %v4354_v57 = vrot.slane %v3317_v27, 9  ;;  %v4171_v56 = vrot.slane %v2385_v22, 9 }
 0x11e   : > { %v1930_v26 = vadd.f32 %v1886_v5, %v1704_v39  ;;  %v2459_v39 = vrot.slane %v2384_v16, 5  ;;  %v3079_v16 = vrot.slane %v3077_v48, 5  ;;  %v3441_v2 = vpack.c.b16 %v3431_v0, %v3430_v6 }
 0x11f   : > { %v1364_v12 = vpop.f32.mrf.mxu1  ;;  %3528 = vmatmul.bf16.gmra.mxu0 %v3440_v58  ;;  %v3070_v37 = vsel %vm5022_vm15, %v3065_v24, %v5515_v35  ;;  %v3393_v23 = vrot.slane %v3391_v53, 4 }
 0x120   : > { %v1662_v25 = vpop.f32.mrf.mxu2  ;;  %v5520_v11 = vadd.f32 %v2296_v50, %v1930_v26  ;;  %v513_v50 = vld [vmem:[#allocation2 + $0x74] sm:$0x1]  ;;  %v2460_v43 = vsel %vm5012_vm14, %v2458_v28, %v2459_v39  ;;  %v1405_v63 = vadd.f32 %v1364_v12, %v5367_v62  ;;  %v3075_v26 = vrot.slane %v3074_v36, 4 }
 0x121   : > { %v1705_v58 = vadd.f32 %v1662_v25, %v1404_v30  ;;  %v514_v9 = vsel %vm4697_vm2, %v504_v33, %v513_v50  ;;  %v2498_v46 = vunpack.c.l.b16 %v2460_v43  ;;  %v2386_v30 = vld [vmem:[#allocation2 + $0x64] sm:$0xf]  ;;  %v3394_v33 = vrot.slane %v3319_v34, 5 }
 0x122   : > { %2598 = vmatmul.bf16.gmra.mxu1 %v2506_v29  ;;  %515 = vst [vmem:[#allocation2 + $0x74] sm:$0x1] %v514_v9  ;;  %v3080_v28 = vsel %vm5022_vm15, %v3075_v26, %v3079_v16  ;;  %v2466_v36 = vrot.slane %v2387_v51, 5  ;;  %v3134_v9 = vunpack.c.l.b16 %v3070_v37 }
 0x123   : > { %v2507_v40 = vpack.c.b16 %v2498_v46, %v2497_v14  ;;  %v2910_v25 = vld [vmem:[#allocation2 + $0x6c] sm:$0xf] }
 0x124   : > { %v2298_v29 = vpop.f32.mrf.mxu0  ;;  %v2911_v62 = vld [vmem:[#allocation2 + $0x70] sm:$0xf]  ;;  %v3085_v10 = vshll.u32 %v2910_v25, 16  ;;  %v3320_v22 = vld [vmem:[#allocation2 + $0x6c] sm:$0xe] }
 0x125   : > { %v1888_v1 = vpop.f32.mrf.mxu3  ;;  %2825 = vmatmul.bf16.gmra.mxu2 %v4476_v42  ;;  %v3091_v47 = vshll.u32 %v2911_v62, 16  ;;  %v3095_v4 = vshrl.u32 %v2911_v62, 16 }
 0x126   : > { %v1931_v21 = vadd.f32 %v1888_v1, %v1705_v58  ;;  %v2463_v58 = vrot.slane %v2386_v30, 5  ;;  %v4477_v1 = vld [vmem:[#allocation2 + $0x60] sm:$0xff]  ;;  %v3087_v0 = vrot.slane %v3085_v10, 5 }
 0x127   : > { %v1366_v55 = vpop.f32.mrf.mxu1  ;;  %v3097_v13 = vrot.slane %v3095_v4, 4 }
 0x128   : > { %v1665_v5 = vpop.f32.mrf.mxu2  ;;  %v5539_v59 = vadd.f32 %v2298_v29, %v1931_v21  ;;  %v1406_v38 = vadd.f32 %v1366_v55, %v5378_v45  ;;  %v3082_v29 = vshrl.u32 %v2910_v25, 16  ;;  %v2465_v43 = vrot.slane %v2463_v58, 4 }
 0x129   : > { %v1706_v52 = vadd.f32 %v1665_v5, %v1405_v63  ;;  %v3135_v21 = vunpack.c.l.b16 %v3080_v28  ;;  %v3392_v45 = vsel %vm5012_vm14, %v4354_v57, %v3391_v53  ;;  %v3395_v55 = vsel %vm5012_vm14, %v3393_v23, %v3394_v33  ;;  %v2912_v5 = vld [vmem:[#allocation2 + $0x74] sm:$0x1] }
 0x12a   : > { %3235 = vmatmul.bf16.gmra.mxu3 %v3143_v20  ;;  %v3084_v6 = vrot.slane %v3082_v29, 4  ;;  %v3093_v63 = vrot.slane %v3091_v47, 5  ;;  %v2467_v24 = vsel %vm5012_vm14, %v2465_v43, %v2466_v36  ;;  %v3433_v27 = vunpack.c.l.b16 %v3395_v55 }
 0x12b   : > { %v3144_v16 = vpack.c.b16 %v3135_v21, %v3134_v9  ;;  %v3101_v34 = vshll.u32 %v2912_v5, 16  ;;  %v4355_v47 = vrot.slane %v3320_v22, 9  ;;  %v4478_v21 = vld [vmem:[#allocation2 + $0x6c] sm:$0xff] }
 0x12c   : > { %v2301_v8 = vpop.f32.mrf.mxu0  ;;  %v3088_v30 = vor.u32 %v3087_v0, %v3084_v6 }
 0x12d   : > { %v1891_v12 = vpop.f32.mrf.mxu3  ;;  %v3103_v33 = vrot.slane %v3101_v34, 5 }
 0x12e   : > { %v1932_v39 = vadd.f32 %v1891_v12, %v1706_v52  ;;  %v2464_v52 = vsel %vm5012_vm14, %v4171_v56, %v2463_v58  ;;  %v2500_v12 = vunpack.c.l.b16 %v2467_v24 }
 0x12f   : > { %v1369_v42 = vpop.f32.mrf.mxu1  ;;  %3533 = vmatmul.bf16.gmra.mxu0 %v3441_v2  ;;  %v3432_v2 = vunpack.c.l.b16 %v3392_v45  ;;  %v2499_v62 = vunpack.c.l.b16 %v2464_v52 }
 0x130   : > { %v1667_v48 = vpop.f32.mrf.mxu2  ;;  %v5547_v35 = vadd.f32 %v2301_v8, %v1932_v39  ;;  %v1407_v53 = vadd.f32 %v1369_v42, %v5343_v15  ;;  %v3098_v8 = vor.u32 %v3097_v13, %v3093_v63  ;;  %v3322_v15 = vld [vmem:[#allocation2 + $0x74] sm:$0x1] }
 0x131   : > { %v1707_v50 = vadd.f32 %v1667_v48, %v1406_v38  ;;  %v3442_v57 = vpack.c.b16 %v3433_v27, %v3432_v2  ;;  %v3089_v38 = vrot.slane %v3088_v30, 4  ;;  %v2508_v51 = vpack.c.b16 %v2500_v12, %v2499_v62 }
 0x132   : > { %2603 = vmatmul.bf16.gmra.mxu1 %v2507_v40  ;;  %v3321_v40 = vld [vmem:[#allocation2 + $0x70] sm:$0xf]  ;;  %v3099_v23 = vrot.slane %v3098_v8, 4  ;;  %v3401_v56 = vrot.slane %v3322_v15, 5 }
 0x133   : > { %v3398_v58 = vrot.slane %v3321_v40, 5 }
 0x134   : > { %v2303_v20 = vpop.f32.mrf.mxu0 }
 0x135   : > { %v1893_v14 = vpop.f32.mrf.mxu3  ;;  %2830 = vmatmul.bf16.gmra.mxu2 %v4477_v1  ;;  %v3400_v4 = vrot.slane %v3398_v58, 4  ;;  %v3104_v1 = vsel %vm5022_vm15, %v3099_v23, %v3103_v33  ;;  %v3399_v6 = vsel %vm5012_vm14, %v4355_v47, %v3398_v58 }
 0x136   : > { %v1933_v26 = vadd.f32 %v1893_v14, %v1707_v50  ;;  %v3094_v50 = vsel %vm5022_vm15, %v3089_v38, %v3093_v63  ;;  %v3137_v55 = vunpack.c.l.b16 %v3104_v1  ;;  %v3434_v5 = vunpack.c.l.b16 %v3399_v6 }
 0x137   : > { %v1371_v46 = vpop.f32.mrf.mxu1  ;;  %v3136_v45 = vunpack.c.l.b16 %v3094_v50 }
 0x138   : > { %v1670_v25 = vpop.f32.mrf.mxu2  ;;  %v5558_v37 = vadd.f32 %v2303_v20, %v1933_v26  ;;  %v1408_v48 = vadd.f32 %v1371_v46, %v5355_v31  ;;  %v3402_v31 = vsel %vm5012_vm14, %v3400_v4, %v3401_v56 }
 0x139   : > { %v1708_v28 = vadd.f32 %v1670_v25, %v1407_v53  ;;  %v3145_v13 = vpack.c.b16 %v3137_v55, %v3136_v45  ;;  %v3435_v14 = vunpack.c.l.b16 %v3402_v31 }
 0x13a   : > { %3240 = vmatmul.bf16.gmra.mxu3 %v3144_v16 }
 0x13b   : > { %v3443_v16 = vpack.c.b16 %v3435_v14, %v3434_v5 }
 0x13c   : > { %v2306_v39 = vpop.f32.mrf.mxu0 }
 0x13d   : > { %v1896_v42 = vpop.f32.mrf.mxu3 }
 0x13e   : > { %v1934_v10 = vadd.f32 %v1896_v42, %v1708_v28 }
 0x13f   : > { %v1374_v29 = vpop.f32.mrf.mxu1  ;;  %3538 = vmatmul.bf16.gmra.mxu0 %v3442_v57 }
 0x140   : > { %v1672_v43 = vpop.f32.mrf.mxu2  ;;  %v5565_v36 = vadd.f32 %v2306_v39, %v1934_v10  ;;  %v1409_v46 = vadd.f32 %v1374_v29, %v5371_v32 }
 0x141   : > { %v1709_v9 = vadd.f32 %v1672_v43, %v1408_v48 }
 0x142   : > { %2608 = vmatmul.bf16.gmra.mxu1 %v2508_v51 }
 0x144   : > { %v2308_v20 = vpop.f32.mrf.mxu0 }
 0x145   : > { %v1898_v0 = vpop.f32.mrf.mxu3  ;;  %2835 = vmatmul.bf16.gmra.mxu2 %v4478_v21 }
 0x146   : > { %v1935_v63 = vadd.f32 %v1898_v0, %v1709_v9 }
 0x147   : > { %v1376_v49 = vpop.f32.mrf.mxu1 }
 0x148   : > { %v1675_v52 = vpop.f32.mrf.mxu2  ;;  %v5572_v24 = vadd.f32 %v2308_v20, %v1935_v63  ;;  %v1410_v30 = vadd.f32 %v1376_v49, %v5386_v61 }
 0x149   : > { %v1710_v26 = vadd.f32 %v1675_v52, %v1409_v46 }
 0x14a   : > { %3245 = vmatmul.bf16.gmra.mxu3 %v3145_v13 }
 0x14c   : > { %v2311_v2 = vpop.f32.mrf.mxu0 }
 0x14d   : > { %v1901_v27 = vpop.f32.mrf.mxu3 }
 0x14e   : > { %v1936_v44 = vadd.f32 %v1901_v27, %v1710_v26 }
 0x14f   : > { %v2574_v53 = vpop.f32.mrf.mxu1  ;;  %3543 = vmatmul.bf16.gmra.mxu0 %v3443_v16 }
 0x150   : > { %v1677_v8 = vpop.f32.mrf.mxu2  ;;  %v5575_v34 = vadd.f32 %v2311_v2, %v1936_v44  ;;  %v2630_v28 = vadd.f32 %v2574_v53, %v5400_v7 }
 0x151   : > { %v1711_v40 = vadd.f32 %v1677_v8, %v1410_v30 }
 0x154   : > { %v2313_v25 = vpop.f32.mrf.mxu0 }
 0x155   : > { %v1903_v32 = vpop.f32.mrf.mxu3 }
 0x156   : > { %v1937_v12 = vadd.f32 %v1903_v32, %v1711_v40 }
 0x157   : > { %v2576_v62 = vpop.f32.mrf.mxu1 }
 0x158   : > { %v2801_v57 = vpop.f32.mrf.mxu2  ;;  %v5578_v58 = vadd.f32 %v2313_v25, %v1937_v12  ;;  %v2631_v51 = vadd.f32 %v2576_v62, %v5412_v54 }
 0x159   : > { %v2857_v39 = vadd.f32 %v2801_v57, %v2630_v28 }
 0x15c   : > { %v3509_v38 = vpop.f32.mrf.mxu0 }
 0x15d   : > { %v3211_v23 = vpop.f32.mrf.mxu3 }
 0x15e   : > { %v3267_v22 = vadd.f32 %v3211_v23, %v2857_v39 }
 0x15f   : > { %v2579_v33 = vpop.f32.mrf.mxu1 }
 0x160   : > { %v3565_v61 = vadd.f32 %v3509_v38, %v3267_v22  ;;  %v2803_v7 = vpop.f32.mrf.mxu2  ;;  %v2632_v48 = vadd.f32 %v2579_v33, %v5420_v17 }
 0x161   : > { %v2858_v15 = vadd.f32 %v2803_v7, %v2631_v51 }
 0x162   : > { %3674 = vst [vmem:[%s5585_s22] sm:$0xff] %v3565_v61  ;;  %v3634_v1 = vmul.f32 %v3565_v61, %v3565_v61 }
 0x164   : > { %v3511_v42 = vpop.f32.mrf.mxu0 }
 0x165   : > { %v3213_v29 = vpop.f32.mrf.mxu3 }
 0x166   : > { %v3268_v47 = vadd.f32 %v3213_v29, %v2858_v15 }
 0x167   : > { %v2581_v10 = vpop.f32.mrf.mxu1 }
 0x168   : > { %v3566_v4 = vadd.f32 %v3511_v42, %v3268_v47  ;;  %v2806_v50 = vpop.f32.mrf.mxu2  ;;  %v2633_v31 = vadd.f32 %v2581_v10, %v5434_v3 }
 0x169   : > { %v2859_v9 = vadd.f32 %v2806_v50, %v2632_v48 }
 0x16a   : > { %v3613_v56 = vadd.f32 %v3566_v4, %v3565_v61  ;;  %v3635_v43 = vmul.f32 %v3566_v4, %v3566_v4  ;;  %3675 = vst [vmem:[%s5585_s22 + $0x8] sm:$0xff] %v3566_v4 }
 0x16c   : > { %v3514_v21 = vpop.f32.mrf.mxu0  ;;  %v3650_v45 = vadd.f32 %v3635_v43, %v3634_v1 }
 0x16d   : > { %v3216_v54 = vpop.f32.mrf.mxu3 }
 0x16e   : > { %v3269_v20 = vadd.f32 %v3216_v54, %v2859_v9 }
 0x16f   : > { %v2584_v55 = vpop.f32.mrf.mxu1 }
 0x170   : > { %v3567_v6 = vadd.f32 %v3514_v21, %v3269_v20  ;;  %v2808_v0 = vpop.f32.mrf.mxu2  ;;  %v2634_v16 = vadd.f32 %v2584_v55, %v5448_v19 }
 0x171   : > { %v2860_v17 = vadd.f32 %v2808_v0, %v2633_v31 }
 0x172   : > { %v3614_v49 = vadd.f32 %v3613_v56, %v3567_v6  ;;  %v3636_v63 = vmul.f32 %v3567_v6, %v3567_v6  ;;  %3676 = vst [vmem:[%s5585_s22 + $0x10] sm:$0xff] %v3567_v6 }
 0x174   : > { %v3516_v13 = vpop.f32.mrf.mxu0  ;;  %v3651_v5 = vadd.f32 %v3650_v45, %v3636_v63 }
 0x175   : > { %v3218_v14 = vpop.f32.mrf.mxu3 }
 0x176   : > { %v3270_v52 = vadd.f32 %v3218_v14, %v2860_v17 }
 0x177   : > { %v2586_v46 = vpop.f32.mrf.mxu1 }
 0x178   : > { %v3568_v26 = vadd.f32 %v3516_v13, %v3270_v52  ;;  %v2811_v2 = vpop.f32.mrf.mxu2  ;;  %v2635_v62 = vadd.f32 %v2586_v46, %v5466_v60 }
 0x179   : > { %v2861_v3 = vadd.f32 %v2811_v2, %v2634_v16 }
 0x17a   : > { %v3615_v27 = vadd.f32 %v3614_v49, %v3568_v26  ;;  %v3637_v53 = vmul.f32 %v3568_v26, %v3568_v26  ;;  %3677 = vst [vmem:[%s5585_s22 + $0x18] sm:$0xff] %v3568_v26 }
 0x17c   : > { %v3519_v44 = vpop.f32.mrf.mxu0  ;;  %v3652_v30 = vadd.f32 %v3651_v5, %v3637_v53 }
 0x17d   : > { %v3221_v8 = vpop.f32.mrf.mxu3 }
 0x17e   : > { %v3271_v25 = vadd.f32 %v3221_v8, %v2861_v3 }
 0x17f   : > { %v2589_v40 = vpop.f32.mrf.mxu1 }
 0x180   : > { %v3569_v32 = vadd.f32 %v3519_v44, %v3271_v25  ;;  %v2813_v12 = vpop.f32.mrf.mxu2  ;;  %v2636_v51 = vadd.f32 %v2589_v40, %v5485_v41 }
 0x181   : > { %v2862_v19 = vadd.f32 %v2813_v12, %v2635_v62 }
 0x182   : > { %v3616_v28 = vadd.f32 %v3615_v27, %v3569_v32  ;;  %v3638_v57 = vmul.f32 %v3569_v32, %v3569_v32  ;;  %3678 = vst [vmem:[%s5585_s22 + $0x20] sm:$0xff] %v3569_v32 }
 0x184   : > { %v3521_v39 = vpop.f32.mrf.mxu0  ;;  %v3653_v38 = vadd.f32 %v3652_v30, %v3638_v57 }
 0x185   : > { %v3223_v23 = vpop.f32.mrf.mxu3 }
 0x186   : > { %v3272_v22 = vadd.f32 %v3223_v23, %v2862_v19 }
 0x187   : > { %v2591_v33 = vpop.f32.mrf.mxu1 }
 0x188   : > { %v3570_v61 = vadd.f32 %v3521_v39, %v3272_v22  ;;  %v2816_v7 = vpop.f32.mrf.mxu2  ;;  %v2637_v1 = vadd.f32 %v2591_v33, %v5513_v18 }
 0x189   : > { %v2863_v60 = vadd.f32 %v2816_v7, %v2636_v51 }
 0x18a   : > { %v3617_v15 = vadd.f32 %v3616_v28, %v3570_v61  ;;  %v3639_v42 = vmul.f32 %v3570_v61, %v3570_v61  ;;  %3679 = vst [vmem:[%s5585_s22 + $0x28] sm:$0xff] %v3570_v61 }
 0x18c   : > { %v3524_v29 = vpop.f32.mrf.mxu0  ;;  %v3654_v10 = vadd.f32 %v3653_v38, %v3639_v42 }
 0x18d   : > { %v3226_v47 = vpop.f32.mrf.mxu3 }
 0x18e   : > { %v3273_v48 = vadd.f32 %v3226_v47, %v2863_v60 }
 0x18f   : > { %v2594_v4 = vpop.f32.mrf.mxu1 }
 0x190   : > { %v3571_v50 = vadd.f32 %v3524_v29, %v3273_v48  ;;  %v2818_v56 = vpop.f32.mrf.mxu2  ;;  %v2638_v31 = vadd.f32 %v2594_v4, %v5520_v11 }
 0x191   : > { %v2864_v41 = vadd.f32 %v2818_v56, %v2637_v1 }
 0x192   : > { %v3618_v43 = vadd.f32 %v3617_v15, %v3571_v50  ;;  %v3640_v9 = vmul.f32 %v3571_v50, %v3571_v50  ;;  %3680 = vst [vmem:[%s5585_s22 + $0x30] sm:$0xff] %v3571_v50 }
 0x194   : > { %v3526_v21 = vpop.f32.mrf.mxu0  ;;  %v3655_v45 = vadd.f32 %v3654_v10, %v3640_v9 }
 0x195   : > { %v3228_v54 = vpop.f32.mrf.mxu3 }
 0x196   : > { %v3274_v20 = vadd.f32 %v3228_v54, %v2864_v41 }
 0x197   : > { %v2596_v55 = vpop.f32.mrf.mxu1 }
 0x198   : > { %v3572_v6 = vadd.f32 %v3526_v21, %v3274_v20  ;;  %v2821_v0 = vpop.f32.mrf.mxu2  ;;  %v2639_v26 = vadd.f32 %v2596_v55, %v5539_v59 }
 0x199   : > { %v2865_v18 = vadd.f32 %v2821_v0, %v2638_v31 }
 0x19a   : > { %v3619_v49 = vadd.f32 %v3618_v43, %v3572_v6  ;;  %v3641_v63 = vmul.f32 %v3572_v6, %v3572_v6  ;;  %3681 = vst [vmem:[%s5585_s22 + $0x38] sm:$0xff] %v3572_v6 }
 0x19c   : > { %v3529_v17 = vpop.f32.mrf.mxu0  ;;  %v3656_v13 = vadd.f32 %v3655_v45, %v3641_v63 }
 0x19d   : > { %v3231_v5 = vpop.f32.mrf.mxu3 }
 0x19e   : > { %v3275_v46 = vadd.f32 %v3231_v5, %v2865_v18 }
 0x19f   : > { %v2599_v14 = vpop.f32.mrf.mxu1 }
 0x1a0   : > { %v3573_v52 = vadd.f32 %v3529_v17, %v3275_v46  ;;  %v2823_v16 = vpop.f32.mrf.mxu2  ;;  %v2640_v25 = vadd.f32 %v2599_v14, %v5547_v35 }
 0x1a1   : > { %v2866_v11 = vadd.f32 %v2823_v16, %v2639_v26 }
 0x1a2   : > { %v3620_v2 = vadd.f32 %v3619_v49, %v3573_v52  ;;  %v3642_v27 = vmul.f32 %v3573_v52, %v3573_v52  ;;  %3682 = vst [vmem:[%s5585_s22 + $0x40] sm:$0xff] %v3573_v52 }
 0x1a4   : > { %v3531_v53 = vpop.f32.mrf.mxu0  ;;  %v3657_v3 = vadd.f32 %v3656_v13, %v3642_v27 }
 0x1a5   : > { %v3233_v44 = vpop.f32.mrf.mxu3 }
 0x1a6   : > { %v3276_v8 = vadd.f32 %v3233_v44, %v2866_v11 }
 0x1a7   : > { %v2601_v30 = vpop.f32.mrf.mxu1 }
 0x1a8   : > { %v3574_v40 = vadd.f32 %v3531_v53, %v3276_v8  ;;  %v2826_v32 = vpop.f32.mrf.mxu2  ;;  %v2641_v33 = vadd.f32 %v2601_v30, %v5558_v37 }
 0x1a9   : > { %v2867_v59 = vadd.f32 %v2826_v32, %v2640_v25 }
 0x1aa   : > { %v3621_v62 = vadd.f32 %v3620_v2, %v3574_v40  ;;  %v3643_v12 = vmul.f32 %v3574_v40, %v3574_v40  ;;  %3683 = vst [vmem:[%s5585_s22 + $0x48] sm:$0xff] %v3574_v40 }
 0x1ac   : > { %v3534_v28 = vpop.f32.mrf.mxu0  ;;  %v3658_v57 = vadd.f32 %v3657_v3, %v3643_v12 }
 0x1ad   : > { %v3236_v19 = vpop.f32.mrf.mxu3 }
 0x1ae   : > { %v3277_v39 = vadd.f32 %v3236_v19, %v2867_v59 }
 0x1af   : > { %v2604_v38 = vpop.f32.mrf.mxu1 }
 0x1b0   : > { %v3575_v23 = vadd.f32 %v3534_v28, %v3277_v39  ;;  %v2828_v22 = vpop.f32.mrf.mxu2  ;;  %v2642_v10 = vadd.f32 %v2604_v38, %v5565_v36 }
 0x1b1   : > { %v2868_v35 = vadd.f32 %v2828_v22, %v2641_v33 }
 0x1b2   : > { %v3622_v61 = vadd.f32 %v3621_v62, %v3575_v23  ;;  %v3644_v51 = vmul.f32 %v3575_v23, %v3575_v23  ;;  %3684 = vst [vmem:[%s5585_s22 + $0x50] sm:$0xff] %v3575_v23 }
 0x1b4   : > { %v3536_v7 = vpop.f32.mrf.mxu0  ;;  %v3659_v15 = vadd.f32 %v3658_v57, %v3644_v51 }
 0x1b5   : > { %v3238_v42 = vpop.f32.mrf.mxu3 }
 0x1b6   : > { %v3278_v60 = vadd.f32 %v3238_v42, %v2868_v35 }
 0x1b7   : > { %v2606_v4 = vpop.f32.mrf.mxu1 }
 0x1b8   : > { %v3576_v29 = vadd.f32 %v3536_v7, %v3278_v60  ;;  %v2831_v47 = vpop.f32.mrf.mxu2  ;;  %v2643_v21 = vadd.f32 %v2606_v4, %v5572_v24 }
 0x1b9   : > { %v2869_v37 = vadd.f32 %v2831_v47, %v2642_v10 }
 0x1ba   : > { %v3623_v48 = vadd.f32 %v3622_v61, %v3576_v29  ;;  %v3645_v50 = vmul.f32 %v3576_v29, %v3576_v29  ;;  %3685 = vst [vmem:[%s5585_s22 + $0x58] sm:$0xff] %v3576_v29 }
 0x1bc   : > { %v3539_v1 = vpop.f32.mrf.mxu0  ;;  %v3660_v56 = vadd.f32 %v3659_v15, %v3645_v50 }
 0x1bd   : > { %v3241_v43 = vpop.f32.mrf.mxu3 }
 0x1be   : > { %v3279_v9 = vadd.f32 %v3241_v43, %v2869_v37 }
 0x1bf   : > { %v2609_v20 = vpop.f32.mrf.mxu1 }
 0x1c0   : > { %v3577_v41 = vadd.f32 %v3539_v1, %v3279_v9  ;;  %v2833_v45 = vpop.f32.mrf.mxu2  ;;  %v2644_v18 = vadd.f32 %v2609_v20, %v5575_v34 }
 0x1c1   : > { %v2870_v36 = vadd.f32 %v2833_v45, %v2643_v21 }
 0x1c2   : > { %v3624_v54 = vadd.f32 %v3623_v48, %v3577_v41  ;;  %v3646_v55 = vmul.f32 %v3577_v41, %v3577_v41  ;;  %3686 = vst [vmem:[%s5585_s22 + $0x60] sm:$0xff] %v3577_v41 }
 0x1c4   : > { %v3541_v6 = vpop.f32.mrf.mxu0  ;;  %v3661_v31 = vadd.f32 %v3660_v56, %v3646_v55 }
 0x1c5   : > { %v3243_v0 = vpop.f32.mrf.mxu3 }
 0x1c6   : > { %v3280_v49 = vadd.f32 %v3243_v0, %v2870_v36 }
 0x1c7   : > { %v2611_v46 = vpop.f32.mrf.mxu1 }
 0x1c8   : > { %v3578_v63 = vadd.f32 %v3541_v6, %v3280_v49  ;;  %v2836_v17 = vpop.f32.mrf.mxu2  ;;  %v2645_v27 = vadd.f32 %v2611_v46, %v5578_v58 }
 0x1c9   : > { %v2871_v24 = vadd.f32 %v2836_v17, %v2644_v18 }
 0x1ca   : > { %v3625_v13 = vadd.f32 %v3624_v54, %v3578_v63  ;;  %v3647_v5 = vmul.f32 %v3578_v63, %v3578_v63  ;;  %3687 = vst [vmem:[%s5585_s22 + $0x68] sm:$0xff] %v3578_v63 }
 0x1cc   : > { %v3662_v14 = vadd.f32 %v3661_v31, %v3647_v5  ;;  %v3544_v52 = vpop.f32.mrf.mxu0 }
 0x1cd   : > { %v3246_v26 = vpop.f32.mrf.mxu3 }
 0x1ce   : > { %v3281_v16 = vadd.f32 %v3246_v26, %v2871_v24 }
 0x1d0   : > { %v3579_v2 = vadd.f32 %v3544_v52, %v3281_v16  ;;  %v2838_v11 = vpop.f32.mrf.mxu2 }
 0x1d1   : > { %v2872_v3 = vadd.f32 %v2838_v11, %v2645_v27 }
 0x1d2   : > { %v3626_v53 = vadd.f32 %v3625_v13, %v3579_v2  ;;  %v3648_v34 = vmul.f32 %v3579_v2, %v3579_v2  ;;  %3688 = vst [vmem:[%s5585_s22 + $0x70] sm:$0xff] %v3579_v2 }
 0x1d4   : > { %v3663_v44 = vadd.f32 %v3662_v14, %v3648_v34  ;;  %v3546_v40 = vpop.f32.mrf.mxu0 }
 0x1d5   : > { %v3248_v30 = vpop.f32.mrf.mxu3 }
 0x1d6   : > { %v3282_v8 = vadd.f32 %v3248_v30, %v2872_v3 }
 0x1d8   : > { %v3580_v25 = vadd.f32 %v3546_v40, %v3282_v8 }
 0x1da   : > { %v3627_v32 = vadd.f32 %v3626_v53, %v3580_v25  ;;  %v3649_v62 = vmul.f32 %v3580_v25, %v3580_v25  ;;  %3689 = vst [vmem:[%s5585_s22 + $0x78] sm:$0xff] %v3580_v25 }
 0x1dc   : > { %v3628_v12 = vrot.slane %v3627_v32, 4  ;;  %v3664_v59 = vadd.f32 %v3663_v44, %v3649_v62 }
 0x1de   : > { %v3629_v58 = vadd.f32 %v3628_v12, %v3627_v32  ;;  %v3665_v28 = vrot.slane %v3664_v59, 4 }
 0x1e0   : > { %v3630_v57 = vrot.slane %v3629_v58, 2  ;;  %v3666_v19 = vadd.f32 %v3665_v28, %v3664_v59 }
 0x1e2   : > { %v3631_v39 = vadd.f32 %v3630_v57, %v3629_v58  ;;  %v3667_v38 = vrot.slane %v3666_v19, 2 }
 0x1e4   : > { %v3632_v23 = vrot.slane %v3631_v39, 1  ;;  %v3668_v33 = vadd.f32 %v3667_v38, %v3666_v19 }
 0x1e6   : > { %v3669_v22 = vrot.slane %v3668_v33, 1  ;;  %v3633_v61 = vadd.f32 %v3632_v23, %v3631_v39 }
 0x1e8   : > { %v3670_v51 = vadd.f32 %v3669_v22, %v3668_v33 }
 0x1ea   : > { %v3672_v35 = vsel %vm352_vm0, %v3633_v61, %v3670_v51 }
 0x1eb   : > { %3673 = vst [vmem:[%s350_s7] sm:$0x3] %v3672_v35 }
 0x1ec PF: > { %s17_s25 = sadd.s32 1, %s4613_s25   ;;  %s5659_s21 = smov %s4605_s23 }
 0x1ed   : > { %p14_p11 = scmp.ge.s32.totalorder %s17_s25, 6   ;;  %s5660_s22 = smov %s4609_s24 }
 0x1ee   : > { %s5661_s23 = smov %s5664_s26  ;;  %s5662_s24 = smov %s5668_s27 }
 0x1ef   :  { %16 = sbr.rel (!%p14_p11) target bundleno = 3 (0x3), region = 96 }

// kernel: basic_block_pallas.3
= control target key start
LH: loop header
LB: loop body
LE: loop exit
PB: predicated region body
PF: predicated region fallthrough
CT: control target
= control target key end

     0   :  { %s4550_s21 = smov 0   ;;  %s4552_s22 = smov 0   ;;  %s5500_s0 = inlined_call_operand.vmem [shape: f32[2,16,16,8], index: 0, kind: input, shape index: {}]   ;;  %s5501_s1 = inlined_call_operand.vmem [shape: f32[4,2,16,8], index: 1, kind: input, shape index: {}]   ;;  %s5502_s2 = inlined_call_operand.vmem [shape: f32[1,128], index: 2, kind: input, shape index: {}, may-alias: {2,3}]   ;;  %s5503_s3 = inlined_call_operand.vmem [shape: f32[1,128], index: 3, kind: input, shape index: {}, may-alias: {2,3}]   ;;  %s5504_s4 = inlined_call_operand.vmem [shape: bf16[9,128,128], index: 4, kind: input, shape index: {}]   ;;  %s5505_s5 = inlined_call_operand.vmem [shape: f32[2,16,16,128], index: 5, kind: output, shape index: {0}]   ;;  %s5506_s6 = inlined_call_operand.vmem [shape: f32[2,2,2,128], index: 6, kind: output, shape index: {1}]  }
   0x1   :  { %s4554_s23 = smov 0   ;;  %s4556_s24 = smov 0  }
   0x2   :  { %s4558_s2 = smov 0  }
   0x3 LB: > { %s26_s3 = sadd.s32 1, %s4504_s23  ;;  %s29_s25 = sadd.s32 1, %s4508_s24  ;;  %s4512_s2 = sphi %s4558_s2, %s17_s2   ;;  %s4508_s24 = sphi %s4556_s24, %s5520_s24   ;;  %s4504_s23 = sphi %s4554_s23, %s5519_s23   ;;  %s4500_s22 = sphi %s4552_s22, %s5518_s22   ;;  %s4496_s21 = sphi %s4550_s21, %s5517_s21  }
   0x4   : > { %p27_p0 = scmp.ge.s32.totalorder %s26_s3, 2  ;;  %p3748_p1 = scmp.ge.s32.totalorder %s4512_s2, 1 }
   0x5   : > { %p257_p2 = scmp.lt.s32.totalorder %s4512_s2, 5 }
   0x6   : > { %s5522_s3 = smov (%p27_p0, %s26_s3), 0  ;;  %s5524_s25 = smov (!%p27_p0, %s29_s25), %s4508_s24 }
   0x7   : > { %p258_p3 = pnand %p3748_p1, %p257_p2  ;;  %p31_p4 = scmp.ge.s32.totalorder %s5524_s25, 2 }
   0x8   : > { %s3749_s28 = sshll.u32 (!%p258_p3), %s4496_s21, 3  ;;  %p313_p5 = scmp.lt.s32.totalorder (!%p258_p3), %s4500_s22, 1 }
   0x9   : > { %s5526_s25 = smov (%p31_p4, %s5524_s25), 0  ;;  %261 = sbr.rel (%p258_p3) target bundleno = 493 (0x1ed), region = 40 }
   0xa   : > { %p315_p6 = scmp.lt.s32.totalorder (!%p258_p3), %s3749_s28, 15  ;;  %s3753_s9 = sshll.u32 (!%p258_p3), %s4500_s22, 1 }
   0xb   : > { %s4608_s14 = sadd.s32 (!%p258_p3), %s4496_s21, %s3753_s9  ;;  %p386_p8 = scmp.eq.s32.totalorder (!%p258_p3), %s4496_s21, 0 }
   0xc   : > { %p325_p7 = scmp.lt.s32.totalorder (!%p258_p3), %s4608_s14, 3  ;;  %p392_p9 = scmp.eq.s32.totalorder (!%p258_p3), %s4496_s21, 1 }
   0xd   : > { %p345_p10 = scmp.lt.s32.totalorder (!%p258_p3), %s4496_s21, 1 }
   0xe   : > { %v4316_v0 = vld [vmem:[%s5504_s4 + $0x38] sm:$0xff]  ;;  %v4514_v1 = vmov 0   ;;  %v4315_v2 = vld [vmem:[%s5504_s4 + $0x30] sm:$0xff]  ;;  %s4594_s7 = scalar_select %p313_p5, %s4500_s22, 1  ;;  %v4314_v3 = vld [vmem:[%s5504_s4 + $0x28] sm:$0xff]  ;;  %vm423_vm2 = vcmask 60416  }
   0xf   : > { %358 = vst [vmem:[#allocation2 + $0x18] sm:$0xf] %v4514_v1  ;;  %4397 = vmatpush.bf16.msra.mxu1 %v4316_v0  ;;  %4398 = vmatpush.bf16.msra.mxu2 %v4316_v0  ;;  %s5528_s28 = smov (!%p315_p6, %s3749_s28), 15  ;;  %v4313_v4 = vld [vmem:[%s5504_s4 + $0x20] sm:$0xff]  ;;  %vm400_vm0 = vsmask.f32 256 }
  0x10   : > { %359 = vst [vmem:[#allocation2 + $0x1c] sm:$0xf] %v4514_v1  ;;  %4399 = vmatpush.bf16.msra.mxu3 %v4316_v0  ;;  %843 = vmatpush.bf16.msra.mxu0 %v4316_v0  ;;  %s3751_s8 = sshll.u32 %s4594_s7, 5  ;;  %s3750_s10 = sshll.u32 %s5528_s28, 1  ;;  %vm401_vm1 = vsmask.f32 4368 }
  0x11   : > { %352 = vst [vmem:[#allocation2] sm:$0xf] %v4514_v1  ;;  %s4604_s13 = sadd.s32 %s3751_s8, %s3750_s10  ;;  %vm424_vm3 = vsmask.f32 7938  ;;  %s5530_s14 = smov (!%p325_p7, %s4608_s14), 3  ;;  %v4312_v20 = vld [vmem:[%s5504_s4 + $0x18] sm:$0xff]  ;;  %vm4651_vm4 = vmor %vm400_vm0, %vm401_vm1 }
  0x12   : > { %353 = vst [vmem:[#allocation2 + $0x4] sm:$0xf] %v4514_v1  ;;  %s3752_s15 = sshll.u32 %s4604_s13, 3  ;;  %vm4663_vm5 = vmand %vm423_vm2, %vm424_vm3  ;;  %s4300_s27 = sshll.u32 %s5530_s14, 5  ;;  %v4311_v34 = vld [vmem:[%s5504_s4 + $0x10] sm:$0xff]  ;;  %v4310_v42 = vld [vmem:[%s5504_s4 + $0x8] sm:$0xff] }
  0x13   : > { %4400 = vmatpush.bf16.msra.mxu1 %v4315_v2  ;;  %4401 = vmatpush.bf16.msra.mxu2 %v4315_v2  ;;  %354 = vst [vmem:[#allocation2 + $0x8] sm:$0x1] %v4514_v1  ;;  %s4620_s20 = scalar_lea.vmem %s5500_s0, %s3752_s15  ;;  %s4704_s11 = scalar_lea.vmem %s5501_s1, %s4300_s27  ;;  %v4309_v50 = vld [vmem:[%s5504_s4] sm:$0xff]  ;;  %v4332_v59 = vld [vmem:[%s5504_s4 + $0xb8] sm:$0xff]  ;;  %vm431_vm6 = vcmask 57344   ;;  %vm1369_vm11 = vcmask 1042432  }
  0x14   : > { %4402 = vmatpush.bf16.msra.mxu3 %v4315_v2  ;;  %844 = vmatpush.bf16.msra.mxu0 %v4315_v2  ;;  %355 = vst [vmem:[#allocation2 + $0xc] sm:$0xf] %v4514_v1  ;;  %v468_v5 = vld [vmem:[%s4620_s20 + $0x10] sm:$0xff]  ;;  %v469_v6 = vld [vmem:[%s4620_s20 + $0x18] sm:$0xff]  ;;  %v470_v33 = vld [vmem:[%s4620_s20 + $0x20] sm:$0xff]  ;;  %vm1370_vm12 = vcmask 1046532   ;;  %s5446_s30 = scalar_lea.vmem %s5505_s5, %s3752_s15 }
  0x15   : > { %356 = vst [vmem:[#allocation2 + $0x10] sm:$0xf] %v4514_v1  ;;  %v472_v7 = vld [vmem:[%s4620_s20 + $0x30] sm:$0xff]  ;;  %v484_v8 = vpack.c.bf16 %v468_v5, %v468_v5  ;;  %v485_v9 = vpack.c.bf16 %v469_v6, %v469_v6  ;;  %v473_v10 = vld [vmem:[%s4620_s20 + $0x38] sm:$0xff]  ;;  %v4690_v41 = vpack.c.bf16 %v470_v33, %v470_v33  ;;  %s4463_s12 = scalar_select %p386_p8, 0, 255  ;;  %vm4843_vm7 = vmand %vm431_vm6, %vm400_vm0 }
  0x16   : > { %357 = vst [vmem:[#allocation2 + $0x14] sm:$0x1] %v4514_v1  ;;  %v476_v11 = vld [vmem:[%s4620_s20 + $0x50] sm:$0xff]  ;;  %v4632_v12 = vpack.c.bf16 %v472_v7, %v472_v7  ;;  %v477_v13 = vld [vmem:[%s4620_s20 + $0x58] sm:$0xff]  ;;  %v4637_v18 = vpack.c.bf16 %v473_v10, %v473_v10  ;;  %v471_v62 = vld [vmem:[%s4620_s20 + $0x28] sm:$0xff]  ;;  %s5532_s21 = smov (!%p345_p10, %s4496_s21), 1 }
  0x17   : > { %4403 = vmatpush.bf16.msra.mxu1 %v4314_v3  ;;  %4404 = vmatpush.bf16.msra.mxu2 %v4314_v3  ;;  %360 = vst [vmem:[#allocation2 + $0x20] sm:$0x1] %v4514_v1  ;;  %v516_v14 = vshrl.u32 %v484_v8, 16  ;;  %v519_v15 = vshll.u32 %v484_v8, 16  ;;  %v524_v16 = vshrl.u32 %v485_v9, 16  ;;  %v527_v17 = vshll.u32 %v485_v9, 16  ;;  %vm4938_vm13 = vmor %vm1369_vm11, %vm1370_vm12 }
  0x18   : > { %4405 = vmatpush.bf16.msra.mxu3 %v4314_v3  ;;  %845 = vmatpush.bf16.msra.mxu0 %v4314_v3  ;;  %361 = vst [vmem:[#allocation2 + $0x24] sm:$0xf] %v4514_v1  ;;  %v4639_v19 = vpack.c.bf16 %v476_v11, %v476_v11  ;;  %v4658_v24 = vpack.c.bf16 %v477_v13, %v477_v13  ;;  %v666_v26 = vld [vmem:[#allocation2 + $0x18] sm:$0xf]  ;;  %v550_v30 = vshrl.u32 %v4632_v12, 16  ;;  %v558_v31 = vshrl.u32 %v4637_v18, 16 }
  0x19   : > { %362 = vst [vmem:[#allocation2 + $0x28] sm:$0xf] %v4514_v1  ;;  %v518_v22 = vrot.slane %v516_v14, 7  ;;  %v4655_v23 = vrot.slane %v524_v16, 7  ;;  %v553_v38 = vshll.u32 %v4632_v12, 16  ;;  %v561_v40 = vshll.u32 %v4637_v18, 16 }
  0x1a   : > { %363 = vst [vmem:[#allocation2 + $0x2c] sm:$0x1] %v4514_v1  ;;  %v584_v32 = vshrl.u32 %v4639_v19, 16  ;;  %v592_v37 = vshrl.u32 %v4658_v24, 16  ;;  %v4687_v39 = vrot.slane %v550_v30, 7  ;;  %v4696_v43 = vrot.slane %v558_v31, 7 }
  0x1b   : > { %4406 = vmatpush.bf16.msra.mxu1 %v4313_v4  ;;  %4407 = vmatpush.bf16.msra.mxu2 %v4313_v4  ;;  %364 = vst [vmem:[#allocation2 + $0x30] sm:$0xf] %v4514_v1  ;;  %v521_v27 = vor.u32 %v519_v15, %v518_v22  ;;  %v522_v28 = vrot.slane %v518_v22, 4  ;;  %v529_v29 = vor.u32 %v527_v17, %v4655_v23  ;;  %v595_v45 = vshll.u32 %v4658_v24, 16  ;;  %v4464_v48 = vld [vmem:[%s4704_s11] sm:%s4463_s12]  ;;  %v4467_v54 = vld [vmem:[%s4704_s11 + $0x8] sm:%s4463_s12] }
  0x1c   : > { %4408 = vmatpush.bf16.msra.mxu3 %v4313_v4  ;;  %846 = vmatpush.bf16.msra.mxu0 %v4313_v4  ;;  %365 = vst [vmem:[#allocation2 + $0x34] sm:$0xf] %v4514_v1  ;;  %v4698_v44 = vrot.slane %v584_v32, 7  ;;  %v4707_v46 = vrot.slane %v592_v37, 7  ;;  %v587_v47 = vshll.u32 %v4639_v19, 16  ;;  %v533_v49 = vshrl.u32 %v4690_v41, 16 }
  0x1d   : > { %366 = vst [vmem:[#allocation2 + $0x38] sm:$0x1] %v4514_v1  ;;  %v530_v35 = vsel %vm4651_vm4, %v522_v28, %v529_v29  ;;  %v667_v36 = vsel %vm4663_vm5, %v521_v27, %v666_v26  ;;  %v4721_v51 = vor.u32 %v553_v38, %v4687_v39  ;;  %v556_v52 = vrot.slane %v4687_v39, 4  ;;  %v4324_v60 = vld [vmem:[%s5504_s4 + $0x78] sm:$0xff]  ;;  %v474_v5 = vld [vmem:[%s4620_s20 + $0x40] sm:$0xff]  ;;  %v475_v10 = vld [vmem:[%s4620_s20 + $0x48] sm:$0xff] }
  0x1e   : > { %367 = vst [vmem:[#allocation2 + $0x3c] sm:$0xf] %v4514_v1  ;;  %v563_v53 = vor.u32 %v561_v40, %v4696_v43  ;;  %v398_v55 = vpack.c.bf16 %v4464_v48, %v4464_v48  ;;  %v590_v57 = vrot.slane %v4698_v44, 4  ;;  %v597_v58 = vor.u32 %v595_v45, %v4707_v46  ;;  %v4348_v63 = vld [vmem:[%s5504_s4 + $0xf8] sm:$0xff]  ;;  %v426_v22 = vld [vmem:[#allocation2] sm:$0xf] }
  0x1f   : > { %4409 = vmatpush.bf16.msra.mxu1 %v4312_v20  ;;  %4410 = vmatpush.bf16.msra.mxu2 %v4312_v20  ;;  %368 = vst [vmem:[#allocation2 + $0x40] sm:$0xf] %v4514_v1  ;;  %v399_v61 = vpack.c.bf16 %v4467_v54, %v4467_v54  ;;  %v487_v3 = vpack.c.bf16 %v471_v62, %v471_v62  ;;  %v536_v4 = vshll.u32 %v4690_v41, 16  ;;  %v4748_v9 = vrot.slane %v533_v49, 7  ;;  %v4356_v13 = vld [vmem:[%s5504_s4 + $0x138] sm:$0xff]  ;;  %v4331_v24 = vld [vmem:[%s5504_s4 + $0xb0] sm:$0xff] }
  0x20   : > { %4411 = vmatpush.bf16.msra.mxu3 %v4312_v20  ;;  %847 = vmatpush.bf16.msra.mxu0 %v4312_v20  ;;  %668 = vst [vmem:[#allocation2 + $0x18] sm:$0xf] %v667_v36  ;;  %v404_v0 = vshrl.u32 %v398_v55, 16  ;;  %v407_v2 = vshll.u32 %v398_v55, 16  ;;  %v4746_v6 = vor.u32 %v587_v47, %v4698_v44  ;;  %v490_v15 = vpack.c.bf16 %v474_v5, %v474_v5  ;;  %v4323_v26 = vld [vmem:[%s5504_s4 + $0x70] sm:$0xff]  ;;  %v478_v33 = vld [vmem:[%s4620_s20 + $0x60] sm:$0xff] }
  0x21   : > { %669 = vst.msk [vmem:[#allocation2 + $0x1c] sm:$0xf] %vm423_vm2, %v530_v35  ;;  %v412_v7 = vshrl.u32 %v399_v61, 16  ;;  %v415_v8 = vshll.u32 %v399_v61, 16  ;;  %v541_v14 = vshrl.u32 %v487_v3, 16  ;;  %v491_v16 = vpack.c.bf16 %v475_v10, %v475_v10  ;;  %v4347_v30 = vld [vmem:[%s5504_s4 + $0xf0] sm:$0xff] }
  0x22   : > { %369 = vst [vmem:[#allocation2 + $0x44] sm:$0x1] %v4514_v1  ;;  %v4727_v56 = vld [vmem:[#allocation2 + $0x30] sm:$0xf]  ;;  %v406_v12 = vrot.slane %v404_v0, 7  ;;  %v564_v17 = vsel %vm4651_vm4, %v556_v52, %v563_v53  ;;  %v544_v27 = vshll.u32 %v487_v3, 16  ;;  %v598_v28 = vsel %vm4651_vm4, %v590_v57, %v597_v58 }
  0x23   : > { %4412 = vmatpush.bf16.msra.mxu1 %v4311_v34  ;;  %4413 = vmatpush.bf16.msra.mxu2 %v4311_v34  ;;  %370 = vst [vmem:[#allocation2 + $0x48] sm:$0xf] %v4514_v1  ;;  %v681_v18 = vsel %vm4663_vm5, %v4721_v51, %v4727_v56  ;;  %v4762_v20 = vrot.slane %v412_v7, 7  ;;  %v4776_v31 = vrot.slane %v541_v14, 7  ;;  %v567_v32 = vshrl.u32 %v490_v15, 16  ;;  %v4355_v36 = vld [vmem:[%s5504_s4 + $0x130] sm:$0xff] }
  0x24   : > { %4414 = vmatpush.bf16.msra.mxu3 %v4311_v34  ;;  %848 = vmatpush.bf16.msra.mxu0 %v4311_v34  ;;  %371 = vst [vmem:[#allocation2 + $0x4c] sm:$0xf] %v4514_v1  ;;  %v409_v29 = vor.u32 %v407_v2, %v406_v12  ;;  %v410_v34 = vrot.slane %v406_v12, 4  ;;  %v570_v37 = vshll.u32 %v490_v15, 16  ;;  %v575_v38 = vshrl.u32 %v491_v16, 16  ;;  %v479_v39 = vld [vmem:[%s4620_s20 + $0x68] sm:$0xff] }
  0x25   : > { %372 = vst [vmem:[#allocation2 + $0x50] sm:$0x1] %v4514_v1  ;;  %v417_v35 = vor.u32 %v415_v8, %v4762_v20  ;;  %v538_v41 = vor.u32 %v536_v4, %v4748_v9  ;;  %v673_v44 = vld [vmem:[#allocation2 + $0x24] sm:$0xf]  ;;  %v569_v45 = vrot.slane %v567_v32, 7  ;;  %v546_v47 = vor.u32 %v544_v27, %v4776_v31  ;;  %v467_v56 = vld [vmem:[%s4620_s20 + $0x8] sm:$0xff] }
  0x26   : > { %373 = vst [vmem:[#allocation2 + $0x54] sm:$0xf] %v4514_v1  ;;  %v4792_v48 = vrot.slane %v575_v38, 7  ;;  %v687_v49 = vld [vmem:[#allocation2 + $0x3c] sm:$0xf]  ;;  %v427_v51 = vsel %vm4663_vm5, %v409_v29, %v426_v22  ;;  %v495_v54 = vpack.c.bf16 %v479_v39, %v479_v39  ;;  %v466_v55 = vld [vmem:[%s4620_s20] sm:$0xff]  ;;  %v483_v10 = vpack.c.bf16 %v467_v56, %v467_v56 }
  0x27   : > { %4415 = vmatpush.bf16.msra.mxu1 %v4310_v42  ;;  %4416 = vmatpush.bf16.msra.mxu2 %v4310_v42  ;;  %374 = vst [vmem:[#allocation2 + $0x58] sm:$0xf] %v4514_v1  ;;  %v572_v52 = vor.u32 %v570_v37, %v569_v45  ;;  %v573_v53 = vrot.slane %v569_v45, 4  ;;  %v418_v57 = vsel %vm4651_vm4, %v410_v34, %v417_v35  ;;  %v4330_v58 = vld [vmem:[%s5504_s4 + $0xa8] sm:$0xff]  ;;  %v4353_v27 = vld [vmem:[%s5504_s4 + $0x120] sm:$0xff]  ;;  %v4343_v56 = vld [vmem:[%s5504_s4 + $0xd0] sm:$0xff] }
  0x28   : > { %4417 = vmatpush.bf16.msra.mxu3 %v4310_v42  ;;  %849 = vmatpush.bf16.msra.mxu0 %v4310_v42  ;;  %375 = vst [vmem:[#allocation2 + $0x5c] sm:$0x1] %v4514_v1  ;;  %v4303_v11 = vld [vmem:[#allocation2 + $0x18] sm:$0xff]  ;;  %v539_v42 = vrot.slane %v4748_v9, 4  ;;  %v674_v0 = vsel %vm4663_vm5, %v538_v41, %v673_v44  ;;  %v609_v2 = vshrl.u32 %v495_v54, 16  ;;  %v612_v3 = vshll.u32 %v495_v54, 16 }
  0x29   : > { %376 = vst [vmem:[#allocation2 + $0x60] sm:$0xf] %v4514_v1  ;;  %v482_v4 = vpack.c.bf16 %v466_v55, %v466_v55  ;;  %v4354_v5 = vld [vmem:[%s5504_s4 + $0x128] sm:$0xff]  ;;  %v688_v7 = vsel %vm4663_vm5, %v572_v52, %v687_v49  ;;  %v510_v22 = vshll.u32 %v483_v10, 16  ;;  %v4344_v44 = vld [vmem:[%s5504_s4 + $0xd8] sm:$0xff]  ;;  %v4319_v52 = vld [vmem:[%s5504_s4 + $0x50] sm:$0xff] }
  0x2a   : > { %377 = vst [vmem:[#allocation2 + $0x64] sm:$0xf] %v4514_v1  ;;  %v694_v19 = vld [vmem:[#allocation2 + $0x48] sm:$0xf]  ;;  %v659_v34 = vld [vmem:[#allocation2 + $0xc] sm:$0xf] }
  0x2b   : > { %4418 = vmatpush.bf16.msra.mxu1 %v4309_v50  ;;  %4419 = vmatpush.bf16.msra.mxu2 %v4309_v50  ;;  %378 = vst [vmem:[#allocation2 + $0x68] sm:$0x1] %v4514_v1  ;;  %v695_v40 = vsel %vm4663_vm5, %v4746_v6, %v694_v19  ;;  %v547_v6 = vsel %vm4651_vm4, %v539_v42, %v546_v47  ;;  %v499_v14 = vshrl.u32 %v482_v4, 16  ;;  %v502_v15 = vshll.u32 %v482_v4, 16  ;;  %v433_v42 = vld [vmem:[#allocation2 + $0x8] sm:$0x1] }
  0x2c   : > { %4420 = vmatpush.bf16.msra.mxu3 %v4309_v50  ;;  %850 = vmatpush.bf16.msra.mxu0 %v4309_v50  ;;  %379 = vst [vmem:[#allocation2 + $0x6c] sm:$0xf] %v4514_v1  ;;  %v494_v50 = vpack.c.bf16 %v478_v33, %v478_v33  ;;  %v507_v19 = vshrl.u32 %v483_v10, 16  ;;  %v4352_v47 = vld [vmem:[%s5504_s4 + $0x118] sm:$0xff]  ;;  %v4327_v55 = vld [vmem:[%s5504_s4 + $0x90] sm:$0xff]  ;;  %s3760_s13 = sshll.u32 %s4594_s7, 1 }
  0x2d   : > { %380 = vst [vmem:[#allocation2 + $0x70] sm:$0xf] %v4514_v1  ;;  %v701_v9 = vld [vmem:[#allocation2 + $0x54] sm:$0xf]  ;;  %v501_v29 = vrot.slane %v499_v14, 7  ;;  %v4350_v14 = vld [vmem:[%s5504_s4 + $0x108] sm:$0xff]  ;;  %s348_s15 = sadd.s32 %s3760_s13, %s5532_s21 }
  0x2e   : > { %861 = vmatmul.bf16.vlgmr.msra.gmra.mxu1 %v4303_v11  ;;  %381 = vst [vmem:[#allocation2 + $0x74] sm:$0x1] %v4514_v1  ;;  %v578_v1 = vshll.u32 %v491_v16, 16  ;;  %v601_v61 = vshrl.u32 %v494_v50, 16  ;;  %v604_v62 = vshll.u32 %v494_v50, 16  ;;  %v4329_v11 = vld [vmem:[%s5504_s4 + $0xa0] sm:$0xff] }
  0x2f   : > { %1525 = vmatpush.bf16.msrb.mxu2 %v4332_v59  ;;  %1224 = vmatpush.bf16.msrb.mxu1 %v4324_v60  ;;  %682 = vst [vmem:[#allocation2 + $0x30] sm:$0xf] %v681_v18  ;;  %v4322_v59 = vld [vmem:[%s5504_s4 + $0x68] sm:$0xff]  ;;  %v4321_v16 = vld [vmem:[%s5504_s4 + $0x60] sm:$0xff]  ;;  %v4849_v33 = vrot.slane %v507_v19, 7  ;;  %v504_v37 = vor.u32 %v502_v15, %v501_v29  ;;  %v505_v38 = vrot.slane %v501_v29, 4 }
  0x30   : > { %1751 = vmatpush.bf16.msrb.mxu3 %v4348_v63  ;;  %2161 = vmatpush.bf16.msrb.mxu0 %v4356_v13  ;;  %683 = vst.msk [vmem:[#allocation2 + $0x34] sm:$0xf] %vm423_vm2, %v564_v17  ;;  %v580_v60 = vor.u32 %v578_v1, %v4792_v48  ;;  %v4346_v63 = vld [vmem:[%s5504_s4 + $0xe8] sm:$0xff]  ;;  %v603_v8 = vrot.slane %v601_v61, 7  ;;  %v4827_v13 = vrot.slane %v609_v2, 7  ;;  %s3761_s8 = sshll.u32 %s348_s15, 1 }
  0x31   : > { %696 = vst [vmem:[#allocation2 + $0x48] sm:$0xf] %v695_v40  ;;  %v4320_v40 = vld [vmem:[%s5504_s4 + $0x58] sm:$0xff]  ;;  %v512_v41 = vor.u32 %v510_v22, %v4849_v33  ;;  %v660_v45 = vsel %vm4663_vm5, %v504_v37, %v659_v34  ;;  %vm932_vm8 = vsmask.f32 3328  ;;  %v4317_v22 = vld [vmem:[%s5504_s4 + $0x40] sm:$0xff]  ;;  %s350_s12 = scalar_lea.vmem %s5506_s6, %s3761_s8 }
  0x32   : > { %697 = vst.msk [vmem:[#allocation2 + $0x4c] sm:$0xf] %vm423_vm2, %v598_v28  ;;  %v581_v12 = vsel %vm4651_vm4, %v573_v53, %v580_v60  ;;  %v606_v17 = vor.u32 %v604_v62, %v603_v8  ;;  %v607_v18 = vrot.slane %v603_v8, 4  ;;  %v614_v28 = vor.u32 %v612_v3, %v4827_v13  ;;  %v4351_v3 = vld [vmem:[%s5504_s4 + $0x110] sm:$0xff] }
  0x33   : > { %1526 = vmatpush.bf16.msrb.mxu2 %v4331_v24  ;;  %1225 = vmatpush.bf16.msrb.mxu1 %v4323_v26  ;;  %428 = vst [vmem:[#allocation2] sm:$0xf] %v427_v51  ;;  %v419_v24 = vrot.slane %v4762_v20, 4  ;;  %v4345_v26 = vld [vmem:[%s5504_s4 + $0xe0] sm:$0xff]  ;;  %v513_v51 = vsel %vm4651_vm4, %v505_v38, %v512_v41  ;;  %v514_v60 = vrot.slane %v4849_v33, 4  ;;  %vm3565_vm14 = vcmask 1040384  }
  0x34   : > { %1752 = vmatpush.bf16.msrb.mxu3 %v4347_v30  ;;  %2162 = vmatpush.bf16.msrb.mxu0 %v4355_v36  ;;  %430 = vst.msk [vmem:[#allocation2 + $0x4] sm:$0xf] %vm423_vm2, %v418_v57  ;;  %v702_v32 = vsel %vm4663_vm5, %v606_v17, %v701_v9  ;;  %v615_v35 = vsel %vm4651_vm4, %v607_v18, %v614_v28  ;;  %v4328_v36 = vld [vmem:[%s5504_s4 + $0x98] sm:$0xff]  ;;  %vm933_vm9 = vsmask.f32 7440  ;;  %v4349_v38 = vld [vmem:[%s5504_s4 + $0x100] sm:$0xff] }
  0x35   : > { %675 = vst [vmem:[#allocation2 + $0x24] sm:$0xf] %v674_v0  ;;  %v434_v1 = vsel %vm4843_vm7, %v419_v24, %v433_v42  ;;  %v663_v10 = vld [vmem:[#allocation2 + $0x14] sm:$0x1]  ;;  %vm4908_vm10 = vmor %vm932_vm8, %vm933_vm9 }
  0x36   : > { %676 = vst.msk [vmem:[#allocation2 + $0x28] sm:$0xf] %vm423_vm2, %v547_v6  ;;  %v4326_v6 = vld [vmem:[%s5504_s4 + $0x88] sm:$0xff]  ;;  %v664_v17 = vsel %vm4843_vm7, %v514_v60, %v663_v10 }
  0x37   : > { %1527 = vmatpush.bf16.msrb.mxu2 %v4330_v58  ;;  %1226 = vmatpush.bf16.msrb.mxu1 %v4322_v59  ;;  %v4305_v20 = vld [vmem:[#allocation2 + $0x30] sm:$0xff]  ;;  %689 = vst [vmem:[#allocation2 + $0x3c] sm:$0xf] %v688_v7  ;;  %v4318_v7 = vld [vmem:[%s5504_s4 + $0x48] sm:$0xff] }
  0x38   : > { %1753 = vmatpush.bf16.msrb.mxu3 %v4346_v63  ;;  %2163 = vmatpush.bf16.msrb.mxu0 %v4354_v5  ;;  %690 = vst.msk [vmem:[#allocation2 + $0x40] sm:$0xf] %vm423_vm2, %v581_v12  ;;  %v4342_v12 = vld [vmem:[%s5504_s4 + $0xc8] sm:$0xff] }
  0x39   : > { %871 = vmatmul.bf16.vlgmr.msra.gmra.mxu2 %v4305_v20  ;;  %v4307_v39 = vld [vmem:[#allocation2 + $0x48] sm:$0xff]  ;;  %703 = vst [vmem:[#allocation2 + $0x54] sm:$0xf] %v702_v32  ;;  %v4325_v20 = vld [vmem:[%s5504_s4 + $0x80] sm:$0xff] }
  0x3a   : > { %704 = vst.msk [vmem:[#allocation2 + $0x58] sm:$0xf] %vm423_vm2, %v615_v35  ;;  %v908_v49 = vld [vmem:[#allocation2] sm:$0xf]  ;;  %881 = vmatmul.bf16.vlgmr.msra.gmra.mxu3 %v4307_v39 }
  0x3b   : > { %1227 = vmatpush.bf16.msrb.mxu1 %v4321_v16  ;;  %1528 = vmatpush.bf16.msrb.mxu2 %v4329_v11  ;;  %v4301_v50 = vld [vmem:[#allocation2] sm:$0xff]  ;;  %661 = vst [vmem:[#allocation2 + $0xc] sm:$0xf] %v660_v45  ;;  %v936_v54 = vshrl.u32 %v908_v49, 16  ;;  %v939_v57 = vshll.u32 %v908_v49, 16  ;;  %v531_v11 = vrot.slane %v4655_v23, 4 }
  0x3c   : > { %1754 = vmatpush.bf16.msrb.mxu3 %v4345_v26  ;;  %2164 = vmatpush.bf16.msrb.mxu0 %v4353_v27  ;;  %v909_v53 = vld [vmem:[#allocation2 + $0x4] sm:$0xf]  ;;  %662 = vst.msk [vmem:[#allocation2 + $0x10] sm:$0xf] %vm423_vm2, %v513_v51  ;;  %v4897_v9 = vld [vmem:[#allocation2] sm:$0xe] }
  0x3d   : > { %v945_v58 = vshll.u32 %v909_v53, 16  ;;  %851 = vmatmul.bf16.vlgmr.msra.gmra.mxu0 %v4301_v50  ;;  %v4304_v59 = vld [vmem:[#allocation2 + $0x24] sm:$0xff]  ;;  %435 = vst [vmem:[#allocation2 + $0x8] sm:$0x1] %v434_v1  ;;  %v938_v61 = vrot.slane %v936_v54, 4  ;;  %v949_v62 = vshrl.u32 %v909_v53, 16 }
  0x3e   : > { %v941_v63 = vrot.slane %v939_v57, 5  ;;  %v4885_v2 = vld [vmem:[#allocation2 + $0x4] sm:$0xf]  ;;  %866 = vmatmul.bf16.gmra.mxu1 %v4304_v59  ;;  %665 = vst [vmem:[#allocation2 + $0x14] sm:$0x1] %v664_v17  ;;  %v3874_v24 = vrot.slane %v4897_v9, 9 }
  0x3f   : > { %1228 = vmatpush.bf16.msrb.mxu1 %v4320_v40  ;;  %1529 = vmatpush.bf16.msrb.mxu2 %v4328_v36  ;;  %v947_v0 = vrot.slane %v945_v58, 5  ;;  %v951_v4 = vrot.slane %v949_v62, 4  ;;  %v1374_v5 = vrot.slane %v4885_v2, 5  ;;  %v4306_v29 = vld [vmem:[#allocation2 + $0x3c] sm:$0xff] }
  0x40   : > { %1755 = vmatpush.bf16.msrb.mxu3 %v4344_v44  ;;  %2165 = vmatpush.bf16.msrb.mxu0 %v4352_v47  ;;  %v942_v8 = vor.u32 %v941_v63, %v938_v61  ;;  %v4341_v32 = vld [vmem:[%s5504_s4 + $0xc0] sm:$0xff]  ;;  %v4380_v44 = vld [vmem:[%s5504_s4 + $0x1b8] sm:$0xff] }
  0x41   : > { %v952_v16 = vor.u32 %v951_v4, %v947_v0  ;;  %v1376_v26 = vrot.slane %v1374_v5, 4  ;;  %v4308_v51 = vld [vmem:[#allocation2 + $0x54] sm:$0xff]  ;;  %v670_v63 = vld [vmem:[#allocation2 + $0x20] sm:$0x1]  ;;  %v1375_v10 = vsel %vm4938_vm13, %v3874_v24, %v1374_v5 }
  0x42   : > { %v943_v18 = vrot.slane %v942_v8, 4  ;;  %v1848_v19 = vld [vmem:[#allocation2 + $0xc] sm:$0xf]  ;;  %v4364_v61 = vld [vmem:[%s5504_s4 + $0x178] sm:$0xff]  ;;  %v671_v8 = vsel %vm4843_vm7, %v531_v11, %v670_v63 }
  0x43   : > { %1229 = vmatpush.bf16.msrb.mxu1 %v4319_v52  ;;  %1530 = vmatpush.bf16.msrb.mxu2 %v4327_v55  ;;  %v1849_v27 = vld [vmem:[#allocation2 + $0x10] sm:$0xf]  ;;  %v1873_v28 = vshrl.u32 %v1848_v19, 16  ;;  %v953_v35 = vrot.slane %v952_v16, 4  ;;  %v1876_v36 = vshll.u32 %v1848_v19, 16  ;;  %v4388_v55 = vld [vmem:[%s5504_s4 + $0x1f8] sm:$0xff] }
  0x44   : > { %1756 = vmatpush.bf16.msrb.mxu3 %v4343_v56  ;;  %2166 = vmatpush.bf16.msrb.mxu0 %v4351_v3  ;;  %v910_v33 = vld [vmem:[#allocation2 + $0x8] sm:$0x1]  ;;  %v948_v34 = vsel %vm4908_vm10, %v943_v18, %v947_v0  ;;  %v1882_v37 = vshll.u32 %v1849_v27, 16  ;;  %v911_v42 = vld [vmem:[#allocation2 + $0xc] sm:$0xf]  ;;  %v1886_v1 = vshrl.u32 %v1849_v27, 16 }
  0x45   : > { %v955_v39 = vshll.u32 %v910_v33, 16  ;;  %v1323_v40 = vld [vmem:[#allocation2 + $0x8] sm:$0x1]  ;;  %v1875_v41 = vrot.slane %v1873_v28, 4  ;;  %v1878_v45 = vrot.slane %v1876_v36, 5  ;;  %v960_v50 = vshrl.u32 %v911_v42, 16 }
  0x46   : > { %v4934_v47 = vrot.slane %v1882_v37, 5  ;;  %v912_v49 = vld [vmem:[#allocation2 + $0x10] sm:$0xf]  ;;  %v1144_v53 = vunpack.c.l.b16 %v948_v34  ;;  %v963_v56 = vshll.u32 %v911_v42, 16  ;;  %v1377_v58 = vrot.slane %v1323_v40, 5 }
  0x47   : > { %1230 = vmatpush.bf16.msrb.mxu1 %v4318_v7  ;;  %1531 = vmatpush.bf16.msrb.mxu2 %v4326_v6  ;;  %v957_v52 = vrot.slane %v955_v39, 5  ;;  %v969_v57 = vshll.u32 %v912_v49, 16  ;;  %v1879_v59 = vor.u32 %v1878_v45, %v1875_v41  ;;  %v1888_v60 = vrot.slane %v1886_v1, 4  ;;  %v4302_v0 = vld [vmem:[#allocation2 + $0xc] sm:$0xff]  ;;  %v1850_v4 = vld [vmem:[#allocation2 + $0x14] sm:$0x1] }
  0x48   : > { %1757 = vmatpush.bf16.msrb.mxu3 %v4342_v12  ;;  %2167 = vmatpush.bf16.msrb.mxu0 %v4350_v14  ;;  %v962_v62 = vrot.slane %v960_v50, 4  ;;  %v913_v6 = vld [vmem:[#allocation2 + $0x14] sm:$0x1]  ;;  %v965_v7 = vrot.slane %v963_v56, 5  ;;  %v4396_v14 = vld [vmem:[%s5504_s4 + $0x238] sm:$0xff]  ;;  %v1892_v23 = vshll.u32 %v1850_v4, 16  ;;  %v1378_v2 = vsel %vm4938_vm13, %v1376_v26, %v1377_v58 }
  0x49   : > { %876 = vmatmul.bf16.gmra.mxu2 %v4306_v29  ;;  %v958_v3 = vsel %vm4908_vm10, %v953_v35, %v957_v52  ;;  %v1889_v12 = vor.u32 %v1888_v60, %v4934_v47  ;;  %672 = vst [vmem:[#allocation2 + $0x20] sm:$0x1] %v671_v8  ;;  %v971_v11 = vrot.slane %v969_v57, 5  ;;  %v973_v17 = vshrl.u32 %v912_v49, 16  ;;  %v1851_v24 = vld [vmem:[#allocation2 + $0x18] sm:$0xf] }
  0x4a   : > { %v1145_v9 = vunpack.c.l.b16 %v958_v3  ;;  %886 = vmatmul.bf16.gmra.mxu3 %v4308_v51  ;;  %v966_v16 = vor.u32 %v965_v7, %v962_v62  ;;  %v1880_v19 = vrot.slane %v1879_v59, 4  ;;  %v979_v5 = vshll.u32 %v913_v6, 16  ;;  %v4363_v26 = vld [vmem:[%s5504_s4 + $0x170] sm:$0xff]  ;;  %v1852_v37 = vld [vmem:[#allocation2 + $0x1c] sm:$0xf] }
  0x4b   : > { %1231 = vmatpush.bf16.msrb.mxu1 %v4317_v22  ;;  %1532 = vmatpush.bf16.msrb.mxu2 %v4325_v20  ;;  %v4379_v22 = vld [vmem:[%s5504_s4 + $0x1b0] sm:$0xff]  ;;  %v1890_v27 = vrot.slane %v1889_v12, 4  ;;  %v1894_v28 = vrot.slane %v1892_v23, 5  ;;  %v975_v29 = vrot.slane %v973_v17, 4  ;;  %v1445_v33 = vunpack.c.l.b16 %v1375_v10  ;;  %v914_v1 = vld [vmem:[#allocation2 + $0x18] sm:$0xf] }
  0x4c   : > { %1758 = vmatpush.bf16.msrb.mxu3 %v4341_v32  ;;  %2168 = vmatpush.bf16.msrb.mxu0 %v4349_v38  ;;  %v1160_v18 = vpack.c.b16 %v1145_v9, %v1144_v53  ;;  %v4387_v20 = vld [vmem:[%s5504_s4 + $0x1f0] sm:$0xff]  ;;  %v1446_v34 = vunpack.c.l.b16 %v1378_v2  ;;  %v967_v35 = vrot.slane %v966_v16, 4  ;;  %v1885_v38 = vsel %vm4908_vm10, %v1880_v19, %v4934_v47  ;;  %v915_v57 = vld [vmem:[#allocation2 + $0x1c] sm:$0xf] }
  0x4d   : > { %856 = vmatmul.bf16.gmra.mxu0 %v4302_v0  ;;  %v4395_v32 = vld [vmem:[%s5504_s4 + $0x230] sm:$0xff]  ;;  %v976_v36 = vor.u32 %v975_v29, %v971_v11  ;;  %v981_v39 = vrot.slane %v979_v5, 5  ;;  %v1897_v41 = vshrl.u32 %v1851_v24, 16  ;;  %v1895_v42 = vsel %vm4908_vm10, %v1890_v27, %v1894_v28 }
  0x4e   : > { %1232 = vmatmul.bf16.vlgmr.msrb.gmra.mxu1 %v1160_v18  ;;  %v1325_v40 = vld [vmem:[#allocation2 + $0x10] sm:$0xf]  ;;  %v1900_v45 = vshll.u32 %v1851_v24, 16  ;;  %v548_v49 = vrot.slane %v4776_v31, 4  ;;  %v1906_v50 = vshll.u32 %v1852_v37, 16  ;;  %v1910_v51 = vshrl.u32 %v1852_v37, 16 }
  0x4f   : > { %2686 = vmatpush.bf16.msra.mxu2 %v4380_v44  ;;  %2459 = vmatpush.bf16.msra.mxu1 %v4364_v61  ;;  %v977_v44 = vrot.slane %v976_v36, 4  ;;  %v1461_v52 = vpack.c.b16 %v1446_v34, %v1445_v33  ;;  %v2081_v53 = vunpack.c.l.b16 %v1885_v38  ;;  %v972_v47 = vsel %vm4908_vm10, %v967_v35, %v971_v11  ;;  %v1326_v62 = vld [vmem:[#allocation2 + $0x14] sm:$0x1]  ;;  %v4333_v4 = vld [vmem:[#allocation2 + $0xc] sm:$0xff] }
  0x50   : > { %3096 = vmatpush.bf16.msra.mxu3 %v4388_v55  ;;  %3394 = vmatpush.bf16.msra.mxu0 %v4396_v14  ;;  %v1324_v55 = vld [vmem:[#allocation2 + $0xc] sm:$0xe]  ;;  %v1381_v56 = vrot.slane %v1325_v40, 5  ;;  %v2082_v58 = vunpack.c.l.b16 %v1895_v42  ;;  %v1899_v60 = vrot.slane %v1897_v41, 4  ;;  %v984_v61 = vshrl.u32 %v914_v1, 16 }
  0x51   : > { %v982_v59 = vsel %vm4908_vm10, %v977_v44, %v981_v39  ;;  %v1902_v63 = vrot.slane %v1900_v45, 5  ;;  %v4986_v31 = vrot.slane %v1906_v50, 5  ;;  %v1912_v0 = vrot.slane %v1910_v51, 4  ;;  %v1853_v7 = vld [vmem:[#allocation2 + $0x20] sm:$0x1]  ;;  %v4378_v33 = vld [vmem:[%s5504_s4 + $0x1a8] sm:$0xff] }
  0x52   : > { %v987_v3 = vshll.u32 %v914_v1, 16  ;;  %v3875_v6 = vrot.slane %v1324_v55, 9  ;;  %v986_v8 = vrot.slane %v984_v61, 4  ;;  %v993_v9 = vshll.u32 %v915_v57, 16  ;;  %v916_v14 = vld [vmem:[#allocation2 + $0x20] sm:$0x1] }
  0x53   : > { %2687 = vmatpush.bf16.msra.mxu2 %v4379_v22  ;;  %2460 = vmatpush.bf16.msra.mxu1 %v4363_v26  ;;  %v1146_v10 = vunpack.c.l.b16 %v972_v47  ;;  %v1147_v12 = vunpack.c.l.b16 %v982_v59  ;;  %v997_v16 = vshrl.u32 %v915_v57, 16  ;;  %v677_v11 = vld [vmem:[#allocation2 + $0x2c] sm:$0x1]  ;;  %v2097_v17 = vpack.c.b16 %v2082_v58, %v2081_v53  ;;  %v1854_v1 = vld [vmem:[#allocation2 + $0x24] sm:$0xf] }
  0x54   : > { %3097 = vmatpush.bf16.msra.mxu3 %v4387_v20  ;;  %3395 = vmatpush.bf16.msra.mxu0 %v4395_v32  ;;  %v989_v23 = vrot.slane %v987_v3, 5  ;;  %v1383_v18 = vrot.slane %v1381_v56, 4  ;;  %v1384_v2 = vrot.slane %v1326_v62, 5  ;;  %v995_v19 = vrot.slane %v993_v9, 5  ;;  %v4386_v39 = vld [vmem:[%s5504_s4 + $0x1e8] sm:$0xff] }
  0x55   : > { %v1903_v5 = vor.u32 %v1902_v63, %v1899_v60  ;;  %v1913_v22 = vor.u32 %v1912_v0, %v4986_v31  ;;  %v1916_v24 = vshll.u32 %v1853_v7, 16  ;;  %v999_v27 = vrot.slane %v997_v16, 4  ;;  %v4362_v40 = vld [vmem:[%s5504_s4 + $0x168] sm:$0xff]  ;;  %v917_v47 = vld [vmem:[#allocation2 + $0x24] sm:$0xf] }
  0x56   : > { %v990_v28 = vor.u32 %v989_v23, %v986_v8  ;;  %v1003_v29 = vshll.u32 %v916_v14, 16  ;;  %v678_v20 = vsel %vm4843_vm7, %v548_v49, %v677_v11  ;;  %v1161_v26 = vpack.c.b16 %v1147_v12, %v1146_v10  ;;  %v4394_v41 = vld [vmem:[%s5504_s4 + $0x228] sm:$0xff]  ;;  %v1327_v58 = vld [vmem:[#allocation2 + $0x18] sm:$0xe]  ;;  %v1328_v59 = vld [vmem:[#allocation2 + $0x1c] sm:$0xf] }
  0x57   : > { %v1000_v32 = vor.u32 %v999_v27, %v995_v19  ;;  %679 = vst [vmem:[#allocation2 + $0x2c] sm:$0x1] %v678_v20  ;;  %v1382_v34 = vsel %vm4938_vm13, %v3875_v6, %v1381_v56  ;;  %v1385_v35 = vsel %vm4938_vm13, %v1383_v18, %v1384_v2  ;;  %v1904_v36 = vrot.slane %v1903_v5, 4  ;;  %2688 = vmatpush.bf16.msra.mxu2 %v4378_v33  ;;  %v1855_v49 = vld [vmem:[#allocation2 + $0x28] sm:$0xf] }
  0x58   : > { %v1914_v37 = vrot.slane %v1913_v22, 4  ;;  %v1918_v38 = vrot.slane %v1916_v24, 5  ;;  %v991_v42 = vrot.slane %v990_v28, 4  ;;  %v1005_v45 = vrot.slane %v1003_v29, 5  ;;  %3098 = vmatpush.bf16.msra.mxu3 %v4386_v39  ;;  %2461 = vmatpush.bf16.msra.mxu1 %v4362_v40  ;;  %v918_v55 = vld [vmem:[#allocation2 + $0x28] sm:$0xf] }
  0x59   : > { %1533 = vmatmul.bf16.vlgmr.msrb.gmra.mxu2 %v1461_v52  ;;  %v1001_v44 = vrot.slane %v1000_v32, 4  ;;  %v565_v50 = vrot.slane %v4696_v43, 4  ;;  %v582_v51 = vrot.slane %v4792_v48, 4  ;;  %v1447_v52 = vunpack.c.l.b16 %v1382_v34  ;;  %3396 = vmatpush.bf16.msra.mxu0 %v4394_v41  ;;  %v1329_v23 = vld [vmem:[#allocation2 + $0x20] sm:$0x1] }
  0x5a   : > { %1759 = vmatmul.bf16.vlgmr.msrb.gmra.mxu3 %v4333_v4  ;;  %v1448_v53 = vunpack.c.l.b16 %v1385_v35  ;;  %v1909_v56 = vsel %vm4908_vm10, %v1904_v36, %v4986_v31  ;;  %v1919_v57 = vsel %vm4908_vm10, %v1914_v37, %v1918_v38  ;;  %v1921_v60 = vshrl.u32 %v1854_v1, 16  ;;  %v684_v31 = vld [vmem:[#allocation2 + $0x38] sm:$0x1]  ;;  %v691_v39 = vld [vmem:[#allocation2 + $0x44] sm:$0x1] }
  0x5b   : > { %v1924_v61 = vshll.u32 %v1854_v1, 16  ;;  %v996_v43 = vsel %vm4908_vm10, %v991_v42, %v995_v19  ;;  %v1006_v48 = vsel %vm4908_vm10, %v1001_v44, %v1005_v45  ;;  %v1930_v62 = vshll.u32 %v1855_v49, 16  ;;  %v4377_v44 = vld [vmem:[%s5504_s4 + $0x1a0] sm:$0xff] }
  0x5c   : > { %v1934_v63 = vshrl.u32 %v1855_v49, 16  ;;  %v1008_v0 = vshrl.u32 %v917_v47, 16  ;;  %v1011_v3 = vshll.u32 %v917_v47, 16  ;;  %v1017_v4 = vshll.u32 %v918_v55, 16  ;;  %2689 = vmatpush.bf16.msra.mxu2 %v4377_v44 }
  0x5d   : > { %2169 = vmatmul.bf16.vlgmr.msrb.gmra.mxu0 %v2097_v17  ;;  %v1021_v6 = vshrl.u32 %v918_v55, 16  ;;  %v1462_v7 = vpack.c.b16 %v1448_v53, %v1447_v52  ;;  %v2083_v8 = vunpack.c.l.b16 %v1909_v56  ;;  %v3876_v9 = vrot.slane %v1327_v58, 9  ;;  %v4334_v17 = vld [vmem:[#allocation2 + $0x18] sm:$0xff]  ;;  %v4361_v52 = vld [vmem:[%s5504_s4 + $0x160] sm:$0xff]  ;;  %v1331_v56 = vld [vmem:[#allocation2 + $0x28] sm:$0xf] }
  0x5e   : > { %1237 = vmatmul.bf16.gmra.mxu1 %v1161_v26  ;;  %v1388_v10 = vrot.slane %v1328_v59, 5  ;;  %v2084_v12 = vunpack.c.l.b16 %v1919_v57  ;;  %v1148_v14 = vunpack.c.l.b16 %v996_v43  ;;  %v1923_v16 = vrot.slane %v1921_v60, 4  ;;  %v1856_v2 = vld [vmem:[#allocation2 + $0x2c] sm:$0x1]  ;;  %v4393_v53 = vld [vmem:[%s5504_s4 + $0x220] sm:$0xff] }
  0x5f   : > { %v1926_v11 = vrot.slane %v1924_v61, 5  ;;  %v1149_v18 = vunpack.c.l.b16 %v1006_v48  ;;  %v5018_v19 = vrot.slane %v1930_v62, 5  ;;  %v1936_v5 = vrot.slane %v1934_v63, 4  ;;  %v919_v32 = vld [vmem:[#allocation2 + $0x2c] sm:$0x1]  ;;  %2462 = vmatpush.bf16.msra.mxu1 %v4361_v52  ;;  %3397 = vmatpush.bf16.msra.mxu0 %v4393_v53  ;;  %v4376_v52 = vld [vmem:[%s5504_s4 + $0x198] sm:$0xff] }
  0x60   : > { %v685_v22 = vsel %vm4843_vm7, %v565_v50, %v684_v31  ;;  %v1010_v24 = vrot.slane %v1008_v0, 4  ;;  %v1013_v27 = vrot.slane %v1011_v3, 5  ;;  %v5022_v28 = vrot.slane %v1017_v4, 5  ;;  %v4385_v50 = vld [vmem:[%s5504_s4 + $0x1e0] sm:$0xff]  ;;  %v1857_v57 = vld [vmem:[#allocation2 + $0x30] sm:$0xf]  ;;  %2690 = vmatpush.bf16.msra.mxu2 %v4376_v52 }
  0x61   : > { %v1023_v29 = vrot.slane %v1021_v6, 4  ;;  %686 = vst [vmem:[#allocation2 + $0x38] sm:$0x1] %v685_v22  ;;  %v1390_v20 = vrot.slane %v1388_v10, 4  ;;  %v1391_v26 = vrot.slane %v1329_v23, 5  ;;  %v2098_v33 = vpack.c.b16 %v2084_v12, %v2083_v8  ;;  %3099 = vmatpush.bf16.msra.mxu3 %v4385_v50 }
  0x62   : > { %v1927_v34 = vor.u32 %v1926_v11, %v1923_v16  ;;  %v1162_v35 = vpack.c.b16 %v1149_v18, %v1148_v14  ;;  %v1389_v36 = vsel %vm4938_vm13, %v3876_v9, %v1388_v10  ;;  %v1937_v37 = vor.u32 %v1936_v5, %v5018_v19  ;;  %v1858_v43 = vld [vmem:[#allocation2 + $0x34] sm:$0xf]  ;;  %v1330_v48 = vld [vmem:[#allocation2 + $0x24] sm:$0xe]  ;;  %v920_v3 = vld [vmem:[#allocation2 + $0x30] sm:$0xf] }
  0x63   : > { %v1940_v38 = vshll.u32 %v1856_v2, 16  ;;  %v1014_v40 = vor.u32 %v1013_v27, %v1010_v24  ;;  %v1024_v41 = vor.u32 %v1023_v29, %v5022_v28  ;;  %v1027_v42 = vshll.u32 %v919_v32, 16  ;;  %v921_v4 = vld [vmem:[#allocation2 + $0x34] sm:$0xf]  ;;  %v1332_v14 = vld [vmem:[#allocation2 + $0x2c] sm:$0x1] }
  0x64   : > { %v692_v45 = vsel %vm4843_vm7, %v582_v51, %v691_v39  ;;  %v1392_v1 = vsel %vm4938_vm13, %v1390_v20, %v1391_v26  ;;  %v1928_v49 = vrot.slane %v1927_v34, 4  ;;  %v1449_v51 = vunpack.c.l.b16 %v1389_v36  ;;  %v4335_v26 = vld [vmem:[#allocation2 + $0x24] sm:$0xff]  ;;  %v1334_v50 = vld [vmem:[#allocation2 + $0x34] sm:$0xf] }
  0x65   : > { %693 = vst [vmem:[#allocation2 + $0x44] sm:$0x1] %v692_v45  ;;  %v1938_v47 = vrot.slane %v1937_v37, 4  ;;  %v1942_v55 = vrot.slane %v1940_v38, 5  ;;  %v1450_v58 = vunpack.c.l.b16 %v1392_v1  ;;  %v1015_v59 = vrot.slane %v1014_v40, 4 }
  0x66   : > { %v1025_v60 = vrot.slane %v1024_v41, 4  ;;  %v1029_v61 = vrot.slane %v1027_v42, 5  ;;  %v1933_v62 = vsel %vm4908_vm10, %v1928_v49, %v5018_v19  ;;  %v1945_v63 = vshrl.u32 %v1857_v57, 16  ;;  %v698_v1 = vld [vmem:[#allocation2 + $0x50] sm:$0x1] }
  0x67   : > { %v1948_v0 = vshll.u32 %v1857_v57, 16  ;;  %v1943_v6 = vsel %vm4908_vm10, %v1938_v47, %v1942_v55  ;;  %v1395_v31 = vrot.slane %v1331_v56, 5  ;;  %v1958_v8 = vshrl.u32 %v1858_v43, 16  ;;  %v1860_v56 = vld [vmem:[#allocation2 + $0x3c] sm:$0xf] }
  0x68   : > { %v1463_v9 = vpack.c.b16 %v1450_v58, %v1449_v51  ;;  %v1020_v10 = vsel %vm4908_vm10, %v1015_v59, %v5022_v28  ;;  %v1030_v12 = vsel %vm4908_vm10, %v1025_v60, %v1029_v61  ;;  %v3877_v23 = vrot.slane %v1330_v48, 9  ;;  %v1859_v34 = vld [vmem:[#allocation2 + $0x38] sm:$0x1] }
  0x69   : > { %1538 = vmatmul.bf16.gmra.mxu2 %v1462_v7  ;;  %v1954_v7 = vshll.u32 %v1858_v43, 16  ;;  %v1032_v16 = vshrl.u32 %v920_v3, 16  ;;  %v1035_v11 = vshll.u32 %v920_v3, 16  ;;  %v1045_v18 = vshrl.u32 %v921_v4, 16  ;;  %v922_v41 = vld [vmem:[#allocation2 + $0x38] sm:$0x1] }
  0x6a   : > { %1764 = vmatmul.bf16.gmra.mxu3 %v4334_v17  ;;  %v1041_v17 = vshll.u32 %v921_v4, 16  ;;  %v2085_v2 = vunpack.c.l.b16 %v1933_v62  ;;  %v2086_v19 = vunpack.c.l.b16 %v1943_v6  ;;  %v1947_v5 = vrot.slane %v1945_v63, 4  ;;  %v4384_v60 = vld [vmem:[%s5504_s4 + $0x1d8] sm:$0xff]  ;;  %v1333_v3 = vld [vmem:[#allocation2 + $0x30] sm:$0xe] }
  0x6b   : > { %v1950_v22 = vrot.slane %v1948_v0, 5  ;;  %v1397_v24 = vrot.slane %v1395_v31, 4  ;;  %v1398_v27 = vrot.slane %v1332_v14, 5  ;;  %v5054_v29 = vrot.slane %v1954_v7, 5  ;;  %v4360_v61 = vld [vmem:[%s5504_s4 + $0x158] sm:$0xff]  ;;  %3100 = vmatpush.bf16.msra.mxu3 %v4384_v60 }
  0x6c   : > { %v1960_v20 = vrot.slane %v1958_v8, 4  ;;  %v599_v28 = vrot.slane %v4707_v46, 4  ;;  %v1150_v32 = vunpack.c.l.b16 %v1020_v10  ;;  %v1037_v36 = vrot.slane %v1035_v11, 5  ;;  %v4392_v43 = vld [vmem:[%s5504_s4 + $0x218] sm:$0xff]  ;;  %v1861_v0 = vld [vmem:[#allocation2 + $0x40] sm:$0xf]  ;;  %2463 = vmatpush.bf16.msra.mxu1 %v4360_v61 }
  0x6d   : > { %2174 = vmatmul.bf16.gmra.mxu0 %v2098_v33  ;;  %v1151_v33 = vunpack.c.l.b16 %v1030_v12  ;;  %v5057_v37 = vrot.slane %v1041_v17, 5  ;;  %v1047_v38 = vrot.slane %v1045_v18, 4  ;;  %v2099_v39 = vpack.c.b16 %v2086_v19, %v2085_v2  ;;  %v1335_v4 = vld [vmem:[#allocation2 + $0x38] sm:$0x1]  ;;  %v923_v10 = vld [vmem:[#allocation2 + $0x3c] sm:$0xf] }
  0x6e   : > { %1242 = vmatmul.bf16.gmra.mxu1 %v1162_v35  ;;  %v1034_v35 = vrot.slane %v1032_v16, 4  ;;  %v1951_v40 = vor.u32 %v1950_v22, %v1947_v5  ;;  %v1396_v42 = vsel %vm4938_vm13, %v3877_v23, %v1395_v31  ;;  %v1399_v44 = vsel %vm4938_vm13, %v1397_v24, %v1398_v27  ;;  %3398 = vmatpush.bf16.msra.mxu0 %v4392_v43  ;;  %v924_v11 = vld [vmem:[#allocation2 + $0x40] sm:$0xf]  ;;  %v1864_v60 = vld [vmem:[#allocation2 + $0x4c] sm:$0xf] }
  0x6f   : > { %v1961_v46 = vor.u32 %v1960_v20, %v5054_v29  ;;  %v1964_v45 = vshll.u32 %v1859_v34, 16  ;;  %v1163_v49 = vpack.c.b16 %v1151_v33, %v1150_v32  ;;  %v699_v53 = vsel %vm4843_vm7, %v599_v28, %v698_v1  ;;  %v1862_v34 = vld [vmem:[#allocation2 + $0x44] sm:$0x1] }
  0x70   : > { %v1038_v51 = vor.u32 %v1037_v36, %v1034_v35  ;;  %v1048_v47 = vor.u32 %v1047_v38, %v5057_v37  ;;  %v1051_v55 = vshll.u32 %v922_v41, 16  ;;  %700 = vst [vmem:[#allocation2 + $0x50] sm:$0x1] %v699_v53  ;;  %v1451_v57 = vunpack.c.l.b16 %v1396_v42  ;;  %v925_v53 = vld [vmem:[#allocation2 + $0x44] sm:$0x1] }
  0x71   : > { %v1452_v58 = vunpack.c.l.b16 %v1399_v44  ;;  %v1952_v59 = vrot.slane %v1951_v40, 4  ;;  %v1962_v48 = vrot.slane %v1961_v46, 4  ;;  %v1966_v62 = vrot.slane %v1964_v45, 5 }
  0x72   : > { %v1402_v63 = vrot.slane %v1334_v50, 5  ;;  %v1969_v6 = vshrl.u32 %v1860_v56, 16  ;;  %v1972_v31 = vshll.u32 %v1860_v56, 16  ;;  %v1039_v7 = vrot.slane %v1038_v51, 4 }
  0x73   : > { %v1049_v8 = vrot.slane %v1048_v47, 4  ;;  %v1464_v12 = vpack.c.b16 %v1452_v58, %v1451_v57  ;;  %v1957_v14 = vsel %vm4908_vm10, %v1952_v59, %v5054_v29  ;;  %v1978_v23 = vshll.u32 %v1861_v0, 16  ;;  %v1863_v47 = vld [vmem:[#allocation2 + $0x48] sm:$0xf]  ;;  %v4375_v59 = vld [vmem:[%s5504_s4 + $0x190] sm:$0xff] }
  0x74   : > { %v1982_v16 = vshrl.u32 %v1861_v0, 16  ;;  %v1967_v17 = vsel %vm4908_vm10, %v1962_v48, %v1966_v62  ;;  %v3878_v18 = vrot.slane %v1333_v3, 9  ;;  %v1404_v2 = vrot.slane %v1402_v63, 4  ;;  %2691 = vmatpush.bf16.msra.mxu2 %v4375_v59 }
  0x75   : > { %v1405_v19 = vrot.slane %v1335_v4, 5  ;;  %v1971_v5 = vrot.slane %v1969_v6, 4  ;;  %v1974_v22 = vrot.slane %v1972_v31, 5  ;;  %v1056_v24 = vshrl.u32 %v923_v10, 16  ;;  %v4383_v6 = vld [vmem:[%s5504_s4 + $0x1d0] sm:$0xff] }
  0x76   : > { %v1059_v27 = vshll.u32 %v923_v10, 16  ;;  %v1044_v20 = vsel %vm4908_vm10, %v1039_v7, %v5057_v37  ;;  %v1065_v28 = vshll.u32 %v924_v11, 16  ;;  %v2087_v32 = vunpack.c.l.b16 %v1957_v14  ;;  %v4336_v37 = vld [vmem:[#allocation2 + $0x30] sm:$0xff]  ;;  %v1336_v14 = vld [vmem:[#allocation2 + $0x3c] sm:$0xe]  ;;  %3101 = vmatpush.bf16.msra.mxu3 %v4383_v6 }
  0x77   : > { %v2088_v33 = vunpack.c.l.b16 %v1967_v17  ;;  %v5089_v35 = vrot.slane %v1978_v23, 5  ;;  %v1984_v36 = vrot.slane %v1982_v16, 4  ;;  %v616_v38 = vrot.slane %v4827_v13, 4  ;;  %v4359_v31 = vld [vmem:[%s5504_s4 + $0x150] sm:$0xff]  ;;  %v926_v23 = vld [vmem:[#allocation2 + $0x48] sm:$0xf] }
  0x78   : > { %v1406_v40 = vsel %vm4938_vm13, %v1404_v2, %v1405_v19  ;;  %v1152_v41 = vunpack.c.l.b16 %v1044_v20  ;;  %v1058_v44 = vrot.slane %v1056_v24, 4  ;;  %v1061_v46 = vrot.slane %v1059_v27, 5  ;;  %v4391_v7 = vld [vmem:[%s5504_s4 + $0x210] sm:$0xff]  ;;  %v1338_v2 = vld [vmem:[#allocation2 + $0x44] sm:$0x1]  ;;  %2464 = vmatpush.bf16.msra.mxu1 %v4359_v31  ;;  %v4374_v31 = vld [vmem:[%s5504_s4 + $0x188] sm:$0xff] }
  0x79   : > { %1543 = vmatmul.bf16.gmra.mxu2 %v1463_v9  ;;  %v1053_v9 = vrot.slane %v1051_v55, 5  ;;  %v1975_v45 = vor.u32 %v1974_v22, %v1971_v5  ;;  %v1988_v1 = vshll.u32 %v1862_v34, 16  ;;  %v2100_v52 = vpack.c.b16 %v2088_v33, %v2087_v32  ;;  %v705_v55 = vld [vmem:[#allocation2 + $0x5c] sm:$0x1]  ;;  %3399 = vmatpush.bf16.msra.mxu0 %v4391_v7  ;;  %v927_v19 = vld [vmem:[#allocation2 + $0x4c] sm:$0xf] }
  0x7a   : > { %1769 = vmatmul.bf16.gmra.mxu3 %v4335_v26  ;;  %v1069_v26 = vshrl.u32 %v924_v11, 16  ;;  %v1985_v13 = vor.u32 %v1984_v36, %v5089_v35  ;;  %v1454_v57 = vunpack.c.l.b16 %v1406_v40  ;;  %v1062_v58 = vor.u32 %v1061_v46, %v1058_v44  ;;  %v1865_v24 = vld [vmem:[#allocation2 + $0x50] sm:$0x1]  ;;  %v1866_v7 = vld [vmem:[#allocation2 + $0x54] sm:$0xf]  ;;  %2692 = vmatpush.bf16.msra.mxu2 %v4374_v31 }
  0x7b   : > { %v1054_v29 = vsel %vm4908_vm10, %v1049_v8, %v1053_v9  ;;  %v706_v61 = vsel %vm4843_vm7, %v616_v38, %v705_v55  ;;  %v1976_v43 = vrot.slane %v1975_v45, 4  ;;  %v1990_v48 = vrot.slane %v1988_v1, 5  ;;  %v1337_v8 = vld [vmem:[#allocation2 + $0x40] sm:$0xf]  ;;  %v480_v33 = vld [vmem:[%s4620_s20 + $0x70] sm:$0xff] }
  0x7c   : > { %v1153_v42 = vunpack.c.l.b16 %v1054_v29  ;;  %v1071_v50 = vrot.slane %v1069_v26, 4  ;;  %707 = vst [vmem:[#allocation2 + $0x5c] sm:$0x1] %v706_v61  ;;  %v1986_v0 = vrot.slane %v1985_v13, 4  ;;  %v1993_v3 = vshrl.u32 %v1863_v47, 16 }
  0x7d   : > { %2179 = vmatmul.bf16.gmra.mxu0 %v2099_v39  ;;  %v1403_v39 = vsel %vm4938_vm13, %v3878_v18, %v1402_v63  ;;  %v1075_v63 = vshll.u32 %v925_v53, 16  ;;  %v1996_v4 = vshll.u32 %v1863_v47, 16  ;;  %v2002_v9 = vshll.u32 %v1864_v60, 16  ;;  %v928_v47 = vld [vmem:[#allocation2 + $0x50] sm:$0x1] }
  0x7e   : > { %1247 = vmatmul.bf16.gmra.mxu1 %v1163_v49  ;;  %v5096_v49 = vrot.slane %v1065_v28, 5  ;;  %v1453_v51 = vunpack.c.l.b16 %v1403_v39  ;;  %v1164_v56 = vpack.c.b16 %v1153_v42, %v1152_v41  ;;  %v2006_v10 = vshrl.u32 %v1864_v60, 16  ;;  %v481_v42 = vld [vmem:[%s4620_s20 + $0x78] sm:$0xff]  ;;  %s5329_s20 = scalar_select %p392_p9, 0, 255 }
  0x7f   : > { %v1981_v11 = vsel %vm4908_vm10, %v1976_v43, %v5089_v35  ;;  %v1077_v18 = vrot.slane %v1075_v63, 5  ;;  %v1991_v5 = vsel %vm4908_vm10, %v1986_v0, %v1990_v48  ;;  %v1409_v22 = vrot.slane %v1337_v8, 5 }
  0x80   : > { %v1072_v62 = vor.u32 %v1071_v50, %v5096_v49  ;;  %v1465_v16 = vpack.c.b16 %v1454_v57, %v1453_v51  ;;  %v1995_v27 = vrot.slane %v1993_v3, 4  ;;  %v1998_v20 = vrot.slane %v1996_v4, 5  ;;  %v4337_v51 = vld [vmem:[#allocation2 + $0x3c] sm:$0xff] }
  0x81   : > { %v5119_v29 = vrot.slane %v2002_v9, 5  ;;  %v2008_v28 = vrot.slane %v2006_v10, 4  ;;  %v1080_v26 = vshrl.u32 %v926_v23, 16  ;;  %v1083_v32 = vshll.u32 %v926_v23, 16 }
  0x82   : > { %v1073_v17 = vrot.slane %v1072_v62, 4  ;;  %v2089_v34 = vunpack.c.l.b16 %v1981_v11  ;;  %v1089_v36 = vshll.u32 %v927_v19, 16  ;;  %v1093_v38 = vshrl.u32 %v927_v19, 16  ;;  %v4382_v11 = vld [vmem:[%s5504_s4 + $0x1c8] sm:$0xff] }
  0x83   : > { %v2090_v39 = vunpack.c.l.b16 %v1991_v5  ;;  %v1412_v41 = vrot.slane %v1338_v2, 5  ;;  %v1411_v44 = vrot.slane %v1409_v22, 4  ;;  %v1999_v46 = vor.u32 %v1998_v20, %v1995_v27  ;;  %3102 = vmatpush.bf16.msra.mxu3 %v4382_v11 }
  0x84   : > { %v1078_v40 = vsel %vm4908_vm10, %v1073_v17, %v1077_v18  ;;  %v2012_v45 = vshll.u32 %v1865_v24, 16  ;;  %v496_v1 = vpack.c.bf16 %v480_v33, %v480_v33  ;;  %v1082_v13 = vrot.slane %v1080_v26, 4  ;;  %v4358_v24 = vld [vmem:[%s5504_s4 + $0x148] sm:$0xff] }
  0x85   : > { %v1085_v53 = vrot.slane %v1083_v32, 5  ;;  %v5129_v55 = vrot.slane %v1089_v36, 5  ;;  %v497_v57 = vpack.c.bf16 %v481_v42, %v481_v42  ;;  %v1413_v60 = vsel %vm4938_vm13, %v1411_v44, %v1412_v41  ;;  %2465 = vmatpush.bf16.msra.mxu1 %v4358_v24  ;;  %v712_v33 = vld [vmem:[#allocation2 + $0x68] sm:$0x1]  ;;  %v930_v36 = vld [vmem:[#allocation2 + $0x58] sm:$0xf] }
  0x86   : > { %v2000_v61 = vrot.slane %v1999_v46, 4  ;;  %v2014_v43 = vrot.slane %v2012_v45, 5  ;;  %v618_v48 = vshrl.u32 %v496_v1, 16  ;;  %v1099_v0 = vshll.u32 %v928_v47, 16  ;;  %v1340_v42 = vld [vmem:[#allocation2 + $0x4c] sm:$0xf] }
  0x87   : > { %v1086_v63 = vor.u32 %v1085_v53, %v1082_v13  ;;  %v621_v3 = vshll.u32 %v496_v1, 16  ;;  %v626_v9 = vshrl.u32 %v497_v57, 16  ;;  %v629_v18 = vshll.u32 %v497_v57, 16  ;;  %v4390_v46 = vld [vmem:[%s5504_s4 + $0x208] sm:$0xff] }
  0x88   : > { %v620_v8 = vrot.slane %v618_v48, 7  ;;  %v2005_v23 = vsel %vm4908_vm10, %v2000_v61, %v5119_v29  ;;  %v1101_v5 = vrot.slane %v1099_v0, 5  ;;  %v2020_v26 = vshll.u32 %v1866_v7, 16  ;;  %3400 = vmatpush.bf16.msra.mxu0 %v4390_v46  ;;  %v1868_v61 = vld [vmem:[#allocation2 + $0x5c] sm:$0x1] }
  0x89   : > { %1548 = vmatmul.bf16.gmra.mxu2 %v1464_v12  ;;  %v1063_v12 = vrot.slane %v1062_v58, 4  ;;  %v2101_v58 = vpack.c.b16 %v2090_v39, %v2089_v34  ;;  %v1087_v19 = vrot.slane %v1086_v63, 4  ;;  %v1113_v47 = vshll.u32 %v930_v36, 16 }
  0x8a   : > { %1774 = vmatmul.bf16.gmra.mxu3 %v4336_v37  ;;  %v3879_v37 = vrot.slane %v1336_v14, 9  ;;  %v1456_v14 = vunpack.c.l.b16 %v1413_v60  ;;  %v623_v17 = vor.u32 %v621_v3, %v620_v8  ;;  %v624_v20 = vrot.slane %v620_v8, 4 }
  0x8b   : > { %v1068_v35 = vsel %vm4908_vm10, %v1063_v12, %v5096_v49  ;;  %v1155_v49 = vunpack.c.l.b16 %v1078_v40  ;;  %v708_v12 = vld [vmem:[#allocation2 + $0x60] sm:$0xf]  ;;  %v1092_v45 = vsel %vm4908_vm10, %v1087_v19, %v5129_v55  ;;  %v1416_v57 = vrot.slane %v1340_v42, 5 }
  0x8c   : > { %v1154_v50 = vunpack.c.l.b16 %v1068_v35  ;;  %v1410_v59 = vsel %vm4938_vm13, %v3879_v37, %v1409_v22  ;;  %v2017_v22 = vshrl.u32 %v1866_v7, 16  ;;  %v929_v35 = vld [vmem:[#allocation2 + $0x54] sm:$0xf]  ;;  %v2091_v37 = vunpack.c.l.b16 %v2005_v23 }
  0x8d   : > { %2184 = vmatmul.bf16.gmra.mxu0 %v2100_v52  ;;  %v2009_v52 = vor.u32 %v2008_v28, %v5119_v29  ;;  %v1455_v10 = vunpack.c.l.b16 %v1410_v59  ;;  %v628_v29 = vrot.slane %v626_v9, 7  ;;  %v709_v28 = vsel %vm4663_vm5, %v623_v17, %v708_v12  ;;  %v931_v12 = vld [vmem:[#allocation2 + $0x5c] sm:$0x1] }
  0x8e   : > { %1252 = vmatmul.bf16.gmra.mxu1 %v1164_v56  ;;  %v1095_v56 = vrot.slane %v1093_v38, 4  ;;  %v1165_v4 = vpack.c.b16 %v1155_v49, %v1154_v50  ;;  %710 = vst [vmem:[#allocation2 + $0x60] sm:$0xf] %v709_v28  ;;  %v2019_v44 = vrot.slane %v2017_v22, 4  ;;  %v1339_v50 = vld [vmem:[#allocation2 + $0x48] sm:$0xe]  ;;  %v1156_v48 = vunpack.c.l.b16 %v1092_v45 }
  0x8f   : > { %v2010_v62 = vrot.slane %v2009_v52, 4  ;;  %v631_v38 = vor.u32 %v629_v18, %v628_v29  ;;  %v633_v39 = vrot.slane %v628_v29, 4  ;;  %v1466_v40 = vpack.c.b16 %v1456_v14, %v1455_v10  ;;  %v1341_v52 = vld [vmem:[#allocation2 + $0x50] sm:$0x1]  ;;  %v4357_v29 = vld [vmem:[%s5504_s4 + $0x140] sm:$0xff] }
  0x90   : > { %v1096_v6 = vor.u32 %v1095_v56, %v5129_v55  ;;  %v1107_v49 = vshll.u32 %v929_v35, 16  ;;  %v1117_v56 = vshrl.u32 %v930_v36, 16  ;;  %v2022_v55 = vrot.slane %v2020_v26, 5  ;;  %2466 = vmatpush.bf16.msra.mxu1 %v4357_v29 }
  0x91   : > { %v2015_v2 = vsel %vm4908_vm10, %v2010_v62, %v2014_v43  ;;  %v632_v13 = vsel %vm4651_vm4, %v624_v20, %v631_v38  ;;  %v713_v53 = vsel %vm4843_vm7, %v633_v39, %v712_v33  ;;  %v4338_v43 = vld [vmem:[#allocation2 + $0x48] sm:$0xff]  ;;  %v3880_v63 = vrot.slane %v1339_v50, 9 }
  0x92   : > { %v1097_v27 = vrot.slane %v1096_v6, 4  ;;  %v2092_v41 = vunpack.c.l.b16 %v2015_v2  ;;  %711 = vst.msk [vmem:[#allocation2 + $0x64] sm:$0xf] %vm423_vm2, %v632_v13  ;;  %v1419_v0 = vrot.slane %v1341_v52, 5  ;;  %v1115_v6 = vrot.slane %v1113_v47, 5 }
  0x93   : > { %714 = vst [vmem:[#allocation2 + $0x68] sm:$0x1] %v713_v53  ;;  %v1119_v31 = vrot.slane %v1117_v56, 4  ;;  %v1418_v7 = vrot.slane %v1416_v57, 4  ;;  %v2023_v8 = vor.u32 %v2022_v55, %v2019_v44  ;;  %v2036_v10 = vshll.u32 %v1868_v61, 16  ;;  %v4389_v44 = vld [vmem:[%s5504_s4 + $0x200] sm:$0xff] }
  0x94   : > { %v1102_v1 = vsel %vm4908_vm10, %v1097_v27, %v1101_v5  ;;  %v2102_v60 = vpack.c.b16 %v2092_v41, %v2091_v37  ;;  %v1417_v11 = vsel %vm4938_vm13, %v3880_v63, %v1416_v57  ;;  %v1123_v2 = vshll.u32 %v931_v12, 16  ;;  %v4381_v27 = vld [vmem:[%s5504_s4 + $0x1c0] sm:$0xff]  ;;  %v1343_v37 = vld [vmem:[#allocation2 + $0x58] sm:$0xf]  ;;  %3401 = vmatpush.bf16.msra.mxu0 %v4389_v44  ;;  %v1342_v47 = vld [vmem:[#allocation2 + $0x54] sm:$0xe] }
  0x95   : > { %v1157_v62 = vunpack.c.l.b16 %v1102_v1  ;;  %v1120_v18 = vor.u32 %v1119_v31, %v1115_v6  ;;  %v1420_v19 = vsel %vm4938_vm13, %v1418_v7, %v1419_v0  ;;  %v2024_v5 = vrot.slane %v2023_v8, 4  ;;  %v1869_v20 = vld [vmem:[#allocation2 + $0x60] sm:$0xf]  ;;  %3103 = vmatpush.bf16.msra.mxu3 %v4381_v27  ;;  %v1344_v56 = vld [vmem:[#allocation2 + $0x5c] sm:$0x1] }
  0x96   : > { %v2038_v24 = vrot.slane %v2036_v10, 5  ;;  %v1457_v28 = vunpack.c.l.b16 %v1417_v11  ;;  %v2041_v39 = vshrl.u32 %v1869_v20, 16  ;;  %v1423_v53 = vrot.slane %v1343_v37, 5  ;;  %v2783_v8 = vld [vmem:[#allocation2 + $0x18] sm:$0xf] }
  0x97   : > { %v1166_v23 = vpack.c.b16 %v1157_v62, %v1156_v48  ;;  %v3881_v48 = vrot.slane %v1342_v47, 9  ;;  %v1426_v63 = vrot.slane %v1344_v56, 5  ;;  %v2811_v27 = vshll.u32 %v2783_v8, 16 }
  0x98   : > { %v1425_v62 = vrot.slane %v1423_v53, 4 }
  0x99   : > { %1553 = vmatmul.bf16.gmra.mxu2 %v1465_v16  ;;  %v1867_v16 = vld [vmem:[#allocation2 + $0x58] sm:$0xf]  ;;  %v1870_v26 = vld [vmem:[#allocation2 + $0x64] sm:$0xf] }
  0x9a   : > { %1779 = vmatmul.bf16.gmra.mxu3 %v4337_v51  ;;  %v2026_v32 = vshll.u32 %v1867_v16, 16  ;;  %v2030_v34 = vshrl.u32 %v1867_v16, 16  ;;  %v1104_v51 = vshrl.u32 %v929_v35, 16  ;;  %v4373_v16 = vld [vmem:[%s5504_s4 + $0x180] sm:$0xff]  ;;  %v1125_v35 = vrot.slane %v1123_v2, 5 }
  0x9b   : > { %2693 = vmatpush.bf16.msra.mxu2 %v4373_v16  ;;  %v2050_v41 = vshll.u32 %v1870_v26, 16  ;;  %v2054_v42 = vshrl.u32 %v1870_v26, 16  ;;  %v1871_v61 = vld [vmem:[#allocation2 + $0x68] sm:$0x1]  ;;  %v1424_v16 = vsel %vm4938_vm13, %v3881_v48, %v1423_v53  ;;  %v1427_v11 = vsel %vm4938_vm13, %v1425_v62, %v1426_v63  ;;  %v2260_v2 = vld [vmem:[#allocation2 + $0x14] sm:$0x1] }
  0x9c   : > { %v2032_v59 = vrot.slane %v2030_v34, 4  ;;  %v1106_v3 = vrot.slane %v1104_v51, 4  ;;  %v1121_v34 = vrot.slane %v1120_v18, 4  ;;  %v2043_v51 = vrot.slane %v2041_v39, 4  ;;  %v2258_v18 = vld [vmem:[#allocation2 + $0xc] sm:$0xe] }
  0x9d   : > { %2189 = vmatmul.bf16.gmra.mxu0 %v2101_v58  ;;  %v2028_v58 = vrot.slane %v2026_v32, 5  ;;  %v1458_v32 = vunpack.c.l.b16 %v1420_v19  ;;  %v2052_v57 = vrot.slane %v2050_v41, 5  ;;  %v2056_v55 = vrot.slane %v2054_v42, 4  ;;  %v4340_v47 = vld [vmem:[#allocation2 + $0x60] sm:$0xff] }
  0x9e   : > { %1257 = vmatmul.bf16.gmra.mxu1 %v1165_v4  ;;  %v1109_v4 = vrot.slane %v1107_v49, 5  ;;  %v1126_v52 = vsel %vm4908_vm10, %v1121_v34, %v1125_v35  ;;  %v2060_v31 = vshll.u32 %v1871_v61, 16  ;;  %v1460_v34 = vunpack.c.l.b16 %v1427_v11  ;;  %v2262_v61 = vld [vmem:[#allocation2 + $0x1c] sm:$0xf] }
  0x9f   : > { %v2033_v9 = vor.u32 %v2032_v59, %v2028_v58  ;;  %v2029_v36 = vsel %vm4908_vm10, %v2024_v5, %v2028_v58  ;;  %v1467_v13 = vpack.c.b16 %v1458_v32, %v1457_v28  ;;  %v4339_v58 = vld [vmem:[#allocation2 + $0x54] sm:$0xff]  ;;  %v4058_v28 = vrot.slane %v2258_v18, 9  ;;  %v2263_v18 = vld [vmem:[#allocation2 + $0x20] sm:$0x1] }
  0xa0   : > { %v1110_v17 = vor.u32 %v1109_v4, %v1106_v3  ;;  %v2093_v45 = vunpack.c.l.b16 %v2029_v36  ;;  %v2259_v3 = vld [vmem:[#allocation2 + $0x10] sm:$0xf]  ;;  %v2311_v32 = vrot.slane %v2260_v2, 5 }
  0xa1   : > { %v2034_v22 = vrot.slane %v2033_v9, 4  ;;  %v2308_v12 = vrot.slane %v2259_v3, 5 }
  0xa2   : > { %v1111_v33 = vrot.slane %v1110_v17, 4 }
  0xa3   : > { %v2039_v38 = vsel %vm4908_vm10, %v2034_v22, %v2038_v24  ;;  %v2062_v22 = vrot.slane %v2060_v31, 5  ;;  %v2808_v24 = vshrl.u32 %v2783_v8, 16  ;;  %v2310_v26 = vrot.slane %v2308_v12, 4  ;;  %v3195_v31 = vld [vmem:[#allocation2 + $0x20] sm:$0x1] }
  0xa4   : > { %v2094_v1 = vunpack.c.l.b16 %v2039_v38  ;;  %v1116_v50 = vsel %vm4908_vm10, %v1111_v33, %v1115_v6  ;;  %v2057_v6 = vor.u32 %v2056_v55, %v2052_v57  ;;  %v1459_v33 = vunpack.c.l.b16 %v1424_v16  ;;  %v2787_v16 = vld [vmem:[#allocation2 + $0x28] sm:$0xf] }
  0xa5   : > { %v1158_v59 = vunpack.c.l.b16 %v1116_v50  ;;  %v2810_v39 = vrot.slane %v2808_v24, 4  ;;  %v2785_v50 = vld [vmem:[#allocation2 + $0x20] sm:$0x1] }
  0xa6   : > { %v2058_v5 = vrot.slane %v2057_v6, 4  ;;  %v3193_v6 = vld [vmem:[#allocation2 + $0x18] sm:$0xe] }
  0xa8   : > { %v2063_v38 = vsel %vm4908_vm10, %v2058_v5, %v2062_v22  ;;  %v4242_v22 = vrot.slane %v3193_v6, 9 }
  0xa9   : > { %1558 = vmatmul.bf16.gmra.mxu2 %v1466_v40  ;;  %v2044_v40 = vshll.u32 %v1869_v20, 16  ;;  %v2096_v53 = vunpack.c.l.b16 %v2063_v38 }
  0xaa   : > { %1784 = vmatmul.bf16.gmra.mxu3 %v4338_v43  ;;  %v2103_v43 = vpack.c.b16 %v2094_v1, %v2093_v45  ;;  %v2309_v45 = vsel %vm4938_vm13, %v4058_v28, %v2308_v12  ;;  %v2312_v1 = vsel %vm4938_vm13, %v2310_v26, %v2311_v32  ;;  %v2315_v12 = vrot.slane %v2262_v61, 5 }
  0xab   : > { %v5165_v14 = vpop.f32.mrf.mxu1  ;;  %v2046_v49 = vrot.slane %v2044_v40, 5  ;;  %v2813_v40 = vrot.slane %v2811_v27, 5  ;;  %v2379_v56 = vunpack.c.l.b16 %v2309_v45  ;;  %v3246_v27 = vrot.slane %v3195_v31, 5  ;;  %v3196_v31 = vld [vmem:[#allocation2 + $0x24] sm:$0xe] }
  0xac   : > { %v2841_v26 = vshll.u32 %v2787_v16, 16 }
  0xad   : > { %2194 = vmatmul.bf16.gmra.mxu0 %v2102_v60  ;;  %v1159_v60 = vunpack.c.l.b16 %v1126_v52  ;;  %v2047_v0 = vor.u32 %v2046_v49, %v2043_v51  ;;  %v1468_v52 = vpack.c.b16 %v1460_v34, %v1459_v33  ;;  %v2814_v49 = vor.u32 %v2813_v40, %v2810_v39 }
  0xae   : > { %1262 = vmatmul.bf16.gmra.mxu1 %v1166_v23  ;;  %v2784_v23 = vld [vmem:[#allocation2 + $0x1c] sm:$0xf]  ;;  %v2317_v33 = vrot.slane %v2315_v12, 4  ;;  %v2845_v34 = vshrl.u32 %v2787_v16, 16  ;;  %v2789_v16 = vld [vmem:[#allocation2 + $0x30] sm:$0xf] }
  0xaf   : > { %v1167_v7 = vpack.c.b16 %v1159_v60, %v1158_v59  ;;  %v2048_v17 = vrot.slane %v2047_v0, 4  ;;  %v2817_v20 = vshll.u32 %v2784_v23, 16  ;;  %v2821_v29 = vshrl.u32 %v2784_v23, 16  ;;  %v3194_v59 = vld [vmem:[#allocation2 + $0x1c] sm:$0xf] }
  0xb0   : > { %v2815_v48 = vrot.slane %v2814_v49, 4  ;;  %v3243_v62 = vrot.slane %v3194_v59, 5  ;;  %v2786_v23 = vld [vmem:[#allocation2 + $0x24] sm:$0xf]  ;;  %v2847_v49 = vrot.slane %v2845_v34, 4  ;;  %v2856_v34 = vshrl.u32 %v2789_v16, 16 }
  0xb1   : > { %v2053_v36 = vsel %vm4908_vm10, %v2048_v17, %v2052_v57  ;;  %v2819_v37 = vrot.slane %v2817_v20, 5  ;;  %v2823_v41 = vrot.slane %v2821_v29, 4  ;;  %v2380_v57 = vunpack.c.l.b16 %v2312_v1  ;;  %v2261_v17 = vld [vmem:[#allocation2 + $0x18] sm:$0xe] }
  0xb2   : > { %v3245_v24 = vrot.slane %v3243_v62, 4  ;;  %v2832_v29 = vshrl.u32 %v2786_v23, 16  ;;  %v2835_v28 = vshll.u32 %v2786_v23, 16  ;;  %v4059_v32 = vrot.slane %v2261_v17, 9 }
  0xb3   : > { %v5187_v46 = vpop.f32.mrf.mxu1  ;;  %v2824_v55 = vor.u32 %v2823_v41, %v2819_v37  ;;  %v2395_v63 = vpack.c.b16 %v2380_v57, %v2379_v56  ;;  %v2820_v5 = vsel %vm4908_vm10, %v2815_v48, %v2819_v37  ;;  %v3244_v38 = vsel %vm4938_vm13, %v4242_v22, %v3243_v62 }
  0xb4   : > { %v3247_v39 = vsel %vm4938_vm13, %v3245_v24, %v3246_v27  ;;  %v3016_v40 = vunpack.c.l.b16 %v2820_v5  ;;  %v2834_v41 = vrot.slane %v2832_v29, 4  ;;  %v2837_v45 = vrot.slane %v2835_v28, 5  ;;  %v2790_v5 = vld [vmem:[#allocation2 + $0x34] sm:$0xf] }
  0xb5   : > { %v2825_v0 = vrot.slane %v2824_v55, 4  ;;  %v3314_v56 = vunpack.c.l.b16 %v3244_v38  ;;  %v3315_v57 = vunpack.c.l.b16 %v3247_v39  ;;  %v4243_v29 = vrot.slane %v3196_v31, 9 }
  0xb6   : > { %v2838_v62 = vor.u32 %v2837_v45, %v2834_v41  ;;  %v2859_v38 = vshll.u32 %v2789_v16, 16  ;;  %v2865_v41 = vshll.u32 %v2790_v5, 16  ;;  %v2869_v45 = vshrl.u32 %v2790_v5, 16  ;;  %v4366_v16 = vld [vmem:[#allocation2 + $0x24] sm:$0xff] }
  0xb7   : > { %v3330_v6 = vpack.c.b16 %v3315_v57, %v3314_v56  ;;  %v2858_v56 = vrot.slane %v2856_v34, 4  ;;  %v2268_v34 = vld [vmem:[#allocation2 + $0x34] sm:$0xf] }
  0xb8   : > { %v2839_v17 = vrot.slane %v2838_v62, 4  ;;  %v2861_v57 = vrot.slane %v2859_v38, 5 }
  0xb9   : > { %1563 = vmatmul.bf16.gmra.mxu2 %v1467_v13  ;;  %v2095_v13 = vunpack.c.l.b16 %v2053_v36 }
  0xba   : > { %v5193_v4 = vpop.f32.mrf.mxu0  ;;  %1789 = vmatmul.bf16.gmra.mxu3 %v4339_v58  ;;  %v2827_v58 = vshll.u32 %v2785_v50, 16 }
  0xbb   : > { %v5197_v10 = vpop.f32.mrf.mxu1  ;;  %v2104_v60 = vpack.c.b16 %v2096_v53, %v2095_v13  ;;  %v2843_v53 = vrot.slane %v2841_v26, 5 }
  0xbc   : > { %v5195_v9 = vpop.f32.mrf.mxu2  ;;  %v2829_v3 = vrot.slane %v2827_v58, 5  ;;  %v2788_v58 = vld [vmem:[#allocation2 + $0x2c] sm:$0x1] }
  0xbd   : > { %2199 = vmatmul.bf16.gmra.mxu0 %v2103_v43  ;;  %v5203_v19 = vpop.f32.mrf.mxu3 }
  0xbe   : > { %1267 = vmatmul.bf16.gmra.mxu1 %v1167_v7  ;;  %v2830_v20 = vsel %vm4908_vm10, %v2825_v0, %v2829_v3  ;;  %v2848_v0 = vor.u32 %v2847_v49, %v2843_v53  ;;  %v2851_v3 = vshll.u32 %v2788_v58, 16 }
  0xbf   : > { %v3017_v37 = vunpack.c.l.b16 %v2830_v20 }
  0xc0   : > { %v2849_v27 = vrot.slane %v2848_v0, 4  ;;  %v2853_v20 = vrot.slane %v2851_v3, 5  ;;  %v2791_v0 = vld [vmem:[#allocation2 + $0x38] sm:$0x1] }
  0xc2   : > { %v5205_v35 = vpop.f32.mrf.mxu0 }
  0xc3   : > { %v5213_v44 = vpop.f32.mrf.mxu1 }
  0xc4   : > { %v5211_v42 = vpop.f32.mrf.mxu2 }
  0xc5   : > { %v5219_v51 = vpop.f32.mrf.mxu3 }
  0xc9   : > { %1568 = vmatmul.bf16.gmra.mxu2 %v1468_v52  ;;  %v2316_v52 = vsel %vm4938_vm13, %v4059_v32, %v2315_v12 }
  0xca   : > { %v5221_v43 = vpop.f32.mrf.mxu0  ;;  %1794 = vmatmul.bf16.gmra.mxu3 %v4340_v47  ;;  %v4365_v47 = vld [vmem:[#allocation2 + $0x18] sm:$0xff]  ;;  %v2381_v61 = vunpack.c.l.b16 %v2316_v52  ;;  %v2844_v52 = vsel %vm4908_vm10, %v2839_v17, %v2843_v53  ;;  %v2871_v53 = vrot.slane %v2869_v45, 4 }
  0xcb   : > { %v1233_v8 = vpop.f32.mrf.mxu1  ;;  %v3018_v62 = vunpack.c.l.b16 %v2844_v52  ;;  %v3201_v45 = vld [vmem:[#allocation2 + $0x38] sm:$0x1] }
  0xcc   : > { %v5223_v7 = vpop.f32.mrf.mxu2  ;;  %v1289_v11 = vadd.f32 %v1233_v8, %v5193_v4  ;;  %v2318_v4 = vrot.slane %v2263_v18, 5  ;;  %v2265_v8 = vld [vmem:[#allocation2 + $0x28] sm:$0xf]  ;;  %v3198_v18 = vld [vmem:[#allocation2 + $0x2c] sm:$0x1] }
  0xcd   : > { %2204 = vmatmul.bf16.gmra.mxu0 %v2104_v60  ;;  %v5226_v2 = vpop.f32.mrf.mxu3  ;;  %v3032_v60 = vpack.c.b16 %v3017_v37, %v3016_v40  ;;  %v2322_v28 = vrot.slane %v2265_v8, 5  ;;  %v3253_v37 = vrot.slane %v3198_v18, 5  ;;  %v2862_v18 = vor.u32 %v2861_v57, %v2858_v56  ;;  %v2267_v57 = vld [vmem:[#allocation2 + $0x30] sm:$0xe] }
  0xce   : > { %2467 = vmatmul.bf16.vlgmr.msra.gmra.mxu1 %v2395_v63  ;;  %v2319_v13 = vsel %vm4938_vm13, %v2317_v33, %v2318_v4  ;;  %v3197_v63 = vld [vmem:[#allocation2 + $0x28] sm:$0xf]  ;;  %v2264_v33 = vld [vmem:[#allocation2 + $0x24] sm:$0xe]  ;;  %v2266_v4 = vld [vmem:[#allocation2 + $0x2c] sm:$0x1] }
  0xcf   : > { %v2382_v48 = vunpack.c.l.b16 %v2319_v13  ;;  %v3250_v23 = vrot.slane %v3197_v63, 5  ;;  %v4060_v13 = vrot.slane %v2264_v33, 9  ;;  %v2325_v49 = vrot.slane %v2266_v4, 5  ;;  %v3200_v33 = vld [vmem:[#allocation2 + $0x34] sm:$0xf] }
  0xd0   : > { %v2863_v4 = vrot.slane %v2862_v18, 4 }
  0xd1   : > { %v3252_v40 = vrot.slane %v3250_v23, 4  ;;  %v2323_v8 = vsel %vm4938_vm13, %v4060_v13, %v2322_v28  ;;  %v2792_v13 = vld [vmem:[#allocation2 + $0x3c] sm:$0xf] }
  0xd2   : > { %v5232_v36 = vpop.f32.mrf.mxu0 }
  0xd3   : > { %v1235_v50 = vpop.f32.mrf.mxu1 }
  0xd4   : > { %v5238_v1 = vpop.f32.mrf.mxu2  ;;  %v5245_v55 = vadd.f32 %v1235_v50, %v5205_v35  ;;  %v2396_v35 = vpack.c.b16 %v2382_v48, %v2381_v61  ;;  %v3254_v61 = vsel %vm4938_vm13, %v3252_v40, %v3253_v37  ;;  %v5262_v48 = vrot.slane %v2865_v41, 5  ;;  %v3199_v41 = vld [vmem:[#allocation2 + $0x30] sm:$0xe] }
  0xd5   : > { %v5247_v59 = vpop.f32.mrf.mxu3 }
  0xd6   : > { %v2868_v56 = vsel %vm4908_vm10, %v2863_v4, %v5262_v48 }
  0xd9   : > { %2694 = vmatmul.bf16.vlgmr.msra.gmra.mxu2 %v4365_v47  ;;  %v3251_v47 = vsel %vm4938_vm13, %v4243_v29, %v3250_v23  ;;  %v2383_v29 = vunpack.c.l.b16 %v2323_v8 }
  0xda   : > { %v2170_v12 = vpop.f32.mrf.mxu0  ;;  %3104 = vmatmul.bf16.vlgmr.msra.gmra.mxu3 %v3032_v60 }
  0xdb   : > { %v1238_v24 = vpop.f32.mrf.mxu1 }
  0xdc   : > { %v1534_v22 = vpop.f32.mrf.mxu2  ;;  %v5250_v32 = vadd.f32 %v1238_v24, %v5221_v43  ;;  %v2324_v43 = vrot.slane %v2322_v28, 4  ;;  %v2875_v24 = vshll.u32 %v2791_v0, 16  ;;  %v3260_v0 = vrot.slane %v3201_v45, 5 }
  0xdd   : > { %3402 = vmatmul.bf16.vlgmr.msra.gmra.mxu0 %v3330_v6  ;;  %v1590_v26 = vadd.f32 %v1534_v22, %v1289_v11  ;;  %v1760_v39 = vpop.f32.mrf.mxu3  ;;  %v2854_v11 = vsel %vm4908_vm10, %v2849_v27, %v2853_v20  ;;  %v3316_v6 = vunpack.c.l.b16 %v3251_v47  ;;  %v2872_v22 = vor.u32 %v2871_v53, %v5262_v48 }
  0xde   : > { %2472 = vmatmul.bf16.gmra.mxu1 %v2396_v35  ;;  %v3019_v63 = vunpack.c.l.b16 %v2854_v11  ;;  %v3317_v35 = vunpack.c.l.b16 %v3254_v61  ;;  %v2877_v40 = vrot.slane %v2875_v24, 5  ;;  %v2329_v11 = vrot.slane %v2268_v34, 5 }
  0xdf   : > { %v1816_v50 = vadd.f32 %v1760_v39, %v1590_v26  ;;  %v2873_v39 = vrot.slane %v2872_v22, 4 }
  0xe0   : > { %v3033_v20 = vpack.c.b16 %v3019_v63, %v3018_v62  ;;  %v3331_v28 = vpack.c.b16 %v3317_v35, %v3316_v6  ;;  %v4244_v62 = vrot.slane %v3199_v41, 9  ;;  %v2880_v6 = vshrl.u32 %v2792_v13, 16 }
  0xe1   : > { %v5258_v58 = vadd.f32 %v2170_v12, %v1816_v50  ;;  %v2326_v12 = vsel %vm4938_vm13, %v2324_v43, %v2325_v49  ;;  %v2793_v43 = vld [vmem:[#allocation2 + $0x40] sm:$0xf]  ;;  %v2878_v53 = vsel %vm4908_vm10, %v2873_v39, %v2877_v40  ;;  %v2331_v8 = vrot.slane %v2329_v11, 4 }
  0xe2   : > { %v2172_v60 = vpop.f32.mrf.mxu0  ;;  %v2384_v26 = vunpack.c.l.b16 %v2326_v12  ;;  %v3020_v35 = vunpack.c.l.b16 %v2868_v56  ;;  %v3021_v18 = vunpack.c.l.b16 %v2878_v53  ;;  %v2882_v24 = vrot.slane %v2880_v6, 4  ;;  %v2796_v6 = vld [vmem:[#allocation2 + $0x4c] sm:$0xf] }
  0xe3   : > { %v1240_v31 = vpop.f32.mrf.mxu1 }
  0xe4   : > { %v1536_v3 = vpop.f32.mrf.mxu2  ;;  %v1292_v17 = vadd.f32 %v1240_v31, %v5232_v36  ;;  %v3257_v36 = vrot.slane %v3200_v33, 5  ;;  %v2397_v37 = vpack.c.b16 %v2384_v26, %v2383_v29  ;;  %v2889_v31 = vshll.u32 %v2793_v43, 16 }
  0xe5   : > { %v1591_v23 = vadd.f32 %v1536_v3, %v5245_v55  ;;  %v1762_v5 = vpop.f32.mrf.mxu3  ;;  %v3034_v45 = vpack.c.b16 %v3021_v18, %v3020_v35  ;;  %v2270_v18 = vld [vmem:[#allocation2 + $0x3c] sm:$0xe] }
  0xe6   : > { %v3259_v63 = vrot.slane %v3257_v36, 4 }
  0xe7   : > { %v1817_v27 = vadd.f32 %v1762_v5, %v1591_v23  ;;  %v2893_v23 = vshrl.u32 %v2793_v43, 16  ;;  %v3258_v5 = vsel %vm4938_vm13, %v4244_v62, %v3257_v36  ;;  %v3203_v43 = vld [vmem:[#allocation2 + $0x40] sm:$0xf]  ;;  %v2795_v62 = vld [vmem:[#allocation2 + $0x48] sm:$0xf] }
  0xe8   : > { %v3261_v22 = vsel %vm4938_vm13, %v3259_v63, %v3260_v0  ;;  %v3318_v39 = vunpack.c.l.b16 %v3258_v5  ;;  %v3264_v53 = vrot.slane %v3203_v43, 5  ;;  %v2272_v5 = vld [vmem:[#allocation2 + $0x44] sm:$0x1] }
  0xe9   : > { %2699 = vmatmul.bf16.gmra.mxu2 %v4366_v16  ;;  %v5271_v38 = vadd.f32 %v2172_v60, %v1817_v27  ;;  %v2269_v60 = vld [vmem:[#allocation2 + $0x38] sm:$0x1]  ;;  %v2895_v4 = vrot.slane %v2893_v23, 4  ;;  %v3319_v40 = vunpack.c.l.b16 %v3261_v22  ;;  %v2904_v22 = vshrl.u32 %v2795_v62, 16 }
  0xea   : > { %v2175_v55 = vpop.f32.mrf.mxu0  ;;  %3109 = vmatmul.bf16.gmra.mxu3 %v3033_v20  ;;  %v2332_v12 = vrot.slane %v2269_v60, 5  ;;  %v2271_v60 = vld [vmem:[#allocation2 + $0x40] sm:$0xf] }
  0xeb   : > { %v1243_v52 = vpop.f32.mrf.mxu1  ;;  %v2336_v23 = vrot.slane %v2271_v60, 5 }
  0xec   : > { %v1539_v50 = vpop.f32.mrf.mxu2  ;;  %v5275_v47 = vadd.f32 %v1243_v52, %v5165_v14  ;;  %v4061_v14 = vrot.slane %v2267_v57, 9  ;;  %v2333_v33 = vsel %vm4938_vm13, %v2331_v8, %v2332_v12  ;;  %v3332_v57 = vpack.c.b16 %v3319_v40, %v3318_v39 }
  0xed   : > { %3407 = vmatmul.bf16.gmra.mxu0 %v3331_v28  ;;  %v1592_v49 = vadd.f32 %v1539_v50, %v5250_v32  ;;  %v1765_v61 = vpop.f32.mrf.mxu3  ;;  %v2883_v32 = vshll.u32 %v2792_v13, 16  ;;  %v5292_v28 = vrot.slane %v2889_v31, 5  ;;  %v2386_v13 = vunpack.c.l.b16 %v2333_v33 }
  0xee   : > { %2477 = vmatmul.bf16.gmra.mxu1 %v2397_v37  ;;  %v2330_v26 = vsel %vm4938_vm13, %v4061_v14, %v2329_v11  ;;  %v2794_v37 = vld [vmem:[#allocation2 + $0x44] sm:$0x1]  ;;  %v2917_v33 = vshrl.u32 %v2796_v6, 16  ;;  %v2339_v39 = vrot.slane %v2272_v5, 5  ;;  %v2798_v5 = vld [vmem:[#allocation2 + $0x54] sm:$0xf] }
  0xef   : > { %v1818_v3 = vadd.f32 %v1765_v61, %v1592_v49  ;;  %v2885_v27 = vrot.slane %v2883_v32, 5  ;;  %v2385_v52 = vunpack.c.l.b16 %v2330_v26  ;;  %v2896_v49 = vor.u32 %v2895_v4, %v5292_v28 }
  0xf0   : > { %v2899_v56 = vshll.u32 %v2794_v37, 16  ;;  %v2913_v26 = vshll.u32 %v2796_v6, 16  ;;  %v2906_v37 = vrot.slane %v2904_v22, 4 }
  0xf1   : > { %v5282_v16 = vadd.f32 %v2175_v55, %v1818_v3  ;;  %v4367_v55 = vld [vmem:[#allocation2 + $0x30] sm:$0xff]  ;;  %v2886_v11 = vor.u32 %v2885_v27, %v2882_v24  ;;  %v2398_v63 = vpack.c.b16 %v2386_v13, %v2385_v52  ;;  %v3204_v3 = vld [vmem:[#allocation2 + $0x44] sm:$0x1]  ;;  %v2897_v14 = vrot.slane %v2896_v49, 4 }
  0xf2   : > { %v2177_v48 = vpop.f32.mrf.mxu0  ;;  %v2901_v8 = vrot.slane %v2899_v56, 5  ;;  %v2907_v24 = vshll.u32 %v2795_v62, 16  ;;  %v5316_v13 = vrot.slane %v2913_v26, 5  ;;  %v2797_v49 = vld [vmem:[#allocation2 + $0x50] sm:$0x1]  ;;  %v4368_v62 = vld [vmem:[#allocation2 + $0x3c] sm:$0xff] }
  0xf3   : > { %v1245_v29 = vpop.f32.mrf.mxu1  ;;  %v2887_v0 = vrot.slane %v2886_v11, 4  ;;  %v3205_v26 = vld [vmem:[#allocation2 + $0x48] sm:$0xe] }
  0xf4   : > { %v1541_v20 = vpop.f32.mrf.mxu2  ;;  %v5295_v36 = vadd.f32 %v1245_v29, %v5187_v46  ;;  %v3267_v29 = vrot.slane %v3204_v3, 5 }
  0xf5   : > { %v1593_v34 = vadd.f32 %v1541_v20, %v1292_v17  ;;  %v1767_v41 = vpop.f32.mrf.mxu3  ;;  %v3202_v17 = vld [vmem:[#allocation2 + $0x3c] sm:$0xe]  ;;  %v3266_v20 = vrot.slane %v3264_v53, 4 }
  0xf6   : > { %v4245_v12 = vrot.slane %v3202_v17, 9 }
  0xf7   : > { %v1819_v50 = vadd.f32 %v1767_v41, %v1593_v34  ;;  %v2892_v34 = vsel %vm4908_vm10, %v2887_v0, %v5292_v28  ;;  %v2909_v41 = vrot.slane %v2907_v24, 5  ;;  %v3268_v52 = vsel %vm4938_vm13, %v3266_v20, %v3267_v29 }
  0xf8   : > { %v3265_v40 = vsel %vm4938_vm13, %v4245_v12, %v3264_v53  ;;  %v2919_v28 = vrot.slane %v2917_v33, 4  ;;  %v3022_v11 = vunpack.c.l.b16 %v2892_v34  ;;  %v3207_v34 = vld [vmem:[#allocation2 + $0x50] sm:$0x1] }
  0xf9   : > { %2704 = vmatmul.bf16.gmra.mxu2 %v4367_v55  ;;  %v5298_v61 = vadd.f32 %v2177_v48, %v1819_v50  ;;  %v2338_v55 = vrot.slane %v2336_v23, 4  ;;  %v2910_v3 = vor.u32 %v2909_v41, %v2906_v37  ;;  %v2275_v37 = vld [vmem:[#allocation2 + $0x50] sm:$0x1]  ;;  %v2931_v41 = vshll.u32 %v2798_v5, 16 }
  0xfa   : > { %v2180_v46 = vpop.f32.mrf.mxu0  ;;  %3114 = vmatmul.bf16.gmra.mxu3 %v3034_v45 }
  0xfb   : > { %v1248_v31 = vpop.f32.mrf.mxu1  ;;  %v2911_v22 = vrot.slane %v2910_v3, 4  ;;  %v2346_v3 = vrot.slane %v2275_v37, 5 }
  0xfc   : > { %v1544_v32 = vpop.f32.mrf.mxu2  ;;  %v5303_v48 = vadd.f32 %v1248_v31, %v5197_v10  ;;  %v4062_v10 = vrot.slane %v2270_v18, 9  ;;  %v2923_v31 = vshll.u32 %v2797_v49, 16  ;;  %v2274_v18 = vld [vmem:[#allocation2 + $0x4c] sm:$0xf]  ;;  %v4246_v49 = vrot.slane %v3205_v26, 9 }
  0xfd   : > { %3412 = vmatmul.bf16.gmra.mxu0 %v3332_v57  ;;  %v1594_v35 = vadd.f32 %v1544_v32, %v5275_v47  ;;  %v1770_v27 = vpop.f32.mrf.mxu3  ;;  %v2902_v47 = vsel %vm4908_vm10, %v2897_v14, %v2901_v8  ;;  %v3320_v57 = vunpack.c.l.b16 %v3265_v40  ;;  %v2920_v32 = vor.u32 %v2919_v28, %v5316_v13  ;;  %v4470_v28 = vld [vmem:[%s4704_s11 + $0x10] sm:%s5329_s20] }
  0xfe   : > { %2482 = vmatmul.bf16.gmra.mxu1 %v2398_v63  ;;  %v3023_v43 = vunpack.c.l.b16 %v2902_v47  ;;  %v2337_v60 = vsel %vm4938_vm13, %v4062_v10, %v2336_v23  ;;  %v3321_v63 = vunpack.c.l.b16 %v3268_v52  ;;  %v2925_v29 = vrot.slane %v2923_v31, 5  ;;  %v2273_v47 = vld [vmem:[#allocation2 + $0x48] sm:$0xe] }
  0xff   : > { %v1820_v4 = vadd.f32 %v1770_v27, %v1594_v35  ;;  %v2387_v12 = vunpack.c.l.b16 %v2337_v60  ;;  %v3206_v35 = vld [vmem:[#allocation2 + $0x4c] sm:$0xf]  ;;  %v2921_v20 = vrot.slane %v2920_v32, 4  ;;  %v2343_v10 = vrot.slane %v2274_v18, 5  ;;  %v4473_v18 = vld [vmem:[%s4704_s11 + $0x18] sm:%s5329_s20] }
 0x100   : > { %v3035_v8 = vpack.c.b16 %v3023_v43, %v3022_v11  ;;  %v3271_v33 = vrot.slane %v3206_v35, 5  ;;  %v2916_v43 = vsel %vm4908_vm10, %v2911_v22, %v5316_v13  ;;  %v2933_v32 = vrot.slane %v2931_v41, 5 }
 0x101   : > { %v5312_v45 = vadd.f32 %v2180_v46, %v1820_v4  ;;  %v2340_v46 = vsel %vm4938_vm13, %v2338_v55, %v2339_v39  ;;  %v2928_v55 = vshrl.u32 %v2798_v5, 16  ;;  %v3024_v22 = vunpack.c.l.b16 %v2916_v43 }
 0x102   : > { %v2182_v50 = vpop.f32.mrf.mxu0  ;;  %v2388_v23 = vunpack.c.l.b16 %v2340_v46  ;;  %v3273_v60 = vrot.slane %v3271_v33, 4  ;;  %v3274_v46 = vrot.slane %v3207_v34, 5  ;;  %v437_v41 = vpack.c.bf16 %v4473_v18, %v4473_v18  ;;  %v2802_v18 = vld [vmem:[#allocation2 + $0x64] sm:$0xf] }
 0x103   : > { %v1250_v17 = vpop.f32.mrf.mxu1 }
 0x104   : > { %v1546_v56 = vpop.f32.mrf.mxu2  ;;  %v5324_v0 = vadd.f32 %v1250_v17, %v5213_v44  ;;  %v2799_v44 = vld [vmem:[#allocation2 + $0x58] sm:$0xf]  ;;  %v2399_v4 = vpack.c.b16 %v2388_v23, %v2387_v12  ;;  %v2926_v17 = vsel %vm4908_vm10, %v2921_v20, %v2925_v29  ;;  %v3272_v23 = vsel %vm4938_vm13, %v4246_v49, %v3271_v33  ;;  %v3208_v49 = vld [vmem:[#allocation2 + $0x54] sm:$0xe] }
 0x105   : > { %v1595_v53 = vadd.f32 %v1546_v56, %v5295_v36  ;;  %v1772_v6 = vpop.f32.mrf.mxu3  ;;  %v3333_v36 = vpack.c.b16 %v3321_v63, %v3320_v57  ;;  %v2941_v52 = vshrl.u32 %v2799_v44, 16  ;;  %v436_v56 = vpack.c.bf16 %v4470_v28, %v4470_v28 }
 0x106   : > { %v2345_v63 = vrot.slane %v2343_v10, 4  ;;  %v3275_v35 = vsel %vm4938_vm13, %v3273_v60, %v3274_v46 }
 0x107   : > { %v1821_v14 = vadd.f32 %v1772_v6, %v1595_v53  ;;  %v4063_v53 = vrot.slane %v2273_v47, 9  ;;  %v2930_v6 = vrot.slane %v2928_v55, 4  ;;  %v2943_v13 = vrot.slane %v2941_v52, 4  ;;  %v4369_v55 = vld [vmem:[#allocation2 + $0x48] sm:$0xff] }
 0x108   : > { %v3323_v37 = vunpack.c.l.b16 %v3275_v35 }
 0x109   : > { %2709 = vmatmul.bf16.gmra.mxu2 %v4368_v62  ;;  %v5331_v24 = vadd.f32 %v2182_v50, %v1821_v14  ;;  %v2937_v50 = vshll.u32 %v2799_v44, 16  ;;  %v2800_v14 = vld [vmem:[#allocation2 + $0x5c] sm:$0x1]  ;;  %v3025_v44 = vunpack.c.l.b16 %v2926_v17  ;;  %v2344_v20 = vsel %vm4938_vm13, %v4063_v53, %v2343_v10 }
 0x10a   : > { %v2185_v27 = vpop.f32.mrf.mxu0  ;;  %3119 = vmatmul.bf16.gmra.mxu3 %v3035_v8  ;;  %v2947_v34 = vshll.u32 %v2800_v14, 16  ;;  %v2389_v52 = vunpack.c.l.b16 %v2344_v20  ;;  %v3210_v53 = vld [vmem:[#allocation2 + $0x5c] sm:$0x1] }
 0x10b   : > { %v5333_v40 = vpop.f32.mrf.mxu1  ;;  %v5343_v31 = vrot.slane %v2937_v50, 5  ;;  %v3036_v43 = vpack.c.b16 %v3025_v44, %v3024_v22 }
 0x10c   : > { %v1549_v39 = vpop.f32.mrf.mxu2  ;;  %v2949_v46 = vrot.slane %v2947_v34, 5  ;;  %v1297_v35 = vadd.f32 %v5333_v40, %v5195_v9  ;;  %v463_v40 = vld [vmem:[#allocation2 + $0x74] sm:$0x1] }
 0x10d   : > { %3417 = vmatmul.bf16.gmra.mxu0 %v3333_v36  ;;  %v1596_v11 = vadd.f32 %v1549_v39, %v5303_v48  ;;  %v1775_v57 = vpop.f32.mrf.mxu3  ;;  %v439_v48 = vshrl.u32 %v436_v56, 16  ;;  %v442_v36 = vshll.u32 %v436_v56, 16  ;;  %v2944_v33 = vor.u32 %v2943_v13, %v5343_v31  ;;  %v3209_v56 = vld [vmem:[#allocation2 + $0x58] sm:$0xf] }
 0x10e   : > { %2487 = vmatmul.bf16.gmra.mxu1 %v2399_v4  ;;  %v2934_v4 = vor.u32 %v2933_v32, %v2930_v6  ;;  %v3322_v39 = vunpack.c.l.b16 %v3272_v23  ;;  %v4247_v13 = vrot.slane %v3208_v49, 9  ;;  %v3278_v14 = vrot.slane %v3209_v56, 5 }
 0x10f   : > { %v1822_v62 = vadd.f32 %v1775_v57, %v1596_v11  ;;  %v5353_v5 = vrot.slane %v439_v48, 7  ;;  %v459_v57 = vld [vmem:[#allocation2 + $0x6c] sm:$0xf]  ;;  %v2945_v60 = vrot.slane %v2944_v33, 4  ;;  %v450_v48 = vshll.u32 %v437_v41, 16 }
 0x110   : > { %v2935_v17 = vrot.slane %v2934_v4, 4 }
 0x111   : > { %v5345_v8 = vadd.f32 %v2185_v27, %v1822_v62  ;;  %v2347_v27 = vsel %vm4938_vm13, %v2345_v63, %v2346_v3  ;;  %v444_v10 = vor.u32 %v442_v36, %v5353_v5  ;;  %v2277_v62 = vld [vmem:[#allocation2 + $0x58] sm:$0xf]  ;;  %v2801_v63 = vld [vmem:[#allocation2 + $0x60] sm:$0xf]  ;;  %v447_v3 = vshrl.u32 %v437_v41, 16 }
 0x112   : > { %v2187_v12 = vpop.f32.mrf.mxu0  ;;  %v2390_v28 = vunpack.c.l.b16 %v2347_v27  ;;  %v445_v36 = vrot.slane %v5353_v5, 4  ;;  %v2350_v4 = vrot.slane %v2277_v62, 5  ;;  %v2952_v33 = vshrl.u32 %v2801_v63, 16 }
 0x113   : > { %v5359_v26 = vpop.f32.mrf.mxu1  ;;  %v460_v23 = vsel %vm4663_vm5, %v444_v10, %v459_v57  ;;  %v449_v22 = vrot.slane %v447_v3, 7  ;;  %v2955_v34 = vshll.u32 %v2801_v63, 16  ;;  %v2961_v5 = vshll.u32 %v2802_v18, 16  ;;  %v2803_v3 = vld [vmem:[#allocation2 + $0x68] sm:$0x1] }
 0x114   : > { %v1551_v29 = vpop.f32.mrf.mxu2  ;;  %v2400_v32 = vpack.c.b16 %v2390_v28, %v2389_v52  ;;  %461 = vst [vmem:[#allocation2 + $0x6c] sm:$0xf] %v460_v23  ;;  %v2965_v41 = vshrl.u32 %v2802_v18, 16  ;;  %v2940_v52 = vsel %vm4908_vm10, %v2935_v17, %v5343_v31  ;;  %v2950_v28 = vsel %vm4908_vm10, %v2945_v60, %v2949_v46  ;;  %v4370_v23 = vld [vmem:[#allocation2 + $0x54] sm:$0xff] }
 0x115   : > { %v1597_v47 = vadd.f32 %v1551_v29, %v5324_v0  ;;  %v1777_v50 = vpop.f32.mrf.mxu3  ;;  %v3334_v0 = vpack.c.b16 %v3323_v37, %v3322_v39  ;;  %v3281_v29 = vrot.slane %v3210_v53, 5  ;;  %v452_v9 = vor.u32 %v450_v48, %v449_v22 }
 0x116   : > { %v3280_v37 = vrot.slane %v3278_v14, 4  ;;  %v2954_v57 = vrot.slane %v2952_v33, 4  ;;  %v2957_v53 = vrot.slane %v2955_v34, 5  ;;  %v3279_v17 = vsel %vm4938_vm13, %v4247_v13, %v3278_v14 }
 0x117   : > { %v1823_v11 = vadd.f32 %v1777_v50, %v1597_v47  ;;  %v2276_v47 = vld [vmem:[#allocation2 + $0x54] sm:$0xe]  ;;  %v454_v50 = vrot.slane %v449_v22, 4  ;;  %v453_v10 = vsel %vm4651_vm4, %v445_v36, %v452_v9  ;;  %v5389_v60 = vrot.slane %v2961_v5, 5 }
 0x118   : > { %462 = vst.msk [vmem:[#allocation2 + $0x70] sm:$0xf] %vm423_vm2, %v453_v10  ;;  %v3282_v21 = vsel %vm4938_vm13, %v3280_v37, %v3281_v29  ;;  %v2967_v46 = vrot.slane %v2965_v41, 4  ;;  %v1298_v62 = vadd.f32 %v5359_v26, %v5211_v42  ;;  %v3026_v30 = vunpack.c.l.b16 %v2940_v52  ;;  %v2279_v10 = vld [vmem:[#allocation2 + $0x60] sm:$0xe] }
 0x119   : > { %2714 = vmatmul.bf16.gmra.mxu2 %v4369_v55  ;;  %v5369_v44 = vadd.f32 %v2187_v12, %v1823_v11  ;;  %v2278_v55 = vld [vmem:[#allocation2 + $0x5c] sm:$0x1]  ;;  %v4064_v11 = vrot.slane %v2276_v47, 9  ;;  %v464_v56 = vsel %vm4843_vm7, %v454_v50, %v463_v40  ;;  %v3027_v63 = vunpack.c.l.b16 %v2950_v28  ;;  %v3211_v50 = vld [vmem:[#allocation2 + $0x60] sm:$0xe] }
 0x11a   : > { %v2190_v6 = vpop.f32.mrf.mxu0  ;;  %3124 = vmatmul.bf16.gmra.mxu3 %v3036_v43  ;;  %v2352_v43 = vrot.slane %v2350_v4, 4  ;;  %v2353_v49 = vrot.slane %v2278_v55, 5  ;;  %465 = vst [vmem:[#allocation2 + $0x74] sm:$0x1] %v464_v56  ;;  %v3325_v18 = vunpack.c.l.b16 %v3282_v21  ;;  %v2958_v36 = vor.u32 %v2957_v53, %v2954_v57  ;;  %v2280_v55 = vld [vmem:[#allocation2 + $0x64] sm:$0xf] }
 0x11b   : > { %v5371_v27 = vpop.f32.mrf.mxu1  ;;  %v2971_v42 = vshll.u32 %v2803_v3, 16  ;;  %v3037_v29 = vpack.c.b16 %v3027_v63, %v3026_v30  ;;  %v2281_v53 = vld [vmem:[#allocation2 + $0x68] sm:$0x1]  ;;  %v4248_v21 = vrot.slane %v3211_v50, 9  ;;  %v4065_v63 = vrot.slane %v2279_v10, 9 }
 0x11c   : > { %v1554_v20 = vpop.f32.mrf.mxu2  ;;  %v2354_v13 = vsel %vm4938_vm13, %v2352_v43, %v2353_v49  ;;  %v1299_v5 = vadd.f32 %v5371_v27, %v5223_v7  ;;  %v2804_v43 = vld [vmem:[#allocation2 + $0x6c] sm:$0xf] }
 0x11d   : > { %3422 = vmatmul.bf16.gmra.mxu0 %v3334_v0  ;;  %v1598_v25 = vadd.f32 %v1554_v20, %v1297_v35  ;;  %v1780_v39 = vpop.f32.mrf.mxu3  ;;  %v3324_v35 = vunpack.c.l.b16 %v3279_v17  ;;  %v2968_v20 = vor.u32 %v2967_v46, %v5389_v60  ;;  %v2392_v34 = vunpack.c.l.b16 %v2354_v13 }
 0x11e   : > { %2492 = vmatmul.bf16.gmra.mxu1 %v2400_v32  ;;  %v2979_v3 = vshll.u32 %v2804_v43, 16 }
 0x11f   : > { %v1824_v12 = vadd.f32 %v1780_v39, %v1598_v25  ;;  %v3212_v25 = vld [vmem:[#allocation2 + $0x64] sm:$0xf]  ;;  %v3335_v47 = vpack.c.b16 %v3325_v18, %v3324_v35  ;;  %v2969_v40 = vrot.slane %v2968_v20, 4  ;;  %v2973_v39 = vrot.slane %v2971_v42, 5  ;;  %v2805_v17 = vld [vmem:[#allocation2 + $0x70] sm:$0xf] }
 0x120   : > { %v3285_v37 = vrot.slane %v3212_v25, 5  ;;  %v2985_v13 = vshll.u32 %v2805_v17, 16 }
 0x121   : > { %v5383_v0 = vadd.f32 %v2190_v6, %v1824_v12  ;;  %v2351_v6 = vsel %vm4938_vm13, %v4064_v11, %v2350_v4  ;;  %v2959_v4 = vrot.slane %v2958_v36, 4  ;;  %v3213_v12 = vld [vmem:[#allocation2 + $0x68] sm:$0x1]  ;;  %v2357_v11 = vrot.slane %v2280_v55, 5 }
 0x122   : > { %v2192_v31 = vpop.f32.mrf.mxu0  ;;  %v2391_v33 = vunpack.c.l.b16 %v2351_v6  ;;  %v2974_v27 = vsel %vm4908_vm10, %v2969_v40, %v2973_v39  ;;  %v3287_v46 = vrot.slane %v3285_v37, 4  ;;  %v2360_v6 = vrot.slane %v2281_v53, 5 }
 0x123   : > { %v1260_v32 = vpop.f32.mrf.mxu1  ;;  %v2964_v57 = vsel %vm4908_vm10, %v2959_v4, %v5389_v60  ;;  %v3286_v18 = vsel %vm4938_vm13, %v4248_v21, %v3285_v37  ;;  %v3029_v20 = vunpack.c.l.b16 %v2974_v27  ;;  %v2806_v37 = vld [vmem:[#allocation2 + $0x74] sm:$0x1]  ;;  %v3214_v27 = vld [vmem:[#allocation2 + $0x6c] sm:$0xe] }
 0x124   : > { %v1556_v48 = vpop.f32.mrf.mxu2  ;;  %v2401_v41 = vpack.c.b16 %v2392_v34, %v2391_v33  ;;  %v3028_v35 = vunpack.c.l.b16 %v2964_v57  ;;  %v2358_v34 = vsel %vm4938_vm13, %v4065_v63, %v2357_v11  ;;  %v3326_v40 = vunpack.c.l.b16 %v3286_v18  ;;  %v3216_v21 = vld [vmem:[#allocation2 + $0x74] sm:$0x1] }
 0x125   : > { %v1599_v14 = vadd.f32 %v1556_v48, %v1298_v62  ;;  %v1782_v22 = vpop.f32.mrf.mxu3  ;;  %v3288_v62 = vrot.slane %v3213_v12, 5  ;;  %v2359_v48 = vrot.slane %v2357_v11, 4  ;;  %v3215_v12 = vld [vmem:[#allocation2 + $0x70] sm:$0xf] }
 0x126   : > { %v3292_v53 = vrot.slane %v3215_v12, 5 }
 0x127   : > { %v1825_v26 = vadd.f32 %v1782_v22, %v1599_v14  ;;  %v2989_v14 = vshrl.u32 %v2805_v17, 16  ;;  %v3289_v36 = vsel %vm4938_vm13, %v3287_v46, %v3288_v62  ;;  %v1300_v22 = vadd.f32 %v1260_v32, %v5238_v1 }
 0x128   : > { %v2361_v25 = vsel %vm4938_vm13, %v2359_v48, %v2360_v6  ;;  %v3327_v39 = vunpack.c.l.b16 %v3289_v36  ;;  %v3038_v32 = vpack.c.b16 %v3029_v20, %v3028_v35  ;;  %v4249_v6 = vrot.slane %v3214_v27, 9 }
 0x129   : > { %2719 = vmatmul.bf16.gmra.mxu2 %v4370_v23  ;;  %v5400_v49 = vadd.f32 %v2192_v31, %v1825_v26  ;;  %v2976_v31 = vshrl.u32 %v2804_v43, 16  ;;  %v2981_v26 = vrot.slane %v2979_v3, 5  ;;  %v2991_v4 = vrot.slane %v2989_v14, 4 }
 0x12a   : > { %v2195_v9 = vpop.f32.mrf.mxu0  ;;  %3129 = vmatmul.bf16.gmra.mxu3 %v3037_v29  ;;  %v2394_v50 = vunpack.c.l.b16 %v2361_v25  ;;  %v2995_v43 = vshll.u32 %v2806_v37, 16  ;;  %v3336_v11 = vpack.c.b16 %v3327_v39, %v3326_v40  ;;  %v3295_v14 = vrot.slane %v3216_v21, 5 }
 0x12b   : > { %v1263_v28 = vpop.f32.mrf.mxu1  ;;  %v2978_v42 = vrot.slane %v2976_v31, 4  ;;  %v3293_v36 = vsel %vm4938_vm13, %v4249_v6, %v3292_v53 }
 0x12c   : > { %v1559_v52 = vpop.f32.mrf.mxu2  ;;  %v1301_v17 = vadd.f32 %v1263_v28, %v5203_v19  ;;  %v2997_v31 = vrot.slane %v2995_v43, 5 }
 0x12d   : > { %3427 = vmatmul.bf16.gmra.mxu0 %v3335_v47  ;;  %v1600_v56 = vadd.f32 %v1559_v52, %v1299_v5  ;;  %v1785_v7 = vpop.f32.mrf.mxu3  ;;  %v2987_v47 = vrot.slane %v2985_v13, 5  ;;  %v2982_v52 = vor.u32 %v2981_v26, %v2978_v42  ;;  %v3294_v13 = vrot.slane %v3292_v53, 4 }
 0x12e   : > { %2497 = vmatmul.bf16.gmra.mxu1 %v2401_v41  ;;  %v2393_v41 = vunpack.c.l.b16 %v2358_v34 }
 0x12f   : > { %v1826_v30 = vadd.f32 %v1785_v7, %v1600_v56  ;;  %v2992_v10 = vor.u32 %v2991_v4, %v2987_v47  ;;  %v3328_v4 = vunpack.c.l.b16 %v3293_v36 }
 0x130   : > { %v2402_v7 = vpack.c.b16 %v2394_v50, %v2393_v41 }
 0x131   : > { %v5407_v23 = vadd.f32 %v2195_v9, %v1826_v30  ;;  %v4371_v9 = vld [vmem:[#allocation2 + $0x60] sm:$0xff]  ;;  %v2983_v30 = vrot.slane %v2982_v52, 4  ;;  %v2993_v63 = vrot.slane %v2992_v10, 4 }
 0x132   : > { %v2197_v60 = vpop.f32.mrf.mxu0 }
 0x133   : > { %v1265_v33 = vpop.f32.mrf.mxu1  ;;  %v2988_v19 = vsel %vm4908_vm10, %v2983_v30, %v2987_v47  ;;  %v2998_v28 = vsel %vm4908_vm10, %v2993_v63, %v2997_v31  ;;  %v4372_v47 = vld [vmem:[#allocation2 + $0x6c] sm:$0xff] }
 0x134   : > { %v1561_v29 = vpop.f32.mrf.mxu2  ;;  %v1302_v20 = vadd.f32 %v1265_v33, %v5219_v51  ;;  %v3030_v42 = vunpack.c.l.b16 %v2988_v19  ;;  %v3031_v26 = vunpack.c.l.b16 %v2998_v28 }
 0x135   : > { %v1601_v55 = vadd.f32 %v1561_v29, %v1300_v22  ;;  %v1787_v5 = vpop.f32.mrf.mxu3  ;;  %v3296_v22 = vsel %vm4938_vm13, %v3294_v13, %v3295_v14 }
 0x136   : > { %v3329_v15 = vunpack.c.l.b16 %v3296_v22  ;;  %v3039_v40 = vpack.c.b16 %v3031_v26, %v3030_v42 }
 0x137   : > { %v1827_v1 = vadd.f32 %v1787_v5, %v1601_v55 }
 0x138   : > { %v3337_v39 = vpack.c.b16 %v3329_v15, %v3328_v4 }
 0x139   : > { %2724 = vmatmul.bf16.gmra.mxu2 %v4371_v9  ;;  %v5418_v56 = vadd.f32 %v2197_v60, %v1827_v1 }
 0x13a   : > { %v2200_v57 = vpop.f32.mrf.mxu0  ;;  %3134 = vmatmul.bf16.gmra.mxu3 %v3038_v32 }
 0x13b   : > { %v1268_v62 = vpop.f32.mrf.mxu1 }
 0x13c   : > { %v1564_v46 = vpop.f32.mrf.mxu2  ;;  %v1303_v54 = vadd.f32 %v1268_v62, %v5226_v2 }
 0x13d   : > { %3432 = vmatmul.bf16.gmra.mxu0 %v3336_v11  ;;  %v1602_v3 = vadd.f32 %v1564_v46, %v1301_v17  ;;  %v1790_v48 = vpop.f32.mrf.mxu3 }
 0x13e   : > { %2502 = vmatmul.bf16.gmra.mxu1 %v2402_v7 }
 0x13f   : > { %v1828_v60 = vadd.f32 %v1790_v48, %v1602_v3 }
 0x141   : > { %v5425_v35 = vadd.f32 %v2200_v57, %v1828_v60 }
 0x142   : > { %v2202_v18 = vpop.f32.mrf.mxu0 }
 0x143   : > { %v1270_v34 = vpop.f32.mrf.mxu1 }
 0x144   : > { %v1566_v29 = vpop.f32.mrf.mxu2  ;;  %v1304_v52 = vadd.f32 %v1270_v34, %v5247_v59 }
 0x145   : > { %v1603_v25 = vadd.f32 %v1566_v29, %v1302_v20  ;;  %v1792_v55 = vpop.f32.mrf.mxu3 }
 0x147   : > { %v1829_v9 = vadd.f32 %v1792_v55, %v1603_v25 }
 0x149   : > { %2729 = vmatmul.bf16.gmra.mxu2 %v4372_v47  ;;  %v5432_v37 = vadd.f32 %v2202_v18, %v1829_v9 }
 0x14a   : > { %v2205_v5 = vpop.f32.mrf.mxu0  ;;  %3139 = vmatmul.bf16.gmra.mxu3 %v3039_v40 }
 0x14b   : > { %v2468_v33 = vpop.f32.mrf.mxu1 }
 0x14c   : > { %v1569_v51 = vpop.f32.mrf.mxu2  ;;  %v2524_v7 = vadd.f32 %v2468_v33, %v5258_v58 }
 0x14d   : > { %3437 = vmatmul.bf16.gmra.mxu0 %v3337_v39  ;;  %v1604_v1 = vadd.f32 %v1569_v51, %v1303_v54  ;;  %v1795_v32 = vpop.f32.mrf.mxu3 }
 0x14f   : > { %v1830_v41 = vadd.f32 %v1795_v32, %v1604_v1 }
 0x151   : > { %v5435_v50 = vadd.f32 %v2205_v5, %v1830_v41 }
 0x152   : > { %v2207_v12 = vpop.f32.mrf.mxu0 }
 0x153   : > { %v2470_v43 = vpop.f32.mrf.mxu1 }
 0x154   : > { %v1571_v10 = vpop.f32.mrf.mxu2  ;;  %v2525_v31 = vadd.f32 %v2470_v43, %v5271_v38 }
 0x155   : > { %v1605_v11 = vadd.f32 %v1571_v10, %v1304_v52  ;;  %v1797_v57 = vpop.f32.mrf.mxu3 }
 0x157   : > { %v1831_v53 = vadd.f32 %v1797_v57, %v1605_v11 }
 0x159   : > { %v5438_v17 = vadd.f32 %v2207_v12, %v1831_v53 }
 0x15a   : > { %v3403_v2 = vpop.f32.mrf.mxu0 }
 0x15b   : > { %v2473_v21 = vpop.f32.mrf.mxu1 }
 0x15c   : > { %v2695_v27 = vpop.f32.mrf.mxu2  ;;  %v2526_v36 = vadd.f32 %v2473_v21, %v5282_v16 }
 0x15d   : > { %v2751_v46 = vadd.f32 %v2695_v27, %v2524_v7  ;;  %v3105_v62 = vpop.f32.mrf.mxu3 }
 0x15f   : > { %v3161_v30 = vadd.f32 %v3105_v62, %v2751_v46 }
 0x161   : > { %v3459_v59 = vadd.f32 %v3403_v2, %v3161_v30 }
 0x162   : > { %v3405_v63 = vpop.f32.mrf.mxu0 }
 0x163   : > { %3568 = vst [vmem:[%s5446_s30] sm:$0xff] %v3459_v59  ;;  %v2475_v58 = vpop.f32.mrf.mxu1  ;;  %v3528_v19 = vmul.f32 %v3459_v59, %v3459_v59 }
 0x164   : > { %v2697_v3 = vpop.f32.mrf.mxu2  ;;  %v2527_v15 = vadd.f32 %v2475_v58, %v5298_v61 }
 0x165   : > { %v2752_v48 = vadd.f32 %v2697_v3, %v2525_v31  ;;  %v3107_v6 = vpop.f32.mrf.mxu3 }
 0x167   : > { %v3162_v13 = vadd.f32 %v3107_v6, %v2752_v48 }
 0x169   : > { %v3460_v14 = vadd.f32 %v3405_v63, %v3162_v13 }
 0x16a   : > { %v3408_v60 = vpop.f32.mrf.mxu0 }
 0x16b   : > { %v3507_v28 = vadd.f32 %v3460_v14, %v3459_v59  ;;  %v3529_v18 = vmul.f32 %v3460_v14, %v3460_v14  ;;  %3569 = vst [vmem:[%s5446_s30 + $0x8] sm:$0xff] %v3460_v14  ;;  %v2478_v20 = vpop.f32.mrf.mxu1 }
 0x16c   : > { %v2700_v22 = vpop.f32.mrf.mxu2  ;;  %v2528_v32 = vadd.f32 %v2478_v20, %v5312_v45 }
 0x16d   : > { %v3544_v42 = vadd.f32 %v3529_v18, %v3528_v19  ;;  %v2753_v26 = vadd.f32 %v2700_v22, %v2526_v36  ;;  %v3110_v29 = vpop.f32.mrf.mxu3 }
 0x16f   : > { %v3163_v38 = vadd.f32 %v3110_v29, %v2753_v26 }
 0x171   : > { %v3461_v34 = vadd.f32 %v3408_v60, %v3163_v38 }
 0x172   : > { %v3410_v25 = vpop.f32.mrf.mxu0 }
 0x173   : > { %v3508_v47 = vadd.f32 %v3507_v28, %v3461_v34  ;;  %v3530_v4 = vmul.f32 %v3461_v34, %v3461_v34  ;;  %3570 = vst [vmem:[%s5446_s30 + $0x10] sm:$0xff] %v3461_v34  ;;  %v2480_v9 = vpop.f32.mrf.mxu1 }
 0x174   : > { %v2702_v55 = vpop.f32.mrf.mxu2  ;;  %v2529_v7 = vadd.f32 %v2480_v9, %v5331_v24 }
 0x175   : > { %v3545_v40 = vadd.f32 %v3544_v42, %v3530_v4  ;;  %v2754_v39 = vadd.f32 %v2702_v55, %v2527_v15  ;;  %v3112_v5 = vpop.f32.mrf.mxu3 }
 0x177   : > { %v3164_v16 = vadd.f32 %v3112_v5, %v2754_v39 }
 0x179   : > { %v3462_v54 = vadd.f32 %v3410_v25, %v3164_v16 }
 0x17a   : > { %v3413_v51 = vpop.f32.mrf.mxu0 }
 0x17b   : > { %v3509_v33 = vadd.f32 %v3508_v47, %v3462_v54  ;;  %v3531_v1 = vmul.f32 %v3462_v54, %v3462_v54  ;;  %3571 = vst [vmem:[%s5446_s30 + $0x18] sm:$0xff] %v3462_v54  ;;  %v2483_v12 = vpop.f32.mrf.mxu1 }
 0x17c   : > { %v2705_v41 = vpop.f32.mrf.mxu2  ;;  %v2530_v58 = vadd.f32 %v2483_v12, %v5345_v8 }
 0x17d   : > { %v3546_v52 = vadd.f32 %v3545_v40, %v3531_v1  ;;  %v2755_v10 = vadd.f32 %v2705_v41, %v2528_v32  ;;  %v3115_v43 = vpop.f32.mrf.mxu3 }
 0x17f   : > { %v3165_v61 = vadd.f32 %v3115_v43, %v2755_v10 }
 0x181   : > { %v3463_v11 = vadd.f32 %v3413_v51, %v3165_v61 }
 0x182   : > { %v3415_v57 = vpop.f32.mrf.mxu0 }
 0x183   : > { %v3510_v53 = vadd.f32 %v3509_v33, %v3463_v11  ;;  %v3532_v2 = vmul.f32 %v3463_v11, %v3463_v11  ;;  %3572 = vst [vmem:[%s5446_s30 + $0x20] sm:$0xff] %v3463_v11  ;;  %v2485_v21 = vpop.f32.mrf.mxu1 }
 0x184   : > { %v2707_v27 = vpop.f32.mrf.mxu2  ;;  %v2531_v22 = vadd.f32 %v2485_v21, %v5369_v44 }
 0x185   : > { %v3547_v46 = vadd.f32 %v3546_v52, %v3532_v2  ;;  %v2756_v62 = vadd.f32 %v2707_v27, %v2529_v7  ;;  %v3117_v30 = vpop.f32.mrf.mxu3 }
 0x187   : > { %v3166_v45 = vadd.f32 %v3117_v30, %v2756_v62 }
 0x189   : > { %v3464_v59 = vadd.f32 %v3415_v57, %v3166_v45 }
 0x18a   : > { %v3418_v63 = vpop.f32.mrf.mxu0 }
 0x18b   : > { %v3511_v31 = vadd.f32 %v3510_v53, %v3464_v59  ;;  %v3533_v3 = vmul.f32 %v3464_v59, %v3464_v59  ;;  %3573 = vst [vmem:[%s5446_s30 + $0x28] sm:$0xff] %v3464_v59  ;;  %v2488_v6 = vpop.f32.mrf.mxu1 }
 0x18c   : > { %v2710_v48 = vpop.f32.mrf.mxu2  ;;  %v2532_v15 = vadd.f32 %v2488_v6, %v5383_v0 }
 0x18d   : > { %v3548_v13 = vadd.f32 %v3547_v46, %v3533_v3  ;;  %v2757_v14 = vadd.f32 %v2710_v48, %v2530_v58  ;;  %v3120_v60 = vpop.f32.mrf.mxu3 }
 0x18f   : > { %v3167_v24 = vadd.f32 %v3120_v60, %v2757_v14 }
 0x191   : > { %v3465_v19 = vadd.f32 %v3418_v63, %v3167_v24 }
 0x192   : > { %v3420_v28 = vpop.f32.mrf.mxu0 }
 0x193   : > { %v3512_v18 = vadd.f32 %v3511_v31, %v3465_v19  ;;  %v3534_v36 = vmul.f32 %v3465_v19, %v3465_v19  ;;  %3574 = vst [vmem:[%s5446_s30 + $0x30] sm:$0xff] %v3465_v19  ;;  %v2490_v42 = vpop.f32.mrf.mxu1 }
 0x194   : > { %v2712_v20 = vpop.f32.mrf.mxu2  ;;  %v2533_v1 = vadd.f32 %v2490_v42, %v5400_v49 }
 0x195   : > { %v3549_v26 = vadd.f32 %v3548_v13, %v3534_v36  ;;  %v2758_v29 = vadd.f32 %v2712_v20, %v2531_v22  ;;  %v3122_v38 = vpop.f32.mrf.mxu3 }
 0x197   : > { %v3168_v8 = vadd.f32 %v3122_v38, %v2758_v29 }
 0x199   : > { %v3466_v34 = vadd.f32 %v3420_v28, %v3168_v8 }
 0x19a   : > { %v3423_v25 = vpop.f32.mrf.mxu0 }
 0x19b   : > { %v3513_v47 = vadd.f32 %v3512_v18, %v3466_v34  ;;  %v3535_v4 = vmul.f32 %v3466_v34, %v3466_v34  ;;  %3575 = vst [vmem:[%s5446_s30 + $0x38] sm:$0xff] %v3466_v34  ;;  %v2493_v5 = vpop.f32.mrf.mxu1 }
 0x19c   : > { %v2715_v55 = vpop.f32.mrf.mxu2  ;;  %v2534_v53 = vadd.f32 %v2493_v5, %v5407_v23 }
 0x19d   : > { %v3550_v9 = vadd.f32 %v3549_v26, %v3535_v4  ;;  %v2759_v40 = vadd.f32 %v2715_v55, %v2532_v15  ;;  %v3125_v39 = vpop.f32.mrf.mxu3 }
 0x19f   : > { %v3169_v44 = vadd.f32 %v3125_v39, %v2759_v40 }
 0x1a1   : > { %v3467_v16 = vadd.f32 %v3423_v25, %v3169_v44 }
 0x1a2   : > { %v3425_v54 = vpop.f32.mrf.mxu0 }
 0x1a3   : > { %v3514_v51 = vadd.f32 %v3513_v47, %v3467_v16  ;;  %v3536_v33 = vmul.f32 %v3467_v16, %v3467_v16  ;;  %3576 = vst [vmem:[%s5446_s30 + $0x40] sm:$0xff] %v3467_v16  ;;  %v2495_v0 = vpop.f32.mrf.mxu1 }
 0x1a4   : > { %v2717_v32 = vpop.f32.mrf.mxu2  ;;  %v2535_v63 = vadd.f32 %v2495_v0, %v5418_v56 }
 0x1a5   : > { %v3551_v41 = vadd.f32 %v3550_v9, %v3536_v33  ;;  %v2760_v12 = vadd.f32 %v2717_v32, %v2533_v1  ;;  %v3127_v52 = vpop.f32.mrf.mxu3 }
 0x1a7   : > { %v3170_v10 = vadd.f32 %v3127_v52, %v2760_v12 }
 0x1a9   : > { %v3468_v43 = vadd.f32 %v3425_v54, %v3170_v10 }
 0x1aa   : > { %v3428_v61 = vpop.f32.mrf.mxu0 }
 0x1ab   : > { %v3515_v11 = vadd.f32 %v3514_v51, %v3468_v43  ;;  %v3537_v57 = vmul.f32 %v3468_v43, %v3468_v43  ;;  %3577 = vst [vmem:[%s5446_s30 + $0x48] sm:$0xff] %v3468_v43  ;;  %v2498_v30 = vpop.f32.mrf.mxu1 }
 0x1ac   : > { %v2720_v2 = vpop.f32.mrf.mxu2  ;;  %v2536_v24 = vadd.f32 %v2498_v30, %v5425_v35 }
 0x1ad   : > { %v3552_v7 = vadd.f32 %v3551_v41, %v3537_v57  ;;  %v2761_v27 = vadd.f32 %v2720_v2, %v2534_v53  ;;  %v3130_v21 = vpop.f32.mrf.mxu3 }
 0x1af   : > { %v3171_v46 = vadd.f32 %v3130_v21, %v2761_v27 }
 0x1b1   : > { %v3469_v49 = vadd.f32 %v3428_v61, %v3171_v46 }
 0x1b2   : > { %v3430_v62 = vpop.f32.mrf.mxu0 }
 0x1b3   : > { %v3516_v45 = vadd.f32 %v3515_v11, %v3469_v49  ;;  %v3538_v59 = vmul.f32 %v3469_v49, %v3469_v49  ;;  %3578 = vst [vmem:[%s5446_s30 + $0x50] sm:$0xff] %v3469_v49  ;;  %v2500_v28 = vpop.f32.mrf.mxu1 }
 0x1b4   : > { %v2722_v31 = vpop.f32.mrf.mxu2  ;;  %v2537_v29 = vadd.f32 %v2500_v28, %v5432_v37 }
 0x1b5   : > { %v3553_v3 = vadd.f32 %v3552_v7, %v3538_v59  ;;  %v2762_v58 = vadd.f32 %v2722_v31, %v2535_v63  ;;  %v3132_v48 = vpop.f32.mrf.mxu3 }
 0x1b7   : > { %v3172_v6 = vadd.f32 %v3132_v48, %v2762_v58 }
 0x1b9   : > { %v3470_v23 = vadd.f32 %v3430_v62, %v3172_v6 }
 0x1ba   : > { %v3433_v13 = vpop.f32.mrf.mxu0 }
 0x1bb   : > { %v3517_v14 = vadd.f32 %v3516_v45, %v3470_v23  ;;  %v3539_v60 = vmul.f32 %v3470_v23, %v3470_v23  ;;  %3579 = vst [vmem:[%s5446_s30 + $0x58] sm:$0xff] %v3470_v23  ;;  %v2503_v4 = vpop.f32.mrf.mxu1 }
 0x1bc   : > { %v2725_v19 = vpop.f32.mrf.mxu2  ;;  %v2538_v40 = vadd.f32 %v2503_v4, %v5435_v50 }
 0x1bd   : > { %v3554_v18 = vadd.f32 %v3553_v3, %v3539_v60  ;;  %v2763_v36 = vadd.f32 %v2725_v19, %v2536_v24  ;;  %v3135_v22 = vpop.f32.mrf.mxu3 }
 0x1bf   : > { %v3173_v20 = vadd.f32 %v3135_v22, %v2763_v36 }
 0x1c1   : > { %v3471_v56 = vadd.f32 %v3433_v13, %v3173_v20 }
 0x1c2   : > { %v3435_v38 = vpop.f32.mrf.mxu0 }
 0x1c3   : > { %v3518_v42 = vadd.f32 %v3517_v14, %v3471_v56  ;;  %v3540_v26 = vmul.f32 %v3471_v56, %v3471_v56  ;;  %3580 = vst [vmem:[%s5446_s30 + $0x60] sm:$0xff] %v3471_v56  ;;  %v2505_v51 = vpop.f32.mrf.mxu1 }
 0x1c4   : > { %v2727_v8 = vpop.f32.mrf.mxu2  ;;  %v2539_v41 = vadd.f32 %v2505_v51, %v5438_v17 }
 0x1c5   : > { %v3555_v34 = vadd.f32 %v3554_v18, %v3540_v26  ;;  %v2764_v25 = vadd.f32 %v2727_v8, %v2537_v29  ;;  %v3137_v47 = vpop.f32.mrf.mxu3 }
 0x1c7   : > { %v3174_v35 = vadd.f32 %v3137_v47, %v2764_v25 }
 0x1c9   : > { %v3472_v15 = vadd.f32 %v3435_v38, %v3174_v35 }
 0x1ca   : > { %v3438_v16 = vpop.f32.mrf.mxu0 }
 0x1cb   : > { %v3519_v55 = vadd.f32 %v3518_v42, %v3472_v15  ;;  %v3541_v9 = vmul.f32 %v3472_v15, %v3472_v15  ;;  %3581 = vst [vmem:[%s5446_s30 + $0x68] sm:$0xff] %v3472_v15 }
 0x1cc   : > { %v2730_v39 = vpop.f32.mrf.mxu2 }
 0x1cd   : > { %v3556_v5 = vadd.f32 %v3555_v34, %v3541_v9  ;;  %v2765_v44 = vadd.f32 %v2730_v39, %v2538_v40  ;;  %v3140_v37 = vpop.f32.mrf.mxu3 }
 0x1cf   : > { %v3175_v54 = vadd.f32 %v3140_v37, %v2765_v44 }
 0x1d1   : > { %v3473_v33 = vadd.f32 %v3438_v16, %v3175_v54 }
 0x1d2   : > { %v3440_v43 = vpop.f32.mrf.mxu0 }
 0x1d3   : > { %v3520_v1 = vadd.f32 %v3519_v55, %v3473_v33  ;;  %v3542_v32 = vmul.f32 %v3473_v33, %v3473_v33  ;;  %3582 = vst [vmem:[%s5446_s30 + $0x70] sm:$0xff] %v3473_v33 }
 0x1d4   : > { %v2732_v12 = vpop.f32.mrf.mxu2 }
 0x1d5   : > { %v3557_v52 = vadd.f32 %v3556_v5, %v3542_v32  ;;  %v2766_v50 = vadd.f32 %v2732_v12, %v2539_v41  ;;  %v3142_v10 = vpop.f32.mrf.mxu3 }
 0x1d7   : > { %v3176_v0 = vadd.f32 %v3142_v10, %v2766_v50 }
 0x1d9   : > { %v3474_v61 = vadd.f32 %v3440_v43, %v3176_v0 }
 0x1db   : > { %v3521_v11 = vadd.f32 %v3520_v1, %v3474_v61  ;;  %v3543_v57 = vmul.f32 %v3474_v61, %v3474_v61  ;;  %3583 = vst [vmem:[%s5446_s30 + $0x78] sm:$0xff] %v3474_v61 }
 0x1dd   : > { %v3522_v53 = vrot.slane %v3521_v11, 4  ;;  %v3558_v2 = vadd.f32 %v3557_v52, %v3543_v57 }
 0x1df   : > { %v3523_v7 = vadd.f32 %v3522_v53, %v3521_v11  ;;  %v3559_v27 = vrot.slane %v3558_v2, 4 }
 0x1e1   : > { %v3524_v21 = vrot.slane %v3523_v7, 2  ;;  %v3560_v17 = vadd.f32 %v3559_v27, %v3558_v2 }
 0x1e3   : > { %v3525_v46 = vadd.f32 %v3524_v21, %v3523_v7  ;;  %v3561_v49 = vrot.slane %v3560_v17, 2 }
 0x1e5   : > { %v3526_v62 = vrot.slane %v3525_v46, 1  ;;  %v3562_v30 = vadd.f32 %v3561_v49, %v3560_v17 }
 0x1e7   : > { %v3563_v45 = vrot.slane %v3562_v30, 1  ;;  %v3527_v59 = vadd.f32 %v3526_v62, %v3525_v46 }
 0x1e9   : > { %v3564_v63 = vadd.f32 %v3563_v45, %v3562_v30 }
 0x1eb   : > { %v3566_v31 = vsel %vm3565_vm14, %v3527_v59, %v3564_v63 }
 0x1ec   : > { %3567 = vst [vmem:[%s350_s12] sm:$0x3] %v3566_v31 }
 0x1ed PF: > { %s17_s2 = sadd.s32 1, %s4512_s2   ;;  %s5517_s21 = smov %s4504_s23 }
 0x1ee   : > { %p14_p11 = scmp.ge.s32.totalorder %s17_s2, 6   ;;  %s5518_s22 = smov %s4508_s24 }
 0x1ef   : > { %s5519_s23 = smov %s5522_s3  ;;  %s5520_s24 = smov %s5526_s25 }
 0x1f0   :  { %16 = sbr.rel (!%p14_p11) target bundleno = 3 (0x3), region = 96 }

</bundles_post_ra>
